<compile_context>
chip_gen: v6e
topology: v6e:2x2x1
jax: 0.10.0
libtpu: 0.0.40
codegen_flags: <defaults>
</compile_context>

<pallas_src>
import functools

import jax
import jax.numpy as jnp
from jax.experimental import pallas as pl
from jax.experimental.pallas import tpu as pltpu

IMG_HEIGHT = 28
IMG_WIDTH = 28
PIXEL_CNT = IMG_HEIGHT * IMG_WIDTH   # 784
FEAT_PAD = 896                       # 7 * 128: lane-aligned hidden width
NUM_CLASSES = 10
OUT_PAD = 128                        # lane-dense padded output width


def _cdiv(a, b):
    return -(-a // b)


def _round_up(x, m):
    return _cdiv(x, m) * m


def _relu_mlp_kernel(x_ref,
                     w1_ref, b1_ref,
                     w2_ref, b2_ref,
                     w3_ref, b3_ref,
                     w4_ref, b4_ref,
                     w5_ref, b5_ref,
                     o_ref):
    h = x_ref[...]                                   # (TB, 896) bf16
    # fc1..fc4: Linear + ReLU. bf16 operands, f32 accumulate, f32 bias/ReLU,
    # then cast back to bf16 so the inter-layer spill traffic is halved.
    for w_ref, b_ref in ((w1_ref, b1_ref), (w2_ref, b2_ref),
                         (w3_ref, b3_ref), (w4_ref, b4_ref)):
        z = jnp.dot(h, w_ref[...], preferred_element_type=jnp.float32)
        h = jnp.maximum(z + b_ref[...], 0.0).astype(jnp.bfloat16)
    # fc5: Linear(896 -> 128-padded), no activation, f32 output.
    out = jnp.dot(h, w5_ref[...], preferred_element_type=jnp.float32)
    out = out + b5_ref[...]
    o_ref[...] = out.astype(o_ref.dtype)             # (TB, 128) lane-dense store


def pack_params(params):
    """One-time packing of PyTorch-convention params into kernel layout.

    W: (out, in) f32 -> zero-padded (FEAT_PAD_in, out_pad) bf16 (transposed)
    b: (out,) f32    -> zero-padded (1, out_pad) f32
    Padding with zeros is exact: padded hidden columns stay 0 through
    bias-add and ReLU, and padded K rows of the next layer are 0.
    """
    packed = []
    for name in ("fc1", "fc2", "fc3", "fc4"):
        W, b = params[name]
        Wt = jnp.asarray(W, jnp.float32).T                       # (784, 784)
        Wt = jnp.pad(Wt, ((0, FEAT_PAD - PIXEL_CNT),
                          (0, FEAT_PAD - PIXEL_CNT)))            # (896, 896)
        bp = jnp.pad(jnp.asarray(b, jnp.float32),
                     (0, FEAT_PAD - PIXEL_CNT))[None, :]         # (1, 896)
        packed.append(Wt.astype(jnp.bfloat16))
        packed.append(bp)
    W5, b5 = params["fc5"]
    W5t = jnp.asarray(W5, jnp.float32).T                         # (784, 10)
    W5t = jnp.pad(W5t, ((0, FEAT_PAD - PIXEL_CNT),
                        (0, OUT_PAD - NUM_CLASSES)))             # (896, 128)
    b5p = jnp.pad(jnp.asarray(b5, jnp.float32),
                  (0, OUT_PAD - NUM_CLASSES))[None, :]           # (1, 128)
    packed.append(W5t.astype(jnp.bfloat16))
    packed.append(b5p)
    return tuple(packed)


@functools.partial(jax.jit, static_argnames=("block_b",))
def relu_mlp_forward(x_nchw, packed, *, block_b=512):
    """x_nchw: (B, 1, 28, 28) float32. packed: output of pack_params()."""
    x = x_nchw.reshape(-1, PIXEL_CNT)                # torch x.view(-1, 784)
    B_flat = x.shape[0]

    # Batch tiling:
    #  - at least 2 grid steps when the batch is big enough (feeds both v7x
    #    TensorCores; each tile still has >=128 rows for the MXU),
    #  - distribute rows across steps so zero-row padding stays < 16 per tile,
    #  - tb multiple of 16 (bf16 sublane packing).
    n_steps = max(1, _cdiv(B_flat, block_b))
    if n_steps == 1 and B_flat >= 256:
        n_steps = 2
    tb = _round_up(_cdiv(B_flat, n_steps), 16)
    B_pad = tb * n_steps

    # Lane-align features (784 -> 896), pad batch, stream as bf16.
    x = jnp.pad(x.astype(jnp.float32),
                ((0, B_pad - B_flat), (0, FEAT_PAD - PIXEL_CNT)))
    x = x.astype(jnp.bfloat16)

    grid = (n_steps,)

    # x / out blocks move along the batch axis; weights & biases use a
    # constant index_map and single buffering -> DMA'd into VMEM once and
    # kept resident across all grid steps.
    x_spec = pl.BlockSpec((tb, FEAT_PAD), lambda i: (i, 0))
    const_spec = lambda a: pl.BlockSpec(a.shape, lambda i: (0, 0),
                                        pipeline_mode=pl.Buffered(1))
    in_specs = [x_spec] + [const_spec(a) for a in packed]
    out_spec = pl.BlockSpec((tb, OUT_PAD), lambda i: (i, 0))

    weight_bytes = sum(int(a.size) * a.dtype.itemsize for a in packed)
    cost = pl.CostEstimate(
        flops=2 * B_pad * FEAT_PAD * (4 * FEAT_PAD + OUT_PAD),
        transcendentals=0,
        bytes_accessed=weight_bytes + B_pad * FEAT_PAD * 2 + B_pad * OUT_PAD * 4,
    )

    out_padded = pl.pallas_call(
        _relu_mlp_kernel,
        out_shape=jax.ShapeDtypeStruct((B_pad, OUT_PAD), jnp.float32),
        grid=grid,
        in_specs=in_specs,
        out_specs=out_spec,
        compiler_params=pltpu.CompilerParams(
            dimension_semantics=("parallel",),
            vmem_limit_bytes=32 << 20,
        ),
        cost_estimate=cost,
    )(x, *packed)

    return out_padded[:B_flat, :NUM_CLASSES]


def init_params(key):
    """Deterministic synthetic init mirroring nn.Linear shapes (PyTorch conv.)."""
    sizes = [(PIXEL_CNT, PIXEL_CNT)] * 4 + [(NUM_CLASSES, PIXEL_CNT)]
    names = ("fc1", "fc2", "fc3", "fc4", "fc5")
    params = {}
    for name, (out_f, in_f) in zip(names, sizes):
        key, kw, kb = jax.random.split(key, 3)
        bound = 1.0 / jnp.sqrt(in_f)
        W = jax.random.uniform(kw, (out_f, in_f), jnp.float32, -bound, bound)
        b = jax.random.uniform(kb, (out_f,), jnp.float32, -bound, bound)
        params[name] = (W, b)
    return params


def reference_forward(x_nchw, params):
    x = x_nchw.reshape(-1, PIXEL_CNT)
    for name in ("fc1", "fc2", "fc3", "fc4"):
        W, b = params[name]
        x = jnp.maximum(x @ W.T + b, 0.0)
    W, b = params["fc5"]
    return x @ W.T + b


if __name__ == "__main__":
    key = jax.random.PRNGKey(0)
    key, kx = jax.random.split(key)
    batch = 2
    x = jax.random.normal(kx, (batch, 1, IMG_HEIGHT, IMG_WIDTH), jnp.float32)

    params = init_params(key)
    packed = pack_params(params)   # one-time packing, reused across calls

    out = relu_mlp_forward(x, packed)
    out = jax.block_until_ready(out)

    ref = reference_forward(x, params)
    assert out.shape == (batch, NUM_CLASSES), out.shape
    # bf16 weights + bf16 streamed activations -> max-normalized relative tol.
    rel_err = jnp.max(jnp.abs(out - ref)) / jnp.maximum(jnp.max(jnp.abs(ref)), 1e-6)
    assert rel_err < 5e-2, f"relative error too large: {rel_err}"

    print("KERNEL_OK")
</pallas_src>

<mosaic_0001>
module attributes {stable_mosaic.version = 11 : i64} {
  func.func @_relu_mlp_kernel(%arg0: i32, %arg1: memref<16x896xbf16, #tpu.memory_space<vmem>>, %arg2: memref<896x896xbf16, #tpu.memory_space<vmem>>, %arg3: memref<1x896xf32, #tpu.memory_space<vmem>>, %arg4: memref<896x896xbf16, #tpu.memory_space<vmem>>, %arg5: memref<1x896xf32, #tpu.memory_space<vmem>>, %arg6: memref<896x896xbf16, #tpu.memory_space<vmem>>, %arg7: memref<1x896xf32, #tpu.memory_space<vmem>>, %arg8: memref<896x896xbf16, #tpu.memory_space<vmem>>, %arg9: memref<1x896xf32, #tpu.memory_space<vmem>>, %arg10: memref<896x128xbf16, #tpu.memory_space<vmem>>, %arg11: memref<1x128xf32, #tpu.memory_space<vmem>>, %arg12: memref<16x128xf32, #tpu.memory_space<vmem>>) attributes {dimension_semantics = [#tpu.dimension_semantics<parallel>], iteration_bounds = array<i64: 1>, scalar_prefetch = 0 : i64, scratch_operands = 0 : i64, tpu.core_type = #tpu.core_type<tc>, window_params = [{transform_indices = @transform_0, window_bounds = array<i64: 16, 896>}, {pipeline_mode = #tpu.pipeline_mode<synchronous>, transform_indices = @transform_1, window_bounds = array<i64: 896, 896>}, {pipeline_mode = #tpu.pipeline_mode<synchronous>, transform_indices = @transform_2, window_bounds = array<i64: 1, 896>}, {pipeline_mode = #tpu.pipeline_mode<synchronous>, transform_indices = @transform_3, window_bounds = array<i64: 896, 896>}, {pipeline_mode = #tpu.pipeline_mode<synchronous>, transform_indices = @transform_4, window_bounds = array<i64: 1, 896>}, {pipeline_mode = #tpu.pipeline_mode<synchronous>, transform_indices = @transform_5, window_bounds = array<i64: 896, 896>}, {pipeline_mode = #tpu.pipeline_mode<synchronous>, transform_indices = @transform_6, window_bounds = array<i64: 1, 896>}, {pipeline_mode = #tpu.pipeline_mode<synchronous>, transform_indices = @transform_7, window_bounds = array<i64: 896, 896>}, {pipeline_mode = #tpu.pipeline_mode<synchronous>, transform_indices = @transform_8, window_bounds = array<i64: 1, 896>}, {pipeline_mode = #tpu.pipeline_mode<synchronous>, transform_indices = @transform_9, window_bounds = array<i64: 896, 128>}, {pipeline_mode = #tpu.pipeline_mode<synchronous>, transform_indices = @transform_10, window_bounds = array<i64: 1, 128>}, {transform_indices = @transform_11, window_bounds = array<i64: 16, 128>}]} {
    %c0 = arith.constant 0 : index
    %c0_0 = arith.constant 0 : index
    %0 = vector.load %arg1[%c0, %c0_0] : memref<16x896xbf16, #tpu.memory_space<vmem>>, vector<16x896xbf16>
    %c0_1 = arith.constant 0 : index
    %c0_2 = arith.constant 0 : index
    %1 = vector.load %arg2[%c0_1, %c0_2] : memref<896x896xbf16, #tpu.memory_space<vmem>>, vector<896x896xbf16>
    %cst = arith.constant dense<0.000000e+00> : vector<16x896xf32>
    %2 = tpu.matmul %0, %1, %cst {dimension_numbers = #tpu.dot_dimension_numbers<[1], [0], [0], [1], [0, 0, 1, 1], [], []>} : vector<16x896xbf16>, vector<896x896xbf16>, vector<16x896xf32> -> vector<16x896xf32>
    %c0_3 = arith.constant 0 : index
    %c0_4 = arith.constant 0 : index
    %3 = vector.load %arg3[%c0_3, %c0_4] : memref<1x896xf32, #tpu.memory_space<vmem>>, vector<1x896xf32>
    %4 = vector.broadcast %3 : vector<1x896xf32> to vector<16x896xf32>
    %5 = arith.addf %2, %4 : vector<16x896xf32>
    %cst_5 = arith.constant 0.000000e+00 : f32
    %6 = vector.broadcast %cst_5 : f32 to vector<16x896xf32>
    %7 = arith.maximumf %5, %6 : vector<16x896xf32>
    %8 = arith.truncf %7 : vector<16x896xf32> to vector<16x896xbf16>
    %c0_6 = arith.constant 0 : index
    %c0_7 = arith.constant 0 : index
    %9 = vector.load %arg4[%c0_6, %c0_7] : memref<896x896xbf16, #tpu.memory_space<vmem>>, vector<896x896xbf16>
    %cst_8 = arith.constant dense<0.000000e+00> : vector<16x896xf32>
    %10 = tpu.matmul %8, %9, %cst_8 {dimension_numbers = #tpu.dot_dimension_numbers<[1], [0], [0], [1], [0, 0, 1, 1], [], []>} : vector<16x896xbf16>, vector<896x896xbf16>, vector<16x896xf32> -> vector<16x896xf32>
    %c0_9 = arith.constant 0 : index
    %c0_10 = arith.constant 0 : index
    %11 = vector.load %arg5[%c0_9, %c0_10] : memref<1x896xf32, #tpu.memory_space<vmem>>, vector<1x896xf32>
    %12 = vector.broadcast %11 : vector<1x896xf32> to vector<16x896xf32>
    %13 = arith.addf %10, %12 : vector<16x896xf32>
    %cst_11 = arith.constant 0.000000e+00 : f32
    %14 = vector.broadcast %cst_11 : f32 to vector<16x896xf32>
    %15 = arith.maximumf %13, %14 : vector<16x896xf32>
    %16 = arith.truncf %15 : vector<16x896xf32> to vector<16x896xbf16>
    %c0_12 = arith.constant 0 : index
    %c0_13 = arith.constant 0 : index
    %17 = vector.load %arg6[%c0_12, %c0_13] : memref<896x896xbf16, #tpu.memory_space<vmem>>, vector<896x896xbf16>
    %cst_14 = arith.constant dense<0.000000e+00> : vector<16x896xf32>
    %18 = tpu.matmul %16, %17, %cst_14 {dimension_numbers = #tpu.dot_dimension_numbers<[1], [0], [0], [1], [0, 0, 1, 1], [], []>} : vector<16x896xbf16>, vector<896x896xbf16>, vector<16x896xf32> -> vector<16x896xf32>
    %c0_15 = arith.constant 0 : index
    %c0_16 = arith.constant 0 : index
    %19 = vector.load %arg7[%c0_15, %c0_16] : memref<1x896xf32, #tpu.memory_space<vmem>>, vector<1x896xf32>
    %20 = vector.broadcast %19 : vector<1x896xf32> to vector<16x896xf32>
    %21 = arith.addf %18, %20 : vector<16x896xf32>
    %cst_17 = arith.constant 0.000000e+00 : f32
    %22 = vector.broadcast %cst_17 : f32 to vector<16x896xf32>
    %23 = arith.maximumf %21, %22 : vector<16x896xf32>
    %24 = arith.truncf %23 : vector<16x896xf32> to vector<16x896xbf16>
    %c0_18 = arith.constant 0 : index
    %c0_19 = arith.constant 0 : index
    %25 = vector.load %arg8[%c0_18, %c0_19] : memref<896x896xbf16, #tpu.memory_space<vmem>>, vector<896x896xbf16>
    %cst_20 = arith.constant dense<0.000000e+00> : vector<16x896xf32>
    %26 = tpu.matmul %24, %25, %cst_20 {dimension_numbers = #tpu.dot_dimension_numbers<[1], [0], [0], [1], [0, 0, 1, 1], [], []>} : vector<16x896xbf16>, vector<896x896xbf16>, vector<16x896xf32> -> vector<16x896xf32>
    %c0_21 = arith.constant 0 : index
    %c0_22 = arith.constant 0 : index
    %27 = vector.load %arg9[%c0_21, %c0_22] : memref<1x896xf32, #tpu.memory_space<vmem>>, vector<1x896xf32>
    %28 = vector.broadcast %27 : vector<1x896xf32> to vector<16x896xf32>
    %29 = arith.addf %26, %28 : vector<16x896xf32>
    %cst_23 = arith.constant 0.000000e+00 : f32
    %30 = vector.broadcast %cst_23 : f32 to vector<16x896xf32>
    %31 = arith.maximumf %29, %30 : vector<16x896xf32>
    %32 = arith.truncf %31 : vector<16x896xf32> to vector<16x896xbf16>
    %c0_24 = arith.constant 0 : index
    %c0_25 = arith.constant 0 : index
    %33 = vector.load %arg10[%c0_24, %c0_25] : memref<896x128xbf16, #tpu.memory_space<vmem>>, vector<896x128xbf16>
    %cst_26 = arith.constant dense<0.000000e+00> : vector<16x128xf32>
    %34 = tpu.matmul %32, %33, %cst_26 {dimension_numbers = #tpu.dot_dimension_numbers<[1], [0], [0], [1], [0, 0, 1, 1], [], []>} : vector<16x896xbf16>, vector<896x128xbf16>, vector<16x128xf32> -> vector<16x128xf32>
    %c0_27 = arith.constant 0 : index
    %c0_28 = arith.constant 0 : index
    %35 = vector.load %arg11[%c0_27, %c0_28] : memref<1x128xf32, #tpu.memory_space<vmem>>, vector<1x128xf32>
    %36 = vector.broadcast %35 : vector<1x128xf32> to vector<16x128xf32>
    %37 = arith.addf %34, %36 : vector<16x128xf32>
    %c0_29 = arith.constant 0 : index
    %c0_30 = arith.constant 0 : index
    %38 = vector.load %arg12[%c0_29, %c0_30] : memref<16x128xf32, #tpu.memory_space<vmem>>, vector<16x128xf32>
    tpu.vector_store %arg12[%c0_29, %c0_30], %37 {strides = array<i32>} : memref<16x128xf32, #tpu.memory_space<vmem>>, vector<16x128xf32>,
    return
  }
  func.func @transform_0(%arg0: i32) -> (i32, i32) {
    %c0_i32 = arith.constant 0 : i32
    %c0_i32_0 = arith.constant 0 : i32
    return %arg0, %c0_i32 : i32, i32
  }
  func.func @transform_1(%arg0: i32) -> (i32, i32) {
    %c0_i32 = arith.constant 0 : i32
    %c0_i32_0 = arith.constant 0 : i32
    %c0_i32_1 = arith.constant 0 : i32
    return %c0_i32, %c0_i32_0 : i32, i32
  }
  func.func @transform_2(%arg0: i32) -> (i32, i32) {
    %c0_i32 = arith.constant 0 : i32
    %c0_i32_0 = arith.constant 0 : i32
    %c0_i32_1 = arith.constant 0 : i32
    return %c0_i32, %c0_i32_0 : i32, i32
  }
  func.func @transform_3(%arg0: i32) -> (i32, i32) {
    %c0_i32 = arith.constant 0 : i32
    %c0_i32_0 = arith.constant 0 : i32
    %c0_i32_1 = arith.constant 0 : i32
    return %c0_i32, %c0_i32_0 : i32, i32
  }
  func.func @transform_4(%arg0: i32) -> (i32, i32) {
    %c0_i32 = arith.constant 0 : i32
    %c0_i32_0 = arith.constant 0 : i32
    %c0_i32_1 = arith.constant 0 : i32
    return %c0_i32, %c0_i32_0 : i32, i32
  }
  func.func @transform_5(%arg0: i32) -> (i32, i32) {
    %c0_i32 = arith.constant 0 : i32
    %c0_i32_0 = arith.constant 0 : i32
    %c0_i32_1 = arith.constant 0 : i32
    return %c0_i32, %c0_i32_0 : i32, i32
  }
  func.func @transform_6(%arg0: i32) -> (i32, i32) {
    %c0_i32 = arith.constant 0 : i32
    %c0_i32_0 = arith.constant 0 : i32
    %c0_i32_1 = arith.constant 0 : i32
    return %c0_i32, %c0_i32_0 : i32, i32
  }
  func.func @transform_7(%arg0: i32) -> (i32, i32) {
    %c0_i32 = arith.constant 0 : i32
    %c0_i32_0 = arith.constant 0 : i32
    %c0_i32_1 = arith.constant 0 : i32
    return %c0_i32, %c0_i32_0 : i32, i32
  }
  func.func @transform_8(%arg0: i32) -> (i32, i32) {
    %c0_i32 = arith.constant 0 : i32
    %c0_i32_0 = arith.constant 0 : i32
    %c0_i32_1 = arith.constant 0 : i32
    return %c0_i32, %c0_i32_0 : i32, i32
  }
  func.func @transform_9(%arg0: i32) -> (i32, i32) {
    %c0_i32 = arith.constant 0 : i32
    %c0_i32_0 = arith.constant 0 : i32
    %c0_i32_1 = arith.constant 0 : i32
    return %c0_i32, %c0_i32_0 : i32, i32
  }
  func.func @transform_10(%arg0: i32) -> (i32, i32) {
    %c0_i32 = arith.constant 0 : i32
    %c0_i32_0 = arith.constant 0 : i32
    %c0_i32_1 = arith.constant 0 : i32
    return %c0_i32, %c0_i32_0 : i32, i32
  }
  func.func @transform_11(%arg0: i32) -> (i32, i32) {
    %c0_i32 = arith.constant 0 : i32
    %c0_i32_0 = arith.constant 0 : i32
    return %arg0, %c0_i32 : i32, i32
  }
}

</mosaic_0001>

<bundles_post_ra>
// kernel: relu_mlp_forward.1
= control target key start
LH: loop header
LB: loop body
LE: loop exit
PB: predicated region body
PF: predicated region fallthrough
CT: control target
= control target key end

     0   :  { %16 = vsyncpa [#allocation3], 0  ;;  %s18996_s0 = inlined_call_operand.vmem [shape: bf16[16,896], index: 0, kind: input, shape index: {}]   ;;  %s18997_s1 = inlined_call_operand.hbm [shape: bf16[896,896], index: 1, kind: input, shape index: {}]   ;;  %s18998_s2 = inlined_call_operand.hbm [shape: f32[1,896], index: 2, kind: input, shape index: {}]   ;;  %s18999_s3 = inlined_call_operand.hbm [shape: bf16[896,896], index: 3, kind: input, shape index: {}]   ;;  %s19000_s4 = inlined_call_operand.hbm [shape: f32[1,896], index: 4, kind: input, shape index: {}]   ;;  %s19001_s5 = inlined_call_operand.hbm [shape: bf16[896,896], index: 5, kind: input, shape index: {}]   ;;  %s19002_s6 = inlined_call_operand.hbm [shape: f32[1,896], index: 6, kind: input, shape index: {}]   ;;  %s19003_s7 = inlined_call_operand.hbm [shape: bf16[896,896], index: 7, kind: input, shape index: {}]   ;;  %s19004_s8 = inlined_call_operand.hbm [shape: f32[1,896], index: 8, kind: input, shape index: {}]   ;;  %s19005_s9 = inlined_call_operand.hbm [shape: bf16[896,128], index: 9, kind: input, shape index: {}]   ;;  %s19006_s10 = inlined_call_operand.hbm [shape: f32[1,128], index: 10, kind: input, shape index: {}]   ;;  %s19007_s11 = inlined_call_operand.vmem [shape: f32[16,128], index: 11, kind: output, shape index: {}]  }
   0x1   :  { %17 = vsyncpa [#allocation5], 0 }
   0x2   :  { %18 = vsyncpa [#allocation8], 0 }
   0x3   :  { %19 = vsyncpa [#allocation11], 0 }
   0x4   :  { %20 = vsyncpa [#allocation14], 0 }
   0x5   :  { %21 = vsyncpa [#allocation17], 0  ;;  %s18303_s17 = smov [#allocation4]   ;;  %s18304_s19 = smov [#allocation7]  }
   0x6   :  { %s42_s18 = sshll.u32 %s18303_s17, 4  ;;  %s64_s20 = sshll.u32 %s18304_s19, 4  ;;  %s43_s18 = int_to_ptr.vmem [resolvable:$true] %s42_s18  ;;  %s65_s20 = int_to_ptr.vmem [resolvable:$true] %s64_s20 }
   0x7   :  { %s18099_s21 = scalar_lea.vmem %s43_s18, 112  ;;  %s18103_s22 = scalar_lea.vmem %s43_s18, 128 }
   0x8   :  { %p18100_p0 = scmp.ne.s32.totalorder %s43_s18, %s18099_s21  ;;  %p18104_p1 = scmp.lt.s32.totalorder %s43_s18, %s43_s18 }
   0x9   :  { %p18105_p2 = scmp.lt.s32.totalorder %s18103_s22, %s18099_s21 }
   0xb   :  { %p18106_p3 = por %p18105_p2, %p18104_p1 }
   0xd   :  { %p18107_p4 = pnand %p18106_p3, %p18100_p0 }
   0xf   :  { %18110 = shalt.err (!%p18107_p4)
}
  0x10   :  { %45 = dma.hbm_to_vmem [thread:$0]  %s18998_s2, 112, %s43_s18, [#allocation5]  }
  0x11   :  { %s18119_s25 = scalar_lea.vmem %s65_s20, 112  ;;  %s18123_s26 = scalar_lea.vmem %s65_s20, 128 }
  0x12   :  { %p18120_p5 = scmp.ne.s32.totalorder %s65_s20, %s18119_s25  ;;  %p18124_p6 = scmp.lt.s32.totalorder %s65_s20, %s65_s20 }
  0x13   :  { %p18125_p7 = scmp.lt.s32.totalorder %s18123_s26, %s18119_s25 }
  0x15   :  { %p18126_p8 = por %p18125_p7, %p18124_p6 }
  0x17   :  { %p18127_p9 = pnand %p18126_p8, %p18120_p5 }
  0x19   :  { %18130 = shalt.err (!%p18127_p9)
}
  0x1a   :  { %67 = dma.hbm_to_vmem [thread:$0]  %s19000_s4, 112, %s65_s20, [#allocation8]  }
  0x1b   :  { %s18305_s29 = smov [#allocation10]   ;;  %s18306_s12 = smov [#allocation13]  }
  0x1c   :  { %s86_s30 = sshll.u32 %s18305_s29, 4  ;;  %s108_s13 = sshll.u32 %s18306_s12, 4  ;;  %s87_s30 = int_to_ptr.vmem [resolvable:$true] %s86_s30  ;;  %s109_s13 = int_to_ptr.vmem [resolvable:$true] %s108_s13 }
  0x1d   :  { %s18139_s14 = scalar_lea.vmem %s87_s30, 112  ;;  %s18143_s2 = scalar_lea.vmem %s87_s30, 128 }
  0x1e   :  { %p18140_p10 = scmp.ne.s32.totalorder %s87_s30, %s18139_s14  ;;  %p18144_p11 = scmp.lt.s32.totalorder %s87_s30, %s87_s30 }
  0x1f   :  { %p18145_p12 = scmp.lt.s32.totalorder %s18143_s2, %s18139_s14 }
  0x21   :  { %p18146_p13 = por %p18145_p12, %p18144_p11 }
  0x23   :  { %p18147_p0 = pnand %p18146_p13, %p18140_p10 }
  0x25   :  { %18150 = shalt.err (!%p18147_p0)
}
  0x26   :  { %89 = dma.hbm_to_vmem [thread:$0]  %s19002_s6, 112, %s87_s30, [#allocation11]  }
  0x27   :  { %s18159_s17 = scalar_lea.vmem %s109_s13, 112  ;;  %s18163_s4 = scalar_lea.vmem %s109_s13, 128 }
  0x28   :  { %p18160_p1 = scmp.ne.s32.totalorder %s109_s13, %s18159_s17  ;;  %p18164_p2 = scmp.lt.s32.totalorder %s109_s13, %s109_s13 }
  0x29   :  { %p18165_p3 = scmp.lt.s32.totalorder %s18163_s4, %s18159_s17 }
  0x2b   :  { %p18166_p4 = por %p18165_p3, %p18164_p2 }
  0x2d   :  { %p18167_p5 = pnand %p18166_p4, %p18160_p1 }
  0x2f   :  { %18170 = shalt.err (!%p18167_p5)
}
  0x30   :  { %111 = dma.hbm_to_vmem [thread:$0]  %s19004_s8, 112, %s109_s13, [#allocation14]  }
  0x31   :  { %s18307_s20 = smov [#allocation2]  }
  0x32   :  { %s29_s21 = sshll.u32 %s18307_s20, 4  ;;  %s30_s21 = int_to_ptr.vmem [resolvable:$true] %s29_s21 }
  0x33   :  { %s18179_s22 = scalar_lea.vmem %s30_s21, 50176  ;;  %p18184_p7 = scmp.lt.s32.totalorder %s30_s21, %s30_s21 }
  0x34   :  { %p18180_p6 = scmp.ne.s32.totalorder %s30_s21, %s18179_s22  ;;  %p18185_p8 = scmp.lt.s32.totalorder %s18179_s22, %s18179_s22 }
  0x36   :  { %p18186_p9 = por %p18185_p8, %p18184_p7 }
  0x38   :  { %p18187_p10 = pnand %p18186_p9, %p18180_p6 }
  0x3a   :  { %18190 = shalt.err (!%p18187_p10)
}
  0x3b   :  { %s18308_s6 = smov 448   ;;  %s18309_s23 = smov 28  }
  0x3c   :  { %35 = dma.hbm_to_vmem [thread:$0]  %s18997_s1, 50176, %s30_s21, [#allocation3], %s18308_s6, %s18308_s6, %s18309_s23  }
  0x3d   :  { %s18310_s8 = smov [#allocation6]   ;;  %s18311_s27 = smov [#allocation9]  }
  0x3e   :  { %s51_s26 = sshll.u32 %s18310_s8, 4  ;;  %s73_s28 = sshll.u32 %s18311_s27, 4  ;;  %s52_s26 = int_to_ptr.vmem [resolvable:$true] %s51_s26  ;;  %s74_s28 = int_to_ptr.vmem [resolvable:$true] %s73_s28 }
  0x3f   :  { %s18199_s29 = scalar_lea.vmem %s52_s26, 50176  ;;  %p18204_p12 = scmp.lt.s32.totalorder %s52_s26, %s52_s26 }
  0x40   :  { %p18200_p11 = scmp.ne.s32.totalorder %s52_s26, %s18199_s29  ;;  %p18205_p13 = scmp.lt.s32.totalorder %s18199_s29, %s18199_s29 }
  0x42   :  { %p18206_p0 = por %p18205_p13, %p18204_p12 }
  0x44   :  { %p18207_p1 = pnand %p18206_p0, %p18200_p11 }
  0x46   :  { %18210 = shalt.err (!%p18207_p1)
}
  0x47   :  { %57 = dma.hbm_to_vmem [thread:$0]  %s18999_s3, 50176, %s52_s26, [#allocation5], %s18308_s6, %s18308_s6, %s18309_s23  }
  0x48   :  { %s18219_s1 = scalar_lea.vmem %s74_s28, 50176  ;;  %p18224_p3 = scmp.lt.s32.totalorder %s74_s28, %s74_s28 }
  0x49   :  { %p18220_p2 = scmp.ne.s32.totalorder %s74_s28, %s18219_s1  ;;  %p18225_p4 = scmp.lt.s32.totalorder %s18219_s1, %s18219_s1 }
  0x4b   :  { %p18226_p5 = por %p18225_p4, %p18224_p3 }
  0x4d   :  { %p18227_p6 = pnand %p18226_p5, %p18220_p2 }
  0x4f   :  { %18230 = shalt.err (!%p18227_p6)
}
  0x50   :  { %79 = dma.hbm_to_vmem [thread:$0]  %s19001_s5, 50176, %s74_s28, [#allocation8], %s18308_s6, %s18308_s6, %s18309_s23  }
  0x51   :  { %s18312_s2 = smov [#allocation12]   ;;  %s18313_s16 = smov [#allocation15]  }
  0x52   :  { %s95_s15 = sshll.u32 %s18312_s2, 4  ;;  %s117_s3 = sshll.u32 %s18313_s16, 4  ;;  %s96_s15 = int_to_ptr.vmem [resolvable:$true] %s95_s15  ;;  %s118_s3 = int_to_ptr.vmem [resolvable:$true] %s117_s3 }
  0x53   :  { %s18239_s17 = scalar_lea.vmem %s96_s15, 50176  ;;  %p18244_p8 = scmp.lt.s32.totalorder %s96_s15, %s96_s15 }
  0x54   :  { %p18240_p7 = scmp.ne.s32.totalorder %s96_s15, %s18239_s17  ;;  %p18245_p9 = scmp.lt.s32.totalorder %s18239_s17, %s18239_s17 }
  0x56   :  { %p18246_p10 = por %p18245_p9, %p18244_p8 }
  0x58   :  { %p18247_p11 = pnand %p18246_p10, %p18240_p7 }
  0x5a   :  { %18250 = shalt.err (!%p18247_p11)
}
  0x5b   :  { %101 = dma.hbm_to_vmem [thread:$0]  %s19003_s7, 50176, %s96_s15, [#allocation11], %s18308_s6, %s18308_s6, %s18309_s23  }
  0x5c   :  { %s18259_s5 = scalar_lea.vmem %s118_s3, 7168  ;;  %p18264_p13 = scmp.lt.s32.totalorder %s118_s3, %s118_s3 }
  0x5d   :  { %p18260_p12 = scmp.ne.s32.totalorder %s118_s3, %s18259_s5  ;;  %p18265_p0 = scmp.lt.s32.totalorder %s18259_s5, %s18259_s5 }
  0x5f   :  { %p18266_p1 = por %p18265_p0, %p18264_p13 }
  0x61   :  { %p18267_p2 = pnand %p18266_p1, %p18260_p12 }
  0x63   :  { %18270 = shalt.err (!%p18267_p2)
}
  0x64   :  { %s18314_s19 = smov 64   ;;  %s18315_s20 = smov 4  }
  0x65   :  { %123 = dma.hbm_to_vmem [thread:$0]  %s19005_s9, 7168, %s118_s3, [#allocation14], %s18314_s19, %s18314_s19, %s18315_s20  }
  0x66   :  { %s18316_s24 = smov [#allocation16]  }
  0x67   :  { %s130_s25 = sshll.u32 %s18316_s24, 4  ;;  %s131_s25 = int_to_ptr.vmem [resolvable:$true] %s130_s25 }
  0x68   :  { %s18279_s8 = scalar_lea.vmem %s131_s25, 16  ;;  %s18283_s7 = scalar_lea.vmem %s131_s25, 32 }
  0x69   :  { %p18280_p3 = scmp.ne.s32.totalorder %s131_s25, %s18279_s8  ;;  %p18284_p4 = scmp.lt.s32.totalorder %s131_s25, %s131_s25 }
  0x6a   :  { %p18285_p5 = scmp.lt.s32.totalorder %s18283_s7, %s18279_s8 }
  0x6c   :  { %p18286_p6 = por %p18285_p5, %p18284_p4 }
  0x6e   :  { %p18287_p7 = pnand %p18286_p6, %p18280_p3 }
  0x70   :  { %18290 = shalt.err (!%p18287_p7)
}
  0x71   :  { %133 = dma.hbm_to_vmem [thread:$0]  %s19006_s10, 16, %s131_s25, [#allocation17]  }
  0x72   :  { %18291 = dma.done.wait [#allocation3], 50176  }
  0x73   :  { %18292 = vsyncadd [#allocation3], 4294917120 }
  0x74   :  { %18293 = dma.done.wait [#allocation5], 50288  }
  0x75   :  { %18294 = vsyncadd [#allocation5], 4294917008 }
  0x76   :  { %18295 = dma.done.wait [#allocation8], 50288  }
  0x77   :  { %18296 = vsyncadd [#allocation8], 4294917008 }
  0x78   :  { %18297 = dma.done.wait [#allocation11], 50288  }
  0x79   :  { %18298 = vsyncadd [#allocation11], 4294917008 }
  0x7a   :  { %18299 = dma.done.wait [#allocation14], 7280  }
  0x7b   :  { %18300 = vsyncadd [#allocation14], 4294960016 }
  0x7c   :  { %18301 = dma.done.wait [#allocation17], 16  }
  0x7d   :  { %18302 = vsyncadd [#allocation17], 4294967280  ;;  %v15772_v0 = vld [vmem:[#allocation2 + $0x18c] ss:$28 sps:$4 sm:$0xff]   ;;  %v15778_v4 = vld [vmem:[#allocation2 + $0x154] ss:$28 sps:$4 sm:$0xff]  }
  0x7e   :  { %v15774_v1 = vld [vmem:[#allocation2 + $0x50c] ss:$28 sps:$4 sm:$0xff]   ;;  %2710 = vmatprep.subr.bf16.mxu0 %v15772_v0  ;;  %v15780_v5 = vld [vmem:[#allocation2 + $0x4d4] ss:$28 sps:$4 sm:$0xff]   ;;  %v15784_v8 = vld [vmem:[#allocation2 + $0x11c] ss:$28 sps:$4 sm:$0xff]  }
  0x7f   :  { %v15776_v2 = vld [vmem:[#allocation2 + $0x188] ss:$28 sps:$4 sm:$0xff]   ;;  %2753 = vmatprep.subr.bf16.mxu1 %v15774_v1  ;;  %v15782_v6 = vld [vmem:[#allocation2 + $0x150] ss:$28 sps:$4 sm:$0xff]   ;;  %v15786_v9 = vld [vmem:[#allocation2 + $0x49c] ss:$28 sps:$4 sm:$0xff]  }
  0x80   :  { %v15777_v3 = vld [vmem:[#allocation2 + $0x508] ss:$28 sps:$4 sm:$0xff]   ;;  %2711 = vmatpush1.bf16.msra.mxu0 %v15776_v2  ;;  %v15783_v7 = vld [vmem:[#allocation2 + $0x4d0] ss:$28 sps:$4 sm:$0xff]   ;;  %v15788_v10 = vld [vmem:[#allocation2 + $0x118] ss:$28 sps:$4 sm:$0xff]  }
  0x81   :  { %2754 = vmatpush1.bf16.msra.mxu1 %v15777_v3  ;;  %2712 = vmatprep.subr.bf16.mxu0 %v15778_v4  ;;  %v15789_v11 = vld [vmem:[#allocation2 + $0x498] ss:$28 sps:$4 sm:$0xff]   ;;  %v15790_v12 = vld [vmem:[#allocation2 + $0xe4] ss:$28 sps:$4 sm:$0xff]   ;;  %v15796_v16 = vld [vmem:[#allocation2 + $0xac] ss:$28 sps:$4 sm:$0xff]  }
  0x82   :  { %2755 = vmatprep.subr.bf16.mxu1 %v15780_v5  ;;  %v15792_v13 = vld [vmem:[#allocation2 + $0x464] ss:$28 sps:$4 sm:$0xff]   ;;  %v15798_v17 = vld [vmem:[#allocation2 + $0x42c] ss:$28 sps:$4 sm:$0xff]   ;;  %v15802_v20 = vld [vmem:[#allocation2 + $0x74] ss:$28 sps:$4 sm:$0xff]  }
  0x83   :  { %v15794_v14 = vld [vmem:[#allocation2 + $0xe0] ss:$28 sps:$4 sm:$0xff]   ;;  %v15800_v18 = vld [vmem:[#allocation2 + $0xa8] ss:$28 sps:$4 sm:$0xff]   ;;  %v15804_v21 = vld [vmem:[#allocation2 + $0x3f4] ss:$28 sps:$4 sm:$0xff]  }
  0x84   :  { %2713 = vmatpush1.bf16.msra.mxu0 %v15782_v6  ;;  %v15795_v15 = vld [vmem:[#allocation2 + $0x460] ss:$28 sps:$4 sm:$0xff]   ;;  %v15801_v19 = vld [vmem:[#allocation2 + $0x428] ss:$28 sps:$4 sm:$0xff]   ;;  %v15806_v22 = vld [vmem:[#allocation2 + $0x70] ss:$28 sps:$4 sm:$0xff]  }
  0x85   :  { %2756 = vmatpush1.bf16.msra.mxu1 %v15783_v7  ;;  %2714 = vmatprep.subr.bf16.mxu0 %v15784_v8  ;;  %v15807_v23 = vld [vmem:[#allocation2 + $0x3f0] ss:$28 sps:$4 sm:$0xff]   ;;  %v15808_v24 = vld [vmem:[#allocation2 + $0x3c] ss:$28 sps:$4 sm:$0xff]   ;;  %v15814_v28 = vld [vmem:[#allocation2 + $0x4] ss:$28 sps:$4 sm:$0xff]  }
  0x86   :  { %2757 = vmatprep.subr.bf16.mxu1 %v15786_v9  ;;  %v15810_v25 = vld [vmem:[#allocation2 + $0x3bc] ss:$28 sps:$4 sm:$0xff]   ;;  %v15816_v29 = vld [vmem:[#allocation2 + $0x384] ss:$28 sps:$4 sm:$0xff]   ;;  %v15820_v32 = vld [vmem:[#allocation2 + $0x34c] ss:$28 sps:$4 sm:$0xff]  }
  0x87   :  { %v15812_v26 = vld [vmem:[#allocation2 + $0x38] ss:$28 sps:$4 sm:$0xff]   ;;  %v15818_v30 = vld [vmem:[#allocation2] ss:$28 sps:$4 sm:$0xff]   ;;  %v15822_v33 = vld [vmem:[#allocation2 + $0x6cc] ss:$28 sps:$4 sm:$0xff]  }
  0x88   :  { %2715 = vmatpush1.bf16.msra.mxu0 %v15788_v10  ;;  %v15813_v27 = vld [vmem:[#allocation2 + $0x3b8] ss:$28 sps:$4 sm:$0xff]   ;;  %v15819_v31 = vld [vmem:[#allocation2 + $0x380] ss:$28 sps:$4 sm:$0xff]   ;;  %v15824_v34 = vld [vmem:[#allocation2 + $0x348] ss:$28 sps:$4 sm:$0xff]  }
  0x89   :  { %2758 = vmatpush1.bf16.msra.mxu1 %v15789_v11  ;;  %2716 = vmatprep.subr.bf16.mxu0 %v15790_v12  ;;  %v15825_v35 = vld [vmem:[#allocation2 + $0x6c8] ss:$28 sps:$4 sm:$0xff]   ;;  %v15826_v36 = vld [vmem:[#allocation2 + $0x314] ss:$28 sps:$4 sm:$0xff]   ;;  %v15832_v40 = vld [vmem:[#allocation2 + $0x2dc] ss:$28 sps:$4 sm:$0xff]  }
  0x8a   :  { %2759 = vmatprep.subr.bf16.mxu1 %v15792_v13  ;;  %v15828_v37 = vld [vmem:[#allocation2 + $0x694] ss:$28 sps:$4 sm:$0xff]   ;;  %v15834_v41 = vld [vmem:[#allocation2 + $0x65c] ss:$28 sps:$4 sm:$0xff]   ;;  %v15838_v44 = vld [vmem:[#allocation2 + $0x2a4] ss:$28 sps:$4 sm:$0xff]  }
  0x8b   :  { %v15830_v38 = vld [vmem:[#allocation2 + $0x310] ss:$28 sps:$4 sm:$0xff]   ;;  %v15836_v42 = vld [vmem:[#allocation2 + $0x2d8] ss:$28 sps:$4 sm:$0xff]   ;;  %v15840_v45 = vld [vmem:[#allocation2 + $0x624] ss:$28 sps:$4 sm:$0xff]  }
  0x8c   :  { %2717 = vmatpush1.bf16.msra.mxu0 %v15794_v14  ;;  %v15831_v39 = vld [vmem:[#allocation2 + $0x690] ss:$28 sps:$4 sm:$0xff]   ;;  %v15837_v43 = vld [vmem:[#allocation2 + $0x658] ss:$28 sps:$4 sm:$0xff]   ;;  %v15842_v46 = vld [vmem:[#allocation2 + $0x2a0] ss:$28 sps:$4 sm:$0xff]  }
  0x8d   :  { %2760 = vmatpush1.bf16.msra.mxu1 %v15795_v15  ;;  %2718 = vmatprep.subr.bf16.mxu0 %v15796_v16  ;;  %v15843_v47 = vld [vmem:[#allocation2 + $0x620] ss:$28 sps:$4 sm:$0xff]   ;;  %v15844_v48 = vld [vmem:[#allocation2 + $0x26c] ss:$28 sps:$4 sm:$0xff]   ;;  %v15850_v54 = vld [vmem:[#allocation2 + $0x234] ss:$28 sps:$4 sm:$0xff]  }
  0x8e   :  { %2761 = vmatprep.subr.bf16.mxu1 %v15798_v17  ;;  %v18425_v49 = vld [vmem:[%s18996_s0 + $0x4] ss:$28 sps:$4 sm:$0xff]   ;;  %v18430_v50 = vld [vmem:[%s18996_s0 + $0xc] ss:$28 sps:$4 sm:$0xff]   ;;  %v15852_v55 = vld [vmem:[#allocation2 + $0x5b4] ss:$28 sps:$4 sm:$0xff]  }
  0x8f   :  { %v15846_v51 = vld [vmem:[#allocation2 + $0x5ec] ss:$28 sps:$4 sm:$0xff]   ;;  %2742 = vmatprep.mubr.bf16.mxu0 %v18425_v49  ;;  %2785 = vmatprep.mubr.bf16.mxu1 %v18430_v50  ;;  %v15856_v58 = vld [vmem:[#allocation2 + $0x1fc] ss:$28 sps:$4 sm:$0xff]   ;;  %v15862_v62 = vld [vmem:[#allocation2 + $0x1c4] ss:$28 sps:$4 sm:$0xff]  }
  0x90   :  { %2719 = vmatpush1.bf16.msra.mxu0 %v15800_v18  ;;  %v15848_v52 = vld [vmem:[#allocation2 + $0x268] ss:$28 sps:$4 sm:$0xff]   ;;  %v15854_v56 = vld [vmem:[#allocation2 + $0x230] ss:$28 sps:$4 sm:$0xff]   ;;  %v15858_v59 = vld [vmem:[#allocation2 + $0x57c] ss:$28 sps:$4 sm:$0xff]  }
  0x91   :  { %2762 = vmatpush1.bf16.msra.mxu1 %v15801_v19  ;;  %2720 = vmatprep.subr.bf16.mxu0 %v15802_v20  ;;  %v15849_v53 = vld [vmem:[#allocation2 + $0x5e8] ss:$28 sps:$4 sm:$0xff]   ;;  %v15855_v57 = vld [vmem:[#allocation2 + $0x5b0] ss:$28 sps:$4 sm:$0xff]   ;;  %v15860_v60 = vld [vmem:[#allocation2 + $0x1f8] ss:$28 sps:$4 sm:$0xff]  }
  0x92   :  { %2763 = vmatprep.subr.bf16.mxu1 %v15804_v21  ;;  %v15861_v61 = vld [vmem:[#allocation2 + $0x578] ss:$28 sps:$4 sm:$0xff]   ;;  %v15864_v63 = vld [vmem:[#allocation2 + $0x544] ss:$28 sps:$4 sm:$0xff]   ;;  %v15875_v2 = vld [vmem:[#allocation2 + $0x88c] ss:$28 sps:$4 sm:$0xff]  }
  0x93   :  { %v15866_v0 = vld [vmem:[#allocation2 + $0x1c0] ss:$28 sps:$4 sm:$0xff]   ;;  %v15878_v3 = vld [vmem:[#allocation2 + $0xc0c] ss:$28 sps:$4 sm:$0xff]   ;;  %v15882_v8 = vld [vmem:[#allocation2 + $0x854] ss:$28 sps:$4 sm:$0xff]  }
  0x94   :  { %2721 = vmatpush1.bf16.msra.mxu0 %v15806_v22  ;;  %v15867_v1 = vld [vmem:[#allocation2 + $0x540] ss:$28 sps:$4 sm:$0xff]   ;;  %v15873_v5 = vld [vmem:[#allocation2 + $0x888] ss:$28 sps:$4 sm:$0xff]   ;;  %v15885_v9 = vld [vmem:[#allocation2 + $0xbd4] ss:$28 sps:$4 sm:$0xff]  }
  0x95   :  { %2764 = vmatpush1.bf16.msra.mxu1 %v15807_v23  ;;  %2722 = vmatprep.subr.bf16.mxu0 %v15808_v24  ;;  %v18437_v4 = vld [vmem:[%s18996_s0] ss:$28 sps:$4 sm:$0xff]   ;;  %v15876_v6 = vld [vmem:[#allocation2 + $0xc08] ss:$28 sps:$4 sm:$0xff]   ;;  %v15880_v10 = vld [vmem:[#allocation2 + $0x850] ss:$28 sps:$4 sm:$0xff]  }
  0x96   :  { %2765 = vmatprep.subr.bf16.mxu1 %v15810_v25  ;;  %v18442_v7 = vld [vmem:[%s18996_s0 + $0x8] ss:$28 sps:$4 sm:$0xff]   ;;  %v15883_v11 = vld [vmem:[#allocation2 + $0xbd0] ss:$28 sps:$4 sm:$0xff]   ;;  %v15888_v12 = vld [vmem:[#allocation2 + $0x81c] ss:$28 sps:$4 sm:$0xff]  }
  0x97   :  { %v15891_v13 = vld [vmem:[#allocation2 + $0xb9c] ss:$28 sps:$4 sm:$0xff]   ;;  %v18317_v14 = vmov 0   ;;  %v15894_v17 = vld [vmem:[#allocation2 + $0x7e4] ss:$28 sps:$4 sm:$0xff]   ;;  %vm18319_vm0 = vmmov 0  }
  0x98   :  { %2723 = vmatpush1.bf16.msra.mxu0 %v15812_v26  ;;  %v15886_v15 = vld [vmem:[#allocation2 + $0x818] ss:$28 sps:$4 sm:$0xff]   ;;  %v15897_v18 = vld [vmem:[#allocation2 + $0xb64] ss:$28 sps:$4 sm:$0xff]   ;;  %v15900_v21 = vld [vmem:[#allocation2 + $0x7ac] ss:$28 sps:$4 sm:$0xff]  }
  0x99   :  { %2766 = vmatpush1.bf16.msra.mxu1 %v15813_v27  ;;  %2724 = vmatprep.subr.bf16.mxu0 %v15814_v28  ;;  %v15889_v16 = vld [vmem:[#allocation2 + $0xb98] ss:$28 sps:$4 sm:$0xff]   ;;  %v15892_v19 = vld [vmem:[#allocation2 + $0x7e0] ss:$28 sps:$4 sm:$0xff]   ;;  %v15903_v22 = vld [vmem:[#allocation2 + $0xb2c] ss:$28 sps:$4 sm:$0xff]  }
  0x9a   :  { %2767 = vmatprep.subr.bf16.mxu1 %v15816_v29  ;;  %v15895_v20 = vld [vmem:[#allocation2 + $0xb60] ss:$28 sps:$4 sm:$0xff]   ;;  %v15898_v23 = vld [vmem:[#allocation2 + $0x7a8] ss:$28 sps:$4 sm:$0xff]   ;;  %v15906_v25 = vld [vmem:[#allocation2 + $0x774] ss:$28 sps:$4 sm:$0xff]  }
  0x9b   :  { %v15901_v24 = vld [vmem:[#allocation2 + $0xb28] ss:$28 sps:$4 sm:$0xff]   ;;  %v15909_v26 = vld [vmem:[#allocation2 + $0xaf4] ss:$28 sps:$4 sm:$0xff]   ;;  %v15912_v29 = vld [vmem:[#allocation2 + $0x73c] ss:$28 sps:$4 sm:$0xff]  }
  0x9c   :  { %2725 = vmatpush1.bf16.msra.mxu0 %v15818_v30  ;;  %v15904_v27 = vld [vmem:[#allocation2 + $0x770] ss:$28 sps:$4 sm:$0xff]   ;;  %v15915_v30 = vld [vmem:[#allocation2 + $0xabc] ss:$28 sps:$4 sm:$0xff]  }
  0x9d   :  { %2768 = vmatpush1.bf16.msra.mxu1 %v15819_v31  ;;  %2726 = vmatprep.subr.bf16.mxu0 %v15820_v32  ;;  %v15907_v28 = vld [vmem:[#allocation2 + $0xaf0] ss:$28 sps:$4 sm:$0xff]   ;;  %v15910_v31 = vld [vmem:[#allocation2 + $0x738] ss:$28 sps:$4 sm:$0xff]  }
  0x9e   :  { %2769 = vmatprep.subr.bf16.mxu1 %v15822_v33  ;;  %v15913_v32 = vld [vmem:[#allocation2 + $0xab8] ss:$28 sps:$4 sm:$0xff]   ;;  %v15918_v33 = vld [vmem:[#allocation2 + $0x704] ss:$28 sps:$4 sm:$0xff]  }
  0xa0   :  { %2727 = vmatpush2.bf16.msra.mxu0 %v15824_v34  ;;  %v15921_v34 = vld [vmem:[#allocation2 + $0xa84] ss:$28 sps:$4 sm:$0xff]  }
  0xa1   :  { %2770 = vmatpush2.bf16.msra.mxu1 %v15825_v35  ;;  %2728 = vmatprep.subr.bf16.mxu0 %v15826_v36  ;;  %v18450_v35 = vld [vmem:[%s18996_s0 + $0x14] ss:$28 sps:$4 sm:$0xff]   ;;  %v15916_v36 = vld [vmem:[#allocation2 + $0x700] ss:$28 sps:$4 sm:$0xff]  }
  0xa2   :  { %2771 = vmatprep.subr.bf16.mxu1 %v15828_v37  ;;  %v15919_v37 = vld [vmem:[#allocation2 + $0xa80] ss:$28 sps:$4 sm:$0xff]  }
  0xa4   :  { %2729 = vmatpush2.bf16.msra.mxu0 %v15830_v38  ;;  %v15924_v38 = vld [vmem:[#allocation2 + $0xa4c] ss:$28 sps:$4 sm:$0xff]  }
  0xa5   :  { %2772 = vmatpush2.bf16.msra.mxu1 %v15831_v39  ;;  %2730 = vmatprep.subr.bf16.mxu0 %v15832_v40  ;;  %v15927_v39 = vld [vmem:[#allocation2 + $0x194] ss:$28 sps:$4 sm:$0xff]   ;;  %v15922_v40 = vld [vmem:[#allocation2 + $0xa48] ss:$28 sps:$4 sm:$0xff]  }
  0xa6   :  { %2773 = vmatprep.subr.bf16.mxu1 %v15834_v41  ;;  %v18456_v41 = vld [vmem:[%s18996_s0 + $0x18] ss:$28 sps:$4 sm:$0xff]  }
  0xa8   :  { %2731 = vmatpush2.bf16.msra.mxu0 %v15836_v42  ;;  %v15925_v42 = vld [vmem:[#allocation2 + $0x190] ss:$28 sps:$4 sm:$0xff]  }
  0xa9   :  { %2774 = vmatpush2.bf16.msra.mxu1 %v15837_v43  ;;  %2732 = vmatprep.subr.bf16.mxu0 %v15838_v44  ;;  %v15931_v43 = vld [vmem:[#allocation2 + $0xa14] ss:$28 sps:$4 sm:$0xff]   ;;  %v15934_v44 = vld [vmem:[#allocation2 + $0x15c] ss:$28 sps:$4 sm:$0xff]  }
  0xaa   :  { %2775 = vmatprep.subr.bf16.mxu1 %v15840_v45  ;;  %v15929_v45 = vld [vmem:[#allocation2 + $0xa10] ss:$28 sps:$4 sm:$0xff]  }
  0xac   :  { %2733 = vmatpush2.bf16.msra.mxu0 %v15842_v46  ;;  %v15932_v46 = vld [vmem:[#allocation2 + $0x158] ss:$28 sps:$4 sm:$0xff]  }
  0xad   :  { %2776 = vmatpush2.bf16.msra.mxu1 %v15843_v47  ;;  %2734 = vmatprep.subr.bf16.mxu0 %v15844_v48  ;;  %v15937_v47 = vld [vmem:[#allocation2 + $0x9dc] ss:$28 sps:$4 sm:$0xff]   ;;  %v15940_v48 = vld [vmem:[#allocation2 + $0x124] ss:$28 sps:$4 sm:$0xff]  }
  0xae   :  { %2777 = vmatprep.subr.bf16.mxu1 %v15846_v51  ;;  %v15935_v51 = vld [vmem:[#allocation2 + $0x9d8] ss:$28 sps:$4 sm:$0xff]  }
  0xb0   :  { %2735 = vmatpush2.bf16.msra.mxu0 %v15848_v52  ;;  %v15938_v52 = vld [vmem:[#allocation2 + $0x120] ss:$28 sps:$4 sm:$0xff]  }
  0xb1   :  { %2778 = vmatpush2.bf16.msra.mxu1 %v15849_v53  ;;  %2736 = vmatprep.subr.bf16.mxu0 %v15850_v54  ;;  %v15943_v53 = vld [vmem:[#allocation2 + $0x9a4] ss:$28 sps:$4 sm:$0xff]   ;;  %v15946_v54 = vld [vmem:[#allocation2 + $0xec] ss:$28 sps:$4 sm:$0xff]  }
  0xb2   :  { %2779 = vmatprep.subr.bf16.mxu1 %v15852_v55  ;;  %v15941_v55 = vld [vmem:[#allocation2 + $0x9a0] ss:$28 sps:$4 sm:$0xff]  }
  0xb4   :  { %2737 = vmatpush2.bf16.msra.mxu0 %v15854_v56  ;;  %v15944_v56 = vld [vmem:[#allocation2 + $0xe8] ss:$28 sps:$4 sm:$0xff]  }
  0xb5   :  { %2780 = vmatpush2.bf16.msra.mxu1 %v15855_v57  ;;  %2738 = vmatprep.subr.bf16.mxu0 %v15856_v58  ;;  %v15949_v57 = vld [vmem:[#allocation2 + $0x96c] ss:$28 sps:$4 sm:$0xff]   ;;  %v15952_v58 = vld [vmem:[#allocation2 + $0xb4] ss:$28 sps:$4 sm:$0xff]  }
  0xb6   :  { %2781 = vmatprep.subr.bf16.mxu1 %v15858_v59  ;;  %v15947_v59 = vld [vmem:[#allocation2 + $0x968] ss:$28 sps:$4 sm:$0xff]  }
  0xb8   :  { %2739 = vmatpush2.bf16.msra.mxu0 %v15860_v60  ;;  %v15955_v60 = vld [vmem:[#allocation2 + $0x934] ss:$28 sps:$4 sm:$0xff]  }
  0xb9   :  { %2782 = vmatpush2.bf16.msra.mxu1 %v15861_v61  ;;  %2740 = vmatprep.subr.bf16.mxu0 %v15862_v62  ;;  %v15958_v61 = vld [vmem:[#allocation2 + $0x7c] ss:$28 sps:$4 sm:$0xff]   ;;  %v15953_v62 = vld [vmem:[#allocation2 + $0x930] ss:$28 sps:$4 sm:$0xff]  }
  0xba   :  { %2783 = vmatprep.subr.bf16.mxu1 %v15864_v63  ;;  %v15956_v63 = vld [vmem:[#allocation2 + $0x78] ss:$28 sps:$4 sm:$0xff]  }
  0xbc   :  { %2741 = vmatpush2.bf16.msra.mxu0 %v15866_v0  ;;  %v15961_v0 = vld [vmem:[#allocation2 + $0x8fc] ss:$28 sps:$4 sm:$0xff]  }
  0xbd   :  { %2784 = vmatpush2.bf16.msra.mxu1 %v15867_v1  ;;  %2796 = vmatprep.subr.bf16.mxu0 %v15875_v2  ;;  %v15964_v1 = vld [vmem:[#allocation2 + $0x44] ss:$28 sps:$4 sm:$0xff]   ;;  %v15959_v2 = vld [vmem:[#allocation2 + $0x8f8] ss:$28 sps:$4 sm:$0xff]  }
  0xbe   :  { %2839 = vmatprep.subr.bf16.mxu1 %v15878_v3  ;;  %v15962_v3 = vld [vmem:[#allocation2 + $0x40] ss:$28 sps:$4 sm:$0xff]  }
  0xbf   :  { %2743 = vmatmul.mubr.bf16.vlgmr.msra.gmra.mxu0 %v18437_v4 }
  0xc0   :  { %2786 = vmatmul.mubr.bf16.vlgmr.msra.gmra.mxu1 %v18442_v7  ;;  %2797 = vmatpush1.bf16.msra.mxu0 %v15873_v5  ;;  %v15967_v5 = vld [vmem:[#allocation2 + $0x8c4] ss:$28 sps:$4 sm:$0xff]  }
  0xc1   :  { %2840 = vmatpush1.bf16.msra.mxu1 %v15876_v6  ;;  %2798 = vmatprep.subr.bf16.mxu0 %v15882_v8  ;;  %v15970_v6 = vld [vmem:[#allocation2 + $0xc] ss:$28 sps:$4 sm:$0xff]   ;;  %v15965_v8 = vld [vmem:[#allocation2 + $0x8c0] ss:$28 sps:$4 sm:$0xff]  }
  0xc2   :  { %2841 = vmatprep.subr.bf16.mxu1 %v15885_v9  ;;  %2871 = vmatprep.mubr.bf16.mxu1 %v18317_v14  ;;  %v15968_v9 = vld [vmem:[#allocation2 + $0x8] ss:$28 sps:$4 sm:$0xff]  }
  0xc3   :  { %2828 = vmatprep.mubr.bf16.mxu0 %v18450_v35 }
  0xc4   :  { %2799 = vmatpush1.bf16.msra.mxu0 %v15880_v10  ;;  %v15976_v10 = vld [vmem:[#allocation2 + $0x354] ss:$28 sps:$4 sm:$0xff]  }
  0xc5   :  { %2842 = vmatpush1.bf16.msra.mxu1 %v15883_v11  ;;  %2800 = vmatprep.subr.bf16.mxu0 %v15888_v12  ;;  %v15979_v11 = vld [vmem:[#allocation2 + $0x514] ss:$28 sps:$4 sm:$0xff]  }
  0xc6   :  { %2843 = vmatprep.subr.bf16.mxu1 %v15891_v13  ;;  %v18463_v12 = vld [vmem:[%s18996_s0 + $0x10] ss:$28 sps:$4 sm:$0xff]  }
  0xc7   :  { %v15974_v13 = vld [vmem:[#allocation2 + $0x350] ss:$28 sps:$4 sm:$0xff]  }
  0xc8   :  { %2801 = vmatpush1.bf16.msra.mxu0 %v15886_v15  ;;  %v15977_v15 = vld [vmem:[#allocation2 + $0x510] ss:$28 sps:$4 sm:$0xff]  }
  0xc9   :  { %2844 = vmatpush1.bf16.msra.mxu1 %v15889_v16  ;;  %2802 = vmatprep.subr.bf16.mxu0 %v15894_v17  ;;  %v15982_v16 = vld [vmem:[#allocation2 + $0x31c] ss:$28 sps:$4 sm:$0xff]  }
  0xca   :  { %2845 = vmatprep.subr.bf16.mxu1 %v15897_v18  ;;  %v15985_v17 = vld [vmem:[#allocation2 + $0x4dc] ss:$28 sps:$4 sm:$0xff]  }
  0xcb   :  { %v15980_v18 = vld [vmem:[#allocation2 + $0x318] ss:$28 sps:$4 sm:$0xff]  }
  0xcc   :  { %2803 = vmatpush1.bf16.msra.mxu0 %v15892_v19  ;;  %v15983_v19 = vld [vmem:[#allocation2 + $0x4d8] ss:$28 sps:$4 sm:$0xff]  }
  0xcd   :  { %2846 = vmatpush1.bf16.msra.mxu1 %v15895_v20  ;;  %2804 = vmatprep.subr.bf16.mxu0 %v15900_v21  ;;  %v15988_v20 = vld [vmem:[#allocation2 + $0x2e4] ss:$28 sps:$4 sm:$0xff]  }
  0xce   :  { %2847 = vmatprep.subr.bf16.mxu1 %v15903_v22  ;;  %v15991_v21 = vld [vmem:[#allocation2 + $0x4a4] ss:$28 sps:$4 sm:$0xff]  }
  0xcf   :  { %v15986_v22 = vld [vmem:[#allocation2 + $0x2e0] ss:$28 sps:$4 sm:$0xff]  }
  0xd0   :  { %2805 = vmatpush1.bf16.msra.mxu0 %v15898_v23  ;;  %v15989_v23 = vld [vmem:[#allocation2 + $0x4a0] ss:$28 sps:$4 sm:$0xff]  }
  0xd1   :  { %2848 = vmatpush1.bf16.msra.mxu1 %v15901_v24  ;;  %2806 = vmatprep.subr.bf16.mxu0 %v15906_v25  ;;  %v15994_v24 = vld [vmem:[#allocation2 + $0x2ac] ss:$28 sps:$4 sm:$0xff]  }
  0xd2   :  { %2849 = vmatprep.subr.bf16.mxu1 %v15909_v26  ;;  %v15997_v25 = vld [vmem:[#allocation2 + $0x46c] ss:$28 sps:$4 sm:$0xff]  }
  0xd3   :  { %v15992_v26 = vld [vmem:[#allocation2 + $0x2a8] ss:$28 sps:$4 sm:$0xff]  }
  0xd4   :  { %2807 = vmatpush1.bf16.msra.mxu0 %v15904_v27  ;;  %v15995_v27 = vld [vmem:[#allocation2 + $0x468] ss:$28 sps:$4 sm:$0xff]  }
  0xd5   :  { %2850 = vmatpush1.bf16.msra.mxu1 %v15907_v28  ;;  %2808 = vmatprep.subr.bf16.mxu0 %v15912_v29  ;;  %v16000_v28 = vld [vmem:[#allocation2 + $0x274] ss:$28 sps:$4 sm:$0xff]  }
  0xd6   :  { %2851 = vmatprep.subr.bf16.mxu1 %v15915_v30  ;;  %v16003_v29 = vld [vmem:[#allocation2 + $0x434] ss:$28 sps:$4 sm:$0xff]  }
  0xd7   :  { %v15998_v30 = vld [vmem:[#allocation2 + $0x270] ss:$28 sps:$4 sm:$0xff]  }
  0xd8   :  { %2809 = vmatpush1.bf16.msra.mxu0 %v15910_v31  ;;  %v16006_v31 = vld [vmem:[#allocation2 + $0x23c] ss:$28 sps:$4 sm:$0xff]  }
  0xd9   :  { %2852 = vmatpush1.bf16.msra.mxu1 %v15913_v32  ;;  %2810 = vmatprep.subr.bf16.mxu0 %v15918_v33  ;;  %v16009_v32 = vld [vmem:[#allocation2 + $0x3fc] ss:$28 sps:$4 sm:$0xff]  }
  0xda   :  { %2853 = vmatprep.subr.bf16.mxu1 %v15921_v34  ;;  %v16004_v33 = vld [vmem:[#allocation2 + $0x238] ss:$28 sps:$4 sm:$0xff]  }
  0xdb   :  { %v16007_v34 = vld [vmem:[#allocation2 + $0x3f8] ss:$28 sps:$4 sm:$0xff]  }
  0xdc   :  { %2811 = vmatpush1.bf16.msra.mxu0 %v15916_v36  ;;  %v16012_v36 = vld [vmem:[#allocation2 + $0x204] ss:$28 sps:$4 sm:$0xff]  }
  0xdd   :  { %2854 = vmatpush1.bf16.msra.mxu1 %v15919_v37  ;;  %2812 = vmatprep.subr.bf16.mxu0 %v15924_v38  ;;  %v16015_v37 = vld [vmem:[#allocation2 + $0x3c4] ss:$28 sps:$4 sm:$0xff]  }
  0xde   :  { %2882 = vmatprep.subr.bf16.mxu1 %v15927_v39  ;;  %v16010_v38 = vld [vmem:[#allocation2 + $0x200] ss:$28 sps:$4 sm:$0xff]  }
  0xdf   :  { %v16013_v39 = vld [vmem:[#allocation2 + $0x3c0] ss:$28 sps:$4 sm:$0xff]  }
  0xe0   :  { %2872 = vmatmul.mubr.bf16.vlgmr.msra.gmra.mxu1 %v18456_v41  ;;  %2813 = vmatpush2.bf16.msra.mxu0 %v15922_v40  ;;  %v16018_v40 = vld [vmem:[#allocation2 + $0x1cc] ss:$28 sps:$4 sm:$0xff]  }
  0xe1   :  { %2883 = vmatpush1.bf16.msra.mxu1 %v15925_v42  ;;  %2814 = vmatprep.subr.bf16.mxu0 %v15931_v43  ;;  %v16021_v42 = vld [vmem:[#allocation2 + $0x38c] ss:$28 sps:$4 sm:$0xff]  }
  0xe2   :  { %2884 = vmatprep.subr.bf16.mxu1 %v15934_v44  ;;  %2914 = vmatprep.mubr.bf16.mxu1 %v18425_v49  ;;  %v15950_v49 = vld [vmem:[#allocation2 + $0xb0] ss:$28 sps:$4 sm:$0xff]   ;;  %v16016_v43 = vld [vmem:[#allocation2 + $0x1c8] ss:$28 sps:$4 sm:$0xff]  }
  0xe3   :  { %v16019_v44 = vld [vmem:[#allocation2 + $0x388] ss:$28 sps:$4 sm:$0xff]  }
  0xe4   :  { %2815 = vmatpush2.bf16.msra.mxu0 %v15929_v45  ;;  %v16024_v45 = vld [vmem:[#allocation2 + $0x6d4] ss:$28 sps:$4 sm:$0xff]  }
  0xe5   :  { %2885 = vmatpush1.bf16.msra.mxu1 %v15932_v46  ;;  %2816 = vmatprep.subr.bf16.mxu0 %v15937_v47  ;;  %v16027_v46 = vld [vmem:[#allocation2 + $0x894] ss:$28 sps:$4 sm:$0xff]  }
  0xe6   :  { %2886 = vmatprep.subr.bf16.mxu1 %v15940_v48  ;;  %v16022_v47 = vld [vmem:[#allocation2 + $0x6d0] ss:$28 sps:$4 sm:$0xff]  }
  0xe7   :  { %v16025_v48 = vld [vmem:[#allocation2 + $0x890] ss:$28 sps:$4 sm:$0xff]  }
  0xe8   :  { %2817 = vmatpush2.bf16.msra.mxu0 %v15935_v51  ;;  %v16030_v51 = vld [vmem:[#allocation2 + $0x69c] ss:$28 sps:$4 sm:$0xff]  }
  0xe9   :  { %2887 = vmatpush1.bf16.msra.mxu1 %v15938_v52  ;;  %2818 = vmatprep.subr.bf16.mxu0 %v15943_v53  ;;  %v16033_v52 = vld [vmem:[#allocation2 + $0x85c] ss:$28 sps:$4 sm:$0xff]  }
  0xea   :  { %2888 = vmatprep.subr.bf16.mxu1 %v15946_v54  ;;  %v16028_v53 = vld [vmem:[#allocation2 + $0x698] ss:$28 sps:$4 sm:$0xff]  }
  0xeb   :  { %v16031_v54 = vld [vmem:[#allocation2 + $0x858] ss:$28 sps:$4 sm:$0xff]  }
  0xec   :  { %2819 = vmatpush2.bf16.msra.mxu0 %v15941_v55  ;;  %v16036_v55 = vld [vmem:[#allocation2 + $0x664] ss:$28 sps:$4 sm:$0xff]  }
  0xed   :  { %2889 = vmatpush1.bf16.msra.mxu1 %v15944_v56  ;;  %2820 = vmatprep.subr.bf16.mxu0 %v15949_v57  ;;  %v16039_v56 = vld [vmem:[#allocation2 + $0x824] ss:$28 sps:$4 sm:$0xff]  }
  0xee   :  { %2890 = vmatprep.subr.bf16.mxu1 %v15952_v58  ;;  %v16034_v57 = vld [vmem:[#allocation2 + $0x660] ss:$28 sps:$4 sm:$0xff]  }
  0xef   :  { %v16037_v58 = vld [vmem:[#allocation2 + $0x820] ss:$28 sps:$4 sm:$0xff]  }
  0xf0   :  { %2821 = vmatpush2.bf16.msra.mxu0 %v15947_v59  ;;  %v16042_v59 = vld [vmem:[#allocation2 + $0x62c] ss:$28 sps:$4 sm:$0xff]  }
  0xf1   :  { %2891 = vmatpush1.bf16.msra.mxu1 %v15950_v49  ;;  %2822 = vmatprep.subr.bf16.mxu0 %v15955_v60  ;;  %v16045_v49 = vld [vmem:[#allocation2 + $0x7ec] ss:$28 sps:$4 sm:$0xff]  }
  0xf2   :  { %2892 = vmatprep.subr.bf16.mxu1 %v15958_v61  ;;  %v16040_v60 = vld [vmem:[#allocation2 + $0x628] ss:$28 sps:$4 sm:$0xff]   ;;  %v16048_v61 = vld [vmem:[#allocation2 + $0x5f4] ss:$28 sps:$4 sm:$0xff]  }
  0xf4   :  { %2823 = vmatpush2.bf16.msra.mxu0 %v15953_v62  ;;  %v16051_v62 = vld [vmem:[#allocation2 + $0x7b4] ss:$28 sps:$4 sm:$0xff]  }
  0xf5   :  { %2893 = vmatpush1.bf16.msra.mxu1 %v15956_v63  ;;  %2824 = vmatprep.subr.bf16.mxu0 %v15961_v0  ;;  %v16046_v63 = vld [vmem:[#allocation2 + $0x5f0] ss:$28 sps:$4 sm:$0xff]  }
  0xf6   :  { %2894 = vmatprep.subr.bf16.mxu1 %v15964_v1  ;;  %v16049_v0 = vld [vmem:[#allocation2 + $0x7b0] ss:$28 sps:$4 sm:$0xff]   ;;  %v16057_v1 = vld [vmem:[#allocation2 + $0x77c] ss:$28 sps:$4 sm:$0xff]  }
  0xf8   :  { %2825 = vmatpush2.bf16.msra.mxu0 %v15959_v2  ;;  %v16052_v2 = vld [vmem:[#allocation2 + $0x5b8] ss:$28 sps:$4 sm:$0xff]  }
  0xf9   :  { %2895 = vmatpush1.bf16.msra.mxu1 %v15962_v3  ;;  %2826 = vmatprep.subr.bf16.mxu0 %v15967_v5  ;;  %v16055_v3 = vld [vmem:[#allocation2 + $0x778] ss:$28 sps:$4 sm:$0xff]   ;;  %v16060_v5 = vld [vmem:[#allocation2 + $0x584] ss:$28 sps:$4 sm:$0xff]  }
  0xfa   :  { %2896 = vmatprep.subr.bf16.mxu1 %v15970_v6  ;;  %v16063_v6 = vld [vmem:[#allocation2 + $0x744] ss:$28 sps:$4 sm:$0xff]  }
  0xfc   :  { %2827 = vmatpush2.bf16.msra.mxu0 %v15965_v8  ;;  %v16058_v8 = vld [vmem:[#allocation2 + $0x580] ss:$28 sps:$4 sm:$0xff]  }
  0xfd   :  { %2897 = vmatpush1.bf16.msra.mxu1 %v15968_v9  ;;  %2925 = vmatprep.subr.bf16.mxu0 %v15979_v11  ;;  %v16061_v9 = vld [vmem:[#allocation2 + $0x740] ss:$28 sps:$4 sm:$0xff]   ;;  %v16069_v11 = vld [vmem:[#allocation2 + $0x70c] ss:$28 sps:$4 sm:$0xff]  }
  0xfe   :  { %2898 = vmatprep.subr.bf16.mxu1 %v15976_v10  ;;  %v16066_v10 = vld [vmem:[#allocation2 + $0x54c] ss:$28 sps:$4 sm:$0xff]  }
  0xff   :  { %2829 = vmatmul.mubr.bf16.vlgmr.msra.gmra.mxu0 %v18463_v12 }
 0x100   :  { %2926 = vmatpush1.bf16.msra.mxu0 %v15977_v15  ;;  %2957 = vmatprep.mubr.bf16.mxu0 %v18430_v50  ;;  %v16001_v50 = vld [vmem:[#allocation2 + $0x430] ss:$28 sps:$4 sm:$0xff]   ;;  %v16067_v15 = vld [vmem:[#allocation2 + $0x708] ss:$28 sps:$4 sm:$0xff]  }
 0x101   :  { %2899 = vmatpush2.bf16.msra.mxu1 %v15974_v13  ;;  %2927 = vmatprep.subr.bf16.mxu0 %v15985_v17  ;;  %v16064_v13 = vld [vmem:[#allocation2 + $0x548] ss:$28 sps:$4 sm:$0xff]   ;;  %v16075_v17 = vld [vmem:[#allocation2 + $0xc14] ss:$28 sps:$4 sm:$0xff]  }
 0x102   :  { %2900 = vmatprep.subr.bf16.mxu1 %v15982_v16  ;;  %v16072_v16 = vld [vmem:[#allocation2 + $0xa54] ss:$28 sps:$4 sm:$0xff]  }
 0x104   :  { %2928 = vmatpush1.bf16.msra.mxu0 %v15983_v19  ;;  %v16073_v19 = vld [vmem:[#allocation2 + $0xc10] ss:$28 sps:$4 sm:$0xff]  }
 0x105   :  { %2901 = vmatpush2.bf16.msra.mxu1 %v15980_v18  ;;  %2929 = vmatprep.subr.bf16.mxu0 %v15991_v21  ;;  %v16070_v18 = vld [vmem:[#allocation2 + $0xa50] ss:$28 sps:$4 sm:$0xff]   ;;  %v16081_v21 = vld [vmem:[#allocation2 + $0xbdc] ss:$28 sps:$4 sm:$0xff]  }
 0x106   :  { %2902 = vmatprep.subr.bf16.mxu1 %v15988_v20  ;;  %v16078_v20 = vld [vmem:[#allocation2 + $0xa1c] ss:$28 sps:$4 sm:$0xff]  }
 0x108   :  { %2930 = vmatpush1.bf16.msra.mxu0 %v15989_v23  ;;  %v16079_v23 = vld [vmem:[#allocation2 + $0xbd8] ss:$28 sps:$4 sm:$0xff]  }
 0x109   :  { %2903 = vmatpush2.bf16.msra.mxu1 %v15986_v22  ;;  %2931 = vmatprep.subr.bf16.mxu0 %v15997_v25  ;;  %v16076_v22 = vld [vmem:[#allocation2 + $0xa18] ss:$28 sps:$4 sm:$0xff]   ;;  %v16087_v25 = vld [vmem:[#allocation2 + $0xba4] ss:$28 sps:$4 sm:$0xff]  }
 0x10a   :  { %2904 = vmatprep.subr.bf16.mxu1 %v15994_v24  ;;  %v16084_v24 = vld [vmem:[#allocation2 + $0x9e4] ss:$28 sps:$4 sm:$0xff]  }
 0x10c   :  { %2932 = vmatpush1.bf16.msra.mxu0 %v15995_v27  ;;  %v16085_v27 = vld [vmem:[#allocation2 + $0xba0] ss:$28 sps:$4 sm:$0xff]  }
 0x10d   :  { %2905 = vmatpush2.bf16.msra.mxu1 %v15992_v26  ;;  %2933 = vmatprep.subr.bf16.mxu0 %v16003_v29  ;;  %v16082_v26 = vld [vmem:[#allocation2 + $0x9e0] ss:$28 sps:$4 sm:$0xff]   ;;  %v16093_v29 = vld [vmem:[#allocation2 + $0xb6c] ss:$28 sps:$4 sm:$0xff]  }
 0x10e   :  { %2906 = vmatprep.subr.bf16.mxu1 %v16000_v28  ;;  %v16090_v28 = vld [vmem:[#allocation2 + $0x9ac] ss:$28 sps:$4 sm:$0xff]  }
 0x110   :  { %2934 = vmatpush1.bf16.msra.mxu0 %v16001_v50  ;;  %v16096_v50 = vld [vmem:[#allocation2 + $0x974] ss:$28 sps:$4 sm:$0xff]  }
 0x111   :  { %2907 = vmatpush2.bf16.msra.mxu1 %v15998_v30  ;;  %2935 = vmatprep.subr.bf16.mxu0 %v16009_v32  ;;  %v16088_v30 = vld [vmem:[#allocation2 + $0x9a8] ss:$28 sps:$4 sm:$0xff]   ;;  %v16094_v32 = vld [vmem:[#allocation2 + $0x970] ss:$28 sps:$4 sm:$0xff]  }
 0x112   :  { %2908 = vmatprep.subr.bf16.mxu1 %v16006_v31  ;;  %v16099_v31 = vld [vmem:[#allocation2 + $0xb34] ss:$28 sps:$4 sm:$0xff]  }
 0x114   :  { %2936 = vmatpush1.bf16.msra.mxu0 %v16007_v34  ;;  %v16102_v34 = vld [vmem:[#allocation2 + $0x93c] ss:$28 sps:$4 sm:$0xff]  }
 0x115   :  { %2909 = vmatpush2.bf16.msra.mxu1 %v16004_v33  ;;  %2937 = vmatprep.subr.bf16.mxu0 %v16015_v37  ;;  %v16097_v33 = vld [vmem:[#allocation2 + $0xb30] ss:$28 sps:$4 sm:$0xff]   ;;  %v16100_v37 = vld [vmem:[#allocation2 + $0x938] ss:$28 sps:$4 sm:$0xff]  }
 0x116   :  { %2910 = vmatprep.subr.bf16.mxu1 %v16012_v36  ;;  %v16105_v36 = vld [vmem:[#allocation2 + $0xafc] ss:$28 sps:$4 sm:$0xff]  }
 0x118   :  { %2938 = vmatpush1.bf16.msra.mxu0 %v16013_v39  ;;  %v16108_v39 = vld [vmem:[#allocation2 + $0x904] ss:$28 sps:$4 sm:$0xff]  }
 0x119   :  { %2911 = vmatpush2.bf16.msra.mxu1 %v16010_v38  ;;  %2939 = vmatprep.subr.bf16.mxu0 %v16021_v42  ;;  %v16103_v38 = vld [vmem:[#allocation2 + $0xaf8] ss:$28 sps:$4 sm:$0xff]   ;;  %v16106_v42 = vld [vmem:[#allocation2 + $0x900] ss:$28 sps:$4 sm:$0xff]  }
 0x11a   :  { %2912 = vmatprep.subr.bf16.mxu1 %v16018_v40  ;;  %v16111_v40 = vld [vmem:[#allocation2 + $0xac4] ss:$28 sps:$4 sm:$0xff]  }
 0x11c   :  { %2940 = vmatpush1.bf16.msra.mxu0 %v16019_v44  ;;  %v16114_v44 = vld [vmem:[#allocation2 + $0x8cc] ss:$28 sps:$4 sm:$0xff]  }
 0x11d   :  { %2913 = vmatpush2.bf16.msra.mxu1 %v16016_v43  ;;  %2941 = vmatprep.subr.bf16.mxu0 %v16024_v45  ;;  %v16109_v43 = vld [vmem:[#allocation2 + $0xac0] ss:$28 sps:$4 sm:$0xff]   ;;  %v16117_v45 = vld [vmem:[#allocation2 + $0xa8c] ss:$28 sps:$4 sm:$0xff]  }
 0x11e   :  { %2968 = vmatprep.subr.bf16.mxu1 %v16027_v46  ;;  %v16112_v46 = vld [vmem:[#allocation2 + $0x8c8] ss:$28 sps:$4 sm:$0xff]  }
 0x120   :  { %2915 = vmatmul.mubr.bf16.vlgmr.msra.gmra.mxu1 %v18437_v4  ;;  %2942 = vmatpush2.bf16.msra.mxu0 %v16022_v47  ;;  %v16043_v4 = vld [vmem:[#allocation2 + $0x7e8] ss:$28 sps:$4 sm:$0xff]  }
 0x121   :  { %2969 = vmatpush1.bf16.msra.mxu1 %v16025_v48  ;;  %2943 = vmatprep.subr.bf16.mxu0 %v16030_v51  ;;  %v16115_v47 = vld [vmem:[#allocation2 + $0xa88] ss:$28 sps:$4 sm:$0xff]   ;;  %v16120_v48 = vld [vmem:[#allocation2 + $0x19c] ss:$28 sps:$4 sm:$0xff]  }
 0x122   :  { %2970 = vmatprep.subr.bf16.mxu1 %v16033_v52  ;;  %3000 = vmatprep.mubr.bf16.mxu1 %v18450_v35  ;;  %v16054_v35 = vld [vmem:[#allocation2 + $0x5bc] ss:$28 sps:$4 sm:$0xff]  }
 0x123   :  { %v16123_v51 = vld [vmem:[#allocation2 + $0x51c] ss:$28 sps:$4 sm:$0xff]  }
 0x124   :  { %2944 = vmatpush2.bf16.msra.mxu0 %v16028_v53  ;;  %v16118_v52 = vld [vmem:[#allocation2 + $0x198] ss:$28 sps:$4 sm:$0xff]  }
 0x125   :  { %2971 = vmatpush1.bf16.msra.mxu1 %v16031_v54  ;;  %2945 = vmatprep.subr.bf16.mxu0 %v16036_v55  ;;  %v16121_v53 = vld [vmem:[#allocation2 + $0x518] ss:$28 sps:$4 sm:$0xff]   ;;  %v16126_v54 = vld [vmem:[#allocation2 + $0x164] ss:$28 sps:$4 sm:$0xff]  }
 0x126   :  { %2972 = vmatprep.subr.bf16.mxu1 %v16039_v56  ;;  %v16129_v55 = vld [vmem:[#allocation2 + $0x4e4] ss:$28 sps:$4 sm:$0xff]  }
 0x127   :  { %v16124_v56 = vld [vmem:[#allocation2 + $0x160] ss:$28 sps:$4 sm:$0xff]  }
 0x128   :  { %2946 = vmatpush2.bf16.msra.mxu0 %v16034_v57  ;;  %v16127_v57 = vld [vmem:[#allocation2 + $0x4e0] ss:$28 sps:$4 sm:$0xff]  }
 0x129   :  { %2973 = vmatpush1.bf16.msra.mxu1 %v16037_v58  ;;  %2947 = vmatprep.subr.bf16.mxu0 %v16042_v59  ;;  %v16132_v58 = vld [vmem:[#allocation2 + $0x12c] ss:$28 sps:$4 sm:$0xff]  }
 0x12a   :  { %2974 = vmatprep.subr.bf16.mxu1 %v16045_v49  ;;  %v16135_v59 = vld [vmem:[#allocation2 + $0x4ac] ss:$28 sps:$4 sm:$0xff]  }
 0x12b   :  { %v16130_v49 = vld [vmem:[#allocation2 + $0x128] ss:$28 sps:$4 sm:$0xff]  }
 0x12c   :  { %2948 = vmatpush2.bf16.msra.mxu0 %v16040_v60  ;;  %v18476_v60 = vld [vmem:[%s18996_s0 + $0x4] ss:$28 sps:$4 sm:$0xff]  }
 0x12d   :  { %2975 = vmatpush1.bf16.msra.mxu1 %v16043_v4  ;;  %2949 = vmatprep.subr.bf16.mxu0 %v16048_v61  ;;  %v16138_v4 = vld [vmem:[#allocation2 + $0xf4] ss:$28 sps:$4 sm:$0xff]  }
 0x12e   :  { %2976 = vmatprep.subr.bf16.mxu1 %v16051_v62  ;;  %v16141_v61 = vld [vmem:[#allocation2 + $0x474] ss:$28 sps:$4 sm:$0xff]  }
 0x12f   :  { %v16136_v62 = vld [vmem:[#allocation2 + $0xf0] ss:$28 sps:$4 sm:$0xff]  }
 0x130   :  { %2950 = vmatpush2.bf16.msra.mxu0 %v16046_v63  ;;  %v16139_v63 = vld [vmem:[#allocation2 + $0x470] ss:$28 sps:$4 sm:$0xff]  }
 0x131   :  { %2977 = vmatpush1.bf16.msra.mxu1 %v16049_v0  ;;  %2951 = vmatprep.subr.bf16.mxu0 %v16054_v35  ;;  %v16144_v0 = vld [vmem:[#allocation2 + $0xbc] ss:$28 sps:$4 sm:$0xff]  }
 0x132   :  { %2978 = vmatprep.subr.bf16.mxu1 %v16057_v1  ;;  %v16147_v35 = vld [vmem:[#allocation2 + $0x43c] ss:$28 sps:$4 sm:$0xff]   ;;  %v623_v1 = vlaneseq }
 0x134   :  { %2952 = vmatpush2.bf16.msra.mxu0 %v16052_v2  ;;  %v16142_v2 = vld [vmem:[#allocation2 + $0xb8] ss:$28 sps:$4 sm:$0xff]  }
 0x135   :  { %2979 = vmatpush1.bf16.msra.mxu1 %v16055_v3  ;;  %2953 = vmatprep.subr.bf16.mxu0 %v16060_v5  ;;  %v16145_v3 = vld [vmem:[#allocation2 + $0x438] ss:$28 sps:$4 sm:$0xff]   ;;  %v16150_v5 = vld [vmem:[#allocation2 + $0x84] ss:$28 sps:$4 sm:$0xff]  }
 0x136   :  { %2980 = vmatprep.subr.bf16.mxu1 %v16063_v6  ;;  %v16153_v6 = vld [vmem:[#allocation2 + $0x404] ss:$28 sps:$4 sm:$0xff]  }
 0x138   :  { %2954 = vmatpush2.bf16.msra.mxu0 %v16058_v8  ;;  %v16148_v8 = vld [vmem:[#allocation2 + $0x80] ss:$28 sps:$4 sm:$0xff]  }
 0x139   :  { %2981 = vmatpush1.bf16.msra.mxu1 %v16061_v9  ;;  %2955 = vmatprep.subr.bf16.mxu0 %v16066_v10  ;;  %v18482_v9 = vshrl.u32 %v623_v1, 7  ;;  %v16151_v10 = vld [vmem:[#allocation2 + $0x400] ss:$28 sps:$4 sm:$0xff]  }
 0x13a   :  { %2982 = vmatprep.subr.bf16.mxu1 %v16069_v11  ;;  %v16156_v11 = vld [vmem:[#allocation2 + $0x4c] ss:$28 sps:$4 sm:$0xff]   ;;  %v16219_v1 = vld [vmem:[#allocation2 + $0xc1c] ss:$28 sps:$4 sm:$0xff]  }
 0x13c   :  { %2956 = vmatpush2.bf16.msra.mxu0 %v16064_v13  ;;  %v16159_v13 = vld [vmem:[#allocation2 + $0x3cc] ss:$28 sps:$4 sm:$0xff]  }
 0x13d   :  { %2983 = vmatpush1.bf16.msra.mxu1 %v16067_v15  ;;  %3011 = vmatprep.subr.bf16.mxu0 %v16075_v17  ;;  %v16154_v15 = vld [vmem:[#allocation2 + $0x48] ss:$28 sps:$4 sm:$0xff]   ;;  %v16162_v17 = vld [vmem:[#allocation2 + $0x14] ss:$28 sps:$4 sm:$0xff]  }
 0x13e   :  { %2984 = vmatprep.subr.bf16.mxu1 %v16072_v16  ;;  %v16157_v16 = vld [vmem:[#allocation2 + $0x3c8] ss:$28 sps:$4 sm:$0xff]  }
 0x13f   :  { %2958 = vmatmul.mubr.bf16.vlgmr.msra.gmra.mxu0 %v18442_v7  ;;  %v16091_v7 = vld [vmem:[#allocation2 + $0xb68] ss:$28 sps:$4 sm:$0xff]  }
 0x140   :  { %3012 = vmatpush1.bf16.msra.mxu0 %v16073_v19  ;;  %3043 = vmatprep.mubr.bf16.mxu0 %v18317_v14  ;;  %v16160_v19 = vld [vmem:[#allocation2 + $0x10] ss:$28 sps:$4 sm:$0xff]  }
 0x141   :  { %2985 = vmatpush2.bf16.msra.mxu1 %v16070_v18  ;;  %3013 = vmatprep.subr.bf16.mxu0 %v16081_v21  ;;  %v16165_v18 = vld [vmem:[#allocation2 + $0x394] ss:$28 sps:$4 sm:$0xff]   ;;  %v18484_v21 = vld [vmem:[#allocation4] sm:$0xff] }
 0x142   :  { %2986 = vmatprep.subr.bf16.mxu1 %v16078_v20  ;;  %v16163_v20 = vld [vmem:[#allocation2 + $0x390] ss:$28 sps:$4 sm:$0xff]  }
 0x144   :  { %3014 = vmatpush1.bf16.msra.mxu0 %v16079_v23  ;;  %v16168_v23 = vld [vmem:[#allocation2 + $0x35c] ss:$28 sps:$4 sm:$0xff]  }
 0x145   :  { %2987 = vmatpush2.bf16.msra.mxu1 %v16076_v22  ;;  %3015 = vmatprep.subr.bf16.mxu0 %v16087_v25  ;;  %v18487_v22 = vsub.s32 0, %v18482_v9  ;;  %v16166_v25 = vld [vmem:[#allocation2 + $0x358] ss:$28 sps:$4 sm:$0xff]  }
 0x146   :  { %2988 = vmatprep.subr.bf16.mxu1 %v16084_v24  ;;  %v16171_v24 = vld [vmem:[#allocation2 + $0x6dc] ss:$28 sps:$4 sm:$0xff]  }
 0x148   :  { %3016 = vmatpush1.bf16.msra.mxu0 %v16085_v27  ;;  %v626_v27 = vrot.slane %v18484_v21, %v18487_v22 }
 0x149   :  { %2989 = vmatpush2.bf16.msra.mxu1 %v16082_v26  ;;  %3017 = vmatprep.subr.bf16.mxu0 %v16093_v29  ;;  %v16169_v26 = vld [vmem:[#allocation2 + $0x6d8] ss:$28 sps:$4 sm:$0xff]   ;;  %v16177_v29 = vld [vmem:[#allocation2 + $0x6a4] ss:$28 sps:$4 sm:$0xff]  }
 0x14a   :  { %2990 = vmatprep.subr.bf16.mxu1 %v16090_v28  ;;  %v16174_v28 = vld [vmem:[#allocation2 + $0x324] ss:$28 sps:$4 sm:$0xff]  }
 0x14c   :  { %3018 = vmatpush1.bf16.msra.mxu0 %v16091_v7 }
 0x14d   :  { %2991 = vmatpush2.bf16.msra.mxu1 %v16088_v30  ;;  %3019 = vmatprep.subr.bf16.mxu0 %v16099_v31  ;;  %v16172_v30 = vld [vmem:[#allocation2 + $0x320] ss:$28 sps:$4 sm:$0xff]  }
 0x14e   :  { %2992 = vmatprep.subr.bf16.mxu1 %v16096_v50  ;;  %v16175_v31 = vld [vmem:[#allocation2 + $0x6a0] ss:$28 sps:$4 sm:$0xff]  }
 0x150   :  { %3020 = vmatpush1.bf16.msra.mxu0 %v16097_v33  ;;  %v16180_v33 = vld [vmem:[#allocation2 + $0x2ec] ss:$28 sps:$4 sm:$0xff]  }
 0x151   :  { %2993 = vmatpush2.bf16.msra.mxu1 %v16094_v32  ;;  %3021 = vmatprep.subr.bf16.mxu0 %v16105_v36 }
 0x152   :  { %2994 = vmatprep.subr.bf16.mxu1 %v16102_v34 }
 0x154   :  { %3022 = vmatpush1.bf16.msra.mxu0 %v16103_v38 }
 0x155   :  { %2995 = vmatpush2.bf16.msra.mxu1 %v16100_v37  ;;  %3023 = vmatprep.subr.bf16.mxu0 %v16111_v40  ;;  %v16183_v37 = vld [vmem:[#allocation2 + $0x66c] ss:$28 sps:$4 sm:$0xff]  }
 0x156   :  { %2996 = vmatprep.subr.bf16.mxu1 %v16108_v39  ;;  %v16178_v39 = vld [vmem:[#allocation2 + $0x2e8] ss:$28 sps:$4 sm:$0xff]  }
 0x158   :  { %3024 = vmatpush1.bf16.msra.mxu0 %v16109_v43  ;;  %v16181_v43 = vld [vmem:[#allocation2 + $0x668] ss:$28 sps:$4 sm:$0xff]  }
 0x159   :  { %2997 = vmatpush2.bf16.msra.mxu1 %v16106_v42  ;;  %3025 = vmatprep.subr.bf16.mxu0 %v16117_v45  ;;  %v16186_v45 = vld [vmem:[#allocation2 + $0x2b4] ss:$28 sps:$4 sm:$0xff]  }
 0x15a   :  { %2998 = vmatprep.subr.bf16.mxu1 %v16114_v44 }
 0x15c   :  { %3026 = vmatpush1.bf16.msra.mxu0 %v16115_v47 }
 0x15d   :  { %2999 = vmatpush2.bf16.msra.mxu1 %v16112_v46  ;;  %3054 = vmatprep.subr.bf16.mxu0 %v16120_v48  ;;  %v16189_v46 = vld [vmem:[#allocation2 + $0x634] ss:$28 sps:$4 sm:$0xff]  }
 0x15e   :  { %3097 = vmatprep.subr.bf16.mxu1 %v16123_v51  ;;  %v16184_v48 = vld [vmem:[#allocation2 + $0x2b0] ss:$28 sps:$4 sm:$0xff]  }
 0x15f   :  { %3044 = vmatmul.mubr.bf16.vlgmr.msra.gmra.mxu0 %v18456_v41  ;;  %v18079_v41 = vld [vmem:[%s18996_s0 + $0xc] ss:$28 sps:$4 sm:$0xff]  }
 0x160   :  { %3001 = vmatmul.mubr.bf16.vlgmr.msra.gmra.mxu1 %v18463_v12  ;;  %3055 = vmatpush1.bf16.msra.mxu0 %v16118_v52  ;;  %v16133_v12 = vld [vmem:[#allocation2 + $0x4a8] ss:$28 sps:$4 sm:$0xff]   ;;  %v16187_v51 = vld [vmem:[#allocation2 + $0x630] ss:$28 sps:$4 sm:$0xff]   ;;  %v16192_v52 = vld [vmem:[#allocation2 + $0x27c] ss:$28 sps:$4 sm:$0xff]  }
 0x161   :  { %3098 = vmatpush1.bf16.msra.mxu1 %v16121_v53  ;;  %3056 = vmatprep.subr.bf16.mxu0 %v16126_v54  ;;  %v16195_v53 = vld [vmem:[#allocation2 + $0x5fc] ss:$28 sps:$4 sm:$0xff]  }
 0x162   :  { %3099 = vmatprep.subr.bf16.mxu1 %v16129_v55  ;;  %3086 = vmatprep.mubr.bf16.mxu0 %v18476_v60  ;;  %v16190_v54 = vld [vmem:[#allocation2 + $0x278] ss:$28 sps:$4 sm:$0xff]  }
 0x163   :  { %3129 = vmatprep.mubr.bf16.mxu1 %v18079_v41  ;;  %v16193_v55 = vld [vmem:[#allocation2 + $0x5f8] ss:$28 sps:$4 sm:$0xff]   ;;  %v16207_v41 = vld [vmem:[#allocation2 + $0x58c] ss:$28 sps:$4 sm:$0xff]  }
 0x164   :  { %3057 = vmatpush1.bf16.msra.mxu0 %v16124_v56  ;;  %v16198_v56 = vld [vmem:[#allocation2 + $0x244] ss:$28 sps:$4 sm:$0xff]  }
 0x165   :  { %3100 = vmatpush1.bf16.msra.mxu1 %v16127_v57  ;;  %3058 = vmatprep.subr.bf16.mxu0 %v16132_v58  ;;  %v16201_v57 = vld [vmem:[#allocation2 + $0x5c4] ss:$28 sps:$4 sm:$0xff]  }
 0x166   :  { %3101 = vmatprep.subr.bf16.mxu1 %v16135_v59  ;;  %v16196_v58 = vld [vmem:[#allocation2 + $0x240] ss:$28 sps:$4 sm:$0xff]  }
 0x167   :  { %v16199_v59 = vld [vmem:[#allocation2 + $0x5c0] ss:$28 sps:$4 sm:$0xff]  }
 0x168   :  { %3059 = vmatpush1.bf16.msra.mxu0 %v16130_v49  ;;  %v16204_v49 = vld [vmem:[#allocation2 + $0x20c] ss:$28 sps:$4 sm:$0xff]  }
 0x169   :  { %3102 = vmatpush1.bf16.msra.mxu1 %v16133_v12  ;;  %3060 = vmatprep.subr.bf16.mxu0 %v16138_v4  ;;  %v16202_v12 = vld [vmem:[#allocation2 + $0x208] ss:$28 sps:$4 sm:$0xff]  }
 0x16a   :  { %3103 = vmatprep.subr.bf16.mxu1 %v16141_v61  ;;  %v16205_v4 = vld [vmem:[#allocation2 + $0x588] ss:$28 sps:$4 sm:$0xff]   ;;  %v16210_v61 = vld [vmem:[#allocation2 + $0x1d4] ss:$28 sps:$4 sm:$0xff]  }
 0x16c   :  { %3061 = vmatpush1.bf16.msra.mxu0 %v16136_v62  ;;  %v16213_v62 = vld [vmem:[#allocation2 + $0x554] ss:$28 sps:$4 sm:$0xff]  }
 0x16d   :  { %3104 = vmatpush1.bf16.msra.mxu1 %v16139_v63  ;;  %3062 = vmatprep.subr.bf16.mxu0 %v16144_v0  ;;  %v16208_v63 = vld [vmem:[#allocation2 + $0x1d0] ss:$28 sps:$4 sm:$0xff]  }
 0x16e   :  { %3105 = vmatprep.subr.bf16.mxu1 %v16147_v35  ;;  %v16211_v0 = vld [vmem:[#allocation2 + $0x550] ss:$28 sps:$4 sm:$0xff]   ;;  %v16216_v35 = vld [vmem:[#allocation2 + $0x89c] ss:$28 sps:$4 sm:$0xff]  }
 0x170   :  { %3063 = vmatpush1.bf16.msra.mxu0 %v16142_v2  ;;  %v16214_v2 = vld [vmem:[#allocation2 + $0x898] ss:$28 sps:$4 sm:$0xff]  }
 0x171   :  { %3106 = vmatpush1.bf16.msra.mxu1 %v16145_v3  ;;  %3064 = vmatprep.subr.bf16.mxu0 %v16150_v5  ;;  %v16217_v3 = vld [vmem:[#allocation2 + $0xc18] ss:$28 sps:$4 sm:$0xff]   ;;  %v16222_v5 = vld [vmem:[#allocation2 + $0x864] ss:$28 sps:$4 sm:$0xff]  }
 0x172   :  { %3107 = vmatprep.subr.bf16.mxu1 %v16153_v6  ;;  %v16225_v6 = vld [vmem:[#allocation2 + $0xbe4] ss:$28 sps:$4 sm:$0xff]  }
 0x174   :  { %3065 = vmatpush1.bf16.msra.mxu0 %v16148_v8  ;;  %v18502_v8 = vld [vmem:[%s18996_s0] ss:$28 sps:$4 sm:$0xff]  }
 0x175   :  { %3108 = vmatpush1.bf16.msra.mxu1 %v16151_v10  ;;  %3066 = vmatprep.subr.bf16.mxu0 %v16156_v11  ;;  %v18508_v10 = vld [vmem:[%s18996_s0 + $0x8] ss:$28 sps:$4 sm:$0xff]   ;;  %v16220_v11 = vld [vmem:[#allocation2 + $0x860] ss:$28 sps:$4 sm:$0xff]  }
 0x176   :  { %3109 = vmatprep.subr.bf16.mxu1 %v16159_v13  ;;  %v16223_v13 = vld [vmem:[#allocation2 + $0xbe0] ss:$28 sps:$4 sm:$0xff]  }
 0x178   :  { %3067 = vmatpush1.bf16.msra.mxu0 %v16154_v15  ;;  %v16228_v15 = vld [vmem:[#allocation2 + $0x82c] ss:$28 sps:$4 sm:$0xff]  }
 0x179   :  { %3110 = vmatpush1.bf16.msra.mxu1 %v16157_v16  ;;  %3068 = vmatprep.subr.bf16.mxu0 %v16162_v17  ;;  %v16231_v16 = vld [vmem:[#allocation2 + $0xbac] ss:$28 sps:$4 sm:$0xff]   ;;  %v18515_v17 = vld [vmem:[%s18996_s0 + $0x14] ss:$28 sps:$4 sm:$0xff]  }
 0x17a   :  { %3111 = vmatprep.subr.bf16.mxu1 %v16165_v18  ;;  %v16226_v18 = vld [vmem:[#allocation2 + $0x828] ss:$28 sps:$4 sm:$0xff]  }
 0x17c   :  { %3069 = vmatpush1.bf16.msra.mxu0 %v16160_v19  ;;  %v16229_v19 = vld [vmem:[#allocation2 + $0xba8] ss:$28 sps:$4 sm:$0xff]  }
 0x17d   :  { %3112 = vmatpush1.bf16.msra.mxu1 %v16163_v20  ;;  %3070 = vmatprep.subr.bf16.mxu0 %v16168_v23  ;;  %v16234_v20 = vld [vmem:[#allocation2 + $0x7f4] ss:$28 sps:$4 sm:$0xff]  }
 0x17e   :  { %3113 = vmatprep.subr.bf16.mxu1 %v16171_v24  ;;  %v16237_v23 = vld [vmem:[#allocation2 + $0xb74] ss:$28 sps:$4 sm:$0xff]  }
 0x17f   :  { %v2744_v7 = vpop.f32.mrf.mxu0  ;;  %v16232_v24 = vld [vmem:[#allocation2 + $0x7f0] ss:$28 sps:$4 sm:$0xff]  }
 0x180   :  { %v2787_v50 = vpop.f32.mrf.mxu1  ;;  %v2745_v32 = vadd.f32 %v2744_v7, %v626_v27  ;;  %3071 = vmatpush2.bf16.msra.mxu0 %v16166_v25  ;;  %v16235_v25 = vld [vmem:[#allocation2 + $0xb70] ss:$28 sps:$4 sm:$0xff]   ;;  %v16249_v7 = vld [vmem:[#allocation2 + $0xb04] ss:$28 sps:$4 sm:$0xff]  }
 0x181   :  { %3114 = vmatpush2.bf16.msra.mxu1 %v16169_v26  ;;  %v18491_v34 = vpop.f32.mrf.mxu0  ;;  %3072 = vmatprep.subr.bf16.mxu0 %v16174_v28  ;;  %v16240_v26 = vld [vmem:[#allocation2 + $0x7bc] ss:$28 sps:$4 sm:$0xff]  }
 0x182   :  { %v18493_v36 = vpop.f32.mrf.mxu1  ;;  %3115 = vmatprep.subr.bf16.mxu1 %v16177_v29  ;;  %v18495_v38 = vadd.f32 %v2787_v50, %v2745_v32  ;;  %v16238_v28 = vld [vmem:[#allocation2 + $0x7b8] ss:$28 sps:$4 sm:$0xff]   ;;  %v16244_v50 = vld [vmem:[#allocation2 + $0x780] ss:$28 sps:$4 sm:$0xff]   ;;  %v16252_v32 = vld [vmem:[#allocation2 + $0x74c] ss:$28 sps:$4 sm:$0xff]  }
 0x183   :  { %v2748_v40 = vpop.f32.mrf.mxu0  ;;  %v16241_v29 = vld [vmem:[#allocation2 + $0xb38] ss:$28 sps:$4 sm:$0xff]  }
 0x184   :  { %v2791_v42 = vpop.f32.mrf.mxu1  ;;  %v2749_v44 = vadd.f32 %v2748_v40, %v626_v27  ;;  %3073 = vmatpush2.bf16.msra.mxu0 %v16172_v30  ;;  %v16243_v27 = vld [vmem:[#allocation2 + $0xb3c] ss:$28 sps:$4 sm:$0xff]   ;;  %v16246_v30 = vld [vmem:[#allocation2 + $0x784] ss:$28 sps:$4 sm:$0xff]   ;;  %v16258_v40 = vld [vmem:[#allocation2 + $0x714] ss:$28 sps:$4 sm:$0xff]  }
 0x185   :  { %3116 = vmatpush2.bf16.msra.mxu1 %v16175_v31  ;;  %3074 = vmatprep.subr.bf16.mxu0 %v16180_v33  ;;  %v16247_v31 = vld [vmem:[#allocation2 + $0xb00] ss:$28 sps:$4 sm:$0xff]   ;;  %v16255_v33 = vld [vmem:[#allocation2 + $0xacc] ss:$28 sps:$4 sm:$0xff]  }
 0x186   :  { %3117 = vmatprep.subr.bf16.mxu1 %v16183_v37  ;;  %v18497_v47 = vadd.f32 %v2791_v42, %v2749_v44  ;;  %v16250_v37 = vld [vmem:[#allocation2 + $0x748] ss:$28 sps:$4 sm:$0xff]   ;;  %v16261_v42 = vld [vmem:[#allocation2 + $0xa94] ss:$28 sps:$4 sm:$0xff]  }
 0x187   :  { %v16259_v44 = vld [vmem:[#allocation2 + $0xa90] ss:$28 sps:$4 sm:$0xff]  }
 0x188   :  { %3075 = vmatpush2.bf16.msra.mxu0 %v16178_v39  ;;  %v16253_v39 = vld [vmem:[#allocation2 + $0xac8] ss:$28 sps:$4 sm:$0xff]  }
 0x189   :  { %3118 = vmatpush2.bf16.msra.mxu1 %v16181_v43  ;;  %3076 = vmatprep.subr.bf16.mxu0 %v16186_v45  ;;  %v16256_v43 = vld [vmem:[#allocation2 + $0x710] ss:$28 sps:$4 sm:$0xff]   ;;  %v16264_v45 = vld [vmem:[#allocation2 + $0xa5c] ss:$28 sps:$4 sm:$0xff]  }
 0x18a   :  { %3119 = vmatprep.subr.bf16.mxu1 %v16189_v46  ;;  %v16265_v46 = vld [vmem:[#allocation2 + $0x360] ss:$28 sps:$4 sm:$0xff]  }
 0x18c   :  { %3077 = vmatpush2.bf16.msra.mxu0 %v16184_v48  ;;  %v16262_v48 = vld [vmem:[#allocation2 + $0xa58] ss:$28 sps:$4 sm:$0xff]  }
 0x18d   :  { %3120 = vmatpush2.bf16.msra.mxu1 %v16187_v51  ;;  %3078 = vmatprep.subr.bf16.mxu0 %v16192_v52  ;;  %v16266_v51 = vld [vmem:[#allocation2 + $0x1a0] ss:$28 sps:$4 sm:$0xff]   ;;  %v18518_v52 = vpop.f32.mrf.mxu1 }
 0x18e   :  { %3121 = vmatprep.subr.bf16.mxu1 %v16195_v53  ;;  %v16269_v53 = vld [vmem:[#allocation2 + $0xa24] ss:$28 sps:$4 sm:$0xff]  }
 0x190   :  { %3079 = vmatpush2.bf16.msra.mxu0 %v16190_v54  ;;  %v16270_v54 = vld [vmem:[#allocation2 + $0x328] ss:$28 sps:$4 sm:$0xff]  }
 0x191   :  { %3122 = vmatpush2.bf16.msra.mxu1 %v16193_v55  ;;  %3080 = vmatprep.subr.bf16.mxu0 %v16198_v56  ;;  %v18520_v55 = vpop.f32.mrf.mxu0 }
 0x192   :  { %3123 = vmatprep.subr.bf16.mxu1 %v16201_v57  ;;  %v16267_v57 = vld [vmem:[#allocation2 + $0xa20] ss:$28 sps:$4 sm:$0xff]  }
 0x194   :  { %3081 = vmatpush2.bf16.msra.mxu0 %v16196_v58 }
 0x195   :  { %3124 = vmatpush2.bf16.msra.mxu1 %v16199_v59  ;;  %3082 = vmatprep.subr.bf16.mxu0 %v16204_v49  ;;  %v18525_v59 = vld [vmem:[%s18996_s0 + $0x18] ss:$28 sps:$4 sm:$0xff]   ;;  %v16271_v49 = vld [vmem:[#allocation2 + $0x168] ss:$28 sps:$4 sm:$0xff]  }
 0x196   :  { %3125 = vmatprep.subr.bf16.mxu1 %v16207_v41 }
 0x198   :  { %3083 = vmatpush2.bf16.msra.mxu0 %v16202_v12  ;;  %v16274_v12 = vld [vmem:[#allocation2 + $0x9ec] ss:$28 sps:$4 sm:$0xff]  }
 0x199   :  { %3126 = vmatpush2.bf16.msra.mxu1 %v16205_v4  ;;  %3084 = vmatprep.subr.bf16.mxu0 %v16210_v61  ;;  %v16275_v4 = vld [vmem:[#allocation2 + $0x2f0] ss:$28 sps:$4 sm:$0xff]  }
 0x19a   :  { %3127 = vmatprep.subr.bf16.mxu1 %v16213_v62 }
 0x19c   :  { %3085 = vmatpush2.bf16.msra.mxu0 %v16208_v63 }
 0x19d   :  { %3128 = vmatpush2.bf16.msra.mxu1 %v16211_v0  ;;  %3140 = vmatprep.subr.bf16.mxu0 %v16216_v35  ;;  %v16272_v0 = vld [vmem:[#allocation2 + $0x9e8] ss:$28 sps:$4 sm:$0xff]   ;;  %v16276_v35 = vld [vmem:[#allocation2 + $0x130] ss:$28 sps:$4 sm:$0xff]  }
 0x19e   :  { %3183 = vmatprep.subr.bf16.mxu1 %v16219_v1 }
 0x19f   :  { %3087 = vmatmul.mubr.bf16.vlgmr.msra.gmra.mxu0 %v18502_v8 }
 0x1a0   :  { %3130 = vmatmul.mubr.bf16.vlgmr.msra.gmra.mxu1 %v18508_v10  ;;  %3141 = vmatpush1.bf16.msra.mxu0 %v16214_v2  ;;  %v2873_v56 = vpop.f32.mrf.mxu1 }
 0x1a1   :  { %3184 = vmatpush1.bf16.msra.mxu1 %v16217_v3  ;;  %3142 = vmatprep.subr.bf16.mxu0 %v16222_v5  ;;  %v16280_v3 = vld [vmem:[#allocation2 + $0x2b8] ss:$28 sps:$4 sm:$0xff]  }
 0x1a2   :  { %3185 = vmatprep.subr.bf16.mxu1 %v16225_v6  ;;  %3215 = vmatprep.mubr.bf16.mxu1 %v18317_v14  ;;  %v18529_v61 = vpop.f32.mrf.mxu1 }
 0x1a3   :  { %3172 = vmatprep.mubr.bf16.mxu0 %v18515_v17 }
 0x1a4   :  { %3143 = vmatpush1.bf16.msra.mxu0 %v16220_v11  ;;  %v2877_v5 = vpop.f32.mrf.mxu1  ;;  %v16277_v11 = vld [vmem:[#allocation2 + $0x9b0] ss:$28 sps:$4 sm:$0xff]  }
 0x1a5   :  { %3186 = vmatpush1.bf16.msra.mxu1 %v16223_v13  ;;  %3144 = vmatprep.subr.bf16.mxu0 %v16228_v15  ;;  %v16281_v13 = vld [vmem:[#allocation2 + $0xf8] ss:$28 sps:$4 sm:$0xff]  }
 0x1a6   :  { %3187 = vmatprep.subr.bf16.mxu1 %v16231_v16  ;;  %v16284_v15 = vld [vmem:[#allocation2 + $0x97c] ss:$28 sps:$4 sm:$0xff]  }
 0x1a8   :  { %3145 = vmatpush1.bf16.msra.mxu0 %v16226_v18 }
 0x1a9   :  { %3188 = vmatpush1.bf16.msra.mxu1 %v16229_v19  ;;  %3146 = vmatprep.subr.bf16.mxu0 %v16234_v20  ;;  %v16285_v19 = vld [vmem:[#allocation2 + $0x280] ss:$28 sps:$4 sm:$0xff]  }
 0x1aa   :  { %3189 = vmatprep.subr.bf16.mxu1 %v16237_v23  ;;  %v16286_v20 = vld [vmem:[#allocation2 + $0xc0] ss:$28 sps:$4 sm:$0xff]  }
 0x1ab   :  { %v16289_v23 = vld [vmem:[#allocation2 + $0x944] ss:$28 sps:$4 sm:$0xff]  }
 0x1ac   :  { %3147 = vmatpush1.bf16.msra.mxu0 %v16232_v24  ;;  %v16290_v24 = vld [vmem:[#allocation2 + $0x248] ss:$28 sps:$4 sm:$0xff]  }
 0x1ad   :  { %3190 = vmatpush1.bf16.msra.mxu1 %v16235_v25  ;;  %3148 = vmatprep.subr.bf16.mxu0 %v16240_v26  ;;  %v16287_v25 = vld [vmem:[#allocation2 + $0x940] ss:$28 sps:$4 sm:$0xff]   ;;  %v16291_v26 = vld [vmem:[#allocation2 + $0x88] ss:$28 sps:$4 sm:$0xff]  }
 0x1ae   :  { %3191 = vmatprep.subr.bf16.mxu1 %v16243_v27  ;;  %v16294_v27 = vld [vmem:[#allocation2 + $0x90c] ss:$28 sps:$4 sm:$0xff]  }
 0x1b0   :  { %3149 = vmatpush1.bf16.msra.mxu0 %v16238_v28  ;;  %v16295_v28 = vld [vmem:[#allocation2 + $0x210] ss:$28 sps:$4 sm:$0xff]  }
 0x1b1   :  { %3192 = vmatpush1.bf16.msra.mxu1 %v16241_v29  ;;  %3150 = vmatprep.subr.bf16.mxu0 %v16246_v30  ;;  %v16292_v29 = vld [vmem:[#allocation2 + $0x908] ss:$28 sps:$4 sm:$0xff]   ;;  %v16296_v30 = vld [vmem:[#allocation2 + $0x50] ss:$28 sps:$4 sm:$0xff]  }
 0x1b2   :  { %3193 = vmatprep.subr.bf16.mxu1 %v16249_v7  ;;  %v16299_v7 = vld [vmem:[#allocation2 + $0x8d4] ss:$28 sps:$4 sm:$0xff]  }
 0x1b4   :  { %3151 = vmatpush1.bf16.msra.mxu0 %v16244_v50  ;;  %v16300_v50 = vld [vmem:[#allocation2 + $0x1d8] ss:$28 sps:$4 sm:$0xff]  }
 0x1b5   :  { %3194 = vmatpush1.bf16.msra.mxu1 %v16247_v31  ;;  %3152 = vmatprep.subr.bf16.mxu0 %v16252_v32  ;;  %v16297_v31 = vld [vmem:[#allocation2 + $0x8d0] ss:$28 sps:$4 sm:$0xff]   ;;  %v16301_v32 = vld [vmem:[#allocation2 + $0x18] ss:$28 sps:$4 sm:$0xff]  }
 0x1b6   :  { %3195 = vmatprep.subr.bf16.mxu1 %v16255_v33  ;;  %v16302_v33 = vld [vmem:[#allocation2 + $0x6e0] ss:$28 sps:$4 sm:$0xff]  }
 0x1b8   :  { %3153 = vmatpush1.bf16.msra.mxu0 %v16250_v37  ;;  %v16303_v37 = vld [vmem:[#allocation2 + $0xa60] ss:$28 sps:$4 sm:$0xff]  }
 0x1b9   :  { %3196 = vmatpush1.bf16.msra.mxu1 %v16253_v39  ;;  %3154 = vmatprep.subr.bf16.mxu0 %v16258_v40  ;;  %v16304_v39 = vld [vmem:[#allocation2 + $0x520] ss:$28 sps:$4 sm:$0xff]  }
 0x1ba   :  { %3197 = vmatprep.subr.bf16.mxu1 %v16261_v42  ;;  %v16305_v40 = vld [vmem:[#allocation2 + $0x8a0] ss:$28 sps:$4 sm:$0xff]   ;;  %v16306_v42 = vld [vmem:[#allocation2 + $0x6a8] ss:$28 sps:$4 sm:$0xff]  }
 0x1bc   :  { %3155 = vmatpush1.bf16.msra.mxu0 %v16256_v43  ;;  %v16307_v43 = vld [vmem:[#allocation2 + $0xa28] ss:$28 sps:$4 sm:$0xff]  }
 0x1bd   :  { %3198 = vmatpush1.bf16.msra.mxu1 %v16259_v44  ;;  %3156 = vmatprep.subr.bf16.mxu0 %v16264_v45  ;;  %v16308_v44 = vld [vmem:[#allocation2 + $0x4e8] ss:$28 sps:$4 sm:$0xff]  }
 0x1be   :  { %15280 = vmatprep.subr.bf16.mxu1 %v16265_v46  ;;  %v16309_v45 = vld [vmem:[#allocation2 + $0x868] ss:$28 sps:$4 sm:$0xff]   ;;  %v18540_v46 = vld [vmem:[%s18996_s0 + $0x10] ss:$28 sps:$4 sm:$0xff]  }
 0x1bf   :  { %v2830_v58 = vpop.f32.mrf.mxu0 }
 0x1c0   :  { %3216 = vmatmul.mubr.bf16.vlgmr.msra.gmra.mxu1 %v18525_v59  ;;  %v2831_v41 = vadd.f32 %v2830_v58, %v18495_v38  ;;  %3157 = vmatpush2.bf16.msra.mxu0 %v16262_v48  ;;  %v16279_v38 = vld [vmem:[#allocation2 + $0x9b4] ss:$28 sps:$4 sm:$0xff]  }
 0x1c1   :  { %15281 = vmatpush3.bf16.msra.mxu1 %v16266_v51  ;;  %v18531_v62 = vpop.f32.mrf.mxu0  ;;  %3158 = vmatprep.subr.bf16.mxu0 %v16269_v53  ;;  %v16310_v48 = vld [vmem:[#allocation2 + $0x670] ss:$28 sps:$4 sm:$0xff]   ;;  %v16315_v58 = vld [vmem:[#allocation2 + $0x9b8] ss:$28 sps:$4 sm:$0xff]  }
 0x1c2   :  { %15282 = vmatprep.subr.bf16.mxu1 %v16270_v54  ;;  %v2874_v63 = vadd.f32 %v2873_v56, %v2831_v41  ;;  %3258 = vmatprep.mubr.bf16.mxu1 %v18476_v60  ;;  %v16311_v51 = vld [vmem:[#allocation2 + $0x9f0] ss:$28 sps:$4 sm:$0xff]   ;;  %v16317_v41 = vld [vmem:[#allocation2 + $0x7f8] ss:$28 sps:$4 sm:$0xff]  }
 0x1c3   :  { %v2834_v1 = vpop.f32.mrf.mxu0  ;;  %v16312_v53 = vld [vmem:[#allocation2 + $0x4b0] ss:$28 sps:$4 sm:$0xff]  }
 0x1c4   :  { %v2835_v2 = vadd.f32 %v2834_v1, %v18497_v47  ;;  %3159 = vmatpush2.bf16.msra.mxu0 %v16267_v57  ;;  %v3390_v16 = vmax.f32 %v2874_v63, 0.0  ;;  %v16282_v47 = vld [vmem:[#allocation2 + $0x978] ss:$28 sps:$4 sm:$0xff]   ;;  %v16313_v54 = vld [vmem:[#allocation2 + $0x830] ss:$28 sps:$4 sm:$0xff]  }
 0x1c5   :  { %15283 = vmatpush3.bf16.msra.mxu1 %v16271_v49  ;;  %3160 = vmatprep.subr.bf16.mxu0 %v16274_v12  ;;  %v18085_v56 = vld [vmem:[%s18996_s0 + $0xc] ss:$28 sps:$4 sm:$0xff]   ;;  %v16314_v57 = vld [vmem:[#allocation2 + $0x638] ss:$28 sps:$4 sm:$0xff]   ;;  %v16318_v12 = vld [vmem:[#allocation2 + $0x600] ss:$28 sps:$4 sm:$0xff]  }
 0x1c6   :  { %15284 = vmatprep.subr.bf16.mxu1 %v16275_v4  ;;  %v2878_v6 = vadd.f32 %v2877_v5, %v2835_v2  ;;  %v16316_v49 = vld [vmem:[#allocation2 + $0x478] ss:$28 sps:$4 sm:$0xff]   ;;  %v16319_v4 = vld [vmem:[#allocation2 + $0x980] ss:$28 sps:$4 sm:$0xff]   ;;  %v16322_v1 = vld [vmem:[#allocation2 + $0x5c8] ss:$28 sps:$4 sm:$0xff]  }
 0x1c7   :  { %v16320_v63 = vld [vmem:[#allocation2 + $0x440] ss:$28 sps:$4 sm:$0xff]   ;;  %v16323_v2 = vld [vmem:[#allocation2 + $0x948] ss:$28 sps:$4 sm:$0xff]  }
 0x1c8   :  { %v3397_v18 = vmax.f32 %v2878_v6, 0.0  ;;  %3161 = vmatpush2.bf16.msra.mxu0 %v16272_v0  ;;  %v16321_v0 = vld [vmem:[#allocation2 + $0x7c0] ss:$28 sps:$4 sm:$0xff]   ;;  %v16326_v6 = vld [vmem:[#allocation2 + $0x590] ss:$28 sps:$4 sm:$0xff]  }
 0x1c9   :  { %15285 = vmatpush3.bf16.msra.mxu1 %v16276_v35  ;;  %3162 = vmatprep.subr.bf16.mxu0 %v16279_v38  ;;  %v16324_v38 = vld [vmem:[#allocation2 + $0x408] ss:$28 sps:$4 sm:$0xff]  }
 0x1ca   :  { %15286 = vmatprep.subr.bf16.mxu1 %v16280_v3  ;;  %v18535_v60 = vpack.c.bf16 %v3397_v18, %v3390_v16  ;;  %v16325_v3 = vld [vmem:[#allocation2 + $0x788] ss:$28 sps:$4 sm:$0xff]   ;;  %v16329_v16 = vld [vmem:[#allocation2 + $0x750] ss:$28 sps:$4 sm:$0xff]  }
 0x1cc   :  { %3163 = vmatpush2.bf16.msra.mxu0 %v16277_v11  ;;  %v16327_v11 = vld [vmem:[#allocation2 + $0x910] ss:$28 sps:$4 sm:$0xff]  }
 0x1cd   :  { %15287 = vmatpush3.bf16.msra.mxu1 %v16281_v13  ;;  %3164 = vmatprep.subr.bf16.mxu0 %v16284_v15  ;;  %v2836_v13 = vpop.f32.mrf.mxu0  ;;  %v16328_v15 = vld [vmem:[#allocation2 + $0x3d0] ss:$28 sps:$4 sm:$0xff]  }
 0x1ce   :  { %15288 = vmatprep.subr.bf16.mxu1 %v16285_v19  ;;  %v16330_v19 = vld [vmem:[#allocation2 + $0x558] ss:$28 sps:$4 sm:$0xff]  }
 0x1d0   :  { %3165 = vmatpush2.bf16.msra.mxu0 %v16282_v47  ;;  %v16331_v47 = vld [vmem:[#allocation2 + $0x8d8] ss:$28 sps:$4 sm:$0xff]  }
 0x1d1   :  { %15289 = vmatpush3.bf16.msra.mxu1 %v16286_v20  ;;  %3166 = vmatprep.subr.bf16.mxu0 %v16289_v23  ;;  %v2879_v20 = vpop.f32.mrf.mxu1  ;;  %v16332_v23 = vld [vmem:[#allocation2 + $0x398] ss:$28 sps:$4 sm:$0xff]  }
 0x1d2   :  { %15290 = vmatprep.subr.bf16.mxu1 %v16290_v24  ;;  %v16333_v24 = vld [vmem:[#allocation2 + $0x718] ss:$28 sps:$4 sm:$0xff]  }
 0x1d4   :  { %3167 = vmatpush2.bf16.msra.mxu0 %v16287_v25 }
 0x1d5   :  { %15291 = vmatpush3.bf16.msra.mxu1 %v16291_v26  ;;  %3168 = vmatprep.subr.bf16.mxu0 %v16294_v27  ;;  %v16337_v27 = vld [vmem:[#allocation2 + $0xc20] ss:$28 sps:$4 sm:$0xff]  }
 0x1d6   :  { %15292 = vmatprep.subr.bf16.mxu1 %v16295_v28 }
 0x1d8   :  { %3169 = vmatpush2.bf16.msra.mxu0 %v16292_v29  ;;  %v16340_v29 = vld [vmem:[#allocation6 + $0x154] ss:$28 sps:$4 sm:$0xff]  }
 0x1d9   :  { %15293 = vmatpush3.bf16.msra.mxu1 %v16296_v30  ;;  %3170 = vmatprep.subr.bf16.mxu0 %v16299_v7  ;;  %v18318_v30 = vmov 0.0   ;;  %v16338_v7 = vld [vmem:[#allocation6 + $0x150] ss:$28 sps:$4 sm:$0xff]  }
 0x1da   :  { %15294 = vmatprep.subr.bf16.mxu1 %v16300_v50  ;;  %v16341_v50 = vld [vmem:[#allocation2 + $0xbe8] ss:$28 sps:$4 sm:$0xff]  }
 0x1dc   :  { %3171 = vmatpush2.bf16.msra.mxu0 %v16297_v31 }
 0x1dd   :  { %15295 = vmatpush3.bf16.msra.mxu1 %v16301_v32  ;;  %15302 = vmatprep.subr.bf16.mxu0 %v16302_v33  ;;  %v16342_v32 = vld [vmem:[#allocation6 + $0x118] ss:$28 sps:$4 sm:$0xff]   ;;  %v16345_v33 = vld [vmem:[#allocation2 + $0xbb0] ss:$28 sps:$4 sm:$0xff]  }
 0x1de   :  { %15324 = vmatprep.subr.bf16.mxu1 %v16303_v37  ;;  %v16346_v37 = vld [vmem:[#allocation6 + $0xe0] ss:$28 sps:$4 sm:$0xff]  }
 0x1df   :  { %3173 = vmatmul.mubr.bf16.vlgmr.msra.gmra.mxu0 %v18540_v46 }
 0x1e0   :  { %3259 = vmatmul.mubr.bf16.vlgmr.msra.gmra.mxu1 %v18502_v8  ;;  %15303 = vmatpush3.bf16.msra.mxu0 %v16304_v39  ;;  %v18549_v8 = vsub.s32 1, %v18482_v9  ;;  %v16349_v39 = vld [vmem:[#allocation2 + $0xb78] ss:$28 sps:$4 sm:$0xff]  }
 0x1e1   :  { %15325 = vmatpush3.bf16.msra.mxu1 %v16305_v40  ;;  %15304 = vmatprep.subr.bf16.mxu0 %v16306_v42  ;;  %v16352_v40 = vld [vmem:[#allocation6 + $0xac] ss:$28 sps:$4 sm:$0xff]  }
 0x1e2   :  { %15326 = vmatprep.subr.bf16.mxu1 %v16307_v43  ;;  %3299 = vmatprep.mubr.bf16.mxu0 %v18085_v56  ;;  %v16350_v42 = vld [vmem:[#allocation6 + $0xa8] ss:$28 sps:$4 sm:$0xff]   ;;  %v16353_v43 = vld [vmem:[#allocation2 + $0xb40] ss:$28 sps:$4 sm:$0xff]  }
 0x1e3   :  { %3340 = vmatprep.mubr.bf16.mxu1 %v18515_v17  ;;  %v630_v17 = vrot.slane %v18484_v21, %v18549_v8  ;;  %v16361_v56 = vld [vmem:[#allocation2 + $0xad0] ss:$28 sps:$4 sm:$0xff]  }
 0x1e4   :  { %15305 = vmatpush3.bf16.msra.mxu0 %v16308_v44  ;;  %v16356_v44 = vld [vmem:[#allocation6 + $0x74] ss:$28 sps:$4 sm:$0xff]  }
 0x1e5   :  { %15327 = vmatpush3.bf16.msra.mxu1 %v16309_v45  ;;  %15306 = vmatprep.subr.bf16.mxu0 %v16310_v48  ;;  %v2751_v35 = vadd.f32 %v18520_v55, %v630_v17  ;;  %v2747_v5 = vadd.f32 %v18491_v34, %v630_v17  ;;  %v16354_v45 = vld [vmem:[#allocation6 + $0x70] ss:$28 sps:$4 sm:$0xff]   ;;  %v16360_v48 = vld [vmem:[#allocation6 + $0x3c] ss:$28 sps:$4 sm:$0xff]  }
 0x1e6   :  { %15328 = vmatprep.subr.bf16.mxu1 %v16311_v51  ;;  %v18571_v51 = vpop.f32.mrf.mxu1  ;;  %v16368_v17 = vld [vmem:[#allocation6 + $0x34c] ss:$28 sps:$4 sm:$0xff]  }
 0x1e7   :  { %v2794_v21 = vadd.f32 %v18518_v52, %v2751_v35  ;;  %v2790_v55 = vadd.f32 %v18493_v36, %v2747_v5  ;;  %v16336_v52 = vld [vmem:[#allocation6 + $0x18c] ss:$28 sps:$4 sm:$0xff]   ;;  %v16374_v5 = vld [vmem:[#allocation6 + $0x314] ss:$28 sps:$4 sm:$0xff]  }
 0x1e8   :  { %15307 = vmatpush3.bf16.msra.mxu0 %v16312_v53  ;;  %v16334_v36 = vld [vmem:[#allocation6 + $0x188] ss:$28 sps:$4 sm:$0xff]  }
 0x1e9   :  { %15329 = vmatpush3.bf16.msra.mxu1 %v16313_v54  ;;  %15308 = vmatprep.subr.bf16.mxu0 %v16314_v57  ;;  %v2837_v18 = vadd.f32 %v2836_v13, %v2794_v21  ;;  %v2833_v34 = vadd.f32 %v18531_v62, %v2790_v55  ;;  %v16358_v54 = vld [vmem:[#allocation6 + $0x38] ss:$28 sps:$4 sm:$0xff]   ;;  %v16364_v57 = vld [vmem:[#allocation6 + $0x4] ss:$28 sps:$4 sm:$0xff]  }
 0x1ea   :  { %15330 = vmatprep.subr.bf16.mxu1 %v16315_v58  ;;  %v2918_v58 = vpop.f32.mrf.mxu1 }
 0x1eb   :  { %v2880_v25 = vadd.f32 %v2879_v20, %v2837_v18  ;;  %v2876_v26 = vadd.f32 %v18529_v61, %v2833_v34  ;;  %v16344_v61 = vld [vmem:[#allocation6 + $0x11c] ss:$28 sps:$4 sm:$0xff]  }
 0x1ec   :  { %15309 = vmatpush3.bf16.msra.mxu0 %v16316_v49 }
 0x1ed   :  { %15331 = vmatpush3.bf16.msra.mxu1 %v16317_v41  ;;  %15310 = vmatprep.subr.bf16.mxu0 %v16318_v12  ;;  %v3398_v28 = vmax.f32 %v2880_v25, 0.0  ;;  %v3391_v62 = vmax.f32 %v2876_v26, 0.0  ;;  %v18578_v41 = vsub.s32 3, %v18482_v9  ;;  %v16362_v12 = vld [vmem:[#allocation6] ss:$28 sps:$4 sm:$0xff]  }
 0x1ee   :  { %15332 = vmatprep.subr.bf16.mxu1 %v16319_v4  ;;  %v16365_v4 = vld [vmem:[#allocation2 + $0xa98] ss:$28 sps:$4 sm:$0xff]   ;;  %v16381_v26 = vld [vmem:[#allocation6 + $0x498] ss:$28 sps:$4 sm:$0xff]  }
 0x1ef   :  { %v18560_v31 = vpack.c.bf16 %v3398_v28, %v3391_v62  ;;  %v16386_v28 = vld [vmem:[#allocation6 + $0x2a4] ss:$28 sps:$4 sm:$0xff]  }
 0x1f0   :  { %15311 = vmatpush3.bf16.msra.mxu0 %v16320_v63  ;;  %v16371_v63 = vld [vmem:[#allocation6 + $0x50c] ss:$28 sps:$4 sm:$0xff]   ;;  %v16389_v62 = vld [vmem:[#allocation6 + $0x464] ss:$28 sps:$4 sm:$0xff]  }
 0x1f1   :  { %15333 = vmatpush3.bf16.msra.mxu1 %v16321_v0  ;;  %15312 = vmatprep.subr.bf16.mxu0 %v16322_v1  ;;  %v18580_v0 = vpop.f32.mrf.mxu1  ;;  %v18585_v1 = vld [vmem:[#allocation4] sm:$0xff] }
 0x1f2   :  { %15334 = vmatprep.subr.bf16.mxu1 %v16323_v2  ;;  %v638_v2 = vrot.slane %v18585_v1, %v18578_v41 }
 0x1f4   :  { %15313 = vmatpush3.bf16.msra.mxu0 %v16324_v38  ;;  %v16366_v38 = vld [vmem:[#allocation6 + $0x348] ss:$28 sps:$4 sm:$0xff]   ;;  %v2919_v21 = vadd.f32 %v2918_v58, %v638_v2  ;;  %v16407_v58 = vld [vmem:[#allocation6 + $0x3bc] ss:$28 sps:$4 sm:$0xff]  }
 0x1f5   :  { %15335 = vmatpush3.bf16.msra.mxu1 %v16325_v3  ;;  %15314 = vmatprep.subr.bf16.mxu0 %v16326_v6  ;;  %v16369_v3 = vld [vmem:[#allocation6 + $0x508] ss:$28 sps:$4 sm:$0xff]   ;;  %v16377_v6 = vld [vmem:[#allocation6 + $0x4d4] ss:$28 sps:$4 sm:$0xff]  }
 0x1f6   :  { %15336 = vmatprep.subr.bf16.mxu1 %v16327_v11  ;;  %v2922_v11 = vpop.f32.mrf.mxu1 }
 0x1f8   :  { %15315 = vmatpush3.bf16.msra.mxu0 %v16328_v15  ;;  %v16372_v15 = vld [vmem:[#allocation6 + $0x310] ss:$28 sps:$4 sm:$0xff]  }
 0x1f9   :  { %15337 = vmatpush3.bf16.msra.mxu1 %v16329_v16  ;;  %15316 = vmatprep.subr.bf16.mxu0 %v16330_v19  ;;  %v16375_v16 = vld [vmem:[#allocation6 + $0x4d0] ss:$28 sps:$4 sm:$0xff]   ;;  %v16380_v19 = vld [vmem:[#allocation6 + $0x2dc] ss:$28 sps:$4 sm:$0xff]  }
 0x1fa   :  { %15338 = vmatprep.subr.bf16.mxu1 %v16331_v47 }
 0x1fc   :  { %15317 = vmatpush3.bf16.msra.mxu0 %v16332_v23  ;;  %v16383_v23 = vld [vmem:[#allocation6 + $0x49c] ss:$28 sps:$4 sm:$0xff]  }
 0x1fd   :  { %15339 = vmatpush3.bf16.msra.mxu1 %v16333_v24  ;;  %15655 = vmatprep.subr.bf16.mxu0 %v18318_v30  ;;  %v2923_v24 = vadd.f32 %v2922_v11, %v638_v2  ;;  %v16411_v2 = vld [vmem:[#allocation6 + $0x380] ss:$28 sps:$4 sm:$0xff]   ;;  %v16419_v11 = vld [vmem:[#allocation6 + $0x694] ss:$28 sps:$4 sm:$0xff]  }
 0x1fe   :  { %5912 = vmatprep.subr.bf16.mxu1 %v16336_v52  ;;  %v16378_v52 = vld [vmem:[#allocation6 + $0x2d8] ss:$28 sps:$4 sm:$0xff]  }
 0x1ff   :  { %3300 = vmatmul.mubr.bf16.vlgmr.msra.gmra.mxu0 %v18508_v10  ;;  %v16348_v10 = vld [vmem:[#allocation6 + $0xe4] ss:$28 sps:$4 sm:$0xff]   ;;  %v18573_v53 = vpop.f32.mrf.mxu0 }
 0x200   :  { %3341 = vmatmul.mubr.bf16.vlgmr.msra.gmra.mxu1 %v18540_v46  ;;  %15656 = vmatpush3.bf16.msra.mxu0 %v16337_v27  ;;  %v16357_v46 = vld [vmem:[#allocation2 + $0xb08] ss:$28 sps:$4 sm:$0xff]  }
 0x201   :  { %5913 = vmatpush1.bf16.msra.mxu1 %v16334_v36  ;;  %5944 = vmatprep.mubr.bf16.mxu1 %v18560_v31  ;;  %v2961_v49 = vpop.f32.mrf.mxu0 }
 0x202   :  { %15657 = vmatprep.subr.bf16.mxu0 %v18318_v30  ;;  %5914 = vmatprep.subr.bf16.mxu1 %v16340_v29  ;;  %v2962_v47 = vadd.f32 %v2961_v49, %v2919_v21  ;;  %v16402_v49 = vld [vmem:[#allocation6 + $0x1f8] ss:$28 sps:$4 sm:$0xff]  }
 0x203   :  { %15671 = vmatprep.mubr.msk.bf16.mxu0 %vm18319_vm0, %v18318_v30  ;;  %v18582_v35 = vpop.f32.mrf.mxu0  ;;  %v16443_v21 = vld [vmem:[#allocation6 + $0x854] ss:$28 sps:$4 sm:$0xff]  }
 0x204   :  { %15658 = vmatpush3.bf16.msra.mxu0 %v16341_v50 }
 0x205   :  { %5915 = vmatpush1.bf16.msra.mxu1 %v16338_v7  ;;  %15659 = vmatprep.subr.bf16.mxu0 %v18318_v30  ;;  %v2965_v13 = vpop.f32.mrf.mxu0 }
 0x206   :  { %5916 = vmatprep.subr.bf16.mxu1 %v16344_v61  ;;  %v2966_v29 = vadd.f32 %v2965_v13, %v2923_v24  ;;  %v16384_v61 = vld [vmem:[#allocation6 + $0x2a0] ss:$28 sps:$4 sm:$0xff]   ;;  %v16438_v13 = vld [vmem:[#allocation6 + $0x888] ss:$28 sps:$4 sm:$0xff]  }
 0x207   :  { %v16449_v24 = vld [vmem:[#allocation6 + $0x7e4] ss:$28 sps:$4 sm:$0xff]  }
 0x208   :  { %15660 = vmatpush3.bf16.msra.mxu0 %v16345_v33 }
 0x209   :  { %5917 = vmatpush1.bf16.msra.mxu1 %v16342_v32  ;;  %15661 = vmatprep.subr.bf16.mxu0 %v18318_v30  ;;  %v16387_v32 = vld [vmem:[#allocation6 + $0x460] ss:$28 sps:$4 sm:$0xff]  }
 0x20a   :  { %5918 = vmatprep.subr.bf16.mxu1 %v16348_v10  ;;  %v16392_v10 = vld [vmem:[#allocation6 + $0x26c] ss:$28 sps:$4 sm:$0xff]  }
 0x20c   :  { %15662 = vmatpush3.bf16.msra.mxu0 %v16349_v39  ;;  %v16395_v39 = vld [vmem:[#allocation6 + $0x42c] ss:$28 sps:$4 sm:$0xff]  }
 0x20d   :  { %5919 = vmatpush1.bf16.msra.mxu1 %v16346_v37  ;;  %15663 = vmatprep.subr.bf16.mxu0 %v18318_v30 }
 0x20e   :  { %5920 = vmatprep.subr.bf16.mxu1 %v16352_v40 }
 0x210   :  { %15664 = vmatpush3.bf16.msra.mxu0 %v16353_v43  ;;  %v16390_v43 = vld [vmem:[#allocation6 + $0x268] ss:$28 sps:$4 sm:$0xff]  }
 0x211   :  { %5921 = vmatpush1.bf16.msra.mxu1 %v16350_v42  ;;  %15665 = vmatprep.subr.bf16.mxu0 %v18318_v30 }
 0x212   :  { %5922 = vmatprep.subr.bf16.mxu1 %v16356_v44  ;;  %v16393_v44 = vld [vmem:[#allocation6 + $0x428] ss:$28 sps:$4 sm:$0xff]  }
 0x214   :  { %15666 = vmatpush3.bf16.msra.mxu0 %v16357_v46 }
 0x215   :  { %5923 = vmatpush1.bf16.msra.mxu1 %v16354_v45  ;;  %15667 = vmatprep.subr.bf16.mxu0 %v18318_v30  ;;  %v16398_v45 = vld [vmem:[#allocation6 + $0x234] ss:$28 sps:$4 sm:$0xff]  }
 0x216   :  { %5924 = vmatprep.subr.bf16.mxu1 %v16360_v48  ;;  %v16401_v48 = vld [vmem:[#allocation6 + $0x3f4] ss:$28 sps:$4 sm:$0xff]  }
 0x218   :  { %15668 = vmatpush3.bf16.msra.mxu0 %v16361_v56  ;;  %v16399_v56 = vld [vmem:[#allocation6 + $0x3f0] ss:$28 sps:$4 sm:$0xff]  }
 0x219   :  { %5925 = vmatpush1.bf16.msra.mxu1 %v16358_v54  ;;  %15669 = vmatprep.subr.bf16.mxu0 %v18318_v30  ;;  %v16396_v54 = vld [vmem:[#allocation6 + $0x230] ss:$28 sps:$4 sm:$0xff]  }
 0x21a   :  { %5926 = vmatprep.subr.bf16.mxu1 %v16364_v57  ;;  %v16404_v57 = vld [vmem:[#allocation6 + $0x1fc] ss:$28 sps:$4 sm:$0xff]  }
 0x21c   :  { %15670 = vmatpush3.bf16.msra.mxu0 %v16365_v4  ;;  %v16410_v4 = vld [vmem:[#allocation6 + $0x1c4] ss:$28 sps:$4 sm:$0xff]  }
 0x21d   :  { %5927 = vmatpush1.bf16.msra.mxu1 %v16362_v12  ;;  %5955 = vmatprep.subr.bf16.mxu0 %v16371_v63  ;;  %v16405_v12 = vld [vmem:[#allocation6 + $0x3b8] ss:$28 sps:$4 sm:$0xff]   ;;  %v16408_v63 = vld [vmem:[#allocation6 + $0x1c0] ss:$28 sps:$4 sm:$0xff]  }
 0x21e   :  { %5928 = vmatprep.subr.bf16.mxu1 %v16368_v17  ;;  %v16413_v17 = vld [vmem:[#allocation6 + $0x384] ss:$28 sps:$4 sm:$0xff]  }
 0x21f   :  { %v18591_v18 = vpop.f32.mrf.mxu0  ;;  %15672 = vmatmul.mubr.bf16.vlgmr.msra.gmra.mxu0 %v18525_v59 }
 0x220   :  { %v18589_v55 = vpop.f32.mrf.mxu1  ;;  %5956 = vmatpush1.bf16.msra.mxu0 %v16369_v3  ;;  %v16440_v3 = vld [vmem:[#allocation6 + $0x88c] ss:$28 sps:$4 sm:$0xff]  }
 0x221   :  { %5929 = vmatpush2.bf16.msra.mxu1 %v16366_v38  ;;  %v3047_v20 = vpop.f32.mrf.mxu0  ;;  %5957 = vmatprep.subr.bf16.mxu0 %v16377_v6  ;;  %v16416_v38 = vld [vmem:[#allocation6 + $0x6cc] ss:$28 sps:$4 sm:$0xff]  }
 0x222   :  { %v3004_v34 = vpop.f32.mrf.mxu1  ;;  %5930 = vmatprep.subr.bf16.mxu1 %v16374_v5  ;;  %v18602_v5 = vsub.s32 2, %v18482_v9  ;;  %v16414_v6 = vld [vmem:[#allocation6 + $0x6c8] ss:$28 sps:$4 sm:$0xff]  }
 0x223   :  { %v3005_v25 = vadd.f32 %v3004_v34, %v2962_v47  ;;  %v18596_v27 = vpop.f32.mrf.mxu0  ;;  %v16446_v47 = vld [vmem:[#allocation6 + $0x81c] ss:$28 sps:$4 sm:$0xff]  }
 0x224   :  { %v18594_v36 = vpop.f32.mrf.mxu1  ;;  %5958 = vmatpush1.bf16.msra.mxu0 %v16375_v16  ;;  %v16441_v16 = vld [vmem:[#allocation6 + $0x850] ss:$28 sps:$4 sm:$0xff]   ;;  %v16420_v34 = vld [vmem:[#allocation6 + $0x658] ss:$28 sps:$4 sm:$0xff]  }
 0x225   :  { %5931 = vmatpush2.bf16.msra.mxu1 %v16372_v15  ;;  %5959 = vmatprep.subr.bf16.mxu0 %v16383_v23  ;;  %v3048_v7 = vadd.f32 %v3047_v20, %v3005_v25  ;;  %v3051_v33 = vpop.f32.mrf.mxu0  ;;  %v16417_v15 = vld [vmem:[#allocation6 + $0x690] ss:$28 sps:$4 sm:$0xff]   ;;  %v16444_v20 = vld [vmem:[#allocation6 + $0x818] ss:$28 sps:$4 sm:$0xff]   ;;  %v16425_v23 = vld [vmem:[#allocation6 + $0x624] ss:$28 sps:$4 sm:$0xff]  }
 0x226   :  { %v3008_v59 = vpop.f32.mrf.mxu1  ;;  %5932 = vmatprep.subr.bf16.mxu1 %v16380_v19  ;;  %v16422_v19 = vld [vmem:[#allocation6 + $0x65c] ss:$28 sps:$4 sm:$0xff]  }
 0x227   :  { %v3009_v50 = vadd.f32 %v3008_v59, %v2966_v29  ;;  %v3393_v40 = vmax.f32 %v3048_v7, 0.0  ;;  %v16423_v25 = vld [vmem:[#allocation6 + $0x620] ss:$28 sps:$4 sm:$0xff]   ;;  %v16452_v29 = vld [vmem:[#allocation6 + $0x7ac] ss:$28 sps:$4 sm:$0xff]  }
 0x228   :  { %5960 = vmatpush1.bf16.msra.mxu0 %v16381_v26  ;;  %v16447_v26 = vld [vmem:[#allocation6 + $0x7e0] ss:$28 sps:$4 sm:$0xff]   ;;  %v16426_v59 = vld [vmem:[#allocation6 + $0x5e8] ss:$28 sps:$4 sm:$0xff]  }
 0x229   :  { %v3052_v37 = vadd.f32 %v3051_v33, %v3009_v50  ;;  %5933 = vmatpush2.bf16.msra.mxu1 %v16378_v52  ;;  %5961 = vmatprep.subr.bf16.mxu0 %v16389_v62  ;;  %v16428_v52 = vld [vmem:[#allocation6 + $0x5ec] ss:$28 sps:$4 sm:$0xff]   ;;  %v16431_v62 = vld [vmem:[#allocation6 + $0x5b4] ss:$28 sps:$4 sm:$0xff]  }
 0x22a   :  { %5934 = vmatprep.subr.bf16.mxu1 %v16386_v28  ;;  %v634_v28 = vrot.slane %v18585_v1, %v18602_v5  ;;  %v16450_v7 = vld [vmem:[#allocation6 + $0x7a8] ss:$28 sps:$4 sm:$0xff]   ;;  %v16434_v1 = vld [vmem:[#allocation6 + $0x57c] ss:$28 sps:$4 sm:$0xff]  }
 0x22b   :  { %v3400_v42 = vmax.f32 %v3052_v37, 0.0  ;;  %v16453_v37 = vld [vmem:[#allocation6 + $0x770] ss:$28 sps:$4 sm:$0xff]  }
 0x22c   :  { %5962 = vmatpush1.bf16.msra.mxu0 %v16387_v32  ;;  %v2921_v50 = vadd.f32 %v18580_v0, %v634_v28  ;;  %v2917_v32 = vadd.f32 %v18571_v51, %v634_v28  ;;  %v16456_v51 = vld [vmem:[#allocation6 + $0x738] ss:$28 sps:$4 sm:$0xff]   ;;  %v16485_v28 = vld [vmem:[#allocation6 + $0x8c4] ss:$28 sps:$4 sm:$0xff]  }
 0x22d   :  { %v18598_v46 = vpack.c.bf16 %v3400_v42, %v3393_v40  ;;  %5935 = vmatpush2.bf16.msra.mxu1 %v16384_v61  ;;  %5963 = vmatprep.subr.bf16.mxu0 %v16395_v39  ;;  %v16455_v61 = vld [vmem:[#allocation6 + $0x774] ss:$28 sps:$4 sm:$0xff]   ;;  %v16458_v42 = vld [vmem:[#allocation6 + $0x73c] ss:$28 sps:$4 sm:$0xff]  }
 0x22e   :  { %5936 = vmatprep.subr.bf16.mxu1 %v16392_v10  ;;  %v2964_v33 = vadd.f32 %v18582_v35, %v2921_v50  ;;  %v16429_v10 = vld [vmem:[#allocation6 + $0x5b0] ss:$28 sps:$4 sm:$0xff]   ;;  %v2960_v39 = vadd.f32 %v18573_v53, %v2917_v32  ;;  %v16435_v53 = vld [vmem:[#allocation6 + $0x540] ss:$28 sps:$4 sm:$0xff]  }
 0x22f   :  { %5987 = vmatprep.mubr.bf16.mxu0 %v18598_v46  ;;  %v16549_v50 = vld [vmem:[#allocation6 + $0xa80] ss:$28 sps:$4 sm:$0xff]  }
 0x230   :  { %5964 = vmatpush1.bf16.msra.mxu0 %v16393_v44  ;;  %v3007_v40 = vadd.f32 %v18594_v36, %v2964_v33  ;;  %v3003_v0 = vadd.f32 %v18589_v55, %v2960_v39  ;;  %v16437_v44 = vld [vmem:[#allocation6 + $0x544] ss:$28 sps:$4 sm:$0xff]   ;;  %v16509_v55 = vld [vmem:[#allocation6 + $0xc0c] ss:$28 sps:$4 sm:$0xff]  }
 0x231   :  { %5937 = vmatpush2.bf16.msra.mxu1 %v16390_v43  ;;  %5965 = vmatprep.subr.bf16.mxu0 %v16401_v48  ;;  %v16432_v43 = vld [vmem:[#allocation6 + $0x578] ss:$28 sps:$4 sm:$0xff]   ;;  %v16459_v36 = vld [vmem:[#allocation6 + $0x700] ss:$28 sps:$4 sm:$0xff]  }
 0x232   :  { %5938 = vmatprep.subr.bf16.mxu1 %v16398_v45  ;;  %v3050_v35 = vadd.f32 %v18596_v27, %v3007_v40  ;;  %v16461_v45 = vld [vmem:[#allocation6 + $0x704] ss:$28 sps:$4 sm:$0xff]   ;;  %v3046_v48 = vadd.f32 %v18591_v18, %v3003_v0  ;;  %v16515_v18 = vld [vmem:[#allocation6 + $0xbd4] ss:$28 sps:$4 sm:$0xff]  }
 0x233   :  { %v16507_v27 = vld [vmem:[#allocation6 + $0xc08] ss:$28 sps:$4 sm:$0xff]  }
 0x234   :  { %5966 = vmatpush1.bf16.msra.mxu0 %v16399_v56  ;;  %v3399_v56 = vmax.f32 %v3050_v35, 0.0 }
 0x235   :  { %5939 = vmatpush2.bf16.msra.mxu1 %v16396_v54  ;;  %5967 = vmatprep.subr.bf16.mxu0 %v16407_v58  ;;  %v16464_v54 = vld [vmem:[#allocation6 + $0xa4c] ss:$28 sps:$4 sm:$0xff]  }
 0x236   :  { %5940 = vmatprep.subr.bf16.mxu1 %v16404_v57  ;;  %v3392_v57 = vmax.f32 %v3046_v48, 0.0  ;;  %v16462_v58 = vld [vmem:[#allocation6 + $0xa48] ss:$28 sps:$4 sm:$0xff]  }
 0x238   :  { %5968 = vmatpush1.bf16.msra.mxu0 %v16405_v12  ;;  %v18615_v12 = vpack.c.bf16 %v3399_v56, %v3392_v57 }
 0x239   :  { %5941 = vmatpush2.bf16.msra.mxu1 %v16402_v49  ;;  %5969 = vmatprep.subr.bf16.mxu0 %v16413_v17  ;;  %v16467_v49 = vld [vmem:[#allocation6 + $0xa14] ss:$28 sps:$4 sm:$0xff]  }
 0x23a   :  { %5942 = vmatprep.subr.bf16.mxu1 %v16410_v4  ;;  %v16465_v4 = vld [vmem:[#allocation6 + $0xa10] ss:$28 sps:$4 sm:$0xff]  }
 0x23b   :  { %v16513_v17 = vld [vmem:[#allocation6 + $0xbd0] ss:$28 sps:$4 sm:$0xff]  }
 0x23c   :  { %5970 = vmatpush1.bf16.msra.mxu0 %v16411_v2  ;;  %v16521_v2 = vld [vmem:[#allocation6 + $0xb9c] ss:$28 sps:$4 sm:$0xff]  }
 0x23d   :  { %5943 = vmatpush2.bf16.msra.mxu1 %v16408_v63  ;;  %5971 = vmatprep.subr.bf16.mxu0 %v16416_v38  ;;  %v16470_v63 = vld [vmem:[#allocation6 + $0x9dc] ss:$28 sps:$4 sm:$0xff]  }
 0x23e   :  { %5998 = vmatprep.subr.bf16.mxu1 %v16440_v3  ;;  %v16468_v38 = vld [vmem:[#allocation6 + $0x9d8] ss:$28 sps:$4 sm:$0xff]  }
 0x23f   :  { %v16519_v3 = vld [vmem:[#allocation6 + $0xb98] ss:$28 sps:$4 sm:$0xff]  }
 0x240   :  { %5945 = vmatmul.mubr.bf16.vlgmr.msra.gmra.mxu1 %v18535_v60  ;;  %5972 = vmatpush2.bf16.msra.mxu0 %v16414_v6  ;;  %v16473_v6 = vld [vmem:[#allocation6 + $0x9a4] ss:$28 sps:$4 sm:$0xff]  }
 0x241   :  { %5999 = vmatpush1.bf16.msra.mxu1 %v16438_v13  ;;  %5973 = vmatprep.subr.bf16.mxu0 %v16419_v11  ;;  %v16527_v11 = vld [vmem:[#allocation6 + $0xb64] ss:$28 sps:$4 sm:$0xff]  }
 0x242   :  { %6000 = vmatprep.subr.bf16.mxu1 %v16443_v21  ;;  %v16471_v13 = vld [vmem:[#allocation6 + $0x9a0] ss:$28 sps:$4 sm:$0xff]   ;;  %v16476_v21 = vld [vmem:[#allocation6 + $0x96c] ss:$28 sps:$4 sm:$0xff]  }
 0x244   :  { %5974 = vmatpush2.bf16.msra.mxu0 %v16417_v15  ;;  %v16525_v15 = vld [vmem:[#allocation6 + $0xb60] ss:$28 sps:$4 sm:$0xff]  }
 0x245   :  { %6001 = vmatpush1.bf16.msra.mxu1 %v16441_v16  ;;  %5975 = vmatprep.subr.bf16.mxu0 %v16422_v19  ;;  %v16533_v16 = vld [vmem:[#allocation6 + $0xb2c] ss:$28 sps:$4 sm:$0xff]  }
 0x246   :  { %6002 = vmatprep.subr.bf16.mxu1 %v16446_v47  ;;  %v16474_v19 = vld [vmem:[#allocation6 + $0x968] ss:$28 sps:$4 sm:$0xff]   ;;  %v16479_v47 = vld [vmem:[#allocation6 + $0x934] ss:$28 sps:$4 sm:$0xff]  }
 0x248   :  { %5976 = vmatpush2.bf16.msra.mxu0 %v16420_v34  ;;  %v16531_v34 = vld [vmem:[#allocation6 + $0xb28] ss:$28 sps:$4 sm:$0xff]  }
 0x249   :  { %6003 = vmatpush1.bf16.msra.mxu1 %v16444_v20  ;;  %5977 = vmatprep.subr.bf16.mxu0 %v16425_v23  ;;  %v16539_v20 = vld [vmem:[#allocation6 + $0xaf4] ss:$28 sps:$4 sm:$0xff]  }
 0x24a   :  { %6004 = vmatprep.subr.bf16.mxu1 %v16449_v24  ;;  %v16477_v23 = vld [vmem:[#allocation6 + $0x930] ss:$28 sps:$4 sm:$0xff]   ;;  %v16482_v24 = vld [vmem:[#allocation6 + $0x8fc] ss:$28 sps:$4 sm:$0xff]  }
 0x24c   :  { %5978 = vmatpush2.bf16.msra.mxu0 %v16423_v25  ;;  %v16537_v25 = vld [vmem:[#allocation6 + $0xaf0] ss:$28 sps:$4 sm:$0xff]  }
 0x24d   :  { %6005 = vmatpush1.bf16.msra.mxu1 %v16447_v26  ;;  %5979 = vmatprep.subr.bf16.mxu0 %v16428_v52  ;;  %v16545_v52 = vld [vmem:[#allocation6 + $0xabc] ss:$28 sps:$4 sm:$0xff]  }
 0x24e   :  { %6006 = vmatprep.subr.bf16.mxu1 %v16452_v29  ;;  %v16480_v26 = vld [vmem:[#allocation6 + $0x8f8] ss:$28 sps:$4 sm:$0xff]  }
 0x24f   :  { %v16543_v29 = vld [vmem:[#allocation6 + $0xab8] ss:$28 sps:$4 sm:$0xff]  }
 0x250   :  { %5980 = vmatpush2.bf16.msra.mxu0 %v16426_v59  ;;  %v16551_v59 = vld [vmem:[#allocation6 + $0xa84] ss:$28 sps:$4 sm:$0xff]  }
 0x251   :  { %6007 = vmatpush1.bf16.msra.mxu1 %v16450_v7  ;;  %5981 = vmatprep.subr.bf16.mxu0 %v16431_v62  ;;  %v16483_v62 = vld [vmem:[#allocation6 + $0x8c0] ss:$28 sps:$4 sm:$0xff]   ;;  %v16488_v7 = vld [vmem:[#allocation6 + $0x514] ss:$28 sps:$4 sm:$0xff]  }
 0x252   :  { %6008 = vmatprep.subr.bf16.mxu1 %v16455_v61  ;;  %v16557_v61 = vld [vmem:[#allocation6 + $0x194] ss:$28 sps:$4 sm:$0xff]  }
 0x254   :  { %5982 = vmatpush2.bf16.msra.mxu0 %v16429_v10 }
 0x255   :  { %6009 = vmatpush1.bf16.msra.mxu1 %v16453_v37  ;;  %5983 = vmatprep.subr.bf16.mxu0 %v16434_v1  ;;  %v18620_v1 = vsub.s32 5, %v18482_v9  ;;  %v18623_v37 = vsub.s32 4, %v18482_v9 }
 0x256   :  { %6010 = vmatprep.subr.bf16.mxu1 %v16458_v42  ;;  %v18625_v42 = vld [vmem:[#allocation4] sm:$0xff] }
 0x257   :  { %v646_v0 = vrot.slane %v18625_v42, %v18620_v1 }
 0x258   :  { %5984 = vmatpush2.bf16.msra.mxu0 %v16432_v43  ;;  %v642_v43 = vrot.slane %v18625_v42, %v18623_v37 }
 0x259   :  { %6011 = vmatpush1.bf16.msra.mxu1 %v16456_v51  ;;  %5985 = vmatprep.subr.bf16.mxu0 %v16437_v44 }
 0x25a   :  { %6012 = vmatprep.subr.bf16.mxu1 %v16461_v45 }
 0x25c   :  { %5986 = vmatpush2.bf16.msra.mxu0 %v16435_v53 }
 0x25d   :  { %6013 = vmatpush1.bf16.msra.mxu1 %v16459_v36  ;;  %6041 = vmatprep.subr.bf16.mxu0 %v16509_v55 }
 0x25e   :  { %6014 = vmatprep.subr.bf16.mxu1 %v16464_v54 }
 0x25f   :  { %5988 = vmatmul.mubr.bf16.vlgmr.msra.gmra.mxu0 %v18615_v12  ;;  %v3088_v33 = vpop.f32.mrf.mxu0 }
 0x260   :  { %6042 = vmatpush1.bf16.msra.mxu0 %v16507_v27  ;;  %6073 = vmatprep.mubr.bf16.mxu0 %v18317_v14  ;;  %v3131_v32 = vpop.f32.mrf.mxu1  ;;  %v3089_v48 = vadd.f32 %v3088_v33, %v642_v43 }
 0x261   :  { %6015 = vmatpush2.bf16.msra.mxu1 %v16462_v58  ;;  %6043 = vmatprep.subr.bf16.mxu0 %v16515_v18  ;;  %v3090_v39 = vpop.f32.mrf.mxu0 }
 0x262   :  { %6016 = vmatprep.subr.bf16.mxu1 %v16467_v49  ;;  %v3133_v10 = vpop.f32.mrf.mxu1  ;;  %v3091_v45 = vadd.f32 %v3090_v39, %v646_v0  ;;  %v3132_v58 = vadd.f32 %v3131_v32, %v3089_v48  ;;  %v16501_v32 = vld [vmem:[#allocation6 + $0x3f8] ss:$28 sps:$4 sm:$0xff]   ;;  %v16504_v39 = vld [vmem:[#allocation6 + $0x3c0] ss:$28 sps:$4 sm:$0xff]  }
 0x263   :  { %v3092_v44 = vpop.f32.mrf.mxu0 }
 0x264   :  { %6044 = vmatpush1.bf16.msra.mxu0 %v16513_v17  ;;  %v3135_v40 = vpop.f32.mrf.mxu1  ;;  %v3093_v36 = vadd.f32 %v3092_v44, %v642_v43  ;;  %v3134_v55 = vadd.f32 %v3133_v10, %v3091_v45  ;;  %v16506_v10 = vld [vmem:[#allocation6 + $0x3c4] ss:$28 sps:$4 sm:$0xff]   ;;  %v16516_v45 = vld [vmem:[#allocation6 + $0x6d0] ss:$28 sps:$4 sm:$0xff]  }
 0x265   :  { %6017 = vmatpush2.bf16.msra.mxu1 %v16465_v4  ;;  %6045 = vmatprep.subr.bf16.mxu0 %v16521_v2  ;;  %v3094_v53 = vpop.f32.mrf.mxu0  ;;  %v16510_v43 = vld [vmem:[#allocation6 + $0x388] ss:$28 sps:$4 sm:$0xff]  }
 0x266   :  { %6018 = vmatprep.subr.bf16.mxu1 %v16470_v63  ;;  %v3137_v51 = vpop.f32.mrf.mxu1  ;;  %v3095_v57 = vadd.f32 %v3094_v53, %v646_v0  ;;  %v3136_v27 = vadd.f32 %v3135_v40, %v3093_v36  ;;  %v16512_v0 = vld [vmem:[#allocation6 + $0x38c] ss:$28 sps:$4 sm:$0xff]   ;;  %v16524_v53 = vld [vmem:[#allocation6 + $0x69c] ss:$28 sps:$4 sm:$0xff]  }
 0x268   :  { %6046 = vmatpush1.bf16.msra.mxu0 %v16519_v3  ;;  %v3138_v2 = vadd.f32 %v3137_v51, %v3095_v57  ;;  %v16518_v51 = vld [vmem:[#allocation6 + $0x6d4] ss:$28 sps:$4 sm:$0xff]   ;;  %v18639_v57 = vsub.s32 6, %v18482_v9 }
 0x269   :  { %6019 = vmatpush2.bf16.msra.mxu1 %v16468_v38  ;;  %6047 = vmatprep.subr.bf16.mxu0 %v16527_v11 }
 0x26a   :  { %6020 = vmatprep.subr.bf16.mxu1 %v16473_v6 }
 0x26c   :  { %6048 = vmatpush1.bf16.msra.mxu0 %v16525_v15 }
 0x26d   :  { %6021 = vmatpush2.bf16.msra.mxu1 %v16471_v13  ;;  %6049 = vmatprep.subr.bf16.mxu0 %v16533_v16 }
 0x26e   :  { %6022 = vmatprep.subr.bf16.mxu1 %v16476_v21 }
 0x270   :  { %6050 = vmatpush1.bf16.msra.mxu0 %v16531_v34 }
 0x271   :  { %6023 = vmatpush2.bf16.msra.mxu1 %v16474_v19  ;;  %6051 = vmatprep.subr.bf16.mxu0 %v16539_v20 }
 0x272   :  { %6024 = vmatprep.subr.bf16.mxu1 %v16479_v47 }
 0x274   :  { %6052 = vmatpush1.bf16.msra.mxu0 %v16537_v25 }
 0x275   :  { %6025 = vmatpush2.bf16.msra.mxu1 %v16477_v23  ;;  %6053 = vmatprep.subr.bf16.mxu0 %v16545_v52  ;;  %v16491_v52 = vld [vmem:[#allocation6 + $0x4dc] ss:$28 sps:$4 sm:$0xff]  }
 0x276   :  { %6026 = vmatprep.subr.bf16.mxu1 %v16482_v24  ;;  %v16486_v24 = vld [vmem:[#allocation6 + $0x510] ss:$28 sps:$4 sm:$0xff]  }
 0x278   :  { %6054 = vmatpush1.bf16.msra.mxu0 %v16543_v29  ;;  %v16492_v29 = vld [vmem:[#allocation6 + $0x4a0] ss:$28 sps:$4 sm:$0xff]  }
 0x279   :  { %6027 = vmatpush2.bf16.msra.mxu1 %v16480_v26  ;;  %6055 = vmatprep.subr.bf16.mxu0 %v16551_v59  ;;  %v16489_v26 = vld [vmem:[#allocation6 + $0x4d8] ss:$28 sps:$4 sm:$0xff]   ;;  %v16497_v59 = vld [vmem:[#allocation6 + $0x46c] ss:$28 sps:$4 sm:$0xff]  }
 0x27a   :  { %6028 = vmatprep.subr.bf16.mxu1 %v16485_v28  ;;  %v16494_v28 = vld [vmem:[#allocation6 + $0x4a4] ss:$28 sps:$4 sm:$0xff]  }
 0x27c   :  { %6056 = vmatpush1.bf16.msra.mxu0 %v16549_v50  ;;  %v16498_v50 = vld [vmem:[#allocation6 + $0x430] ss:$28 sps:$4 sm:$0xff]  }
 0x27d   :  { %6029 = vmatpush2.bf16.msra.mxu1 %v16483_v62  ;;  %6084 = vmatprep.subr.bf16.mxu0 %v16557_v61  ;;  %v16495_v62 = vld [vmem:[#allocation6 + $0x468] ss:$28 sps:$4 sm:$0xff]   ;;  %v16503_v61 = vld [vmem:[#allocation6 + $0x3fc] ss:$28 sps:$4 sm:$0xff]  }
 0x27e   :  { %6127 = vmatprep.subr.bf16.mxu1 %v16488_v7  ;;  %v16500_v7 = vld [vmem:[#allocation6 + $0x434] ss:$28 sps:$4 sm:$0xff]  }
 0x280   :  { %v3217_v35 = vpop.f32.mrf.mxu1 }
 0x282   :  { %v3219_v54 = vpop.f32.mrf.mxu1 }
 0x284   :  { %v3221_v4 = vpop.f32.mrf.mxu1 }
 0x286   :  { %v3223_v21 = vpop.f32.mrf.mxu1 }
 0x29f   :  { %v3174_v56 = vpop.f32.mrf.mxu0 }
 0x2a0   :  { %v3175_v17 = vadd.f32 %v3174_v56, %v3132_v58  ;;  %v15296_v33 = vpop.f32.mrf.mxu1  ;;  %v16522_v56 = vld [vmem:[#allocation6 + $0x698] ss:$28 sps:$4 sm:$0xff]  }
 0x2a1   :  { %v3176_v49 = vpop.f32.mrf.mxu0 }
 0x2a2   :  { %v3177_v18 = vadd.f32 %v3176_v49, %v3134_v55  ;;  %v3218_v15 = vadd.f32 %v3217_v35, %v3175_v17  ;;  %v15297_v40 = vpop.f32.mrf.mxu1  ;;  %v16530_v55 = vld [vmem:[#allocation6 + $0x664] ss:$28 sps:$4 sm:$0xff]  }
 0x2a3   :  { %v3178_v63 = vpop.f32.mrf.mxu0  ;;  %v15298_v17 = vadd.f32 %v15297_v40, %v15296_v33  ;;  %v16555_v33 = vld [vmem:[#allocation6 + $0x190] ss:$28 sps:$4 sm:$0xff]  }
 0x2a4   :  { %v3179_v38 = vadd.f32 %v3178_v63, %v3136_v27  ;;  %v3220_v6 = vadd.f32 %v3219_v54, %v3177_v18  ;;  %v3394_v20 = vmax.f32 %v3218_v15, 0.0  ;;  %v15299_v44 = vpop.f32.mrf.mxu1  ;;  %v16528_v27 = vld [vmem:[#allocation6 + $0x660] ss:$28 sps:$4 sm:$0xff]   ;;  %v16536_v18 = vld [vmem:[#allocation6 + $0x62c] ss:$28 sps:$4 sm:$0xff]  }
 0x2a5   :  { %v3180_v3 = vpop.f32.mrf.mxu0 }
 0x2a6   :  { %v3222_v11 = vadd.f32 %v3221_v4, %v3179_v38  ;;  %v3181_v13 = vadd.f32 %v3180_v3, %v3138_v2  ;;  %v3395_v47 = vmax.f32 %v3220_v6, 0.0  ;;  %v15300_v48 = vpop.f32.mrf.mxu1  ;;  %v650_v4 = vrot.slane %v18625_v42, %v18639_v57  ;;  %v16534_v6 = vld [vmem:[#allocation6 + $0x628] ss:$28 sps:$4 sm:$0xff]  }
 0x2a7   :  { %v15301_v38 = vadd.f32 %v15300_v48, %v15299_v44  ;;  %v16563_v44 = vld [vmem:[#allocation6 + $0x15c] ss:$28 sps:$4 sm:$0xff]   ;;  %v16569_v48 = vld [vmem:[#allocation6 + $0x124] ss:$28 sps:$4 sm:$0xff]  }
 0x2a8   :  { %v3224_v16 = vadd.f32 %v3223_v21, %v3181_v13  ;;  %v3401_v19 = vmax.f32 %v3222_v11, 0.0  ;;  %v16542_v11 = vld [vmem:[#allocation6 + $0x5f4] ss:$28 sps:$4 sm:$0xff]   ;;  %v3261_v9 = vadd.f32 %v15298_v17, %v650_v4  ;;  %v16582_v17 = vld [vmem:[#allocation6 + $0xb68] ss:$28 sps:$4 sm:$0xff]  }
 0x2a9   :  { %v3264_v15 = vadd.f32 %v15301_v38, %v650_v4  ;;  %v16579_v4 = vld [vmem:[#allocation6 + $0xb0] ss:$28 sps:$4 sm:$0xff]   ;;  %v16585_v38 = vld [vmem:[#allocation6 + $0x78] ss:$28 sps:$4 sm:$0xff]  }
 0x2aa   :  { %v3402_v34 = vmax.f32 %v3224_v16, 0.0  ;;  %v18633_v25 = vpack.c.bf16 %v3401_v19, %v3394_v20 }
 0x2ac   :  { %v18631_v23 = vpack.c.bf16 %v3402_v34, %v3395_v47  ;;  %v16540_v47 = vld [vmem:[#allocation6 + $0x5f0] ss:$28 sps:$4 sm:$0xff]   ;;  %v16548_v34 = vld [vmem:[#allocation6 + $0x5bc] ss:$28 sps:$4 sm:$0xff]  }
 0x2ae   :  { %6030 = vmatprep.mubr.bf16.mxu1 %v18631_v23 }
 0x2af   :  { %6031 = vmatmul.mubr.bf16.vlgmr.msra.gmra.mxu1 %v18633_v25 }
 0x2b0   :  { %6128 = vmatpush1.bf16.msra.mxu1 %v16486_v24  ;;  %6159 = vmatprep.mubr.bf16.mxu1 %v18598_v46 }
 0x2b1   :  { %6129 = vmatprep.subr.bf16.mxu1 %v16491_v52 }
 0x2b4   :  { %6130 = vmatpush1.bf16.msra.mxu1 %v16489_v26  ;;  %v16546_v26 = vld [vmem:[#allocation6 + $0x5b8] ss:$28 sps:$4 sm:$0xff]  }
 0x2b5   :  { %6131 = vmatprep.subr.bf16.mxu1 %v16494_v28 }
 0x2b8   :  { %6132 = vmatpush1.bf16.msra.mxu1 %v16492_v29  ;;  %v16554_v29 = vld [vmem:[#allocation6 + $0x584] ss:$28 sps:$4 sm:$0xff]  }
 0x2b9   :  { %6133 = vmatprep.subr.bf16.mxu1 %v16497_v59 }
 0x2bc   :  { %6134 = vmatpush1.bf16.msra.mxu1 %v16495_v62 }
 0x2bd   :  { %6135 = vmatprep.subr.bf16.mxu1 %v16500_v7 }
 0x2bf   :  { %v15318_v35 = vpop.f32.mrf.mxu0 }
 0x2c0   :  { %6136 = vmatpush1.bf16.msra.mxu1 %v16498_v50  ;;  %v15340_v54 = vpop.f32.mrf.mxu1 }
 0x2c1   :  { %6137 = vmatprep.subr.bf16.mxu1 %v16503_v61  ;;  %v15319_v36 = vpop.f32.mrf.mxu0  ;;  %v16552_v61 = vld [vmem:[#allocation6 + $0x580] ss:$28 sps:$4 sm:$0xff]  }
 0x2c2   :  { %v15341_v49 = vpop.f32.mrf.mxu1  ;;  %v15320_v3 = vadd.f32 %v15319_v36, %v15318_v35  ;;  %v16561_v35 = vld [vmem:[#allocation6 + $0x158] ss:$28 sps:$4 sm:$0xff]  }
 0x2c3   :  { %v15321_v58 = vpop.f32.mrf.mxu0  ;;  %v15342_v19 = vadd.f32 %v15341_v49, %v15340_v54  ;;  %v16572_v36 = vld [vmem:[#allocation6 + $0xbdc] ss:$28 sps:$4 sm:$0xff]  }
 0x2c4   :  { %6138 = vmatpush1.bf16.msra.mxu1 %v16501_v32  ;;  %v15343_v2 = vpop.f32.mrf.mxu1  ;;  %v3302_v16 = vadd.f32 %v15320_v3, %v3261_v9  ;;  %v16570_v54 = vld [vmem:[#allocation6 + $0xbd8] ss:$28 sps:$4 sm:$0xff]   ;;  %v16576_v49 = vld [vmem:[#allocation6 + $0xba0] ss:$28 sps:$4 sm:$0xff]   ;;  %v16588_v3 = vld [vmem:[#allocation6 + $0xb30] ss:$28 sps:$4 sm:$0xff]  }
 0x2c5   :  { %6139 = vmatprep.subr.bf16.mxu1 %v16506_v10  ;;  %v15322_v63 = vpop.f32.mrf.mxu0  ;;  %v16560_v10 = vld [vmem:[#allocation6 + $0x54c] ss:$28 sps:$4 sm:$0xff]   ;;  %v16591_v9 = vld [vmem:[#allocation6 + $0x40] ss:$28 sps:$4 sm:$0xff]  }
 0x2c6   :  { %v15323_v13 = vadd.f32 %v15322_v63, %v15321_v58  ;;  %v15344_v21 = vpop.f32.mrf.mxu1  ;;  %v3343_v52 = vadd.f32 %v15342_v19, %v3302_v16  ;;  %v16578_v58 = vld [vmem:[#allocation6 + $0xba4] ss:$28 sps:$4 sm:$0xff]   ;;  %v16587_v63 = vld [vmem:[#allocation6 + $0x7c] ss:$28 sps:$4 sm:$0xff]  }
 0x2c7   :  { %v15345_v20 = vadd.f32 %v15344_v21, %v15343_v2  ;;  %v16590_v2 = vld [vmem:[#allocation6 + $0xb34] ss:$28 sps:$4 sm:$0xff]   ;;  %v16599_v21 = vld [vmem:[#allocation6 + $0xc] ss:$28 sps:$4 sm:$0xff]   ;;  %v16600_v19 = vld [vmem:[#allocation6 + $0xac0] ss:$28 sps:$4 sm:$0xff]  }
 0x2c8   :  { %6140 = vmatpush1.bf16.msra.mxu1 %v16504_v39  ;;  %v3305_v42 = vadd.f32 %v15323_v13, %v3264_v15  ;;  %v16594_v13 = vld [vmem:[#allocation6 + $0xaf8] ss:$28 sps:$4 sm:$0xff]   ;;  %v16602_v15 = vld [vmem:[#allocation6 + $0xac4] ss:$28 sps:$4 sm:$0xff]  }
 0x2c9   :  { %6141 = vmatprep.subr.bf16.mxu1 %v16512_v0  ;;  %v16558_v0 = vld [vmem:[#allocation6 + $0x548] ss:$28 sps:$4 sm:$0xff]  }
 0x2ca   :  { %v3346_v62 = vadd.f32 %v15345_v20, %v3305_v42  ;;  %v16597_v16 = vld [vmem:[#allocation6 + $0x8] ss:$28 sps:$4 sm:$0xff]   ;;  %v16603_v42 = vld [vmem:[#allocation6 + $0x350] ss:$28 sps:$4 sm:$0xff]  }
 0x2cb   :  { %v16606_v20 = vld [vmem:[#allocation6 + $0xa88] ss:$28 sps:$4 sm:$0xff]  }
 0x2cc   :  { %6142 = vmatpush1.bf16.msra.mxu1 %v16510_v43 }
 0x2cd   :  { %6143 = vmatprep.subr.bf16.mxu1 %v16518_v51  ;;  %v16566_v51 = vld [vmem:[#allocation6 + $0xc14] ss:$28 sps:$4 sm:$0xff]  }
 0x2d0   :  { %6144 = vmatpush2.bf16.msra.mxu1 %v16516_v45  ;;  %v16564_v45 = vld [vmem:[#allocation6 + $0xc10] ss:$28 sps:$4 sm:$0xff]  }
 0x2d1   :  { %6145 = vmatprep.subr.bf16.mxu1 %v16524_v53  ;;  %v16567_v53 = vld [vmem:[#allocation6 + $0x120] ss:$28 sps:$4 sm:$0xff]  }
 0x2d4   :  { %6146 = vmatpush2.bf16.msra.mxu1 %v16522_v56  ;;  %v16575_v56 = vld [vmem:[#allocation6 + $0xec] ss:$28 sps:$4 sm:$0xff]  }
 0x2d5   :  { %6147 = vmatprep.subr.bf16.mxu1 %v16530_v55  ;;  %v16573_v55 = vld [vmem:[#allocation6 + $0xe8] ss:$28 sps:$4 sm:$0xff]  }
 0x2d8   :  { %6148 = vmatpush2.bf16.msra.mxu1 %v16528_v27  ;;  %v16581_v27 = vld [vmem:[#allocation6 + $0xb4] ss:$28 sps:$4 sm:$0xff]  }
 0x2d9   :  { %6149 = vmatprep.subr.bf16.mxu1 %v16536_v18  ;;  %v16584_v18 = vld [vmem:[#allocation6 + $0xb6c] ss:$28 sps:$4 sm:$0xff]  }
 0x2dc   :  { %6150 = vmatpush2.bf16.msra.mxu1 %v16534_v6  ;;  %v16593_v6 = vld [vmem:[#allocation6 + $0x44] ss:$28 sps:$4 sm:$0xff]  }
 0x2dd   :  { %6151 = vmatprep.subr.bf16.mxu1 %v16542_v11  ;;  %v16596_v11 = vld [vmem:[#allocation6 + $0xafc] ss:$28 sps:$4 sm:$0xff]  }
 0x2df   :  { %v3383_v24 = vpop.f32.mrf.mxu0 }
 0x2e0   :  { %6152 = vmatpush2.bf16.msra.mxu1 %v16540_v47  ;;  %v3384_v59 = vadd.f32 %v3383_v24, %v3343_v52  ;;  %v16605_v47 = vld [vmem:[#allocation6 + $0x354] ss:$28 sps:$4 sm:$0xff]   ;;  %v16611_v24 = vld [vmem:[#allocation6 + $0x31c] ss:$28 sps:$4 sm:$0xff]  }
 0x2e1   :  { %v15673_v28 = vpop.f32.mrf.mxu0  ;;  %6153 = vmatprep.subr.bf16.mxu1 %v16548_v34  ;;  %v16608_v34 = vld [vmem:[#allocation6 + $0xa8c] ss:$28 sps:$4 sm:$0xff]   ;;  %v16614_v52 = vld [vmem:[#allocation6 + $0x19c] ss:$28 sps:$4 sm:$0xff]  }
 0x2e2   :  { %v3396_v39 = vmax.f32 %v3384_v59, 0.0  ;;  %v16612_v28 = vld [vmem:[#allocation6 + $0x198] ss:$28 sps:$4 sm:$0xff]   ;;  %v16620_v59 = vld [vmem:[#allocation6 + $0x164] ss:$28 sps:$4 sm:$0xff]  }
 0x2e3   :  { %v3386_v7 = vpop.f32.mrf.mxu0 }
 0x2e4   :  { %v3387_v50 = vadd.f32 %v3386_v7, %v3346_v62  ;;  %6154 = vmatpush2.bf16.msra.mxu1 %v16546_v26  ;;  %v16609_v26 = vld [vmem:[#allocation6 + $0x318] ss:$28 sps:$4 sm:$0xff]   ;;  %v16615_v62 = vld [vmem:[#allocation6 + $0x2e0] ss:$28 sps:$4 sm:$0xff]  }
 0x2e5   :  { %v15674_v32 = vpop.f32.mrf.mxu0  ;;  %6155 = vmatprep.subr.bf16.mxu1 %v16554_v29  ;;  %v16617_v29 = vld [vmem:[#allocation6 + $0x2e4] ss:$28 sps:$4 sm:$0xff]  }
 0x2e6   :  { %v3403_v40 = vmax.f32 %v3387_v50, 0.0  ;;  %v16618_v7 = vld [vmem:[#allocation6 + $0x160] ss:$28 sps:$4 sm:$0xff]   ;;  %v16623_v50 = vld [vmem:[#allocation6 + $0x2ac] ss:$28 sps:$4 sm:$0xff]  }
 0x2e7   :  { %v16621_v32 = vld [vmem:[#allocation6 + $0x2a8] ss:$28 sps:$4 sm:$0xff]  }
 0x2e8   :  { %v18643_v43 = vpack.c.bf16 %v3403_v40, %v3396_v39  ;;  %6156 = vmatpush2.bf16.msra.mxu1 %v16552_v61  ;;  %v16626_v61 = vld [vmem:[#allocation6 + $0x12c] ss:$28 sps:$4 sm:$0xff]   ;;  %v3859_v39 = vld [vmem:[#allocation7] sm:$0xff]  ;;  %v16632_v40 = vld [vmem:[#allocation6 + $0xf4] ss:$28 sps:$4 sm:$0xff]  }
 0x2e9   :  { %6157 = vmatprep.subr.bf16.mxu1 %v16560_v10  ;;  %v16629_v10 = vld [vmem:[#allocation6 + $0x274] ss:$28 sps:$4 sm:$0xff]  }
 0x2ea   :  { %6074 = vmatmul.mubr.bf16.vlgmr.msra.gmra.mxu0 %v18643_v43 }
 0x2eb   :  { %6085 = vmatpush1.bf16.msra.mxu0 %v16555_v33  ;;  %6116 = vmatprep.mubr.bf16.mxu0 %v18560_v31  ;;  %v16624_v33 = vld [vmem:[#allocation6 + $0x128] ss:$28 sps:$4 sm:$0xff]  }
 0x2ec   :  { %6158 = vmatpush2.bf16.msra.mxu1 %v16558_v0  ;;  %6086 = vmatprep.subr.bf16.mxu0 %v16563_v44  ;;  %v16627_v0 = vld [vmem:[#allocation6 + $0x270] ss:$28 sps:$4 sm:$0xff]  }
 0x2ed   :  { %6213 = vmatprep.subr.bf16.mxu1 %v16566_v51  ;;  %v16630_v51 = vld [vmem:[#allocation6 + $0xf0] ss:$28 sps:$4 sm:$0xff]  }
 0x2ef   :  { %6087 = vmatpush1.bf16.msra.mxu0 %v16561_v35  ;;  %6160 = vmatmul.mubr.bf16.vlgmr.msra.gmra.mxu1 %v18615_v12  ;;  %v16635_v35 = vld [vmem:[#allocation6 + $0x23c] ss:$28 sps:$4 sm:$0xff]  }
 0x2f0   :  { %6214 = vmatpush1.bf16.msra.mxu1 %v16564_v45  ;;  %6088 = vmatprep.subr.bf16.mxu0 %v16569_v48  ;;  %v16638_v45 = vld [vmem:[#allocation6 + $0xbc] ss:$28 sps:$4 sm:$0xff]   ;;  %v3864_v48 = vrot.slane %v3859_v39, %v18487_v22 }
 0x2f1   :  { %6215 = vmatprep.subr.bf16.mxu1 %v16572_v36  ;;  %6245 = vmatprep.mubr.bf16.mxu1 %v18317_v14  ;;  %v16686_v39 = vld [vmem:[#allocation6 + $0x27c] ss:$28 sps:$4 sm:$0xff]  }
 0x2f3   :  { %6089 = vmatpush1.bf16.msra.mxu0 %v16567_v53  ;;  %v16633_v53 = vld [vmem:[#allocation6 + $0x238] ss:$28 sps:$4 sm:$0xff]  }
 0x2f4   :  { %6216 = vmatpush1.bf16.msra.mxu1 %v16570_v54  ;;  %6090 = vmatprep.subr.bf16.mxu0 %v16575_v56  ;;  %v16636_v54 = vld [vmem:[#allocation6 + $0xb8] ss:$28 sps:$4 sm:$0xff]   ;;  %v16641_v56 = vld [vmem:[#allocation6 + $0x204] ss:$28 sps:$4 sm:$0xff]  }
 0x2f5   :  { %6217 = vmatprep.subr.bf16.mxu1 %v16578_v58 }
 0x2f7   :  { %6091 = vmatpush1.bf16.msra.mxu0 %v16573_v55  ;;  %v16644_v55 = vld [vmem:[#allocation6 + $0x84] ss:$28 sps:$4 sm:$0xff]  }
 0x2f8   :  { %6218 = vmatpush1.bf16.msra.mxu1 %v16576_v49  ;;  %6092 = vmatprep.subr.bf16.mxu0 %v16581_v27  ;;  %v16639_v49 = vld [vmem:[#allocation6 + $0x200] ss:$28 sps:$4 sm:$0xff]  }
 0x2f9   :  { %6219 = vmatprep.subr.bf16.mxu1 %v16584_v18 }
 0x2fb   :  { %6093 = vmatpush1.bf16.msra.mxu0 %v16579_v4 }
 0x2fc   :  { %6220 = vmatpush1.bf16.msra.mxu1 %v16582_v17  ;;  %6094 = vmatprep.subr.bf16.mxu0 %v16587_v63  ;;  %v16642_v17 = vld [vmem:[#allocation6 + $0x80] ss:$28 sps:$4 sm:$0xff]   ;;  %v16647_v63 = vld [vmem:[#allocation6 + $0x1cc] ss:$28 sps:$4 sm:$0xff]  }
 0x2fd   :  { %6221 = vmatprep.subr.bf16.mxu1 %v16590_v2 }
 0x2ff   :  { %6095 = vmatpush1.bf16.msra.mxu0 %v16585_v38  ;;  %v16650_v38 = vld [vmem:[#allocation6 + $0x4c] ss:$28 sps:$4 sm:$0xff]  }
 0x300   :  { %6222 = vmatpush1.bf16.msra.mxu1 %v16588_v3  ;;  %6096 = vmatprep.subr.bf16.mxu0 %v16593_v6  ;;  %v5946_v44 = vpop.f32.mrf.mxu1  ;;  %v16645_v6 = vld [vmem:[#allocation6 + $0x1c8] ss:$28 sps:$4 sm:$0xff]  }
 0x301   :  { %6223 = vmatprep.subr.bf16.mxu1 %v16596_v11  ;;  %v5947_v58 = vadd.f32 %v5946_v44, %v3864_v48  ;;  %v16689_v44 = vld [vmem:[#allocation6 + $0x744] ss:$28 sps:$4 sm:$0xff]  }
 0x302   :  { %v18652_v36 = vpop.f32.mrf.mxu1 }
 0x303   :  { %6097 = vmatpush1.bf16.msra.mxu0 %v16591_v9 }
 0x304   :  { %6224 = vmatpush1.bf16.msra.mxu1 %v16594_v13  ;;  %6098 = vmatprep.subr.bf16.mxu0 %v16599_v21  ;;  %v5950_v27 = vpop.f32.mrf.mxu1  ;;  %v16648_v13 = vld [vmem:[#allocation6 + $0x48] ss:$28 sps:$4 sm:$0xff]   ;;  %v16653_v21 = vld [vmem:[#allocation6 + $0x894] ss:$28 sps:$4 sm:$0xff]  }
 0x305   :  { %6225 = vmatprep.subr.bf16.mxu1 %v16602_v15  ;;  %v5951_v3 = vadd.f32 %v5950_v27, %v3864_v48  ;;  %v16651_v15 = vld [vmem:[#allocation6 + $0x890] ss:$28 sps:$4 sm:$0xff]  }
 0x306   :  { %v16695_v48 = vld [vmem:[#allocation6 + $0x70c] ss:$28 sps:$4 sm:$0xff]  }
 0x307   :  { %6099 = vmatpush1.bf16.msra.mxu0 %v16597_v16  ;;  %v16656_v16 = vld [vmem:[#allocation6 + $0x14] ss:$28 sps:$4 sm:$0xff]  }
 0x308   :  { %6226 = vmatpush1.bf16.msra.mxu1 %v16600_v19  ;;  %6100 = vmatprep.subr.bf16.mxu0 %v16605_v47  ;;  %v16654_v19 = vld [vmem:[#allocation6 + $0x10] ss:$28 sps:$4 sm:$0xff]   ;;  %v16659_v47 = vld [vmem:[#allocation6 + $0x85c] ss:$28 sps:$4 sm:$0xff]  }
 0x309   :  { %6227 = vmatprep.subr.bf16.mxu1 %v16608_v34  ;;  %v16657_v34 = vld [vmem:[#allocation6 + $0x858] ss:$28 sps:$4 sm:$0xff]   ;;  %v16702_v27 = vld [vmem:[#allocation6 + $0x1d0] ss:$28 sps:$4 sm:$0xff]  }
 0x30b   :  { %6101 = vmatpush2.bf16.msra.mxu0 %v16603_v42  ;;  %v16662_v42 = vld [vmem:[#allocation6 + $0x35c] ss:$28 sps:$4 sm:$0xff]  }
 0x30c   :  { %6228 = vmatpush1.bf16.msra.mxu1 %v16606_v20  ;;  %6102 = vmatprep.subr.bf16.mxu0 %v16611_v24  ;;  %v16660_v20 = vld [vmem:[#allocation6 + $0x358] ss:$28 sps:$4 sm:$0xff]   ;;  %v16665_v24 = vld [vmem:[#allocation6 + $0x824] ss:$28 sps:$4 sm:$0xff]  }
 0x30d   :  { %6256 = vmatprep.subr.bf16.mxu1 %v16614_v52  ;;  %v16663_v52 = vld [vmem:[#allocation6 + $0x820] ss:$28 sps:$4 sm:$0xff]  }
 0x30f   :  { %6103 = vmatpush2.bf16.msra.mxu0 %v16609_v26  ;;  %6246 = vmatmul.mubr.bf16.vlgmr.msra.gmra.mxu1 %v18643_v43  ;;  %v16668_v26 = vld [vmem:[#allocation6 + $0x324] ss:$28 sps:$4 sm:$0xff]  }
 0x310   :  { %6257 = vmatpush1.bf16.msra.mxu1 %v16612_v28  ;;  %6288 = vmatprep.mubr.bf16.mxu1 %v18560_v31  ;;  %v16666_v28 = vld [vmem:[#allocation6 + $0x320] ss:$28 sps:$4 sm:$0xff]  }
 0x311   :  { %6104 = vmatprep.subr.bf16.mxu0 %v16617_v29  ;;  %6258 = vmatprep.subr.bf16.mxu1 %v16620_v59  ;;  %v16671_v29 = vld [vmem:[#allocation6 + $0x7ec] ss:$28 sps:$4 sm:$0xff]  }
 0x312   :  { %v16669_v59 = vld [vmem:[#allocation6 + $0x7e8] ss:$28 sps:$4 sm:$0xff]  }
 0x313   :  { %6105 = vmatpush2.bf16.msra.mxu0 %v16615_v62  ;;  %v16674_v62 = vld [vmem:[#allocation6 + $0x2ec] ss:$28 sps:$4 sm:$0xff]  }
 0x314   :  { %6259 = vmatpush1.bf16.msra.mxu1 %v16618_v7  ;;  %6106 = vmatprep.subr.bf16.mxu0 %v16623_v50  ;;  %v16672_v7 = vld [vmem:[#allocation6 + $0x2e8] ss:$28 sps:$4 sm:$0xff]   ;;  %v16677_v50 = vld [vmem:[#allocation6 + $0x7b4] ss:$28 sps:$4 sm:$0xff]  }
 0x315   :  { %6260 = vmatprep.subr.bf16.mxu1 %v16626_v61  ;;  %v16675_v61 = vld [vmem:[#allocation6 + $0x7b0] ss:$28 sps:$4 sm:$0xff]  }
 0x317   :  { %6107 = vmatpush2.bf16.msra.mxu0 %v16621_v32  ;;  %v16680_v32 = vld [vmem:[#allocation6 + $0x2b4] ss:$28 sps:$4 sm:$0xff]  }
 0x318   :  { %6261 = vmatpush1.bf16.msra.mxu1 %v16624_v33  ;;  %6108 = vmatprep.subr.bf16.mxu0 %v16629_v10  ;;  %v16678_v33 = vld [vmem:[#allocation6 + $0x2b0] ss:$28 sps:$4 sm:$0xff]   ;;  %v16683_v10 = vld [vmem:[#allocation6 + $0x77c] ss:$28 sps:$4 sm:$0xff]  }
 0x319   :  { %6262 = vmatprep.subr.bf16.mxu1 %v16632_v40  ;;  %v16681_v40 = vld [vmem:[#allocation6 + $0x778] ss:$28 sps:$4 sm:$0xff]  }
 0x31b   :  { %6109 = vmatpush2.bf16.msra.mxu0 %v16627_v0  ;;  %v16684_v0 = vld [vmem:[#allocation6 + $0x278] ss:$28 sps:$4 sm:$0xff]  }
 0x31c   :  { %6263 = vmatpush1.bf16.msra.mxu1 %v16630_v51  ;;  %6110 = vmatprep.subr.bf16.mxu0 %v16635_v35  ;;  %v16692_v51 = vld [vmem:[#allocation6 + $0x244] ss:$28 sps:$4 sm:$0xff]  }
 0x31d   :  { %6264 = vmatprep.subr.bf16.mxu1 %v16638_v45  ;;  %v16687_v35 = vld [vmem:[#allocation6 + $0x740] ss:$28 sps:$4 sm:$0xff]  }
 0x31e   :  { %v16690_v45 = vld [vmem:[#allocation6 + $0x240] ss:$28 sps:$4 sm:$0xff]  }
 0x31f   :  { %6111 = vmatpush2.bf16.msra.mxu0 %v16633_v53  ;;  %v5989_v18 = vpop.f32.mrf.mxu0  ;;  %v16698_v53 = vld [vmem:[#allocation6 + $0x20c] ss:$28 sps:$4 sm:$0xff]  }
 0x320   :  { %v18654_v4 = vadd.f32 %v5989_v18, %v5947_v58  ;;  %6265 = vmatpush1.bf16.msra.mxu1 %v16636_v54  ;;  %6112 = vmatprep.subr.bf16.mxu0 %v16641_v56  ;;  %v16693_v54 = vld [vmem:[#allocation6 + $0x708] ss:$28 sps:$4 sm:$0xff]   ;;  %v16704_v58 = vld [vmem:[#allocation6 + $0x1d4] ss:$28 sps:$4 sm:$0xff]   ;;  %v16707_v18 = vld [vmem:[#allocation6 + $0xa1c] ss:$28 sps:$4 sm:$0xff]  }
 0x321   :  { %v18656_v2 = vpop.f32.mrf.mxu0  ;;  %6266 = vmatprep.subr.bf16.mxu1 %v16644_v55  ;;  %v16696_v56 = vld [vmem:[#allocation6 + $0x208] ss:$28 sps:$4 sm:$0xff]   ;;  %v16701_v55 = vld [vmem:[#allocation6 + $0xa54] ss:$28 sps:$4 sm:$0xff]  }
 0x323   :  { %6113 = vmatpush2.bf16.msra.mxu0 %v16639_v49  ;;  %v5993_v11 = vpop.f32.mrf.mxu0  ;;  %v16699_v49 = vld [vmem:[#allocation6 + $0xa50] ss:$28 sps:$4 sm:$0xff]  }
 0x324   :  { %v18658_v9 = vadd.f32 %v5993_v11, %v5951_v3  ;;  %6267 = vmatpush1.bf16.msra.mxu1 %v16642_v17  ;;  %6114 = vmatprep.subr.bf16.mxu0 %v16647_v63  ;;  %v16705_v17 = vld [vmem:[#allocation6 + $0xa18] ss:$28 sps:$4 sm:$0xff]   ;;  %v16713_v3 = vld [vmem:[#allocation6 + $0x9e4] ss:$28 sps:$4 sm:$0xff]  }
 0x325   :  { %6268 = vmatprep.subr.bf16.mxu1 %v16650_v38  ;;  %v16710_v63 = vld [vmem:[#allocation6 + $0x89c] ss:$28 sps:$4 sm:$0xff]   ;;  %v16716_v11 = vld [vmem:[#allocation6 + $0x864] ss:$28 sps:$4 sm:$0xff]  }
 0x326   :  { %v16708_v38 = vld [vmem:[#allocation6 + $0x898] ss:$28 sps:$4 sm:$0xff]  }
 0x327   :  { %6115 = vmatpush2.bf16.msra.mxu0 %v16645_v6  ;;  %v16711_v6 = vld [vmem:[#allocation6 + $0x9e0] ss:$28 sps:$4 sm:$0xff]  }
 0x328   :  { %6269 = vmatpush1.bf16.msra.mxu1 %v16648_v13  ;;  %6170 = vmatprep.subr.bf16.mxu0 %v16653_v21  ;;  %v16714_v13 = vld [vmem:[#allocation6 + $0x860] ss:$28 sps:$4 sm:$0xff]   ;;  %v16719_v21 = vld [vmem:[#allocation6 + $0x9ac] ss:$28 sps:$4 sm:$0xff]  }
 0x329   :  { %6270 = vmatprep.subr.bf16.mxu1 %v16656_v16  ;;  %v16722_v16 = vld [vmem:[#allocation6 + $0x82c] ss:$28 sps:$4 sm:$0xff]  }
 0x32a   :  { %6117 = vmatmul.mubr.bf16.vlgmr.msra.gmra.mxu0 %v18535_v60 }
 0x32b   :  { %6171 = vmatpush1.bf16.msra.mxu0 %v16651_v15  ;;  %6202 = vmatprep.mubr.bf16.mxu0 %v18631_v23  ;;  %v16717_v15 = vld [vmem:[#allocation6 + $0x9a8] ss:$28 sps:$4 sm:$0xff]  }
 0x32c   :  { %6271 = vmatpush1.bf16.msra.mxu1 %v16654_v19  ;;  %6172 = vmatprep.subr.bf16.mxu0 %v16659_v47  ;;  %v16720_v19 = vld [vmem:[#allocation6 + $0x828] ss:$28 sps:$4 sm:$0xff]   ;;  %v16725_v47 = vld [vmem:[#allocation6 + $0x974] ss:$28 sps:$4 sm:$0xff]  }
 0x32d   :  { %6272 = vmatprep.subr.bf16.mxu1 %v16662_v42  ;;  %v16728_v42 = vld [vmem:[#allocation6 + $0x7f4] ss:$28 sps:$4 sm:$0xff]  }
 0x32f   :  { %6173 = vmatpush1.bf16.msra.mxu0 %v16657_v34  ;;  %v16723_v34 = vld [vmem:[#allocation6 + $0x970] ss:$28 sps:$4 sm:$0xff]  }
 0x330   :  { %6273 = vmatpush2.bf16.msra.mxu1 %v16660_v20  ;;  %6174 = vmatprep.subr.bf16.mxu0 %v16665_v24  ;;  %v16726_v20 = vld [vmem:[#allocation6 + $0x7f0] ss:$28 sps:$4 sm:$0xff]   ;;  %v16731_v24 = vld [vmem:[#allocation6 + $0x93c] ss:$28 sps:$4 sm:$0xff]  }
 0x331   :  { %6274 = vmatprep.subr.bf16.mxu1 %v16668_v26  ;;  %v16729_v26 = vld [vmem:[#allocation6 + $0x938] ss:$28 sps:$4 sm:$0xff]  }
 0x333   :  { %6175 = vmatpush1.bf16.msra.mxu0 %v16663_v52  ;;  %v16734_v52 = vld [vmem:[#allocation6 + $0x7bc] ss:$28 sps:$4 sm:$0xff]  }
 0x334   :  { %6275 = vmatpush2.bf16.msra.mxu1 %v16666_v28  ;;  %6176 = vmatprep.subr.bf16.mxu0 %v16671_v29  ;;  %v16732_v28 = vld [vmem:[#allocation6 + $0x7b8] ss:$28 sps:$4 sm:$0xff]   ;;  %v16737_v29 = vld [vmem:[#allocation6 + $0x904] ss:$28 sps:$4 sm:$0xff]  }
 0x335   :  { %6276 = vmatprep.subr.bf16.mxu1 %v16674_v62  ;;  %v16735_v62 = vld [vmem:[#allocation6 + $0x900] ss:$28 sps:$4 sm:$0xff]  }
 0x337   :  { %6177 = vmatpush1.bf16.msra.mxu0 %v16669_v59  ;;  %v16740_v59 = vld [vmem:[#allocation6 + $0x784] ss:$28 sps:$4 sm:$0xff]  }
 0x338   :  { %6277 = vmatpush2.bf16.msra.mxu1 %v16672_v7  ;;  %6178 = vmatprep.subr.bf16.mxu0 %v16677_v50  ;;  %v16738_v7 = vld [vmem:[#allocation6 + $0x780] ss:$28 sps:$4 sm:$0xff]   ;;  %v16743_v50 = vld [vmem:[#allocation6 + $0x8cc] ss:$28 sps:$4 sm:$0xff]  }
 0x339   :  { %6278 = vmatprep.subr.bf16.mxu1 %v16680_v32  ;;  %v16741_v32 = vld [vmem:[#allocation6 + $0x8c8] ss:$28 sps:$4 sm:$0xff]  }
 0x33b   :  { %6179 = vmatpush1.bf16.msra.mxu0 %v16675_v61  ;;  %v16746_v61 = vld [vmem:[#allocation6 + $0x74c] ss:$28 sps:$4 sm:$0xff]  }
 0x33c   :  { %6279 = vmatpush2.bf16.msra.mxu1 %v16678_v33  ;;  %6180 = vmatprep.subr.bf16.mxu0 %v16683_v10  ;;  %v16744_v33 = vld [vmem:[#allocation6 + $0x748] ss:$28 sps:$4 sm:$0xff]   ;;  %v16749_v10 = vld [vmem:[#allocation6 + $0x51c] ss:$28 sps:$4 sm:$0xff]  }
 0x33d   :  { %6280 = vmatprep.subr.bf16.mxu1 %v16686_v39  ;;  %v16752_v39 = vld [vmem:[#allocation6 + $0x714] ss:$28 sps:$4 sm:$0xff]  }
 0x33f   :  { %6181 = vmatpush1.bf16.msra.mxu0 %v16681_v40  ;;  %v16747_v40 = vld [vmem:[#allocation6 + $0x518] ss:$28 sps:$4 sm:$0xff]  }
 0x340   :  { %6281 = vmatpush2.bf16.msra.mxu1 %v16684_v0  ;;  %6182 = vmatprep.subr.bf16.mxu0 %v16689_v44  ;;  %v16750_v0 = vld [vmem:[#allocation6 + $0x710] ss:$28 sps:$4 sm:$0xff]   ;;  %v16755_v44 = vld [vmem:[#allocation6 + $0x4e4] ss:$28 sps:$4 sm:$0xff]  }
 0x341   :  { %6282 = vmatprep.subr.bf16.mxu1 %v16692_v51  ;;  %v16753_v51 = vld [vmem:[#allocation6 + $0x4e0] ss:$28 sps:$4 sm:$0xff]  }
 0x343   :  { %6183 = vmatpush1.bf16.msra.mxu0 %v16687_v35  ;;  %v16758_v35 = vld [vmem:[#allocation6 + $0xa5c] ss:$28 sps:$4 sm:$0xff]  }
 0x344   :  { %6283 = vmatpush2.bf16.msra.mxu1 %v16690_v45  ;;  %6184 = vmatprep.subr.bf16.mxu0 %v16695_v48  ;;  %v16756_v45 = vld [vmem:[#allocation6 + $0xa58] ss:$28 sps:$4 sm:$0xff]   ;;  %v16761_v48 = vld [vmem:[#allocation6 + $0x4ac] ss:$28 sps:$4 sm:$0xff]  }
 0x345   :  { %6284 = vmatprep.subr.bf16.mxu1 %v16698_v53  ;;  %v18666_v53 = vpop.f32.mrf.mxu1 }
 0x347   :  { %6185 = vmatpush1.bf16.msra.mxu0 %v16693_v54  ;;  %v16759_v54 = vld [vmem:[#allocation6 + $0x4a8] ss:$28 sps:$4 sm:$0xff]  }
 0x348   :  { %6285 = vmatpush2.bf16.msra.mxu1 %v16696_v56  ;;  %6186 = vmatprep.subr.bf16.mxu0 %v16701_v55  ;;  %v16764_v56 = vld [vmem:[#allocation6 + $0xa24] ss:$28 sps:$4 sm:$0xff]  }
 0x349   :  { %6286 = vmatprep.subr.bf16.mxu1 %v16704_v58  ;;  %v16762_v55 = vld [vmem:[#allocation6 + $0xa20] ss:$28 sps:$4 sm:$0xff]  }
 0x34b   :  { %6187 = vmatpush2.bf16.msra.mxu0 %v16699_v49 }
 0x34c   :  { %6287 = vmatpush2.bf16.msra.mxu1 %v16702_v27  ;;  %6188 = vmatprep.subr.bf16.mxu0 %v16707_v18  ;;  %v16767_v27 = vld [vmem:[#allocation6 + $0x474] ss:$28 sps:$4 sm:$0xff]  }
 0x34d   :  { %6342 = vmatprep.subr.bf16.mxu1 %v16710_v63  ;;  %v16770_v63 = vld [vmem:[#allocation6 + $0x9ec] ss:$28 sps:$4 sm:$0xff]  }
 0x34f   :  { %6189 = vmatpush2.bf16.msra.mxu0 %v16705_v17  ;;  %6289 = vmatmul.mubr.bf16.vlgmr.msra.gmra.mxu1 %v18535_v60  ;;  %v16765_v17 = vld [vmem:[#allocation6 + $0x470] ss:$28 sps:$4 sm:$0xff]  }
 0x350   :  { %6343 = vmatpush1.bf16.msra.mxu1 %v16708_v38  ;;  %6374 = vmatprep.mubr.bf16.mxu1 %v18631_v23  ;;  %v16768_v38 = vld [vmem:[#allocation6 + $0x9e8] ss:$28 sps:$4 sm:$0xff]  }
 0x351   :  { %6190 = vmatprep.subr.bf16.mxu0 %v16713_v3  ;;  %6344 = vmatprep.subr.bf16.mxu1 %v16716_v11 }
 0x353   :  { %6191 = vmatpush2.bf16.msra.mxu0 %v16711_v6  ;;  %v16773_v6 = vld [vmem:[#allocation6 + $0x43c] ss:$28 sps:$4 sm:$0xff]  }
 0x354   :  { %6345 = vmatpush1.bf16.msra.mxu1 %v16714_v13  ;;  %6192 = vmatprep.subr.bf16.mxu0 %v16719_v21  ;;  %v16776_v13 = vld [vmem:[#allocation6 + $0x9b4] ss:$28 sps:$4 sm:$0xff]  }
 0x355   :  { %6346 = vmatprep.subr.bf16.mxu1 %v16722_v16  ;;  %v16774_v21 = vld [vmem:[#allocation6 + $0x9b0] ss:$28 sps:$4 sm:$0xff]   ;;  %v16782_v16 = vld [vmem:[#allocation6 + $0x97c] ss:$28 sps:$4 sm:$0xff]  }
 0x357   :  { %6193 = vmatpush2.bf16.msra.mxu0 %v16717_v15  ;;  %v16779_v15 = vld [vmem:[#allocation6 + $0x404] ss:$28 sps:$4 sm:$0xff]  }
 0x358   :  { %6347 = vmatpush1.bf16.msra.mxu1 %v16720_v19  ;;  %6194 = vmatprep.subr.bf16.mxu0 %v16725_v47  ;;  %v16777_v19 = vld [vmem:[#allocation6 + $0x400] ss:$28 sps:$4 sm:$0xff]   ;;  %v16780_v47 = vld [vmem:[#allocation6 + $0x978] ss:$28 sps:$4 sm:$0xff]  }
 0x359   :  { %6348 = vmatprep.subr.bf16.mxu1 %v16728_v42  ;;  %v16783_v42 = vld [vmem:[#allocation6 + $0x3c8] ss:$28 sps:$4 sm:$0xff]  }
 0x35b   :  { %6195 = vmatpush2.bf16.msra.mxu0 %v16723_v34  ;;  %v16785_v34 = vld [vmem:[#allocation6 + $0x3cc] ss:$28 sps:$4 sm:$0xff]  }
 0x35c   :  { %6349 = vmatpush1.bf16.msra.mxu1 %v16726_v20  ;;  %6196 = vmatprep.subr.bf16.mxu0 %v16731_v24  ;;  %v16786_v20 = vld [vmem:[#allocation6 + $0x940] ss:$28 sps:$4 sm:$0xff]   ;;  %v16791_v24 = vld [vmem:[#allocation6 + $0x394] ss:$28 sps:$4 sm:$0xff]  }
 0x35d   :  { %6350 = vmatprep.subr.bf16.mxu1 %v16734_v52  ;;  %v16794_v52 = vld [vmem:[#allocation6 + $0x90c] ss:$28 sps:$4 sm:$0xff]  }
 0x35f   :  { %6197 = vmatpush2.bf16.msra.mxu0 %v16729_v26  ;;  %v16789_v26 = vld [vmem:[#allocation6 + $0x390] ss:$28 sps:$4 sm:$0xff]  }
 0x360   :  { %6351 = vmatpush1.bf16.msra.mxu1 %v16732_v28  ;;  %6198 = vmatprep.subr.bf16.mxu0 %v16737_v29  ;;  %v16792_v28 = vld [vmem:[#allocation6 + $0x908] ss:$28 sps:$4 sm:$0xff]   ;;  %v16797_v29 = vld [vmem:[#allocation6 + $0x6dc] ss:$28 sps:$4 sm:$0xff]  }
 0x361   :  { %6352 = vmatprep.subr.bf16.mxu1 %v16740_v59  ;;  %v16800_v59 = vld [vmem:[#allocation6 + $0x8d4] ss:$28 sps:$4 sm:$0xff]  }
 0x363   :  { %6199 = vmatpush2.bf16.msra.mxu0 %v16735_v62  ;;  %v16795_v62 = vld [vmem:[#allocation6 + $0x6d8] ss:$28 sps:$4 sm:$0xff]  }
 0x364   :  { %6353 = vmatpush1.bf16.msra.mxu1 %v16738_v7  ;;  %6200 = vmatprep.subr.bf16.mxu0 %v16743_v50  ;;  %v16798_v7 = vld [vmem:[#allocation6 + $0x8d0] ss:$28 sps:$4 sm:$0xff]   ;;  %v16803_v50 = vld [vmem:[#allocation6 + $0x6a4] ss:$28 sps:$4 sm:$0xff]  }
 0x365   :  { %6354 = vmatprep.subr.bf16.mxu1 %v16746_v61  ;;  %v16804_v61 = vld [vmem:[#allocation6 + $0x6e0] ss:$28 sps:$4 sm:$0xff]  }
 0x367   :  { %6201 = vmatpush2.bf16.msra.mxu0 %v16741_v32  ;;  %v16801_v32 = vld [vmem:[#allocation6 + $0x6a0] ss:$28 sps:$4 sm:$0xff]  }
 0x368   :  { %6355 = vmatpush1.bf16.msra.mxu1 %v16744_v33  ;;  %6299 = vmatprep.subr.bf16.mxu0 %v16749_v10  ;;  %v16805_v33 = vld [vmem:[#allocation6 + $0x520] ss:$28 sps:$4 sm:$0xff]   ;;  %v16808_v10 = vld [vmem:[#allocation6 + $0x66c] ss:$28 sps:$4 sm:$0xff]  }
 0x369   :  { %6356 = vmatprep.subr.bf16.mxu1 %v16752_v39  ;;  %v16809_v39 = vld [vmem:[#allocation6 + $0x6a8] ss:$28 sps:$4 sm:$0xff]  }
 0x36a   :  { %6203 = vmatmul.mubr.bf16.vlgmr.msra.gmra.mxu0 %v18633_v25 }
 0x36b   :  { %6300 = vmatpush1.bf16.msra.mxu0 %v16747_v40  ;;  %6331 = vmatprep.mubr.bf16.mxu0 %v18598_v46  ;;  %v16806_v40 = vld [vmem:[#allocation6 + $0x668] ss:$28 sps:$4 sm:$0xff]  }
 0x36c   :  { %6357 = vmatpush1.bf16.msra.mxu1 %v16750_v0  ;;  %6301 = vmatprep.subr.bf16.mxu0 %v16755_v44  ;;  %v16810_v0 = vld [vmem:[#allocation6 + $0x4e8] ss:$28 sps:$4 sm:$0xff]   ;;  %v16813_v44 = vld [vmem:[#allocation6 + $0x634] ss:$28 sps:$4 sm:$0xff]  }
 0x36d   :  { %6358 = vmatprep.subr.bf16.mxu1 %v16758_v35  ;;  %v16814_v35 = vld [vmem:[#allocation6 + $0x670] ss:$28 sps:$4 sm:$0xff]  }
 0x36f   :  { %6302 = vmatpush1.bf16.msra.mxu0 %v16753_v51  ;;  %v6032_v58 = vpop.f32.mrf.mxu1  ;;  %v16811_v51 = vld [vmem:[#allocation6 + $0x630] ss:$28 sps:$4 sm:$0xff]  }
 0x370   :  { %v18669_v49 = vadd.f32 %v6032_v58, %v18654_v4  ;;  %6359 = vmatpush2.bf16.msra.mxu1 %v16756_v45  ;;  %6303 = vmatprep.subr.bf16.mxu0 %v16761_v48  ;;  %v16771_v4 = vld [vmem:[#allocation6 + $0x438] ss:$28 sps:$4 sm:$0xff]   ;;  %v16815_v45 = vld [vmem:[#allocation6 + $0x4b0] ss:$28 sps:$4 sm:$0xff]   ;;  %v16823_v58 = vld [vmem:[#allocation6 + $0x5c4] ss:$28 sps:$4 sm:$0xff]  }
 0x371   :  { %v18671_v18 = vpop.f32.mrf.mxu1  ;;  %6360 = vmatprep.subr.bf16.mxu1 %v16764_v56  ;;  %v16818_v48 = vld [vmem:[#allocation6 + $0x5fc] ss:$28 sps:$4 sm:$0xff]  }
 0x372   :  { %v16816_v56 = vld [vmem:[#allocation6 + $0x5f8] ss:$28 sps:$4 sm:$0xff]  }
 0x373   :  { %6304 = vmatpush1.bf16.msra.mxu0 %v16759_v54  ;;  %v6036_v3 = vpop.f32.mrf.mxu1  ;;  %v16819_v54 = vld [vmem:[#allocation6 + $0x638] ss:$28 sps:$4 sm:$0xff]  }
 0x374   :  { %v18674_v11 = vadd.f32 %v6036_v3, %v18658_v9  ;;  %6361 = vmatpush2.bf16.msra.mxu1 %v16762_v55  ;;  %6305 = vmatprep.subr.bf16.mxu0 %v16767_v27  ;;  %v16788_v9 = vld [vmem:[#allocation6 + $0x944] ss:$28 sps:$4 sm:$0xff]   ;;  %v16820_v55 = vld [vmem:[#allocation6 + $0x478] ss:$28 sps:$4 sm:$0xff]  }
 0x375   :  { %6362 = vmatprep.subr.bf16.mxu1 %v16770_v63  ;;  %v16821_v27 = vld [vmem:[#allocation6 + $0x5c0] ss:$28 sps:$4 sm:$0xff]   ;;  %v16828_v63 = vld [vmem:[#allocation6 + $0x58c] ss:$28 sps:$4 sm:$0xff]  }
 0x376   :  { %v16826_v3 = vld [vmem:[#allocation6 + $0x588] ss:$28 sps:$4 sm:$0xff]  }
 0x377   :  { %6306 = vmatpush1.bf16.msra.mxu0 %v16765_v17  ;;  %v16825_v17 = vld [vmem:[#allocation6 + $0x440] ss:$28 sps:$4 sm:$0xff]  }
 0x378   :  { %6363 = vmatpush2.bf16.msra.mxu1 %v16768_v38  ;;  %6307 = vmatprep.subr.bf16.mxu0 %v16773_v6  ;;  %v16829_v38 = vld [vmem:[#allocation6 + $0x5c8] ss:$28 sps:$4 sm:$0xff]  }
 0x379   :  { %6364 = vmatprep.subr.bf16.mxu1 %v16776_v13  ;;  %v16830_v6 = vld [vmem:[#allocation6 + $0x408] ss:$28 sps:$4 sm:$0xff]   ;;  %v16833_v13 = vld [vmem:[#allocation6 + $0x554] ss:$28 sps:$4 sm:$0xff]  }
 0x37b   :  { %6308 = vmatpush1.bf16.msra.mxu0 %v16771_v4  ;;  %v16834_v4 = vld [vmem:[#allocation6 + $0x590] ss:$28 sps:$4 sm:$0xff]  }
 0x37c   :  { %6365 = vmatpush2.bf16.msra.mxu1 %v16774_v21  ;;  %6309 = vmatprep.subr.bf16.mxu0 %v16779_v15  ;;  %v16831_v21 = vld [vmem:[#allocation6 + $0x550] ss:$28 sps:$4 sm:$0xff]  }
 0x37d   :  { %6366 = vmatprep.subr.bf16.mxu1 %v16782_v16  ;;  %v16835_v15 = vld [vmem:[#allocation6 + $0x3d0] ss:$28 sps:$4 sm:$0xff]   ;;  %v16838_v16 = vld [vmem:[#allocation6 + $0xc1c] ss:$28 sps:$4 sm:$0xff]  }
 0x37f   :  { %6310 = vmatpush1.bf16.msra.mxu0 %v16777_v19  ;;  %v16839_v19 = vld [vmem:[#allocation6 + $0x558] ss:$28 sps:$4 sm:$0xff]  }
 0x380   :  { %6367 = vmatpush2.bf16.msra.mxu1 %v16780_v47  ;;  %6311 = vmatprep.subr.bf16.mxu0 %v16785_v34  ;;  %v16836_v47 = vld [vmem:[#allocation6 + $0xc18] ss:$28 sps:$4 sm:$0xff]   ;;  %v18678_v34 = vpop.f32.mrf.mxu0 }
 0x381   :  { %6368 = vmatprep.subr.bf16.mxu1 %v16788_v9  ;;  %v16840_v9 = vld [vmem:[#allocation6 + $0x398] ss:$28 sps:$4 sm:$0xff]  }
 0x383   :  { %6312 = vmatpush1.bf16.msra.mxu0 %v16783_v42  ;;  %v16843_v42 = vld [vmem:[#allocation6 + $0xbe4] ss:$28 sps:$4 sm:$0xff]  }
 0x384   :  { %6369 = vmatpush2.bf16.msra.mxu1 %v16786_v20  ;;  %6313 = vmatprep.subr.bf16.mxu0 %v16791_v24  ;;  %v16841_v20 = vld [vmem:[#allocation6 + $0xbe0] ss:$28 sps:$4 sm:$0xff]  }
 0x385   :  { %6370 = vmatprep.subr.bf16.mxu1 %v16794_v52 }
 0x387   :  { %6314 = vmatpush1.bf16.msra.mxu0 %v16789_v26 }
 0x388   :  { %6371 = vmatpush2.bf16.msra.mxu1 %v16792_v28  ;;  %6315 = vmatprep.subr.bf16.mxu0 %v16797_v29  ;;  %v16844_v28 = vld [vmem:[#allocation6 + $0xc20] ss:$28 sps:$4 sm:$0xff]   ;;  %v16847_v29 = vld [vmem:[#allocation6 + $0xbac] ss:$28 sps:$4 sm:$0xff]  }
 0x389   :  { %6372 = vmatprep.subr.bf16.mxu1 %v16800_v59  ;;  %v16845_v59 = vld [vmem:[#allocation6 + $0xba8] ss:$28 sps:$4 sm:$0xff]  }
 0x38b   :  { %6316 = vmatpush2.bf16.msra.mxu0 %v16795_v62 }
 0x38c   :  { %6373 = vmatpush2.bf16.msra.mxu1 %v16798_v7  ;;  %6317 = vmatprep.subr.bf16.mxu0 %v16803_v50  ;;  %v16851_v50 = vld [vmem:[#allocation6 + $0xb74] ss:$28 sps:$4 sm:$0xff]  }
 0x38d   :  { %15377 = vmatprep.subr.bf16.mxu1 %v16804_v61 }
 0x38f   :  { %6318 = vmatpush2.bf16.msra.mxu0 %v16801_v32  ;;  %6375 = vmatmul.mubr.bf16.vlgmr.msra.gmra.mxu1 %v18633_v25 }
 0x390   :  { %15378 = vmatpush3.bf16.msra.mxu1 %v16805_v33  ;;  %6501 = vmatprep.mubr.bf16.mxu1 %v18598_v46  ;;  %v16824_v46 = vld [vmem:[#allocation6 + $0x600] ss:$28 sps:$4 sm:$0xff]   ;;  %v16849_v33 = vld [vmem:[#allocation6 + $0xb70] ss:$28 sps:$4 sm:$0xff]  }
 0x391   :  { %6319 = vmatprep.subr.bf16.mxu0 %v16808_v10  ;;  %15379 = vmatprep.subr.bf16.mxu1 %v16809_v39  ;;  %v16855_v39 = vld [vmem:[#allocation6 + $0xb3c] ss:$28 sps:$4 sm:$0xff]  }
 0x393   :  { %6320 = vmatpush2.bf16.msra.mxu0 %v16806_v40  ;;  %v16856_v40 = vld [vmem:[#allocation6 + $0xb78] ss:$28 sps:$4 sm:$0xff]  }
 0x394   :  { %15380 = vmatpush3.bf16.msra.mxu1 %v16810_v0  ;;  %6321 = vmatprep.subr.bf16.mxu0 %v16813_v44  ;;  %v16859_v0 = vld [vmem:[#allocation6 + $0xb04] ss:$28 sps:$4 sm:$0xff]  }
 0x395   :  { %15381 = vmatprep.subr.bf16.mxu1 %v16814_v35  ;;  %v16857_v44 = vld [vmem:[#allocation6 + $0xb00] ss:$28 sps:$4 sm:$0xff]   ;;  %v16863_v35 = vld [vmem:[#allocation6 + $0xacc] ss:$28 sps:$4 sm:$0xff]  }
 0x397   :  { %6322 = vmatpush2.bf16.msra.mxu0 %v16811_v51  ;;  %v16860_v51 = vld [vmem:[#allocation6 + $0xb40] ss:$28 sps:$4 sm:$0xff]  }
 0x398   :  { %15382 = vmatpush3.bf16.msra.mxu1 %v16815_v45  ;;  %6323 = vmatprep.subr.bf16.mxu0 %v16818_v48  ;;  %v16861_v45 = vld [vmem:[#allocation6 + $0xac8] ss:$28 sps:$4 sm:$0xff]  }
 0x399   :  { %15383 = vmatprep.subr.bf16.mxu1 %v16819_v54  ;;  %v16864_v48 = vld [vmem:[#allocation6 + $0xb08] ss:$28 sps:$4 sm:$0xff]   ;;  %v16867_v54 = vld [vmem:[#allocation6 + $0xa94] ss:$28 sps:$4 sm:$0xff]  }
 0x39b   :  { %6324 = vmatpush2.bf16.msra.mxu0 %v16816_v56  ;;  %v16865_v56 = vld [vmem:[#allocation6 + $0xa90] ss:$28 sps:$4 sm:$0xff]  }
 0x39c   :  { %15384 = vmatpush3.bf16.msra.mxu1 %v16820_v55  ;;  %6325 = vmatprep.subr.bf16.mxu0 %v16823_v58  ;;  %v16868_v55 = vld [vmem:[#allocation6 + $0xad0] ss:$28 sps:$4 sm:$0xff]   ;;  %v16869_v58 = vld [vmem:[#allocation6 + $0x360] ss:$28 sps:$4 sm:$0xff]  }
 0x39d   :  { %15385 = vmatprep.subr.bf16.mxu1 %v16824_v46  ;;  %v16870_v46 = vld [vmem:[#allocation6 + $0x1a0] ss:$28 sps:$4 sm:$0xff]  }
 0x39f   :  { %6326 = vmatpush2.bf16.msra.mxu0 %v16821_v27  ;;  %v16871_v27 = vld [vmem:[#allocation6 + $0xa98] ss:$28 sps:$4 sm:$0xff]  }
 0x3a0   :  { %15386 = vmatpush3.bf16.msra.mxu1 %v16825_v17  ;;  %6327 = vmatprep.subr.bf16.mxu0 %v16828_v63  ;;  %v16872_v17 = vld [vmem:[#allocation6 + $0x328] ss:$28 sps:$4 sm:$0xff]   ;;  %v16897_v63 = vld [vmem:[#allocation9 + $0x50c] ss:$28 sps:$4 sm:$0xff]  }
 0x3a1   :  { %15387 = vmatprep.subr.bf16.mxu1 %v16829_v38  ;;  %v16873_v38 = vld [vmem:[#allocation6 + $0x168] ss:$28 sps:$4 sm:$0xff]  }
 0x3a3   :  { %6328 = vmatpush2.bf16.msra.mxu0 %v16826_v3  ;;  %v16874_v3 = vld [vmem:[#allocation6 + $0x2f0] ss:$28 sps:$4 sm:$0xff]  }
 0x3a4   :  { %15388 = vmatpush3.bf16.msra.mxu1 %v16830_v6  ;;  %6329 = vmatprep.subr.bf16.mxu0 %v16833_v13  ;;  %v16895_v6 = vld [vmem:[#allocation9 + $0x508] ss:$28 sps:$4 sm:$0xff]   ;;  %v16902_v13 = vld [vmem:[#allocation9 + $0x4d4] ss:$28 sps:$4 sm:$0xff]  }
 0x3a5   :  { %15389 = vmatprep.subr.bf16.mxu1 %v16834_v4  ;;  %v16875_v4 = vld [vmem:[#allocation6 + $0x130] ss:$28 sps:$4 sm:$0xff]  }
 0x3a7   :  { %6330 = vmatpush2.bf16.msra.mxu0 %v16831_v21  ;;  %v16876_v21 = vld [vmem:[#allocation6 + $0x2b8] ss:$28 sps:$4 sm:$0xff]  }
 0x3a8   :  { %15390 = vmatpush3.bf16.msra.mxu1 %v16835_v15  ;;  %6385 = vmatprep.subr.bf16.mxu0 %v16838_v16  ;;  %v16900_v15 = vld [vmem:[#allocation9 + $0x4d0] ss:$28 sps:$4 sm:$0xff]   ;;  %v16907_v16 = vld [vmem:[#allocation9 + $0x49c] ss:$28 sps:$4 sm:$0xff]  }
 0x3a9   :  { %15391 = vmatprep.subr.bf16.mxu1 %v16839_v19  ;;  %v16877_v19 = vld [vmem:[#allocation6 + $0xf8] ss:$28 sps:$4 sm:$0xff]  }
 0x3aa   :  { %6332 = vmatmul.mubr.bf16.vlgmr.msra.gmra.mxu0 %v18615_v12  ;;  %v6075_v24 = vpop.f32.mrf.mxu0 }
 0x3ab   :  { %v6076_v52 = vadd.f32 %v6075_v24, %v18669_v49  ;;  %6386 = vmatpush1.bf16.msra.mxu0 %v16836_v47  ;;  %6417 = vmatprep.mubr.bf16.mxu0 %v18317_v14  ;;  %v16848_v49 = vld [vmem:[#allocation6 + $0xbe8] ss:$28 sps:$4 sm:$0xff]   ;;  %v16878_v47 = vld [vmem:[#allocation6 + $0x280] ss:$28 sps:$4 sm:$0xff]  }
 0x3ac   :  { %15392 = vmatpush3.bf16.msra.mxu1 %v16840_v9  ;;  %v18683_v26 = vpop.f32.mrf.mxu0  ;;  %6387 = vmatprep.subr.bf16.mxu0 %v16843_v42  ;;  %v16905_v9 = vld [vmem:[#allocation9 + $0x498] ss:$28 sps:$4 sm:$0xff]   ;;  %v16910_v24 = vld [vmem:[#allocation9 + $0x460] ss:$28 sps:$4 sm:$0xff]  }
 0x3ad   :  { %15675 = vmatprep.subr.bf16.mxu1 %v18318_v30  ;;  %v6592_v61 = vmax.f32 %v6076_v52, 0.0  ;;  %v16879_v42 = vld [vmem:[#allocation6 + $0xc0] ss:$28 sps:$4 sm:$0xff]   ;;  %v16919_v52 = vld [vmem:[#allocation9 + $0x42c] ss:$28 sps:$4 sm:$0xff]  }
 0x3ae   :  { %v6079_v62 = vpop.f32.mrf.mxu0 }
 0x3af   :  { %v6080_v7 = vadd.f32 %v6079_v62, %v18674_v11  ;;  %6388 = vmatpush1.bf16.msra.mxu0 %v16841_v20  ;;  %6502 = vmatmul.mubr.bf16.vlgmr.msra.gmra.mxu1 %v18615_v12  ;;  %v16852_v11 = vld [vmem:[#allocation6 + $0xbb0] ss:$28 sps:$4 sm:$0xff]   ;;  %v16853_v12 = vld [vmem:[#allocation6 + $0xb38] ss:$28 sps:$4 sm:$0xff]   ;;  %v16880_v20 = vld [vmem:[#allocation6 + $0x248] ss:$28 sps:$4 sm:$0xff]  }
 0x3b0   :  { %15676 = vmatpush3.bf16.msra.mxu1 %v16844_v28  ;;  %6389 = vmatprep.subr.bf16.mxu0 %v16847_v29  ;;  %v16882_v28 = vld [vmem:[#allocation6 + $0x210] ss:$28 sps:$4 sm:$0xff]  }
 0x3b1   :  { %v6599_v32 = vmax.f32 %v6080_v7, 0.0  ;;  %15677 = vmatprep.subr.bf16.mxu1 %v18318_v30  ;;  %15691 = vmatprep.mubr.msk.bf16.mxu1 %vm18319_vm0, %v18318_v30  ;;  %v16917_v29 = vld [vmem:[#allocation9 + $0x428] ss:$28 sps:$4 sm:$0xff]   ;;  %v16884_v7 = vld [vmem:[#allocation6 + $0x1d8] ss:$28 sps:$4 sm:$0xff]  }
 0x3b2   :  { %v16883_v62 = vld [vmem:[#allocation6 + $0x50] ss:$28 sps:$4 sm:$0xff]  }
 0x3b3   :  { %v18691_v10 = vpack.c.bf16 %v6599_v32, %v6592_v61  ;;  %6390 = vmatpush1.bf16.msra.mxu0 %v16845_v59  ;;  %v16925_v59 = vld [vmem:[#allocation9 + $0x3f4] ss:$28 sps:$4 sm:$0xff]  }
 0x3b4   :  { %15678 = vmatpush3.bf16.msra.mxu1 %v16848_v49  ;;  %6391 = vmatprep.subr.bf16.mxu0 %v16851_v50  ;;  %v16923_v49 = vld [vmem:[#allocation9 + $0x3f0] ss:$28 sps:$4 sm:$0xff]   ;;  %v16931_v50 = vld [vmem:[#allocation9 + $0x3bc] ss:$28 sps:$4 sm:$0xff]  }
 0x3b5   :  { %15679 = vmatprep.subr.bf16.mxu1 %v18318_v30  ;;  %v16885_v61 = vld [vmem:[#allocation6 + $0x18] ss:$28 sps:$4 sm:$0xff]   ;;  %v16886_v32 = vld [vmem:[#allocation6 + $0xa60] ss:$28 sps:$4 sm:$0xff]  }
 0x3b7   :  { %6392 = vmatpush1.bf16.msra.mxu0 %v16849_v33  ;;  %v16929_v33 = vld [vmem:[#allocation9 + $0x3b8] ss:$28 sps:$4 sm:$0xff]  }
 0x3b8   :  { %15680 = vmatpush3.bf16.msra.mxu1 %v16852_v11  ;;  %6393 = vmatprep.subr.bf16.mxu0 %v16855_v39  ;;  %v16937_v11 = vld [vmem:[#allocation9 + $0x384] ss:$28 sps:$4 sm:$0xff]   ;;  %v16887_v39 = vld [vmem:[#allocation6 + $0x8a0] ss:$28 sps:$4 sm:$0xff]  }
 0x3b9   :  { %15681 = vmatprep.subr.bf16.mxu1 %v18318_v30 }
 0x3bb   :  { %6394 = vmatpush1.bf16.msra.mxu0 %v16853_v12  ;;  %v16888_v12 = vld [vmem:[#allocation6 + $0xa28] ss:$28 sps:$4 sm:$0xff]  }
 0x3bc   :  { %15682 = vmatpush3.bf16.msra.mxu1 %v16856_v40  ;;  %6395 = vmatprep.subr.bf16.mxu0 %v16859_v0  ;;  %v16935_v40 = vld [vmem:[#allocation9 + $0x380] ss:$28 sps:$4 sm:$0xff]  }
 0x3bd   :  { %15683 = vmatprep.subr.bf16.mxu1 %v18318_v30  ;;  %v16889_v0 = vld [vmem:[#allocation6 + $0x868] ss:$28 sps:$4 sm:$0xff]  }
 0x3bf   :  { %6396 = vmatpush1.bf16.msra.mxu0 %v16857_v44  ;;  %v16943_v44 = vld [vmem:[#allocation9 + $0x6cc] ss:$28 sps:$4 sm:$0xff]  }
 0x3c0   :  { %15684 = vmatpush3.bf16.msra.mxu1 %v16860_v51  ;;  %6397 = vmatprep.subr.bf16.mxu0 %v16863_v35  ;;  %v18702_v51 = vld [vmem:[#allocation7] sm:$0xff] }
 0x3c1   :  { %15685 = vmatprep.subr.bf16.mxu1 %v18318_v30  ;;  %v3868_v35 = vrot.slane %v18702_v51, %v18549_v8 }
 0x3c3   :  { %6398 = vmatpush1.bf16.msra.mxu0 %v16861_v45  ;;  %v16890_v45 = vld [vmem:[#allocation6 + $0x9f0] ss:$28 sps:$4 sm:$0xff]  }
 0x3c4   :  { %15686 = vmatpush3.bf16.msra.mxu1 %v16864_v48  ;;  %6399 = vmatprep.subr.bf16.mxu0 %v16867_v54  ;;  %v16941_v48 = vld [vmem:[#allocation9 + $0x6c8] ss:$28 sps:$4 sm:$0xff]  }
 0x3c5   :  { %15687 = vmatprep.subr.bf16.mxu1 %v18318_v30  ;;  %v16891_v54 = vld [vmem:[#allocation6 + $0x830] ss:$28 sps:$4 sm:$0xff]  }
 0x3c7   :  { %6400 = vmatpush1.bf16.msra.mxu0 %v16865_v56  ;;  %v16949_v56 = vld [vmem:[#allocation9 + $0x694] ss:$28 sps:$4 sm:$0xff]  }
 0x3c8   :  { %15688 = vmatpush3.bf16.msra.mxu1 %v16868_v55  ;;  %15355 = vmatprep.subr.bf16.mxu0 %v16869_v58  ;;  %v5949_v55 = vadd.f32 %v18652_v36, %v3868_v35  ;;  %v5953_v58 = vadd.f32 %v18666_v53, %v3868_v35  ;;  %v16894_v36 = vld [vmem:[#allocation6 + $0x980] ss:$28 sps:$4 sm:$0xff]  }
 0x3c9   :  { %15689 = vmatprep.subr.bf16.mxu1 %v18318_v30 }
 0x3ca   :  { %6418 = vmatmul.mubr.bf16.vlgmr.msra.gmra.mxu0 %v18643_v43 }
 0x3cb   :  { %15356 = vmatpush3.bf16.msra.mxu0 %v16870_v46  ;;  %6460 = vmatprep.mubr.bf16.mxu0 %v18560_v31  ;;  %v16912_v31 = vld [vmem:[#allocation9 + $0x464] ss:$28 sps:$4 sm:$0xff]   ;;  %v16892_v46 = vld [vmem:[#allocation6 + $0x9b8] ss:$28 sps:$4 sm:$0xff]  }
 0x3cc   :  { %15690 = vmatpush3.bf16.msra.mxu1 %v16871_v27  ;;  %15357 = vmatprep.subr.bf16.mxu0 %v16872_v17  ;;  %v16947_v27 = vld [vmem:[#allocation9 + $0x690] ss:$28 sps:$4 sm:$0xff]   ;;  %v6038_v17 = vpop.f32.mrf.mxu1 }
 0x3cd   :  { %9157 = vmatprep.subr.bf16.mxu1 %v16897_v63  ;;  %v5996_v63 = vadd.f32 %v18678_v34, %v5953_v58  ;;  %v16898_v34 = vld [vmem:[#allocation6 + $0x7c0] ss:$28 sps:$4 sm:$0xff]  }
 0x3ce   :  { %v6161_v35 = vpop.f32.mrf.mxu1 }
 0x3cf   :  { %15358 = vmatpush3.bf16.msra.mxu0 %v16873_v38  ;;  %15692 = vmatmul.mubr.bf16.vlgmr.msra.gmra.mxu1 %v18643_v43  ;;  %v16881_v43 = vld [vmem:[#allocation6 + $0x88] ss:$28 sps:$4 sm:$0xff]   ;;  %v16893_v38 = vld [vmem:[#allocation6 + $0x7f8] ss:$28 sps:$4 sm:$0xff]  }
 0x3d0   :  { %15359 = vmatprep.subr.bf16.mxu0 %v16874_v3  ;;  %9158 = vmatpush1.bf16.msra.mxu1 %v16895_v6  ;;  %v16955_v3 = vld [vmem:[#allocation9 + $0x65c] ss:$28 sps:$4 sm:$0xff]  }
 0x3d1   :  { %9159 = vmatprep.subr.bf16.mxu1 %v16902_v13  ;;  %v6039_v13 = vadd.f32 %v6038_v17, %v5996_v63  ;;  %v3876_v17 = vrot.slane %v18702_v51, %v18578_v41  ;;  %v3872_v63 = vrot.slane %v18702_v51, %v18602_v5 }
 0x3d3   :  { %15360 = vmatpush3.bf16.msra.mxu0 %v16875_v4  ;;  %v16953_v4 = vld [vmem:[#allocation9 + $0x658] ss:$28 sps:$4 sm:$0xff]  }
 0x3d4   :  { %15361 = vmatprep.subr.bf16.mxu0 %v16876_v21  ;;  %9160 = vmatpush1.bf16.msra.mxu1 %v16900_v15  ;;  %v16899_v15 = vld [vmem:[#allocation6 + $0x948] ss:$28 sps:$4 sm:$0xff]  }
 0x3d5   :  { %9161 = vmatprep.subr.bf16.mxu1 %v16907_v16 }
 0x3d7   :  { %15362 = vmatpush3.bf16.msra.mxu0 %v16877_v19 }
 0x3d8   :  { %15363 = vmatprep.subr.bf16.mxu0 %v16878_v47  ;;  %9162 = vmatpush1.bf16.msra.mxu1 %v16905_v9  ;;  %v16959_v47 = vld [vmem:[#allocation9 + $0x620] ss:$28 sps:$4 sm:$0xff]  }
 0x3d9   :  { %9163 = vmatprep.subr.bf16.mxu1 %v16912_v31  ;;  %v16903_v9 = vld [vmem:[#allocation6 + $0x788] ss:$28 sps:$4 sm:$0xff]   ;;  %v16904_v31 = vld [vmem:[#allocation6 + $0x910] ss:$28 sps:$4 sm:$0xff]  }
 0x3db   :  { %15364 = vmatpush3.bf16.msra.mxu0 %v16879_v42  ;;  %v16965_v42 = vld [vmem:[#allocation9 + $0x5e8] ss:$28 sps:$4 sm:$0xff]  }
 0x3dc   :  { %15365 = vmatprep.subr.bf16.mxu0 %v16880_v20  ;;  %9164 = vmatpush1.bf16.msra.mxu1 %v16910_v24  ;;  %v16908_v20 = vld [vmem:[#allocation6 + $0x750] ss:$28 sps:$4 sm:$0xff]   ;;  %v16909_v24 = vld [vmem:[#allocation6 + $0x8d8] ss:$28 sps:$4 sm:$0xff]  }
 0x3dd   :  { %9165 = vmatprep.subr.bf16.mxu1 %v16919_v52  ;;  %v16971_v52 = vld [vmem:[#allocation9 + $0x5b0] ss:$28 sps:$4 sm:$0xff]  }
 0x3df   :  { %15366 = vmatpush3.bf16.msra.mxu0 %v16881_v43  ;;  %v16979_v43 = vld [vmem:[#allocation9 + $0x57c] ss:$28 sps:$4 sm:$0xff]  }
 0x3e0   :  { %15367 = vmatprep.subr.bf16.mxu0 %v16882_v28  ;;  %9166 = vmatpush1.bf16.msra.mxu1 %v16917_v29  ;;  %v16913_v28 = vld [vmem:[#allocation6 + $0x718] ss:$28 sps:$4 sm:$0xff]  }
 0x3e1   :  { %9167 = vmatprep.subr.bf16.mxu1 %v16925_v59  ;;  %v16916_v29 = vld [vmem:[#allocation9 + $0x18c] ss:$28 sps:$4 sm:$0xff]   ;;  %v16977_v59 = vld [vmem:[#allocation9 + $0x578] ss:$28 sps:$4 sm:$0xff]  }
 0x3e3   :  { %15368 = vmatpush3.bf16.msra.mxu0 %v16883_v62  ;;  %v16985_v62 = vld [vmem:[#allocation9 + $0x544] ss:$28 sps:$4 sm:$0xff]  }
 0x3e4   :  { %15369 = vmatprep.subr.bf16.mxu0 %v16884_v7  ;;  %9168 = vmatpush1.bf16.msra.mxu1 %v16923_v49  ;;  %v16914_v7 = vld [vmem:[#allocation9 + $0x188] ss:$28 sps:$4 sm:$0xff]   ;;  %v16922_v49 = vld [vmem:[#allocation9 + $0x154] ss:$28 sps:$4 sm:$0xff]  }
 0x3e5   :  { %9169 = vmatprep.subr.bf16.mxu1 %v16931_v50  ;;  %v16983_v50 = vld [vmem:[#allocation9 + $0x540] ss:$28 sps:$4 sm:$0xff]  }
 0x3e7   :  { %15370 = vmatpush3.bf16.msra.mxu0 %v16885_v61 }
 0x3e8   :  { %15399 = vmatprep.subr.bf16.mxu0 %v16886_v32  ;;  %9170 = vmatpush1.bf16.msra.mxu1 %v16929_v33  ;;  %v16920_v32 = vld [vmem:[#allocation9 + $0x150] ss:$28 sps:$4 sm:$0xff]   ;;  %v16928_v33 = vld [vmem:[#allocation9 + $0x11c] ss:$28 sps:$4 sm:$0xff]  }
 0x3e9   :  { %9171 = vmatprep.subr.bf16.mxu1 %v16937_v11  ;;  %v16926_v11 = vld [vmem:[#allocation9 + $0x118] ss:$28 sps:$4 sm:$0xff]  }
 0x3ea   :  { %6461 = vmatmul.mubr.bf16.vlgmr.msra.gmra.mxu0 %v18535_v60  ;;  %v5992_v60 = vadd.f32 %v18656_v2, %v5949_v55  ;;  %v16961_v2 = vld [vmem:[#allocation9 + $0x624] ss:$28 sps:$4 sm:$0xff]  }
 0x3eb   :  { %15400 = vmatpush3.bf16.msra.mxu0 %v16887_v39  ;;  %6542 = vmatprep.mubr.bf16.mxu0 %v18631_v23  ;;  %v6081_v23 = vpop.f32.mrf.mxu0  ;;  %v16934_v39 = vld [vmem:[#allocation9 + $0xe4] ss:$28 sps:$4 sm:$0xff]  }
 0x3ec   :  { %15401 = vmatprep.subr.bf16.mxu0 %v16888_v12  ;;  %9172 = vmatpush1.bf16.msra.mxu1 %v16935_v40  ;;  %v6035_v6 = vadd.f32 %v18671_v18, %v5992_v60  ;;  %v6082_v21 = vadd.f32 %v6081_v23, %v6039_v13  ;;  %v16967_v18 = vld [vmem:[#allocation9 + $0x5ec] ss:$28 sps:$4 sm:$0xff]   ;;  %v16932_v12 = vld [vmem:[#allocation9 + $0xe0] ss:$28 sps:$4 sm:$0xff]  }
 0x3ed   :  { %9173 = vmatprep.subr.bf16.mxu1 %v16943_v44  ;;  %v16940_v40 = vld [vmem:[#allocation9 + $0xac] ss:$28 sps:$4 sm:$0xff]   ;;  %v16946_v44 = vld [vmem:[#allocation9 + $0x74] ss:$28 sps:$4 sm:$0xff]   ;;  %v16958_v55 = vld [vmem:[#allocation9 + $0x4] ss:$28 sps:$4 sm:$0xff]  }
 0x3ee   :  { %v6078_v53 = vadd.f32 %v18683_v26, %v6035_v6  ;;  %v6600_v19 = vmax.f32 %v6082_v21, 0.0  ;;  %v16973_v26 = vld [vmem:[#allocation9 + $0x5b4] ss:$28 sps:$4 sm:$0xff]   ;;  %v16962_v13 = vld [vmem:[#allocation9 + $0x348] ss:$28 sps:$4 sm:$0xff]  }
 0x3ef   :  { %15402 = vmatpush3.bf16.msra.mxu0 %v16889_v0  ;;  %v16938_v0 = vld [vmem:[#allocation9 + $0xa8] ss:$28 sps:$4 sm:$0xff]  }
 0x3f0   :  { %15403 = vmatprep.subr.bf16.mxu0 %v16890_v45  ;;  %9174 = vmatpush2.bf16.msra.mxu1 %v16941_v48  ;;  %v6593_v16 = vmax.f32 %v6078_v53, 0.0  ;;  %v16952_v45 = vld [vmem:[#allocation9 + $0x3c] ss:$28 sps:$4 sm:$0xff]   ;;  %v6163_v48 = vpop.f32.mrf.mxu1  ;;  %v16970_v53 = vld [vmem:[#allocation9 + $0x314] ss:$28 sps:$4 sm:$0xff]  }
 0x3f1   :  { %9175 = vmatprep.subr.bf16.mxu1 %v16949_v56  ;;  %v16950_v56 = vld [vmem:[#allocation9 + $0x38] ss:$28 sps:$4 sm:$0xff]  }
 0x3f2   :  { %v18714_v61 = vpack.c.bf16 %v6600_v19, %v6593_v16  ;;  %v6165_v58 = vpop.f32.mrf.mxu1  ;;  %v16968_v19 = vld [vmem:[#allocation9 + $0x310] ss:$28 sps:$4 sm:$0xff]  }
 0x3f3   :  { %15404 = vmatpush3.bf16.msra.mxu0 %v16891_v54  ;;  %v6118_v54 = vpop.f32.mrf.mxu0 }
 0x3f4   :  { %15405 = vmatprep.subr.bf16.mxu0 %v16892_v46  ;;  %9176 = vmatpush2.bf16.msra.mxu1 %v16947_v27  ;;  %v16956_v27 = vld [vmem:[#allocation9] ss:$28 sps:$4 sm:$0xff]   ;;  %v6167_v60 = vpop.f32.mrf.mxu1 }
 0x3f5   :  { %9177 = vmatprep.subr.bf16.mxu1 %v16955_v3  ;;  %v6120_v46 = vpop.f32.mrf.mxu0 }
 0x3f6   :  { %v6247_v3 = vpop.f32.mrf.mxu1  ;;  %v6121_v6 = vadd.f32 %v6120_v46, %v3876_v17  ;;  %v17079_v46 = vld [vmem:[#allocation9 + $0xbd0] ss:$28 sps:$4 sm:$0xff]  }
 0x3f7   :  { %15406 = vmatpush3.bf16.msra.mxu0 %v16893_v38  ;;  %v6122_v23 = vpop.f32.mrf.mxu0  ;;  %v16964_v38 = vld [vmem:[#allocation9 + $0x34c] ss:$28 sps:$4 sm:$0xff]  }
 0x3f8   :  { %15407 = vmatprep.subr.bf16.mxu0 %v16894_v36  ;;  %9178 = vmatpush2.bf16.msra.mxu1 %v16953_v4  ;;  %v6119_v36 = vadd.f32 %v6118_v54, %v3872_v63  ;;  %v6123_v21 = vadd.f32 %v6122_v23, %v3872_v63  ;;  %v6164_v16 = vadd.f32 %v6163_v48, %v6121_v6  ;;  %v16991_v48 = vld [vmem:[#allocation9 + $0x234] ss:$28 sps:$4 sm:$0xff]   ;;  %v17073_v54 = vld [vmem:[#allocation9 + $0xc08] ss:$28 sps:$4 sm:$0xff]   ;;  %v17087_v23 = vld [vmem:[#allocation9 + $0xb9c] ss:$28 sps:$4 sm:$0xff]  }
 0x3f9   :  { %9179 = vmatprep.subr.bf16.mxu1 %v16961_v2  ;;  %v6124_v4 = vpop.f32.mrf.mxu0  ;;  %v6249_v2 = vpop.f32.mrf.mxu1  ;;  %v17085_v63 = vld [vmem:[#allocation9 + $0xb98] ss:$28 sps:$4 sm:$0xff]   ;;  %v17091_v6 = vld [vmem:[#allocation9 + $0xb60] ss:$28 sps:$4 sm:$0xff]  }
 0x3fb   :  { %15408 = vmatpush3.bf16.msra.mxu0 %v16898_v34 }
 0x3fc   :  { %15409 = vmatprep.subr.bf16.mxu0 %v16899_v15  ;;  %9180 = vmatpush2.bf16.msra.mxu1 %v16959_v47  ;;  %v6125_v15 = vadd.f32 %v6124_v4, %v3876_v17  ;;  %v6162_v47 = vadd.f32 %v6161_v35, %v6119_v36  ;;  %v16992_v17 = vld [vmem:[#allocation9 + $0x1f8] ss:$28 sps:$4 sm:$0xff]   ;;  %v16998_v36 = vld [vmem:[#allocation9 + $0x888] ss:$28 sps:$4 sm:$0xff]  }
 0x3fd   :  { %9181 = vmatprep.subr.bf16.mxu1 %v16967_v18  ;;  %v17003_v4 = vld [vmem:[#allocation9 + $0x854] ss:$28 sps:$4 sm:$0xff]  }
 0x3ff   :  { %15410 = vmatpush3.bf16.msra.mxu0 %v16903_v9  ;;  %v16976_v9 = vld [vmem:[#allocation9 + $0x2dc] ss:$28 sps:$4 sm:$0xff]  }
 0x400   :  { %15411 = vmatprep.subr.bf16.mxu0 %v16904_v31  ;;  %9182 = vmatpush2.bf16.msra.mxu1 %v16965_v42  ;;  %v6166_v42 = vadd.f32 %v6165_v58, %v6123_v21  ;;  %v16994_v58 = vld [vmem:[#allocation9 + $0x1fc] ss:$28 sps:$4 sm:$0xff]   ;;  %v17097_v21 = vld [vmem:[#allocation9 + $0xb28] ss:$28 sps:$4 sm:$0xff]  }
 0x401   :  { %9183 = vmatprep.subr.bf16.mxu1 %v16973_v26  ;;  %v6251_v26 = vpop.f32.mrf.mxu1 }
 0x403   :  { %15412 = vmatpush3.bf16.msra.mxu0 %v16908_v20 }
 0x404   :  { %15413 = vmatprep.subr.bf16.mxu0 %v16909_v24  ;;  %9184 = vmatpush2.bf16.msra.mxu1 %v16971_v52 }
 0x405   :  { %9185 = vmatprep.subr.bf16.mxu1 %v16979_v43  ;;  %v6168_v43 = vadd.f32 %v6167_v60, %v6125_v15  ;;  %v16997_v60 = vld [vmem:[#allocation9 + $0x1c4] ss:$28 sps:$4 sm:$0xff]   ;;  %v17105_v15 = vld [vmem:[#allocation9 + $0xaf4] ss:$28 sps:$4 sm:$0xff]  }
 0x407   :  { %15414 = vmatpush3.bf16.msra.mxu0 %v16913_v28  ;;  %v16974_v28 = vld [vmem:[#allocation9 + $0x2d8] ss:$28 sps:$4 sm:$0xff]  }
 0x408   :  { %9114 = vmatprep.subr.bf16.mxu0 %v16916_v29  ;;  %9186 = vmatpush2.bf16.msra.mxu1 %v16977_v59  ;;  %v16982_v59 = vld [vmem:[#allocation9 + $0x2a4] ss:$28 sps:$4 sm:$0xff]  }
 0x409   :  { %9187 = vmatprep.subr.bf16.mxu1 %v16985_v62 }
 0x40a   :  { %6543 = vmatmul.mubr.bf16.vlgmr.msra.gmra.mxu0 %v18633_v25  ;;  %v16944_v25 = vld [vmem:[#allocation9 + $0x70] ss:$28 sps:$4 sm:$0xff]  }
 0x40b   :  { %9115 = vmatpush1.bf16.msra.mxu0 %v16914_v7  ;;  %9146 = vmatprep.mubr.bf16.mxu0 %v18714_v61 }
 0x40c   :  { %9116 = vmatprep.subr.bf16.mxu0 %v16922_v49  ;;  %9188 = vmatpush2.bf16.msra.mxu1 %v16983_v50  ;;  %v6253_v50 = vpop.f32.mrf.mxu1 }
 0x40f   :  { %9117 = vmatpush1.bf16.msra.mxu0 %v16920_v32 }
 0x410   :  { %9118 = vmatprep.subr.bf16.mxu0 %v16928_v33 }
 0x413   :  { %9119 = vmatpush1.bf16.msra.mxu0 %v16926_v11  ;;  %v16980_v11 = vld [vmem:[#allocation9 + $0x2a0] ss:$28 sps:$4 sm:$0xff]  }
 0x414   :  { %9120 = vmatprep.subr.bf16.mxu0 %v16934_v39 }
 0x417   :  { %9121 = vmatpush1.bf16.msra.mxu0 %v16932_v12  ;;  %v16988_v12 = vld [vmem:[#allocation9 + $0x26c] ss:$28 sps:$4 sm:$0xff]  }
 0x418   :  { %9122 = vmatprep.subr.bf16.mxu0 %v16940_v40 }
 0x41b   :  { %9123 = vmatpush1.bf16.msra.mxu0 %v16938_v0 }
 0x41c   :  { %9124 = vmatprep.subr.bf16.mxu0 %v16946_v44 }
 0x41f   :  { %9125 = vmatpush1.bf16.msra.mxu0 %v16944_v25  ;;  %v16986_v25 = vld [vmem:[#allocation9 + $0x268] ss:$28 sps:$4 sm:$0xff]  }
 0x420   :  { %9126 = vmatprep.subr.bf16.mxu0 %v16952_v45 }
 0x423   :  { %9127 = vmatpush1.bf16.msra.mxu0 %v16950_v56  ;;  %v17075_v56 = vld [vmem:[#allocation9 + $0xc0c] ss:$28 sps:$4 sm:$0xff]  }
 0x424   :  { %9128 = vmatprep.subr.bf16.mxu0 %v16958_v55  ;;  %v16989_v55 = vld [vmem:[#allocation9 + $0x230] ss:$28 sps:$4 sm:$0xff]   ;;  %9243 = vmatprep.subr.bf16.mxu1 %v17075_v56 }
 0x427   :  { %9129 = vmatpush1.bf16.msra.mxu0 %v16956_v27  ;;  %v17081_v27 = vld [vmem:[#allocation9 + $0xbd4] ss:$28 sps:$4 sm:$0xff]  }
 0x428   :  { %9130 = vmatprep.subr.bf16.mxu0 %v16964_v38  ;;  %v16995_v38 = vld [vmem:[#allocation9 + $0x1c0] ss:$28 sps:$4 sm:$0xff]  }
 0x42a   :  { %v6204_v34 = vpop.f32.mrf.mxu0 }
 0x42b   :  { %9131 = vmatpush2.bf16.msra.mxu0 %v16962_v13  ;;  %v6205_v20 = vadd.f32 %v6204_v34, %v6162_v47  ;;  %v17093_v13 = vld [vmem:[#allocation9 + $0xb64] ss:$28 sps:$4 sm:$0xff]   ;;  %v17006_v34 = vld [vmem:[#allocation9 + $0x81c] ss:$28 sps:$4 sm:$0xff]  }
 0x42c   :  { %v6206_v18 = vpop.f32.mrf.mxu0  ;;  %9132 = vmatprep.subr.bf16.mxu0 %v16970_v53  ;;  %v17099_v53 = vld [vmem:[#allocation9 + $0xb2c] ss:$28 sps:$4 sm:$0xff]   ;;  %v17009_v47 = vld [vmem:[#allocation9 + $0x7e4] ss:$28 sps:$4 sm:$0xff]  }
 0x42d   :  { %v6207_v31 = vadd.f32 %v6206_v18, %v6164_v16  ;;  %v6248_v32 = vadd.f32 %v6247_v3, %v6205_v20  ;;  %v17000_v3 = vld [vmem:[#allocation9 + $0x88c] ss:$28 sps:$4 sm:$0xff]   ;;  %v17111_v18 = vld [vmem:[#allocation9 + $0xabc] ss:$28 sps:$4 sm:$0xff]   ;;  %v17117_v20 = vld [vmem:[#allocation9 + $0xa84] ss:$28 sps:$4 sm:$0xff]  }
 0x42e   :  { %v6208_v24 = vpop.f32.mrf.mxu0  ;;  %v17103_v16 = vld [vmem:[#allocation9 + $0xaf0] ss:$28 sps:$4 sm:$0xff]  }
 0x42f   :  { %v6209_v52 = vadd.f32 %v6208_v24, %v6166_v42  ;;  %9133 = vmatpush2.bf16.msra.mxu0 %v16968_v19  ;;  %v6250_v62 = vadd.f32 %v6249_v2, %v6207_v31  ;;  %v6594_v44 = vmax.f32 %v6248_v32, 0.0  ;;  %v17001_v2 = vld [vmem:[#allocation9 + $0x850] ss:$28 sps:$4 sm:$0xff]   ;;  %v17004_v19 = vld [vmem:[#allocation9 + $0x818] ss:$28 sps:$4 sm:$0xff]   ;;  %v18730_v31 = vpop.f32.mrf.mxu1 }
 0x430   :  { %v6210_v29 = vpop.f32.mrf.mxu0  ;;  %9134 = vmatprep.subr.bf16.mxu0 %v16976_v9  ;;  %v17109_v9 = vld [vmem:[#allocation9 + $0xab8] ss:$28 sps:$4 sm:$0xff]   ;;  %v17007_v42 = vld [vmem:[#allocation9 + $0x7e0] ss:$28 sps:$4 sm:$0xff]  }
 0x431   :  { %v6252_v7 = vadd.f32 %v6251_v26, %v6209_v52  ;;  %v6211_v49 = vadd.f32 %v6210_v29, %v6168_v43  ;;  %v6595_v40 = vmax.f32 %v6250_v62, 0.0  ;;  %v17012_v26 = vld [vmem:[#allocation9 + $0x7ac] ss:$28 sps:$4 sm:$0xff]   ;;  %v17115_v24 = vld [vmem:[#allocation9 + $0xa80] ss:$28 sps:$4 sm:$0xff]   ;;  %v18732_v52 = vpop.f32.mrf.mxu1 }
 0x432   :  { %v17010_v43 = vld [vmem:[#allocation9 + $0x7a8] ss:$28 sps:$4 sm:$0xff]   ;;  %v17123_v29 = vld [vmem:[#allocation9 + $0x194] ss:$28 sps:$4 sm:$0xff]  }
 0x433   :  { %v6254_v33 = vadd.f32 %v6253_v50, %v6211_v49  ;;  %9135 = vmatpush2.bf16.msra.mxu0 %v16974_v28  ;;  %v6601_v39 = vmax.f32 %v6252_v7, 0.0  ;;  %v17015_v28 = vld [vmem:[#allocation9 + $0x774] ss:$28 sps:$4 sm:$0xff]   ;;  %v17018_v7 = vld [vmem:[#allocation9 + $0x73c] ss:$28 sps:$4 sm:$0xff]  }
 0x434   :  { %9136 = vmatprep.subr.bf16.mxu0 %v16982_v59  ;;  %v18734_v59 = vpop.f32.mrf.mxu1  ;;  %v17013_v62 = vld [vmem:[#allocation9 + $0x770] ss:$28 sps:$4 sm:$0xff]   ;;  %v17016_v50 = vld [vmem:[#allocation9 + $0x738] ss:$28 sps:$4 sm:$0xff]   ;;  %v17021_v32 = vld [vmem:[#allocation9 + $0x704] ss:$28 sps:$4 sm:$0xff]  }
 0x435   :  { %v6602_v0 = vmax.f32 %v6254_v33, 0.0  ;;  %v18724_v45 = vpack.c.bf16 %v6601_v39, %v6594_v44  ;;  %v17024_v39 = vld [vmem:[#allocation9 + $0xa4c] ss:$28 sps:$4 sm:$0xff]  }
 0x436   :  { %v6296_v49 = vpop.f32.mrf.mxu1 }
 0x437   :  { %v18722_v35 = vpack.c.bf16 %v6602_v0, %v6595_v40  ;;  %9137 = vmatpush2.bf16.msra.mxu0 %v16980_v11  ;;  %v17019_v11 = vld [vmem:[#allocation9 + $0x700] ss:$28 sps:$4 sm:$0xff]   ;;  %v17022_v40 = vld [vmem:[#allocation9 + $0xa48] ss:$28 sps:$4 sm:$0xff]   ;;  %v17027_v0 = vld [vmem:[#allocation9 + $0xa14] ss:$28 sps:$4 sm:$0xff]  }
 0x438   :  { %9138 = vmatprep.subr.bf16.mxu0 %v16988_v12 }
 0x439   :  { %9189 = vmatprep.mubr.bf16.mxu1 %v18722_v35 }
 0x43a   :  { %9190 = vmatmul.mubr.bf16.vlgmr.msra.gmra.mxu1 %v18724_v45 }
 0x43b   :  { %9139 = vmatpush2.bf16.msra.mxu0 %v16986_v25  ;;  %9244 = vmatpush1.bf16.msra.mxu1 %v17073_v54  ;;  %v17025_v25 = vld [vmem:[#allocation9 + $0xa10] ss:$28 sps:$4 sm:$0xff]  }
 0x43c   :  { %9140 = vmatprep.subr.bf16.mxu0 %v16991_v48  ;;  %9275 = vmatprep.mubr.bf16.mxu1 %v18317_v14  ;;  %v17030_v48 = vld [vmem:[#allocation9 + $0x9dc] ss:$28 sps:$4 sm:$0xff]  }
 0x43d   :  { %9245 = vmatprep.subr.bf16.mxu1 %v17081_v27 }
 0x43f   :  { %9141 = vmatpush2.bf16.msra.mxu0 %v16989_v55  ;;  %9246 = vmatpush1.bf16.msra.mxu1 %v17079_v46  ;;  %v17028_v55 = vld [vmem:[#allocation9 + $0x9d8] ss:$28 sps:$4 sm:$0xff]  }
 0x440   :  { %9142 = vmatprep.subr.bf16.mxu0 %v16994_v58  ;;  %9247 = vmatprep.subr.bf16.mxu1 %v17087_v23  ;;  %v17033_v58 = vld [vmem:[#allocation9 + $0x9a4] ss:$28 sps:$4 sm:$0xff]  }
 0x443   :  { %9143 = vmatpush2.bf16.msra.mxu0 %v16992_v17  ;;  %9248 = vmatpush1.bf16.msra.mxu1 %v17085_v63  ;;  %v17036_v63 = vld [vmem:[#allocation9 + $0x96c] ss:$28 sps:$4 sm:$0xff]  }
 0x444   :  { %9144 = vmatprep.subr.bf16.mxu0 %v16997_v60  ;;  %9249 = vmatprep.subr.bf16.mxu1 %v17093_v13  ;;  %v17031_v60 = vld [vmem:[#allocation9 + $0x9a0] ss:$28 sps:$4 sm:$0xff]   ;;  %v17037_v13 = vld [vmem:[#allocation9 + $0x930] ss:$28 sps:$4 sm:$0xff]  }
 0x447   :  { %9145 = vmatpush2.bf16.msra.mxu0 %v16995_v38  ;;  %9250 = vmatpush1.bf16.msra.mxu1 %v17091_v6  ;;  %v17039_v6 = vld [vmem:[#allocation9 + $0x934] ss:$28 sps:$4 sm:$0xff]  }
 0x448   :  { %9200 = vmatprep.subr.bf16.mxu0 %v17000_v3  ;;  %9251 = vmatprep.subr.bf16.mxu1 %v17099_v53  ;;  %v17034_v3 = vld [vmem:[#allocation9 + $0x968] ss:$28 sps:$4 sm:$0xff]   ;;  %v17040_v53 = vld [vmem:[#allocation9 + $0x8f8] ss:$28 sps:$4 sm:$0xff]  }
 0x44a   :  { %9147 = vmatmul.mubr.bf16.vlgmr.msra.gmra.mxu0 %v18691_v10 }
 0x44b   :  { %9201 = vmatpush1.bf16.msra.mxu0 %v16998_v36  ;;  %9252 = vmatpush1.bf16.msra.mxu1 %v17097_v21 }
 0x44c   :  { %9202 = vmatprep.subr.bf16.mxu0 %v17003_v4  ;;  %9253 = vmatprep.subr.bf16.mxu1 %v17105_v15  ;;  %v17042_v4 = vld [vmem:[#allocation9 + $0x8fc] ss:$28 sps:$4 sm:$0xff]  }
 0x44d   :  { %v17043_v15 = vld [vmem:[#allocation9 + $0x8c0] ss:$28 sps:$4 sm:$0xff]  }
 0x44f   :  { %9203 = vmatpush1.bf16.msra.mxu0 %v17001_v2  ;;  %9254 = vmatpush1.bf16.msra.mxu1 %v17103_v16  ;;  %v18736_v33 = vpop.f32.mrf.mxu1  ;;  %v17045_v2 = vld [vmem:[#allocation9 + $0x8c4] ss:$28 sps:$4 sm:$0xff]   ;;  %v3880_v16 = vrot.slane %v18702_v51, %v18623_v37 }
 0x450   :  { %9204 = vmatprep.subr.bf16.mxu0 %v17006_v34  ;;  %9255 = vmatprep.subr.bf16.mxu1 %v17111_v18  ;;  %v3884_v34 = vrot.slane %v18702_v51, %v18620_v1 }
 0x451   :  { %v6378_v12 = vpop.f32.mrf.mxu1 }
 0x452   :  { %v6293_v18 = vadd.f32 %v18732_v52, %v3884_v34 }
 0x453   :  { %9205 = vmatpush1.bf16.msra.mxu0 %v17004_v19  ;;  %9256 = vmatpush1.bf16.msra.mxu1 %v17109_v9  ;;  %v6380_v44 = vpop.f32.mrf.mxu1  ;;  %v6295_v9 = vadd.f32 %v18734_v59, %v3880_v16 }
 0x454   :  { %9206 = vmatprep.subr.bf16.mxu0 %v17009_v47  ;;  %9257 = vmatprep.subr.bf16.mxu1 %v17117_v20  ;;  %v17048_v47 = vld [vmem:[#allocation9 + $0x514] ss:$28 sps:$4 sm:$0xff]   ;;  %v6297_v20 = vadd.f32 %v6296_v49, %v3884_v34  ;;  %v17069_v34 = vld [vmem:[#allocation9 + $0x38c] ss:$28 sps:$4 sm:$0xff]  }
 0x455   :  { %v6382_v54 = vpop.f32.mrf.mxu1 }
 0x457   :  { %9207 = vmatpush1.bf16.msra.mxu0 %v17007_v42  ;;  %9258 = vmatpush1.bf16.msra.mxu1 %v17115_v24  ;;  %v6291_v42 = vadd.f32 %v18730_v31, %v3880_v16  ;;  %v17072_v16 = vld [vmem:[#allocation9 + $0x6d4] ss:$28 sps:$4 sm:$0xff]  }
 0x458   :  { %9208 = vmatprep.subr.bf16.mxu0 %v17012_v26  ;;  %9286 = vmatprep.subr.bf16.mxu1 %v17123_v29 }
 0x45b   :  { %9209 = vmatpush1.bf16.msra.mxu0 %v17010_v43 }
 0x45c   :  { %9210 = vmatprep.subr.bf16.mxu0 %v17015_v28 }
 0x45f   :  { %9211 = vmatpush1.bf16.msra.mxu0 %v17013_v62 }
 0x460   :  { %9212 = vmatprep.subr.bf16.mxu0 %v17018_v7 }
 0x463   :  { %9213 = vmatpush1.bf16.msra.mxu0 %v17016_v50 }
 0x464   :  { %9214 = vmatprep.subr.bf16.mxu0 %v17021_v32 }
 0x467   :  { %9215 = vmatpush1.bf16.msra.mxu0 %v17019_v11 }
 0x468   :  { %9216 = vmatprep.subr.bf16.mxu0 %v17024_v39 }
 0x46a   :  { %v6333_v36 = vpop.f32.mrf.mxu0 }
 0x46b   :  { %9217 = vmatpush2.bf16.msra.mxu0 %v17022_v40  ;;  %v6334_v28 = vadd.f32 %v6333_v36, %v6291_v42  ;;  %v17058_v36 = vld [vmem:[#allocation9 + $0x430] ss:$28 sps:$4 sm:$0xff]   ;;  %v17084_v42 = vld [vmem:[#allocation9 + $0x664] ss:$28 sps:$4 sm:$0xff]  }
 0x46c   :  { %9218 = vmatprep.subr.bf16.mxu0 %v17027_v0  ;;  %v6335_v21 = vpop.f32.mrf.mxu0 }
 0x46d   :  { %v6336_v24 = vadd.f32 %v6335_v21, %v6293_v18  ;;  %v6377_v32 = vadd.f32 %v18736_v33, %v6334_v28  ;;  %v17046_v33 = vld [vmem:[#allocation9 + $0x510] ss:$28 sps:$4 sm:$0xff]   ;;  %v17066_v21 = vld [vmem:[#allocation9 + $0x3c4] ss:$28 sps:$4 sm:$0xff]   ;;  %v17076_v18 = vld [vmem:[#allocation9 + $0x698] ss:$28 sps:$4 sm:$0xff]  }
 0x46e   :  { %v6337_v19 = vpop.f32.mrf.mxu0 }
 0x46f   :  { %v15393_v56 = vpop.f32.mrf.mxu1  ;;  %9219 = vmatpush2.bf16.msra.mxu0 %v17025_v25  ;;  %v6338_v43 = vadd.f32 %v6337_v19, %v6295_v9  ;;  %v6379_v51 = vadd.f32 %v6378_v12, %v6336_v24  ;;  %v17070_v19 = vld [vmem:[#allocation9 + $0x6d0] ss:$28 sps:$4 sm:$0xff]  }
 0x470   :  { %9220 = vmatprep.subr.bf16.mxu0 %v17030_v48  ;;  %v6339_v26 = vpop.f32.mrf.mxu0  ;;  %v17090_v24 = vld [vmem:[#allocation9 + $0x62c] ss:$28 sps:$4 sm:$0xff]  }
 0x471   :  { %v15394_v46 = vpop.f32.mrf.mxu1  ;;  %v6340_v62 = vadd.f32 %v6339_v26, %v6297_v20  ;;  %v6381_v50 = vadd.f32 %v6380_v44, %v6338_v43  ;;  %v17082_v26 = vld [vmem:[#allocation9 + $0x660] ss:$28 sps:$4 sm:$0xff]   ;;  %v17088_v43 = vld [vmem:[#allocation9 + $0x628] ss:$28 sps:$4 sm:$0xff]  }
 0x472   :  { %v18738_v27 = vadd.f32 %v15394_v46, %v15393_v56 }
 0x473   :  { %v15396_v17 = vpop.f32.mrf.mxu1  ;;  %9221 = vmatpush2.bf16.msra.mxu0 %v17028_v55  ;;  %v6383_v40 = vadd.f32 %v6382_v54, %v6340_v62  ;;  %v17049_v54 = vld [vmem:[#allocation9 + $0x4d8] ss:$28 sps:$4 sm:$0xff]  }
 0x474   :  { %9222 = vmatprep.subr.bf16.mxu0 %v17033_v58  ;;  %v18089_v62 = vld [vmem:[#allocation7] sm:$0xff] }
 0x475   :  { %v15397_v23 = vpop.f32.mrf.mxu1 }
 0x476   :  { %v18740_v38 = vadd.f32 %v15397_v23, %v15396_v17  ;;  %v17052_v23 = vld [vmem:[#allocation9 + $0x4a0] ss:$28 sps:$4 sm:$0xff]  }
 0x477   :  { %9223 = vmatpush2.bf16.msra.mxu0 %v17031_v60  ;;  %v17051_v60 = vld [vmem:[#allocation9 + $0x4dc] ss:$28 sps:$4 sm:$0xff]  }
 0x478   :  { %9224 = vmatprep.subr.bf16.mxu0 %v17036_v63  ;;  %v17054_v63 = vld [vmem:[#allocation9 + $0x4a4] ss:$28 sps:$4 sm:$0xff]  }
 0x47b   :  { %9225 = vmatpush2.bf16.msra.mxu0 %v17034_v3  ;;  %v17057_v3 = vld [vmem:[#allocation9 + $0x46c] ss:$28 sps:$4 sm:$0xff]  }
 0x47c   :  { %9226 = vmatprep.subr.bf16.mxu0 %v17039_v6  ;;  %v17055_v6 = vld [vmem:[#allocation9 + $0x468] ss:$28 sps:$4 sm:$0xff]  }
 0x47f   :  { %9227 = vmatpush2.bf16.msra.mxu0 %v17037_v13  ;;  %v17060_v13 = vld [vmem:[#allocation9 + $0x434] ss:$28 sps:$4 sm:$0xff]  }
 0x480   :  { %9228 = vmatprep.subr.bf16.mxu0 %v17042_v4  ;;  %v17063_v4 = vld [vmem:[#allocation9 + $0x3fc] ss:$28 sps:$4 sm:$0xff]  }
 0x483   :  { %9229 = vmatpush2.bf16.msra.mxu0 %v17040_v53  ;;  %v17061_v53 = vld [vmem:[#allocation9 + $0x3f8] ss:$28 sps:$4 sm:$0xff]  }
 0x484   :  { %9230 = vmatprep.subr.bf16.mxu0 %v17045_v2  ;;  %v17064_v2 = vld [vmem:[#allocation9 + $0x3c0] ss:$28 sps:$4 sm:$0xff]  }
 0x487   :  { %9231 = vmatpush2.bf16.msra.mxu0 %v17043_v15  ;;  %v17067_v15 = vld [vmem:[#allocation9 + $0x388] ss:$28 sps:$4 sm:$0xff]  }
 0x488   :  { %9329 = vmatprep.subr.bf16.mxu0 %v17048_v47  ;;  %v17078_v47 = vld [vmem:[#allocation9 + $0x69c] ss:$28 sps:$4 sm:$0xff]  }
 0x48a   :  { %v6419_v29 = vpop.f32.mrf.mxu0 }
 0x48b   :  { %v6420_v31 = vadd.f32 %v6419_v29, %v6377_v32  ;;  %v17096_v29 = vld [vmem:[#allocation9 + $0x5f4] ss:$28 sps:$4 sm:$0xff]  }
 0x48c   :  { %v6421_v7 = vpop.f32.mrf.mxu0 }
 0x48d   :  { %v6422_v52 = vadd.f32 %v6421_v7, %v6379_v51  ;;  %v6596_v46 = vmax.f32 %v6420_v31, 0.0  ;;  %v3888_v7 = vrot.slane %v18089_v62, %v18639_v57  ;;  %v17148_v62 = vld [vmem:[#allocation9 + $0xaf8] ss:$28 sps:$4 sm:$0xff]  }
 0x48e   :  { %v6423_v11 = vpop.f32.mrf.mxu0 }
 0x48f   :  { %v6424_v39 = vadd.f32 %v6423_v11, %v6381_v50  ;;  %v18750_v59 = vpop.f32.mrf.mxu1  ;;  %v6597_v56 = vmax.f32 %v6422_v52, 0.0  ;;  %v17094_v50 = vld [vmem:[#allocation9 + $0x5f0] ss:$28 sps:$4 sm:$0xff]   ;;  %v17102_v11 = vld [vmem:[#allocation9 + $0x5bc] ss:$28 sps:$4 sm:$0xff]  }
 0x490   :  { %v6425_v0 = vpop.f32.mrf.mxu0 }
 0x491   :  { %v6426_v25 = vadd.f32 %v6425_v0, %v6383_v40  ;;  %v15693_v49 = vpop.f32.mrf.mxu1  ;;  %v6603_v48 = vmax.f32 %v6424_v39, 0.0  ;;  %v17100_v40 = vld [vmem:[#allocation9 + $0x5b8] ss:$28 sps:$4 sm:$0xff]   ;;  %v17108_v0 = vld [vmem:[#allocation9 + $0x584] ss:$28 sps:$4 sm:$0xff]  }
 0x493   :  { %v6604_v55 = vmax.f32 %v6426_v25, 0.0  ;;  %v18752_v58 = vpop.f32.mrf.mxu1  ;;  %v18756_v17 = vpack.c.bf16 %v6603_v48, %v6596_v46 }
 0x495   :  { %v18754_v12 = vpack.c.bf16 %v6604_v55, %v6597_v56  ;;  %v15694_v44 = vpop.f32.mrf.mxu1  ;;  %v17106_v55 = vld [vmem:[#allocation9 + $0x580] ss:$28 sps:$4 sm:$0xff]  }
 0x496   :  { %v17114_v44 = vld [vmem:[#allocation9 + $0x54c] ss:$28 sps:$4 sm:$0xff]  }
 0x497   :  { %9232 = vmatprep.mubr.bf16.mxu0 %v18754_v12 }
 0x498   :  { %9233 = vmatmul.mubr.bf16.vlgmr.msra.gmra.mxu0 %v18756_v17 }
 0x499   :  { %9330 = vmatpush1.bf16.msra.mxu0 %v17046_v33  ;;  %9361 = vmatprep.mubr.bf16.mxu0 %v18722_v35 }
 0x49a   :  { %9331 = vmatprep.subr.bf16.mxu0 %v17051_v60 }
 0x49d   :  { %9332 = vmatpush1.bf16.msra.mxu0 %v17049_v54 }
 0x49e   :  { %9333 = vmatprep.subr.bf16.mxu0 %v17054_v63 }
 0x4a1   :  { %9334 = vmatpush1.bf16.msra.mxu0 %v17052_v23 }
 0x4a2   :  { %9335 = vmatprep.subr.bf16.mxu0 %v17057_v3  ;;  %v17112_v3 = vld [vmem:[#allocation9 + $0x548] ss:$28 sps:$4 sm:$0xff]  }
 0x4a5   :  { %9336 = vmatpush1.bf16.msra.mxu0 %v17055_v6  ;;  %v17120_v6 = vld [vmem:[#allocation9 + $0xc14] ss:$28 sps:$4 sm:$0xff]  }
 0x4a6   :  { %9337 = vmatprep.subr.bf16.mxu0 %v17060_v13 }
 0x4a9   :  { %9338 = vmatpush1.bf16.msra.mxu0 %v17058_v36  ;;  %v17118_v36 = vld [vmem:[#allocation9 + $0xc10] ss:$28 sps:$4 sm:$0xff]  }
 0x4aa   :  { %9339 = vmatprep.subr.bf16.mxu0 %v17063_v4  ;;  %v15371_v9 = vpop.f32.mrf.mxu0  ;;  %v17126_v4 = vld [vmem:[#allocation9 + $0xbdc] ss:$28 sps:$4 sm:$0xff]  }
 0x4ac   :  { %v15372_v20 = vpop.f32.mrf.mxu0 }
 0x4ad   :  { %9340 = vmatpush1.bf16.msra.mxu0 %v17061_v53  ;;  %v15373_v51 = vadd.f32 %v15372_v20, %v15371_v9  ;;  %v17136_v9 = vld [vmem:[#allocation9 + $0xb68] ss:$28 sps:$4 sm:$0xff]  }
 0x4ae   :  { %9341 = vmatprep.subr.bf16.mxu0 %v17066_v21  ;;  %v15374_v28 = vpop.f32.mrf.mxu0  ;;  %v17139_v20 = vld [vmem:[#allocation9 + $0xe8] ss:$28 sps:$4 sm:$0xff]  }
 0x4af   :  { %v6463_v52 = vadd.f32 %v15373_v51, %v3888_v7  ;;  %v17156_v51 = vld [vmem:[#allocation9 + $0xac4] ss:$28 sps:$4 sm:$0xff]  }
 0x4b0   :  { %v15375_v32 = vpop.f32.mrf.mxu0 }
 0x4b1   :  { %9342 = vmatpush1.bf16.msra.mxu0 %v17064_v2  ;;  %v15376_v39 = vadd.f32 %v15375_v32, %v15374_v28  ;;  %v6504_v48 = vadd.f32 %v18738_v27, %v6463_v52  ;;  %v17121_v2 = vld [vmem:[#allocation9 + $0x190] ss:$28 sps:$4 sm:$0xff]   ;;  %v17150_v28 = vld [vmem:[#allocation9 + $0xafc] ss:$28 sps:$4 sm:$0xff]  }
 0x4b2   :  { %9343 = vmatprep.subr.bf16.mxu0 %v17069_v34  ;;  %v17129_v34 = vld [vmem:[#allocation9 + $0x15c] ss:$28 sps:$4 sm:$0xff]   ;;  %v17162_v52 = vld [vmem:[#allocation9 + $0xa8c] ss:$28 sps:$4 sm:$0xff]  }
 0x4b3   :  { %v6466_v49 = vadd.f32 %v15376_v39, %v3888_v7  ;;  %v17153_v7 = vld [vmem:[#allocation9 + $0x7c] ss:$28 sps:$4 sm:$0xff]  }
 0x4b4   :  { %v17154_v32 = vld [vmem:[#allocation9 + $0xac0] ss:$28 sps:$4 sm:$0xff]  }
 0x4b5   :  { %9344 = vmatpush1.bf16.msra.mxu0 %v17067_v15  ;;  %v6507_v63 = vadd.f32 %v18740_v38, %v6466_v49  ;;  %v17124_v38 = vld [vmem:[#allocation9 + $0xbd8] ss:$28 sps:$4 sm:$0xff]   ;;  %v17132_v15 = vld [vmem:[#allocation9 + $0xba4] ss:$28 sps:$4 sm:$0xff]  }
 0x4b6   :  { %9345 = vmatprep.subr.bf16.mxu0 %v17072_v16  ;;  %v17130_v16 = vld [vmem:[#allocation9 + $0xba0] ss:$28 sps:$4 sm:$0xff]   ;;  %v17166_v49 = vld [vmem:[#allocation9 + $0x198] ss:$28 sps:$4 sm:$0xff]  }
 0x4b7   :  { %v17157_v39 = vld [vmem:[#allocation9 + $0x40] ss:$28 sps:$4 sm:$0xff]  }
 0x4b9   :  { %9346 = vmatpush2.bf16.msra.mxu0 %v17070_v19  ;;  %v17135_v19 = vld [vmem:[#allocation9 + $0x124] ss:$28 sps:$4 sm:$0xff]  }
 0x4ba   :  { %9347 = vmatprep.subr.bf16.mxu0 %v17078_v47  ;;  %v17138_v47 = vld [vmem:[#allocation9 + $0xb6c] ss:$28 sps:$4 sm:$0xff]  }
 0x4bd   :  { %9348 = vmatpush2.bf16.msra.mxu0 %v17076_v18  ;;  %v17133_v18 = vld [vmem:[#allocation9 + $0x120] ss:$28 sps:$4 sm:$0xff]  }
 0x4be   :  { %9349 = vmatprep.subr.bf16.mxu0 %v17084_v42  ;;  %v17141_v42 = vld [vmem:[#allocation9 + $0xec] ss:$28 sps:$4 sm:$0xff]  }
 0x4c1   :  { %9350 = vmatpush2.bf16.msra.mxu0 %v17082_v26  ;;  %v17144_v26 = vld [vmem:[#allocation9 + $0xb34] ss:$28 sps:$4 sm:$0xff]  }
 0x4c2   :  { %9351 = vmatprep.subr.bf16.mxu0 %v17090_v24  ;;  %v17142_v24 = vld [vmem:[#allocation9 + $0xb30] ss:$28 sps:$4 sm:$0xff]  }
 0x4c5   :  { %9352 = vmatpush2.bf16.msra.mxu0 %v17088_v43  ;;  %v17147_v43 = vld [vmem:[#allocation9 + $0xb4] ss:$28 sps:$4 sm:$0xff]  }
 0x4c6   :  { %9353 = vmatprep.subr.bf16.mxu0 %v17096_v29  ;;  %v17145_v29 = vld [vmem:[#allocation9 + $0xb0] ss:$28 sps:$4 sm:$0xff]  }
 0x4c9   :  { %9354 = vmatpush2.bf16.msra.mxu0 %v17094_v50  ;;  %v17151_v50 = vld [vmem:[#allocation9 + $0x78] ss:$28 sps:$4 sm:$0xff]  }
 0x4ca   :  { %v15415_v31 = vpop.f32.mrf.mxu0  ;;  %9355 = vmatprep.subr.bf16.mxu0 %v17102_v11  ;;  %v17159_v11 = vld [vmem:[#allocation9 + $0x44] ss:$28 sps:$4 sm:$0xff]  }
 0x4cc   :  { %v15416_v25 = vpop.f32.mrf.mxu0 }
 0x4cd   :  { %v15417_v56 = vadd.f32 %v15416_v25, %v15415_v31  ;;  %9356 = vmatpush2.bf16.msra.mxu0 %v17100_v40  ;;  %v17160_v40 = vld [vmem:[#allocation9 + $0xa88] ss:$28 sps:$4 sm:$0xff]  }
 0x4ce   :  { %v15418_v46 = vpop.f32.mrf.mxu0  ;;  %9357 = vmatprep.subr.bf16.mxu0 %v17108_v0  ;;  %v17165_v31 = vld [vmem:[#allocation9 + $0xc] ss:$28 sps:$4 sm:$0xff]   ;;  %v17168_v0 = vld [vmem:[#allocation9 + $0x19c] ss:$28 sps:$4 sm:$0xff]  }
 0x4cf   :  { %v6545_v33 = vadd.f32 %v15417_v56, %v6504_v48  ;;  %v17163_v25 = vld [vmem:[#allocation9 + $0x8] ss:$28 sps:$4 sm:$0xff]   ;;  %v17171_v48 = vld [vmem:[#allocation9 + $0x354] ss:$28 sps:$4 sm:$0xff]  }
 0x4d0   :  { %v15419_v60 = vpop.f32.mrf.mxu0  ;;  %v17174_v56 = vld [vmem:[#allocation9 + $0x164] ss:$28 sps:$4 sm:$0xff]  }
 0x4d1   :  { %v6586_v54 = vadd.f32 %v18750_v59, %v6545_v33  ;;  %v15420_v23 = vadd.f32 %v15419_v60, %v15418_v46  ;;  %9358 = vmatpush2.bf16.msra.mxu0 %v17106_v55  ;;  %v17169_v55 = vld [vmem:[#allocation9 + $0x350] ss:$28 sps:$4 sm:$0xff]   ;;  %v17172_v46 = vld [vmem:[#allocation9 + $0x160] ss:$28 sps:$4 sm:$0xff]   ;;  %v17175_v60 = vld [vmem:[#allocation9 + $0x318] ss:$28 sps:$4 sm:$0xff]  }
 0x4d2   :  { %9359 = vmatprep.subr.bf16.mxu0 %v17114_v44  ;;  %v17177_v44 = vld [vmem:[#allocation9 + $0x31c] ss:$28 sps:$4 sm:$0xff]   ;;  %v17180_v33 = vld [vmem:[#allocation9 + $0x12c] ss:$28 sps:$4 sm:$0xff]  }
 0x4d3   :  { %v6548_v13 = vadd.f32 %v15420_v23, %v6507_v63  ;;  %v6598_v53 = vmax.f32 %v6586_v54, 0.0  ;;  %v17178_v54 = vld [vmem:[#allocation9 + $0x128] ss:$28 sps:$4 sm:$0xff]   ;;  %v17186_v23 = vld [vmem:[#allocation9 + $0xf4] ss:$28 sps:$4 sm:$0xff]  }
 0x4d4   :  { %v17183_v63 = vld [vmem:[#allocation9 + $0x2e4] ss:$28 sps:$4 sm:$0xff]  }
 0x4d5   :  { %v6589_v27 = vadd.f32 %v18752_v58, %v6548_v13  ;;  %9360 = vmatpush2.bf16.msra.mxu0 %v17112_v3  ;;  %v17127_v58 = vld [vmem:[#allocation9 + $0x158] ss:$28 sps:$4 sm:$0xff]   ;;  %v17181_v3 = vld [vmem:[#allocation9 + $0x2e0] ss:$28 sps:$4 sm:$0xff]   ;;  %v17189_v13 = vld [vmem:[#allocation9 + $0x2ac] ss:$28 sps:$4 sm:$0xff]  }
 0x4d6   :  { %9415 = vmatprep.subr.bf16.mxu0 %v17120_v6  ;;  %v17184_v6 = vld [vmem:[#allocation9 + $0xf0] ss:$28 sps:$4 sm:$0xff]  }
 0x4d7   :  { %v6605_v21 = vmax.f32 %v6589_v27, 0.0  ;;  %v17192_v27 = vld [vmem:[#allocation9 + $0xbc] ss:$28 sps:$4 sm:$0xff]  }
 0x4d8   :  { %9362 = vmatmul.mubr.bf16.vlgmr.msra.gmra.mxu0 %v18724_v45 }
 0x4d9   :  { %v18767_v59 = vpack.c.bf16 %v6605_v21, %v6598_v53  ;;  %9416 = vmatpush1.bf16.msra.mxu0 %v17118_v36  ;;  %9447 = vmatprep.mubr.bf16.mxu0 %v18317_v14  ;;  %v17187_v36 = vld [vmem:[#allocation9 + $0x2a8] ss:$28 sps:$4 sm:$0xff]   ;;  %v17190_v53 = vld [vmem:[#allocation9 + $0xb8] ss:$28 sps:$4 sm:$0xff]  }
 0x4da   :  { %9417 = vmatprep.subr.bf16.mxu0 %v17126_v4  ;;  %v18774_v4 = vld [vmem:[#allocation10] sm:$0xff]  ;;  %v17195_v21 = vld [vmem:[#allocation9 + $0x274] ss:$28 sps:$4 sm:$0xff]  }
 0x4db   :  { %9276 = vmatmul.mubr.bf16.vlgmr.msra.gmra.mxu1 %v18767_v59 }
 0x4dc   :  { %9287 = vmatpush1.bf16.msra.mxu1 %v17121_v2  ;;  %9318 = vmatprep.mubr.bf16.mxu1 %v18714_v61  ;;  %v17198_v2 = vld [vmem:[#allocation9 + $0x84] ss:$28 sps:$4 sm:$0xff]  }
 0x4dd   :  { %9418 = vmatpush1.bf16.msra.mxu0 %v17124_v38  ;;  %9288 = vmatprep.subr.bf16.mxu1 %v17129_v34  ;;  %v7066_v38 = vrot.slane %v18774_v4, %v18487_v22 }
 0x4de   :  { %9419 = vmatprep.subr.bf16.mxu0 %v17132_v15  ;;  %v17193_v15 = vld [vmem:[#allocation9 + $0x270] ss:$28 sps:$4 sm:$0xff]  }
 0x4e0   :  { %9289 = vmatpush1.bf16.msra.mxu1 %v17127_v58  ;;  %v17196_v58 = vld [vmem:[#allocation9 + $0x80] ss:$28 sps:$4 sm:$0xff]  }
 0x4e1   :  { %9420 = vmatpush1.bf16.msra.mxu0 %v17130_v16  ;;  %9290 = vmatprep.subr.bf16.mxu1 %v17135_v19  ;;  %v17201_v16 = vld [vmem:[#allocation9 + $0x23c] ss:$28 sps:$4 sm:$0xff]  }
 0x4e2   :  { %9421 = vmatprep.subr.bf16.mxu0 %v17138_v47  ;;  %v17204_v47 = vld [vmem:[#allocation9 + $0x4c] ss:$28 sps:$4 sm:$0xff]  }
 0x4e4   :  { %9291 = vmatpush1.bf16.msra.mxu1 %v17133_v18 }
 0x4e5   :  { %9422 = vmatpush1.bf16.msra.mxu0 %v17136_v9  ;;  %9292 = vmatprep.subr.bf16.mxu1 %v17141_v42 }
 0x4e6   :  { %9423 = vmatprep.subr.bf16.mxu0 %v17144_v26  ;;  %v17199_v26 = vld [vmem:[#allocation9 + $0x238] ss:$28 sps:$4 sm:$0xff]  }
 0x4e8   :  { %9293 = vmatpush1.bf16.msra.mxu1 %v17139_v20  ;;  %v17202_v20 = vld [vmem:[#allocation9 + $0x48] ss:$28 sps:$4 sm:$0xff]  }
 0x4e9   :  { %9424 = vmatpush1.bf16.msra.mxu0 %v17142_v24  ;;  %9294 = vmatprep.subr.bf16.mxu1 %v17147_v43  ;;  %v17207_v24 = vld [vmem:[#allocation9 + $0x204] ss:$28 sps:$4 sm:$0xff]  }
 0x4ea   :  { %9425 = vmatprep.subr.bf16.mxu0 %v17150_v28 }
 0x4ec   :  { %9295 = vmatpush1.bf16.msra.mxu1 %v17145_v29  ;;  %v17210_v29 = vld [vmem:[#allocation9 + $0x14] ss:$28 sps:$4 sm:$0xff]  }
 0x4ed   :  { %9426 = vmatpush1.bf16.msra.mxu0 %v17148_v62  ;;  %9296 = vmatprep.subr.bf16.mxu1 %v17153_v7 }
 0x4ee   :  { %9427 = vmatprep.subr.bf16.mxu0 %v17156_v51  ;;  %v17205_v51 = vld [vmem:[#allocation9 + $0x200] ss:$28 sps:$4 sm:$0xff]  }
 0x4f0   :  { %9297 = vmatpush1.bf16.msra.mxu1 %v17151_v50  ;;  %v17208_v50 = vld [vmem:[#allocation9 + $0x10] ss:$28 sps:$4 sm:$0xff]  }
 0x4f1   :  { %9428 = vmatpush1.bf16.msra.mxu0 %v17154_v32  ;;  %9298 = vmatprep.subr.bf16.mxu1 %v17159_v11  ;;  %v17213_v32 = vld [vmem:[#allocation9 + $0x1cc] ss:$28 sps:$4 sm:$0xff]  }
 0x4f2   :  { %9429 = vmatprep.subr.bf16.mxu0 %v17162_v52  ;;  %v17216_v52 = vld [vmem:[#allocation9 + $0x35c] ss:$28 sps:$4 sm:$0xff]  }
 0x4f4   :  { %9299 = vmatpush1.bf16.msra.mxu1 %v17157_v39  ;;  %v17211_v39 = vld [vmem:[#allocation9 + $0x1c8] ss:$28 sps:$4 sm:$0xff]  }
 0x4f5   :  { %9430 = vmatpush1.bf16.msra.mxu0 %v17160_v40  ;;  %9300 = vmatprep.subr.bf16.mxu1 %v17165_v31  ;;  %v17214_v40 = vld [vmem:[#allocation9 + $0x358] ss:$28 sps:$4 sm:$0xff]  }
 0x4f6   :  { %9458 = vmatprep.subr.bf16.mxu0 %v17168_v0  ;;  %v17219_v31 = vld [vmem:[#allocation9 + $0x894] ss:$28 sps:$4 sm:$0xff]   ;;  %v17222_v0 = vld [vmem:[#allocation9 + $0x324] ss:$28 sps:$4 sm:$0xff]  }
 0x4f8   :  { %9301 = vmatpush1.bf16.msra.mxu1 %v17163_v25  ;;  %9448 = vmatmul.mubr.bf16.vlgmr.msra.gmra.mxu0 %v18767_v59  ;;  %v17217_v25 = vld [vmem:[#allocation9 + $0x890] ss:$28 sps:$4 sm:$0xff]  }
 0x4f9   :  { %9459 = vmatpush1.bf16.msra.mxu0 %v17166_v49  ;;  %9490 = vmatprep.mubr.bf16.mxu0 %v18714_v61  ;;  %v17220_v49 = vld [vmem:[#allocation9 + $0x320] ss:$28 sps:$4 sm:$0xff]  }
 0x4fa   :  { %9302 = vmatprep.subr.bf16.mxu1 %v17171_v48  ;;  %9460 = vmatprep.subr.bf16.mxu0 %v17174_v56  ;;  %v9191_v34 = vpop.f32.mrf.mxu1  ;;  %v17225_v48 = vld [vmem:[#allocation9 + $0x85c] ss:$28 sps:$4 sm:$0xff]   ;;  %v17228_v56 = vld [vmem:[#allocation9 + $0x2ec] ss:$28 sps:$4 sm:$0xff]  }
 0x4fc   :  { %9303 = vmatpush2.bf16.msra.mxu1 %v17169_v55  ;;  %v18778_v9 = vpop.f32.mrf.mxu1  ;;  %v17223_v55 = vld [vmem:[#allocation9 + $0x858] ss:$28 sps:$4 sm:$0xff]  }
 0x4fd   :  { %9461 = vmatpush1.bf16.msra.mxu0 %v17172_v46  ;;  %9304 = vmatprep.subr.bf16.mxu1 %v17177_v44  ;;  %v17226_v46 = vld [vmem:[#allocation9 + $0x2e8] ss:$28 sps:$4 sm:$0xff]  }
 0x4fe   :  { %9462 = vmatprep.subr.bf16.mxu0 %v17180_v33  ;;  %v9195_v7 = vpop.f32.mrf.mxu1  ;;  %v17231_v44 = vld [vmem:[#allocation9 + $0x824] ss:$28 sps:$4 sm:$0xff]   ;;  %v17234_v33 = vld [vmem:[#allocation9 + $0x2b4] ss:$28 sps:$4 sm:$0xff]  }
 0x500   :  { %9305 = vmatpush2.bf16.msra.mxu1 %v17175_v60  ;;  %v17229_v60 = vld [vmem:[#allocation9 + $0x820] ss:$28 sps:$4 sm:$0xff]  }
 0x501   :  { %9463 = vmatpush1.bf16.msra.mxu0 %v17178_v54  ;;  %9306 = vmatprep.subr.bf16.mxu1 %v17183_v63  ;;  %v17232_v54 = vld [vmem:[#allocation9 + $0x2b0] ss:$28 sps:$4 sm:$0xff]  }
 0x502   :  { %9464 = vmatprep.subr.bf16.mxu0 %v17186_v23  ;;  %v17237_v63 = vld [vmem:[#allocation9 + $0x7ec] ss:$28 sps:$4 sm:$0xff]   ;;  %v17240_v23 = vld [vmem:[#allocation9 + $0x27c] ss:$28 sps:$4 sm:$0xff]  }
 0x504   :  { %9307 = vmatpush2.bf16.msra.mxu1 %v17181_v3  ;;  %v17235_v3 = vld [vmem:[#allocation9 + $0x7e8] ss:$28 sps:$4 sm:$0xff]  }
 0x505   :  { %9465 = vmatpush1.bf16.msra.mxu0 %v17184_v6  ;;  %9308 = vmatprep.subr.bf16.mxu1 %v17189_v13  ;;  %v17238_v6 = vld [vmem:[#allocation9 + $0x278] ss:$28 sps:$4 sm:$0xff]  }
 0x506   :  { %9466 = vmatprep.subr.bf16.mxu0 %v17192_v27  ;;  %v17243_v13 = vld [vmem:[#allocation9 + $0x7b4] ss:$28 sps:$4 sm:$0xff]   ;;  %v17246_v27 = vld [vmem:[#allocation9 + $0x244] ss:$28 sps:$4 sm:$0xff]  }
 0x508   :  { %9309 = vmatpush2.bf16.msra.mxu1 %v17187_v36  ;;  %v17241_v36 = vld [vmem:[#allocation9 + $0x7b0] ss:$28 sps:$4 sm:$0xff]  }
 0x509   :  { %9467 = vmatpush1.bf16.msra.mxu0 %v17190_v53  ;;  %9310 = vmatprep.subr.bf16.mxu1 %v17195_v21  ;;  %v17244_v53 = vld [vmem:[#allocation9 + $0x240] ss:$28 sps:$4 sm:$0xff]  }
 0x50a   :  { %v9148_v19 = vpop.f32.mrf.mxu0  ;;  %9468 = vmatprep.subr.bf16.mxu0 %v17198_v2  ;;  %v17249_v21 = vld [vmem:[#allocation9 + $0x77c] ss:$28 sps:$4 sm:$0xff]   ;;  %v17252_v2 = vld [vmem:[#allocation9 + $0x20c] ss:$28 sps:$4 sm:$0xff]  }
 0x50b   :  { %v9149_v18 = vadd.f32 %v9148_v19, %v7066_v38  ;;  %v17256_v19 = vld [vmem:[#allocation9 + $0x1d0] ss:$28 sps:$4 sm:$0xff]  }
 0x50c   :  { %9311 = vmatpush2.bf16.msra.mxu1 %v17193_v15  ;;  %v18780_v42 = vpop.f32.mrf.mxu0  ;;  %v17255_v15 = vld [vmem:[#allocation9 + $0x744] ss:$28 sps:$4 sm:$0xff]  }
 0x50d   :  { %9469 = vmatpush1.bf16.msra.mxu0 %v17196_v58  ;;  %9312 = vmatprep.subr.bf16.mxu1 %v17201_v16  ;;  %v18782_v43 = vadd.f32 %v9191_v34, %v9149_v18  ;;  %v17250_v34 = vld [vmem:[#allocation9 + $0x208] ss:$28 sps:$4 sm:$0xff]   ;;  %v17258_v58 = vld [vmem:[#allocation9 + $0x1d4] ss:$28 sps:$4 sm:$0xff]   ;;  %v17253_v16 = vld [vmem:[#allocation9 + $0x740] ss:$28 sps:$4 sm:$0xff]  }
 0x50e   :  { %v9152_v28 = vpop.f32.mrf.mxu0  ;;  %9470 = vmatprep.subr.bf16.mxu0 %v17204_v47  ;;  %v17261_v47 = vld [vmem:[#allocation9 + $0x70c] ss:$28 sps:$4 sm:$0xff]   ;;  %v17264_v18 = vld [vmem:[#allocation9 + $0x89c] ss:$28 sps:$4 sm:$0xff]  }
 0x50f   :  { %v9153_v62 = vadd.f32 %v9152_v28, %v7066_v38  ;;  %v17247_v38 = vld [vmem:[#allocation9 + $0x778] ss:$28 sps:$4 sm:$0xff]   ;;  %v17270_v28 = vld [vmem:[#allocation9 + $0x864] ss:$28 sps:$4 sm:$0xff]  }
 0x510   :  { %9313 = vmatpush2.bf16.msra.mxu1 %v17199_v26  ;;  %v17259_v26 = vld [vmem:[#allocation9 + $0x708] ss:$28 sps:$4 sm:$0xff]  }
 0x511   :  { %9471 = vmatpush1.bf16.msra.mxu0 %v17202_v20  ;;  %9314 = vmatprep.subr.bf16.mxu1 %v17207_v24  ;;  %v18784_v11 = vadd.f32 %v9195_v7, %v9153_v62  ;;  %v17262_v20 = vld [vmem:[#allocation9 + $0x898] ss:$28 sps:$4 sm:$0xff]   ;;  %v17268_v62 = vld [vmem:[#allocation9 + $0x860] ss:$28 sps:$4 sm:$0xff]  }
 0x512   :  { %9472 = vmatprep.subr.bf16.mxu0 %v17210_v29  ;;  %v17267_v24 = vld [vmem:[#allocation9 + $0xa54] ss:$28 sps:$4 sm:$0xff]   ;;  %v17273_v7 = vld [vmem:[#allocation9 + $0xa1c] ss:$28 sps:$4 sm:$0xff]  }
 0x513   :  { %v17265_v29 = vld [vmem:[#allocation9 + $0xa50] ss:$28 sps:$4 sm:$0xff]  }
 0x514   :  { %9315 = vmatpush2.bf16.msra.mxu1 %v17205_v51  ;;  %v17276_v51 = vld [vmem:[#allocation9 + $0x82c] ss:$28 sps:$4 sm:$0xff]  }
 0x515   :  { %9473 = vmatpush1.bf16.msra.mxu0 %v17208_v50  ;;  %9316 = vmatprep.subr.bf16.mxu1 %v17213_v32  ;;  %v17271_v50 = vld [vmem:[#allocation9 + $0xa18] ss:$28 sps:$4 sm:$0xff]   ;;  %v17274_v32 = vld [vmem:[#allocation9 + $0x828] ss:$28 sps:$4 sm:$0xff]  }
 0x516   :  { %9474 = vmatprep.subr.bf16.mxu0 %v17216_v52  ;;  %v17279_v52 = vld [vmem:[#allocation9 + $0x9e4] ss:$28 sps:$4 sm:$0xff]  }
 0x518   :  { %9317 = vmatpush2.bf16.msra.mxu1 %v17211_v39  ;;  %v17282_v39 = vld [vmem:[#allocation9 + $0x7f4] ss:$28 sps:$4 sm:$0xff]  }
 0x519   :  { %9475 = vmatpush2.bf16.msra.mxu0 %v17214_v40  ;;  %9372 = vmatprep.subr.bf16.mxu1 %v17219_v31  ;;  %v17277_v40 = vld [vmem:[#allocation9 + $0x9e0] ss:$28 sps:$4 sm:$0xff]   ;;  %v17280_v31 = vld [vmem:[#allocation9 + $0x7f0] ss:$28 sps:$4 sm:$0xff]  }
 0x51a   :  { %9476 = vmatprep.subr.bf16.mxu0 %v17222_v0  ;;  %v17285_v0 = vld [vmem:[#allocation9 + $0x9ac] ss:$28 sps:$4 sm:$0xff]  }
 0x51b   :  { %9319 = vmatmul.mubr.bf16.vlgmr.msra.gmra.mxu1 %v18691_v10 }
 0x51c   :  { %9373 = vmatpush1.bf16.msra.mxu1 %v17217_v25  ;;  %9404 = vmatprep.mubr.bf16.mxu1 %v18754_v12  ;;  %v17288_v25 = vld [vmem:[#allocation9 + $0x7bc] ss:$28 sps:$4 sm:$0xff]  }
 0x51d   :  { %9477 = vmatpush2.bf16.msra.mxu0 %v17220_v49  ;;  %9374 = vmatprep.subr.bf16.mxu1 %v17225_v48  ;;  %v17283_v49 = vld [vmem:[#allocation9 + $0x9a8] ss:$28 sps:$4 sm:$0xff]   ;;  %v17286_v48 = vld [vmem:[#allocation9 + $0x7b8] ss:$28 sps:$4 sm:$0xff]  }
 0x51e   :  { %9478 = vmatprep.subr.bf16.mxu0 %v17228_v56  ;;  %v17291_v56 = vld [vmem:[#allocation9 + $0x974] ss:$28 sps:$4 sm:$0xff]  }
 0x520   :  { %9375 = vmatpush1.bf16.msra.mxu1 %v17223_v55  ;;  %v17294_v55 = vld [vmem:[#allocation9 + $0x784] ss:$28 sps:$4 sm:$0xff]  }
 0x521   :  { %9479 = vmatpush2.bf16.msra.mxu0 %v17226_v46  ;;  %9376 = vmatprep.subr.bf16.mxu1 %v17231_v44  ;;  %v17289_v46 = vld [vmem:[#allocation9 + $0x970] ss:$28 sps:$4 sm:$0xff]   ;;  %v17292_v44 = vld [vmem:[#allocation9 + $0x780] ss:$28 sps:$4 sm:$0xff]  }
 0x522   :  { %9480 = vmatprep.subr.bf16.mxu0 %v17234_v33  ;;  %v17297_v33 = vld [vmem:[#allocation9 + $0x93c] ss:$28 sps:$4 sm:$0xff]  }
 0x524   :  { %9377 = vmatpush1.bf16.msra.mxu1 %v17229_v60  ;;  %v17300_v60 = vld [vmem:[#allocation9 + $0x74c] ss:$28 sps:$4 sm:$0xff]  }
 0x525   :  { %9481 = vmatpush2.bf16.msra.mxu0 %v17232_v54  ;;  %9378 = vmatprep.subr.bf16.mxu1 %v17237_v63  ;;  %v17295_v54 = vld [vmem:[#allocation9 + $0x938] ss:$28 sps:$4 sm:$0xff]   ;;  %v17298_v63 = vld [vmem:[#allocation9 + $0x748] ss:$28 sps:$4 sm:$0xff]  }
 0x526   :  { %9482 = vmatprep.subr.bf16.mxu0 %v17240_v23  ;;  %v17303_v23 = vld [vmem:[#allocation9 + $0x904] ss:$28 sps:$4 sm:$0xff]  }
 0x528   :  { %9379 = vmatpush1.bf16.msra.mxu1 %v17235_v3  ;;  %v17306_v3 = vld [vmem:[#allocation9 + $0x714] ss:$28 sps:$4 sm:$0xff]  }
 0x529   :  { %9483 = vmatpush2.bf16.msra.mxu0 %v17238_v6  ;;  %9380 = vmatprep.subr.bf16.mxu1 %v17243_v13  ;;  %v17301_v6 = vld [vmem:[#allocation9 + $0x900] ss:$28 sps:$4 sm:$0xff]   ;;  %v17304_v13 = vld [vmem:[#allocation9 + $0x710] ss:$28 sps:$4 sm:$0xff]  }
 0x52a   :  { %9484 = vmatprep.subr.bf16.mxu0 %v17246_v27  ;;  %v17309_v27 = vld [vmem:[#allocation9 + $0x8cc] ss:$28 sps:$4 sm:$0xff]  }
 0x52c   :  { %9381 = vmatpush1.bf16.msra.mxu1 %v17241_v36  ;;  %v17312_v36 = vld [vmem:[#allocation9 + $0xa5c] ss:$28 sps:$4 sm:$0xff]  }
 0x52d   :  { %9485 = vmatpush2.bf16.msra.mxu0 %v17244_v53  ;;  %9382 = vmatprep.subr.bf16.mxu1 %v17249_v21  ;;  %v17307_v53 = vld [vmem:[#allocation9 + $0x8c8] ss:$28 sps:$4 sm:$0xff]   ;;  %v17310_v21 = vld [vmem:[#allocation9 + $0xa58] ss:$28 sps:$4 sm:$0xff]  }
 0x52e   :  { %9486 = vmatprep.subr.bf16.mxu0 %v17252_v2  ;;  %v17315_v2 = vld [vmem:[#allocation9 + $0x51c] ss:$28 sps:$4 sm:$0xff]  }
 0x530   :  { %9383 = vmatpush1.bf16.msra.mxu1 %v17247_v38  ;;  %v18790_v38 = vpop.f32.mrf.mxu0 }
 0x531   :  { %9487 = vmatpush2.bf16.msra.mxu0 %v17250_v34  ;;  %9384 = vmatprep.subr.bf16.mxu1 %v17255_v15  ;;  %v17318_v34 = vld [vmem:[#allocation9 + $0xa24] ss:$28 sps:$4 sm:$0xff]  }
 0x532   :  { %9488 = vmatprep.subr.bf16.mxu0 %v17258_v58  ;;  %v17313_v58 = vld [vmem:[#allocation9 + $0x518] ss:$28 sps:$4 sm:$0xff]  }
 0x534   :  { %9385 = vmatpush1.bf16.msra.mxu1 %v17253_v16 }
 0x535   :  { %9489 = vmatpush2.bf16.msra.mxu0 %v17256_v19  ;;  %9386 = vmatprep.subr.bf16.mxu1 %v17261_v47  ;;  %v17316_v19 = vld [vmem:[#allocation9 + $0xa20] ss:$28 sps:$4 sm:$0xff]  }
 0x536   :  { %9544 = vmatprep.subr.bf16.mxu0 %v17264_v18  ;;  %v17321_v47 = vld [vmem:[#allocation9 + $0x4e4] ss:$28 sps:$4 sm:$0xff]  }
 0x538   :  { %9387 = vmatpush1.bf16.msra.mxu1 %v17259_v26  ;;  %9491 = vmatmul.mubr.bf16.vlgmr.msra.gmra.mxu0 %v18691_v10  ;;  %v17324_v26 = vld [vmem:[#allocation9 + $0x9ec] ss:$28 sps:$4 sm:$0xff]  }
 0x539   :  { %9545 = vmatpush1.bf16.msra.mxu0 %v17262_v20  ;;  %9576 = vmatprep.mubr.bf16.mxu0 %v18754_v12 }
 0x53a   :  { %9388 = vmatprep.subr.bf16.mxu1 %v17267_v24  ;;  %9546 = vmatprep.subr.bf16.mxu0 %v17270_v28  ;;  %v17319_v24 = vld [vmem:[#allocation9 + $0x4e0] ss:$28 sps:$4 sm:$0xff]  }
 0x53c   :  { %9389 = vmatpush2.bf16.msra.mxu1 %v17265_v29  ;;  %v17327_v29 = vld [vmem:[#allocation9 + $0x4ac] ss:$28 sps:$4 sm:$0xff]  }
 0x53d   :  { %9547 = vmatpush1.bf16.msra.mxu0 %v17268_v62  ;;  %9390 = vmatprep.subr.bf16.mxu1 %v17273_v7  ;;  %v17330_v62 = vld [vmem:[#allocation9 + $0x9b4] ss:$28 sps:$4 sm:$0xff]   ;;  %v17325_v7 = vld [vmem:[#allocation9 + $0x4a8] ss:$28 sps:$4 sm:$0xff]  }
 0x53e   :  { %9548 = vmatprep.subr.bf16.mxu0 %v17276_v51  ;;  %v17328_v51 = vld [vmem:[#allocation9 + $0x9b0] ss:$28 sps:$4 sm:$0xff]  }
 0x540   :  { %9391 = vmatpush2.bf16.msra.mxu1 %v17271_v50  ;;  %v17333_v50 = vld [vmem:[#allocation9 + $0x474] ss:$28 sps:$4 sm:$0xff]  }
 0x541   :  { %9549 = vmatpush1.bf16.msra.mxu0 %v17274_v32  ;;  %9392 = vmatprep.subr.bf16.mxu1 %v17279_v52  ;;  %v17336_v32 = vld [vmem:[#allocation9 + $0x97c] ss:$28 sps:$4 sm:$0xff]   ;;  %v17331_v52 = vld [vmem:[#allocation9 + $0x470] ss:$28 sps:$4 sm:$0xff]  }
 0x542   :  { %9550 = vmatprep.subr.bf16.mxu0 %v17282_v39  ;;  %v17339_v39 = vld [vmem:[#allocation9 + $0x43c] ss:$28 sps:$4 sm:$0xff]  }
 0x544   :  { %9393 = vmatpush2.bf16.msra.mxu1 %v17277_v40  ;;  %v17342_v40 = vld [vmem:[#allocation9 + $0x944] ss:$28 sps:$4 sm:$0xff]  }
 0x545   :  { %9551 = vmatpush1.bf16.msra.mxu0 %v17280_v31  ;;  %9394 = vmatprep.subr.bf16.mxu1 %v17285_v0  ;;  %v17337_v31 = vld [vmem:[#allocation9 + $0x438] ss:$28 sps:$4 sm:$0xff]   ;;  %v17340_v0 = vld [vmem:[#allocation9 + $0x940] ss:$28 sps:$4 sm:$0xff]  }
 0x546   :  { %9552 = vmatprep.subr.bf16.mxu0 %v17288_v25  ;;  %v17345_v25 = vld [vmem:[#allocation9 + $0x404] ss:$28 sps:$4 sm:$0xff]  }
 0x548   :  { %9395 = vmatpush2.bf16.msra.mxu1 %v17283_v49  ;;  %v17348_v49 = vld [vmem:[#allocation9 + $0x90c] ss:$28 sps:$4 sm:$0xff]  }
 0x549   :  { %9553 = vmatpush1.bf16.msra.mxu0 %v17286_v48  ;;  %9396 = vmatprep.subr.bf16.mxu1 %v17291_v56  ;;  %v17343_v48 = vld [vmem:[#allocation9 + $0x400] ss:$28 sps:$4 sm:$0xff]   ;;  %v17346_v56 = vld [vmem:[#allocation9 + $0x908] ss:$28 sps:$4 sm:$0xff]  }
 0x54a   :  { %9554 = vmatprep.subr.bf16.mxu0 %v17294_v55  ;;  %v17351_v55 = vld [vmem:[#allocation9 + $0x3cc] ss:$28 sps:$4 sm:$0xff]  }
 0x54c   :  { %9397 = vmatpush2.bf16.msra.mxu1 %v17289_v46  ;;  %v17354_v46 = vld [vmem:[#allocation9 + $0x8d4] ss:$28 sps:$4 sm:$0xff]  }
 0x54d   :  { %9555 = vmatpush1.bf16.msra.mxu0 %v17292_v44  ;;  %9398 = vmatprep.subr.bf16.mxu1 %v17297_v33  ;;  %v17349_v44 = vld [vmem:[#allocation9 + $0x3c8] ss:$28 sps:$4 sm:$0xff]   ;;  %v17352_v33 = vld [vmem:[#allocation9 + $0x8d0] ss:$28 sps:$4 sm:$0xff]  }
 0x54e   :  { %9556 = vmatprep.subr.bf16.mxu0 %v17300_v60  ;;  %v17357_v60 = vld [vmem:[#allocation9 + $0x394] ss:$28 sps:$4 sm:$0xff]  }
 0x550   :  { %9399 = vmatpush2.bf16.msra.mxu1 %v17295_v54  ;;  %v17358_v54 = vld [vmem:[#allocation9 + $0x6e0] ss:$28 sps:$4 sm:$0xff]  }
 0x551   :  { %9557 = vmatpush1.bf16.msra.mxu0 %v17298_v63  ;;  %9400 = vmatprep.subr.bf16.mxu1 %v17303_v23  ;;  %v17355_v63 = vld [vmem:[#allocation9 + $0x390] ss:$28 sps:$4 sm:$0xff]   ;;  %v17359_v23 = vld [vmem:[#allocation9 + $0x520] ss:$28 sps:$4 sm:$0xff]  }
 0x552   :  { %9558 = vmatprep.subr.bf16.mxu0 %v17306_v3  ;;  %v17362_v3 = vld [vmem:[#allocation9 + $0x6dc] ss:$28 sps:$4 sm:$0xff]  }
 0x554   :  { %9401 = vmatpush2.bf16.msra.mxu1 %v17301_v6  ;;  %v17363_v6 = vld [vmem:[#allocation9 + $0x6a8] ss:$28 sps:$4 sm:$0xff]  }
 0x555   :  { %9559 = vmatpush1.bf16.msra.mxu0 %v17304_v13  ;;  %9402 = vmatprep.subr.bf16.mxu1 %v17309_v27  ;;  %v17360_v13 = vld [vmem:[#allocation9 + $0x6d8] ss:$28 sps:$4 sm:$0xff]   ;;  %v17364_v27 = vld [vmem:[#allocation9 + $0x4e8] ss:$28 sps:$4 sm:$0xff]  }
 0x556   :  { %9560 = vmatprep.subr.bf16.mxu0 %v17312_v36  ;;  %v17367_v36 = vld [vmem:[#allocation9 + $0x6a4] ss:$28 sps:$4 sm:$0xff]  }
 0x558   :  { %9403 = vmatpush2.bf16.msra.mxu1 %v17307_v53  ;;  %v9234_v15 = vpop.f32.mrf.mxu0  ;;  %v17368_v53 = vld [vmem:[#allocation9 + $0x670] ss:$28 sps:$4 sm:$0xff]  }
 0x559   :  { %v18793_v16 = vadd.f32 %v9234_v15, %v18782_v43  ;;  %9561 = vmatpush2.bf16.msra.mxu0 %v17310_v21  ;;  %9501 = vmatprep.subr.bf16.mxu1 %v17315_v2  ;;  %v17322_v43 = vld [vmem:[#allocation9 + $0x9e8] ss:$28 sps:$4 sm:$0xff]   ;;  %v17365_v21 = vld [vmem:[#allocation9 + $0x6a0] ss:$28 sps:$4 sm:$0xff]   ;;  %v17369_v2 = vld [vmem:[#allocation9 + $0x4b0] ss:$28 sps:$4 sm:$0xff]  }
 0x55a   :  { %v18795_v18 = vpop.f32.mrf.mxu0  ;;  %9562 = vmatprep.subr.bf16.mxu0 %v17318_v34  ;;  %v17372_v34 = vld [vmem:[#allocation9 + $0x66c] ss:$28 sps:$4 sm:$0xff]   ;;  %v17373_v15 = vld [vmem:[#allocation9 + $0x638] ss:$28 sps:$4 sm:$0xff]  }
 0x55b   :  { %9405 = vmatmul.mubr.bf16.vlgmr.msra.gmra.mxu1 %v18756_v17 }
 0x55c   :  { %9502 = vmatpush1.bf16.msra.mxu1 %v17313_v58  ;;  %9533 = vmatprep.mubr.bf16.mxu1 %v18722_v35  ;;  %v9238_v20 = vpop.f32.mrf.mxu0  ;;  %v17370_v58 = vld [vmem:[#allocation9 + $0x668] ss:$28 sps:$4 sm:$0xff]  }
 0x55d   :  { %v18800_v28 = vadd.f32 %v9238_v20, %v18784_v11  ;;  %9563 = vmatpush2.bf16.msra.mxu0 %v17316_v19  ;;  %9503 = vmatprep.subr.bf16.mxu1 %v17321_v47  ;;  %v17334_v11 = vld [vmem:[#allocation9 + $0x978] ss:$28 sps:$4 sm:$0xff]   ;;  %v17379_v20 = vld [vmem:[#allocation9 + $0x440] ss:$28 sps:$4 sm:$0xff]  }
 0x55e   :  { %9564 = vmatprep.subr.bf16.mxu0 %v17324_v26  ;;  %v17374_v19 = vld [vmem:[#allocation9 + $0x478] ss:$28 sps:$4 sm:$0xff]   ;;  %v17375_v26 = vld [vmem:[#allocation9 + $0x630] ss:$28 sps:$4 sm:$0xff]  }
 0x55f   :  { %v17377_v47 = vld [vmem:[#allocation9 + $0x634] ss:$28 sps:$4 sm:$0xff]  }
 0x560   :  { %9504 = vmatpush1.bf16.msra.mxu1 %v17319_v24  ;;  %v17382_v24 = vld [vmem:[#allocation9 + $0x5fc] ss:$28 sps:$4 sm:$0xff]  }
 0x561   :  { %9565 = vmatpush2.bf16.msra.mxu0 %v17322_v43  ;;  %9505 = vmatprep.subr.bf16.mxu1 %v17327_v29  ;;  %v17383_v43 = vld [vmem:[#allocation9 + $0x5c8] ss:$28 sps:$4 sm:$0xff]   ;;  %v17380_v29 = vld [vmem:[#allocation9 + $0x5f8] ss:$28 sps:$4 sm:$0xff]  }
 0x562   :  { %9566 = vmatprep.subr.bf16.mxu0 %v17330_v62  ;;  %v17384_v62 = vld [vmem:[#allocation9 + $0x408] ss:$28 sps:$4 sm:$0xff]  }
 0x564   :  { %9506 = vmatpush1.bf16.msra.mxu1 %v17325_v7  ;;  %v17387_v7 = vld [vmem:[#allocation9 + $0x5c4] ss:$28 sps:$4 sm:$0xff]  }
 0x565   :  { %9567 = vmatpush2.bf16.msra.mxu0 %v17328_v51  ;;  %9507 = vmatprep.subr.bf16.mxu1 %v17333_v50  ;;  %v17388_v51 = vld [vmem:[#allocation9 + $0x590] ss:$28 sps:$4 sm:$0xff]   ;;  %v17385_v50 = vld [vmem:[#allocation9 + $0x5c0] ss:$28 sps:$4 sm:$0xff]  }
 0x566   :  { %9568 = vmatprep.subr.bf16.mxu0 %v17336_v32  ;;  %v17389_v32 = vld [vmem:[#allocation9 + $0x3d0] ss:$28 sps:$4 sm:$0xff]  }
 0x568   :  { %9508 = vmatpush1.bf16.msra.mxu1 %v17331_v52  ;;  %v17392_v52 = vld [vmem:[#allocation9 + $0x58c] ss:$28 sps:$4 sm:$0xff]  }
 0x569   :  { %9569 = vmatpush2.bf16.msra.mxu0 %v17334_v11  ;;  %9509 = vmatprep.subr.bf16.mxu1 %v17339_v39  ;;  %v17393_v11 = vld [vmem:[#allocation9 + $0x558] ss:$28 sps:$4 sm:$0xff]   ;;  %v17390_v39 = vld [vmem:[#allocation9 + $0x588] ss:$28 sps:$4 sm:$0xff]  }
 0x56a   :  { %9570 = vmatprep.subr.bf16.mxu0 %v17342_v40  ;;  %v17394_v40 = vld [vmem:[#allocation9 + $0x398] ss:$28 sps:$4 sm:$0xff]  }
 0x56c   :  { %9510 = vmatpush1.bf16.msra.mxu1 %v17337_v31  ;;  %v17397_v31 = vld [vmem:[#allocation9 + $0x554] ss:$28 sps:$4 sm:$0xff]  }
 0x56d   :  { %9571 = vmatpush2.bf16.msra.mxu0 %v17340_v0  ;;  %9511 = vmatprep.subr.bf16.mxu1 %v17345_v25  ;;  %v17395_v0 = vld [vmem:[#allocation9 + $0x550] ss:$28 sps:$4 sm:$0xff]   ;;  %v17398_v25 = vld [vmem:[#allocation9 + $0xc20] ss:$28 sps:$4 sm:$0xff]  }
 0x56e   :  { %9572 = vmatprep.subr.bf16.mxu0 %v17348_v49  ;;  %v17401_v49 = vld [vmem:[#allocation9 + $0xc1c] ss:$28 sps:$4 sm:$0xff]  }
 0x570   :  { %9512 = vmatpush1.bf16.msra.mxu1 %v17343_v48  ;;  %v17399_v48 = vld [vmem:[#allocation9 + $0xc18] ss:$28 sps:$4 sm:$0xff]  }
 0x571   :  { %9573 = vmatpush2.bf16.msra.mxu0 %v17346_v56  ;;  %9513 = vmatprep.subr.bf16.mxu1 %v17351_v55  ;;  %v18806_v56 = vpop.f32.mrf.mxu1  ;;  %v17402_v55 = vld [vmem:[#allocation9 + $0xbe8] ss:$28 sps:$4 sm:$0xff]  }
 0x572   :  { %9574 = vmatprep.subr.bf16.mxu0 %v17354_v46  ;;  %v17405_v46 = vld [vmem:[#allocation9 + $0xbe4] ss:$28 sps:$4 sm:$0xff]  }
 0x574   :  { %9514 = vmatpush1.bf16.msra.mxu1 %v17349_v44 }
 0x575   :  { %9575 = vmatpush2.bf16.msra.mxu0 %v17352_v33  ;;  %9515 = vmatprep.subr.bf16.mxu1 %v17357_v60  ;;  %v17403_v60 = vld [vmem:[#allocation9 + $0xbe0] ss:$28 sps:$4 sm:$0xff]  }
 0x576   :  { %15452 = vmatprep.subr.bf16.mxu0 %v17358_v54 }
 0x578   :  { %9516 = vmatpush1.bf16.msra.mxu1 %v17355_v63  ;;  %9577 = vmatmul.mubr.bf16.vlgmr.msra.gmra.mxu0 %v18756_v17  ;;  %v17406_v63 = vld [vmem:[#allocation9 + $0xbb0] ss:$28 sps:$4 sm:$0xff]  }
 0x579   :  { %15453 = vmatpush3.bf16.msra.mxu0 %v17359_v23  ;;  %9703 = vmatprep.mubr.bf16.mxu0 %v18722_v35  ;;  %v17378_v35 = vld [vmem:[#allocation9 + $0x600] ss:$28 sps:$4 sm:$0xff]   ;;  %v17409_v23 = vld [vmem:[#allocation9 + $0xbac] ss:$28 sps:$4 sm:$0xff]  }
 0x57a   :  { %9517 = vmatprep.subr.bf16.mxu1 %v17362_v3  ;;  %15454 = vmatprep.subr.bf16.mxu0 %v17363_v6 }
 0x57c   :  { %9518 = vmatpush2.bf16.msra.mxu1 %v17360_v13  ;;  %v17413_v13 = vld [vmem:[#allocation9 + $0xb74] ss:$28 sps:$4 sm:$0xff]  }
 0x57d   :  { %15455 = vmatpush3.bf16.msra.mxu0 %v17364_v27  ;;  %9519 = vmatprep.subr.bf16.mxu1 %v17367_v36 }
 0x57e   :  { %15456 = vmatprep.subr.bf16.mxu0 %v17368_v53 }
 0x580   :  { %9520 = vmatpush2.bf16.msra.mxu1 %v17365_v21  ;;  %v17411_v21 = vld [vmem:[#allocation9 + $0xb70] ss:$28 sps:$4 sm:$0xff]  }
 0x581   :  { %15457 = vmatpush3.bf16.msra.mxu0 %v17369_v2  ;;  %9521 = vmatprep.subr.bf16.mxu1 %v17372_v34  ;;  %v17414_v2 = vld [vmem:[#allocation9 + $0xb40] ss:$28 sps:$4 sm:$0xff]  }
 0x582   :  { %15458 = vmatprep.subr.bf16.mxu0 %v17373_v15  ;;  %v17417_v34 = vld [vmem:[#allocation9 + $0xb3c] ss:$28 sps:$4 sm:$0xff]   ;;  %v17418_v15 = vld [vmem:[#allocation9 + $0xb08] ss:$28 sps:$4 sm:$0xff]  }
 0x584   :  { %9522 = vmatpush2.bf16.msra.mxu1 %v17370_v58  ;;  %v17421_v58 = vld [vmem:[#allocation9 + $0xb04] ss:$28 sps:$4 sm:$0xff]  }
 0x585   :  { %15459 = vmatpush3.bf16.msra.mxu0 %v17374_v19  ;;  %9523 = vmatprep.subr.bf16.mxu1 %v17377_v47  ;;  %v17419_v19 = vld [vmem:[#allocation9 + $0xb00] ss:$28 sps:$4 sm:$0xff]   ;;  %v17422_v47 = vld [vmem:[#allocation9 + $0xad0] ss:$28 sps:$4 sm:$0xff]  }
 0x586   :  { %15460 = vmatprep.subr.bf16.mxu0 %v17378_v35  ;;  %v17425_v35 = vld [vmem:[#allocation9 + $0xacc] ss:$28 sps:$4 sm:$0xff]  }
 0x588   :  { %9524 = vmatpush2.bf16.msra.mxu1 %v17375_v26  ;;  %v17423_v26 = vld [vmem:[#allocation9 + $0xac8] ss:$28 sps:$4 sm:$0xff]  }
 0x589   :  { %15461 = vmatpush3.bf16.msra.mxu0 %v17379_v20  ;;  %9525 = vmatprep.subr.bf16.mxu1 %v17382_v24  ;;  %v17426_v20 = vld [vmem:[#allocation9 + $0xa98] ss:$28 sps:$4 sm:$0xff]  }
 0x58a   :  { %15462 = vmatprep.subr.bf16.mxu0 %v17383_v43  ;;  %v17429_v24 = vld [vmem:[#allocation9 + $0xa94] ss:$28 sps:$4 sm:$0xff]  }
 0x58b   :  { %v17457_v43 = vld [vmem:[#allocation12 + $0x50c] ss:$28 sps:$4 sm:$0xff]  }
 0x58c   :  { %9526 = vmatpush2.bf16.msra.mxu1 %v17380_v29  ;;  %v17427_v29 = vld [vmem:[#allocation9 + $0xa90] ss:$28 sps:$4 sm:$0xff]  }
 0x58d   :  { %15463 = vmatpush3.bf16.msra.mxu0 %v17384_v62  ;;  %9527 = vmatprep.subr.bf16.mxu1 %v17387_v7  ;;  %v17430_v62 = vld [vmem:[#allocation9 + $0x360] ss:$28 sps:$4 sm:$0xff]   ;;  %v17455_v7 = vld [vmem:[#allocation12 + $0x508] ss:$28 sps:$4 sm:$0xff]  }
 0x58e   :  { %15464 = vmatprep.subr.bf16.mxu0 %v17388_v51  ;;  %v17462_v51 = vld [vmem:[#allocation12 + $0x4d4] ss:$28 sps:$4 sm:$0xff]  }
 0x590   :  { %9528 = vmatpush2.bf16.msra.mxu1 %v17385_v50  ;;  %v17431_v50 = vld [vmem:[#allocation9 + $0x1a0] ss:$28 sps:$4 sm:$0xff]  }
 0x591   :  { %15465 = vmatpush3.bf16.msra.mxu0 %v17389_v32  ;;  %9529 = vmatprep.subr.bf16.mxu1 %v17392_v52  ;;  %v17432_v32 = vld [vmem:[#allocation9 + $0x328] ss:$28 sps:$4 sm:$0xff]   ;;  %v17460_v52 = vld [vmem:[#allocation12 + $0x4d0] ss:$28 sps:$4 sm:$0xff]  }
 0x592   :  { %15466 = vmatprep.subr.bf16.mxu0 %v17393_v11  ;;  %v17467_v11 = vld [vmem:[#allocation12 + $0x49c] ss:$28 sps:$4 sm:$0xff]  }
 0x594   :  { %9530 = vmatpush2.bf16.msra.mxu1 %v17390_v39  ;;  %v17433_v39 = vld [vmem:[#allocation9 + $0x168] ss:$28 sps:$4 sm:$0xff]  }
 0x595   :  { %15467 = vmatpush3.bf16.msra.mxu0 %v17394_v40  ;;  %9531 = vmatprep.subr.bf16.mxu1 %v17397_v31  ;;  %v17434_v40 = vld [vmem:[#allocation9 + $0x2f0] ss:$28 sps:$4 sm:$0xff]   ;;  %v17465_v31 = vld [vmem:[#allocation12 + $0x498] ss:$28 sps:$4 sm:$0xff]  }
 0x596   :  { %15695 = vmatprep.subr.bf16.mxu0 %v18318_v30 }
 0x598   :  { %9532 = vmatpush2.bf16.msra.mxu1 %v17395_v0  ;;  %9704 = vmatmul.mubr.bf16.vlgmr.msra.gmra.mxu0 %v18724_v45  ;;  %v17472_v0 = vld [vmem:[#allocation12 + $0x464] ss:$28 sps:$4 sm:$0xff]  }
 0x599   :  { %15696 = vmatpush3.bf16.msra.mxu0 %v17398_v25  ;;  %9587 = vmatprep.subr.bf16.mxu1 %v17401_v49  ;;  %v17435_v25 = vld [vmem:[#allocation9 + $0x130] ss:$28 sps:$4 sm:$0xff]   ;;  %v17436_v49 = vld [vmem:[#allocation9 + $0x2b8] ss:$28 sps:$4 sm:$0xff]  }
 0x59a   :  { %15697 = vmatprep.subr.bf16.mxu0 %v18318_v30  ;;  %15711 = vmatprep.mubr.msk.bf16.mxu0 %vm18319_vm0, %v18318_v30 }
 0x59b   :  { %9534 = vmatmul.mubr.bf16.vlgmr.msra.gmra.mxu1 %v18724_v45  ;;  %v9277_v44 = vpop.f32.mrf.mxu1  ;;  %v17407_v45 = vld [vmem:[#allocation9 + $0xba8] ss:$28 sps:$4 sm:$0xff]  }
 0x59c   :  { %v9278_v33 = vadd.f32 %v9277_v44, %v18793_v16  ;;  %9588 = vmatpush1.bf16.msra.mxu1 %v17399_v48  ;;  %9619 = vmatprep.mubr.bf16.mxu1 %v18317_v14  ;;  %v17410_v16 = vld [vmem:[#allocation9 + $0xb78] ss:$28 sps:$4 sm:$0xff]   ;;  %v17470_v48 = vld [vmem:[#allocation12 + $0x460] ss:$28 sps:$4 sm:$0xff]  }
 0x59d   :  { %15698 = vmatpush3.bf16.msra.mxu0 %v17402_v55  ;;  %v18814_v54 = vpop.f32.mrf.mxu1  ;;  %9589 = vmatprep.subr.bf16.mxu1 %v17405_v46  ;;  %v17479_v55 = vld [vmem:[#allocation12 + $0x42c] ss:$28 sps:$4 sm:$0xff]   ;;  %v17438_v46 = vld [vmem:[#allocation9 + $0x280] ss:$28 sps:$4 sm:$0xff]  }
 0x59e   :  { %15699 = vmatprep.subr.bf16.mxu0 %v18318_v30  ;;  %v9794_v27 = vmax.f32 %v9278_v33, 0.0  ;;  %v17485_v44 = vld [vmem:[#allocation12 + $0x3f4] ss:$28 sps:$4 sm:$0xff]  }
 0x59f   :  { %v9281_v3 = vpop.f32.mrf.mxu1  ;;  %v17439_v33 = vld [vmem:[#allocation9 + $0xc0] ss:$28 sps:$4 sm:$0xff]  }
 0x5a0   :  { %v9282_v6 = vadd.f32 %v9281_v3, %v18800_v28  ;;  %9590 = vmatpush1.bf16.msra.mxu1 %v17403_v60  ;;  %v17415_v28 = vld [vmem:[#allocation9 + $0xb38] ss:$28 sps:$4 sm:$0xff]   ;;  %v17440_v60 = vld [vmem:[#allocation9 + $0x248] ss:$28 sps:$4 sm:$0xff]  }
 0x5a1   :  { %15700 = vmatpush3.bf16.msra.mxu0 %v17406_v63  ;;  %9591 = vmatprep.subr.bf16.mxu1 %v17409_v23  ;;  %v17483_v63 = vld [vmem:[#allocation12 + $0x3f0] ss:$28 sps:$4 sm:$0xff]   ;;  %v17491_v23 = vld [vmem:[#allocation12 + $0x3bc] ss:$28 sps:$4 sm:$0xff]  }
 0x5a2   :  { %v9801_v36 = vmax.f32 %v9282_v6, 0.0  ;;  %15701 = vmatprep.subr.bf16.mxu0 %v18318_v30  ;;  %v17441_v3 = vld [vmem:[#allocation9 + $0x88] ss:$28 sps:$4 sm:$0xff]   ;;  %v17442_v6 = vld [vmem:[#allocation9 + $0x210] ss:$28 sps:$4 sm:$0xff]  }
 0x5a4   :  { %v18819_v53 = vpack.c.bf16 %v9801_v36, %v9794_v27  ;;  %9592 = vmatpush1.bf16.msra.mxu1 %v17407_v45  ;;  %v17489_v45 = vld [vmem:[#allocation12 + $0x3b8] ss:$28 sps:$4 sm:$0xff]   ;;  %v17444_v27 = vld [vmem:[#allocation9 + $0x1d8] ss:$28 sps:$4 sm:$0xff]   ;;  %v17495_v36 = vld [vmem:[#allocation12 + $0x380] ss:$28 sps:$4 sm:$0xff]  }
 0x5a5   :  { %15702 = vmatpush3.bf16.msra.mxu0 %v17410_v16  ;;  %9593 = vmatprep.subr.bf16.mxu1 %v17413_v13  ;;  %v17497_v16 = vld [vmem:[#allocation12 + $0x384] ss:$28 sps:$4 sm:$0xff]  }
 0x5a6   :  { %15703 = vmatprep.subr.bf16.mxu0 %v18318_v30  ;;  %v17443_v13 = vld [vmem:[#allocation9 + $0x50] ss:$28 sps:$4 sm:$0xff]  }
 0x5a8   :  { %9594 = vmatpush1.bf16.msra.mxu1 %v17411_v21  ;;  %v17503_v21 = vld [vmem:[#allocation12 + $0x6cc] ss:$28 sps:$4 sm:$0xff]  }
 0x5a9   :  { %15704 = vmatpush3.bf16.msra.mxu0 %v17414_v2  ;;  %9595 = vmatprep.subr.bf16.mxu1 %v17417_v34  ;;  %v17445_v2 = vld [vmem:[#allocation9 + $0x18] ss:$28 sps:$4 sm:$0xff]   ;;  %v17446_v34 = vld [vmem:[#allocation9 + $0xa60] ss:$28 sps:$4 sm:$0xff]  }
 0x5aa   :  { %15705 = vmatprep.subr.bf16.mxu0 %v18318_v30 }
 0x5ac   :  { %9596 = vmatpush1.bf16.msra.mxu1 %v17415_v28  ;;  %v17501_v28 = vld [vmem:[#allocation12 + $0x6c8] ss:$28 sps:$4 sm:$0xff]  }
 0x5ad   :  { %15706 = vmatpush3.bf16.msra.mxu0 %v17418_v15  ;;  %9597 = vmatprep.subr.bf16.mxu1 %v17421_v58  ;;  %v17509_v15 = vld [vmem:[#allocation12 + $0x694] ss:$28 sps:$4 sm:$0xff]  }
 0x5ae   :  { %15707 = vmatprep.subr.bf16.mxu0 %v18318_v30  ;;  %v17447_v58 = vld [vmem:[#allocation9 + $0x8a0] ss:$28 sps:$4 sm:$0xff]  }
 0x5b0   :  { %9598 = vmatpush1.bf16.msra.mxu1 %v17419_v19  ;;  %v17448_v19 = vld [vmem:[#allocation9 + $0xa28] ss:$28 sps:$4 sm:$0xff]  }
 0x5b1   :  { %15708 = vmatpush3.bf16.msra.mxu0 %v17422_v47  ;;  %9599 = vmatprep.subr.bf16.mxu1 %v17425_v35  ;;  %v17507_v47 = vld [vmem:[#allocation12 + $0x690] ss:$28 sps:$4 sm:$0xff]   ;;  %v17515_v35 = vld [vmem:[#allocation12 + $0x65c] ss:$28 sps:$4 sm:$0xff]  }
 0x5b2   :  { %15709 = vmatprep.subr.bf16.mxu0 %v18318_v30 }
 0x5b4   :  { %9600 = vmatpush1.bf16.msra.mxu1 %v17423_v26  ;;  %v17449_v26 = vld [vmem:[#allocation9 + $0x868] ss:$28 sps:$4 sm:$0xff]  }
 0x5b5   :  { %15710 = vmatpush3.bf16.msra.mxu0 %v17426_v20  ;;  %9601 = vmatprep.subr.bf16.mxu1 %v17429_v24  ;;  %v17450_v20 = vld [vmem:[#allocation9 + $0x9f0] ss:$28 sps:$4 sm:$0xff]   ;;  %v17513_v24 = vld [vmem:[#allocation12 + $0x658] ss:$28 sps:$4 sm:$0xff]  }
 0x5b6   :  { %12359 = vmatprep.subr.bf16.mxu0 %v17457_v43  ;;  %v17521_v43 = vld [vmem:[#allocation12 + $0x624] ss:$28 sps:$4 sm:$0xff]  }
 0x5b8   :  { %9602 = vmatpush1.bf16.msra.mxu1 %v17427_v29  ;;  %15712 = vmatmul.mubr.bf16.vlgmr.msra.gmra.mxu0 %v18767_v59  ;;  %v17451_v29 = vld [vmem:[#allocation9 + $0x830] ss:$28 sps:$4 sm:$0xff]  }
 0x5b9   :  { %15430 = vmatprep.subr.bf16.mxu1 %v17430_v62  ;;  %12360 = vmatpush1.bf16.msra.mxu0 %v17455_v7  ;;  %v17452_v62 = vld [vmem:[#allocation9 + $0x9b8] ss:$28 sps:$4 sm:$0xff]   ;;  %v17519_v7 = vld [vmem:[#allocation12 + $0x620] ss:$28 sps:$4 sm:$0xff]  }
 0x5ba   :  { %12361 = vmatprep.subr.bf16.mxu0 %v17462_v51  ;;  %v17527_v51 = vld [vmem:[#allocation12 + $0x5ec] ss:$28 sps:$4 sm:$0xff]  }
 0x5bb   :  { %9620 = vmatmul.mubr.bf16.vlgmr.msra.gmra.mxu1 %v18767_v59  ;;  %v17437_v59 = vld [vmem:[#allocation9 + $0xf8] ss:$28 sps:$4 sm:$0xff]  }
 0x5bc   :  { %15431 = vmatpush3.bf16.msra.mxu1 %v17431_v50  ;;  %9662 = vmatprep.mubr.bf16.mxu1 %v18714_v61  ;;  %v17477_v61 = vld [vmem:[#allocation12 + $0x428] ss:$28 sps:$4 sm:$0xff]   ;;  %v17454_v50 = vld [vmem:[#allocation9 + $0x980] ss:$28 sps:$4 sm:$0xff]  }
 0x5bd   :  { %15432 = vmatprep.subr.bf16.mxu1 %v17432_v32  ;;  %12362 = vmatpush1.bf16.msra.mxu0 %v17460_v52  ;;  %v17533_v32 = vld [vmem:[#allocation12 + $0x5b4] ss:$28 sps:$4 sm:$0xff]   ;;  %v7070_v52 = vrot.slane %v18774_v4, %v18549_v8 }
 0x5be   :  { %12363 = vmatprep.subr.bf16.mxu0 %v17467_v11  ;;  %v17458_v11 = vld [vmem:[#allocation9 + $0x7c0] ss:$28 sps:$4 sm:$0xff]  }
 0x5c0   :  { %15433 = vmatpush3.bf16.msra.mxu1 %v17433_v39  ;;  %v17459_v39 = vld [vmem:[#allocation9 + $0x948] ss:$28 sps:$4 sm:$0xff]  }
 0x5c1   :  { %15434 = vmatprep.subr.bf16.mxu1 %v17434_v40  ;;  %12364 = vmatpush1.bf16.msra.mxu0 %v17465_v31  ;;  %v17531_v40 = vld [vmem:[#allocation12 + $0x5b0] ss:$28 sps:$4 sm:$0xff]   ;;  %v9155_v31 = vadd.f32 %v18790_v38, %v7070_v52  ;;  %v17468_v38 = vld [vmem:[#allocation9 + $0x750] ss:$28 sps:$4 sm:$0xff]  }
 0x5c2   :  { %12365 = vmatprep.subr.bf16.mxu0 %v17472_v0  ;;  %v17539_v0 = vld [vmem:[#allocation12 + $0x57c] ss:$28 sps:$4 sm:$0xff]  }
 0x5c3   :  { %v9198_v4 = vadd.f32 %v18806_v56, %v9155_v31  ;;  %v17473_v56 = vld [vmem:[#allocation9 + $0x718] ss:$28 sps:$4 sm:$0xff]  }
 0x5c4   :  { %15435 = vmatpush3.bf16.msra.mxu1 %v17435_v25  ;;  %v9151_v25 = vadd.f32 %v18780_v42, %v7070_v52  ;;  %v17543_v42 = vld [vmem:[#allocation12 + $0x540] ss:$28 sps:$4 sm:$0xff]   ;;  %v17530_v31 = vld [vmem:[#allocation12 + $0x314] ss:$28 sps:$4 sm:$0xff]  }
 0x5c5   :  { %15436 = vmatprep.subr.bf16.mxu1 %v17436_v49  ;;  %12366 = vmatpush1.bf16.msra.mxu0 %v17470_v48  ;;  %v17463_v49 = vld [vmem:[#allocation9 + $0x788] ss:$28 sps:$4 sm:$0xff]   ;;  %v9240_v48 = vpop.f32.mrf.mxu0 }
 0x5c6   :  { %12367 = vmatprep.subr.bf16.mxu0 %v17479_v55  ;;  %v17464_v55 = vld [vmem:[#allocation9 + $0x910] ss:$28 sps:$4 sm:$0xff]  }
 0x5c8   :  { %15437 = vmatpush3.bf16.msra.mxu1 %v17437_v59  ;;  %v17537_v59 = vld [vmem:[#allocation12 + $0x578] ss:$28 sps:$4 sm:$0xff]  }
 0x5c9   :  { %15438 = vmatprep.subr.bf16.mxu1 %v17438_v46  ;;  %12368 = vmatpush1.bf16.msra.mxu0 %v17477_v61  ;;  %v17545_v46 = vld [vmem:[#allocation12 + $0x544] ss:$28 sps:$4 sm:$0xff]   ;;  %v9283_v61 = vpop.f32.mrf.mxu1 }
 0x5ca   :  { %12369 = vmatprep.subr.bf16.mxu0 %v17485_v44  ;;  %v9194_v44 = vadd.f32 %v18778_v9, %v9151_v25 }
 0x5cc   :  { %15439 = vmatpush3.bf16.msra.mxu1 %v17439_v33  ;;  %v9241_v33 = vadd.f32 %v9240_v48, %v9198_v4 }
 0x5cd   :  { %15440 = vmatprep.subr.bf16.mxu1 %v17440_v60  ;;  %12370 = vmatpush1.bf16.msra.mxu0 %v17483_v63  ;;  %v17469_v60 = vld [vmem:[#allocation9 + $0x8d8] ss:$28 sps:$4 sm:$0xff]   ;;  %v9237_v63 = vadd.f32 %v18795_v18, %v9194_v44 }
 0x5ce   :  { %12371 = vmatprep.subr.bf16.mxu0 %v17491_v23  ;;  %v9284_v23 = vadd.f32 %v9283_v61, %v9241_v33  ;;  %v17480_v18 = vld [vmem:[#allocation12 + $0x150] ss:$28 sps:$4 sm:$0xff]   ;;  %v17536_v61 = vld [vmem:[#allocation12 + $0x2dc] ss:$28 sps:$4 sm:$0xff]  }
 0x5d0   :  { %15441 = vmatpush3.bf16.msra.mxu1 %v17441_v3  ;;  %v9280_v3 = vadd.f32 %v18814_v54, %v9237_v63  ;;  %v17488_v54 = vld [vmem:[#allocation12 + $0x11c] ss:$28 sps:$4 sm:$0xff]  }
 0x5d1   :  { %15442 = vmatprep.subr.bf16.mxu1 %v17442_v6  ;;  %12372 = vmatpush1.bf16.msra.mxu0 %v17489_v45  ;;  %v17476_v6 = vld [vmem:[#allocation12 + $0x18c] ss:$28 sps:$4 sm:$0xff]   ;;  %v9802_v45 = vmax.f32 %v9284_v23, 0.0 }
 0x5d2   :  { %12373 = vmatprep.subr.bf16.mxu0 %v17497_v16  ;;  %v9795_v9 = vmax.f32 %v9280_v3, 0.0  ;;  %v17474_v16 = vld [vmem:[#allocation12 + $0x188] ss:$28 sps:$4 sm:$0xff]   ;;  %v17534_v3 = vld [vmem:[#allocation12 + $0x2d8] ss:$28 sps:$4 sm:$0xff]  }
 0x5d4   :  { %15443 = vmatpush3.bf16.msra.mxu1 %v17443_v13  ;;  %v17482_v13 = vld [vmem:[#allocation12 + $0x154] ss:$28 sps:$4 sm:$0xff]  }
 0x5d5   :  { %15444 = vmatprep.subr.bf16.mxu1 %v17444_v27  ;;  %12374 = vmatpush1.bf16.msra.mxu0 %v17495_v36  ;;  %v18838_v27 = vpack.c.bf16 %v9802_v45, %v9795_v9  ;;  %v17486_v36 = vld [vmem:[#allocation12 + $0x118] ss:$28 sps:$4 sm:$0xff]  }
 0x5d6   :  { %12375 = vmatprep.subr.bf16.mxu0 %v17503_v21  ;;  %v17494_v21 = vld [vmem:[#allocation12 + $0xe4] ss:$28 sps:$4 sm:$0xff]  }
 0x5d8   :  { %15445 = vmatpush3.bf16.msra.mxu1 %v17445_v2  ;;  %v17492_v2 = vld [vmem:[#allocation12 + $0xe0] ss:$28 sps:$4 sm:$0xff]  }
 0x5d9   :  { %15474 = vmatprep.subr.bf16.mxu1 %v17446_v34  ;;  %12376 = vmatpush2.bf16.msra.mxu0 %v17501_v28  ;;  %v17500_v34 = vld [vmem:[#allocation12 + $0xac] ss:$28 sps:$4 sm:$0xff]  }
 0x5da   :  { %12377 = vmatprep.subr.bf16.mxu0 %v17509_v15  ;;  %v17498_v28 = vld [vmem:[#allocation12 + $0xa8] ss:$28 sps:$4 sm:$0xff]   ;;  %v9363_v15 = vpop.f32.mrf.mxu0 }
 0x5db   :  { %9663 = vmatmul.mubr.bf16.vlgmr.msra.gmra.mxu1 %v18691_v10  ;;  %v17453_v10 = vld [vmem:[#allocation9 + $0x7f8] ss:$28 sps:$4 sm:$0xff]  }
 0x5dc   :  { %15475 = vmatpush3.bf16.msra.mxu1 %v17447_v58  ;;  %9744 = vmatprep.mubr.bf16.mxu1 %v18754_v12  ;;  %v17525_v12 = vld [vmem:[#allocation12 + $0x5e8] ss:$28 sps:$4 sm:$0xff]   ;;  %v17506_v58 = vld [vmem:[#allocation12 + $0x74] ss:$28 sps:$4 sm:$0xff]  }
 0x5dd   :  { %15476 = vmatprep.subr.bf16.mxu1 %v17448_v19  ;;  %12378 = vmatpush2.bf16.msra.mxu0 %v17507_v47  ;;  %v9365_v19 = vpop.f32.mrf.mxu0  ;;  %v9320_v47 = vpop.f32.mrf.mxu1 }
 0x5de   :  { %12379 = vmatprep.subr.bf16.mxu0 %v17515_v35  ;;  %v17512_v35 = vld [vmem:[#allocation12 + $0x3c] ss:$28 sps:$4 sm:$0xff]  }
 0x5e0   :  { %15477 = vmatpush3.bf16.msra.mxu1 %v17449_v26  ;;  %v17510_v26 = vld [vmem:[#allocation12 + $0x38] ss:$28 sps:$4 sm:$0xff]  }
 0x5e1   :  { %15478 = vmatprep.subr.bf16.mxu1 %v17450_v20  ;;  %12380 = vmatpush2.bf16.msra.mxu0 %v17513_v24  ;;  %v9367_v20 = vpop.f32.mrf.mxu0  ;;  %v9322_v24 = vpop.f32.mrf.mxu1 }
 0x5e2   :  { %12381 = vmatprep.subr.bf16.mxu0 %v17521_v43  ;;  %v17518_v43 = vld [vmem:[#allocation12 + $0x4] ss:$28 sps:$4 sm:$0xff]  }
 0x5e4   :  { %15479 = vmatpush3.bf16.msra.mxu1 %v17451_v29  ;;  %v18842_v29 = vld [vmem:[#allocation10] sm:$0xff] }
 0x5e5   :  { %15480 = vmatprep.subr.bf16.mxu1 %v17452_v62  ;;  %12382 = vmatpush2.bf16.msra.mxu0 %v17519_v7  ;;  %v7078_v62 = vrot.slane %v18842_v29, %v18578_v41  ;;  %v17516_v7 = vld [vmem:[#allocation12] ss:$28 sps:$4 sm:$0xff]  }
 0x5e6   :  { %12383 = vmatprep.subr.bf16.mxu0 %v17527_v51  ;;  %v9369_v51 = vpop.f32.mrf.mxu0 }
 0x5e7   :  { %v9323_v52 = vadd.f32 %v9322_v24, %v7078_v62  ;;  %v17554_v24 = vld [vmem:[#allocation12 + $0x1fc] ss:$28 sps:$4 sm:$0xff]  }
 0x5e8   :  { %15481 = vmatpush3.bf16.msra.mxu1 %v17453_v10  ;;  %v7074_v10 = vrot.slane %v18842_v29, %v18602_v5 }
 0x5e9   :  { %15482 = vmatprep.subr.bf16.mxu1 %v17454_v50  ;;  %12384 = vmatpush2.bf16.msra.mxu0 %v17525_v12  ;;  %v9324_v50 = vpop.f32.mrf.mxu1  ;;  %v17524_v12 = vld [vmem:[#allocation12 + $0x34c] ss:$28 sps:$4 sm:$0xff]  }
 0x5ea   :  { %12385 = vmatprep.subr.bf16.mxu0 %v17533_v32  ;;  %v9449_v32 = vpop.f32.mrf.mxu0 }
 0x5ec   :  { %15483 = vmatpush3.bf16.msra.mxu1 %v17458_v11  ;;  %v17522_v11 = vld [vmem:[#allocation12 + $0x348] ss:$28 sps:$4 sm:$0xff]   ;;  %v9451_v25 = vpop.f32.mrf.mxu0 }
 0x5ed   :  { %15484 = vmatprep.subr.bf16.mxu1 %v17459_v39  ;;  %12386 = vmatpush2.bf16.msra.mxu0 %v17531_v40  ;;  %v9321_v39 = vadd.f32 %v9320_v47, %v7074_v10  ;;  %v9326_v40 = vpop.f32.mrf.mxu1  ;;  %v17551_v47 = vld [vmem:[#allocation12 + $0x234] ss:$28 sps:$4 sm:$0xff]  }
 0x5ee   :  { %12387 = vmatprep.subr.bf16.mxu0 %v17539_v0  ;;  %v9325_v0 = vadd.f32 %v9324_v50, %v7074_v10  ;;  %v9327_v48 = vadd.f32 %v9326_v40, %v7078_v62  ;;  %v17641_v62 = vld [vmem:[#allocation12 + $0xbd4] ss:$28 sps:$4 sm:$0xff]   ;;  %v17647_v50 = vld [vmem:[#allocation12 + $0xb9c] ss:$28 sps:$4 sm:$0xff]  }
 0x5ef   :  { %v9364_v4 = vadd.f32 %v9363_v15, %v9321_v39  ;;  %v17645_v10 = vld [vmem:[#allocation12 + $0xb98] ss:$28 sps:$4 sm:$0xff]   ;;  %v17558_v39 = vld [vmem:[#allocation12 + $0x888] ss:$28 sps:$4 sm:$0xff]  }
 0x5f0   :  { %15485 = vmatpush3.bf16.msra.mxu1 %v17463_v49  ;;  %v9368_v33 = vadd.f32 %v9367_v20, %v9325_v0  ;;  %v9370_v23 = vadd.f32 %v9369_v51, %v9327_v48  ;;  %v17549_v20 = vld [vmem:[#allocation12 + $0x230] ss:$28 sps:$4 sm:$0xff]   ;;  %v17557_v51 = vld [vmem:[#allocation12 + $0x1c4] ss:$28 sps:$4 sm:$0xff]   ;;  %v17566_v48 = vld [vmem:[#allocation12 + $0x81c] ss:$28 sps:$4 sm:$0xff]  }
 0x5f1   :  { %15486 = vmatprep.subr.bf16.mxu1 %v17464_v55  ;;  %12388 = vmatpush2.bf16.msra.mxu0 %v17537_v59  ;;  %v9366_v55 = vadd.f32 %v9365_v19, %v9323_v52  ;;  %v17528_v59 = vld [vmem:[#allocation12 + $0x310] ss:$28 sps:$4 sm:$0xff]   ;;  %v17651_v52 = vld [vmem:[#allocation12 + $0xb60] ss:$28 sps:$4 sm:$0xff]   ;;  %v17657_v0 = vld [vmem:[#allocation12 + $0xb28] ss:$28 sps:$4 sm:$0xff]  }
 0x5f2   :  { %12389 = vmatprep.subr.bf16.mxu0 %v17545_v46  ;;  %v17563_v40 = vld [vmem:[#allocation12 + $0x854] ss:$28 sps:$4 sm:$0xff]  }
 0x5f4   :  { %15487 = vmatpush3.bf16.msra.mxu1 %v17468_v38  ;;  %v9453_v38 = vpop.f32.mrf.mxu0 }
 0x5f5   :  { %15488 = vmatprep.subr.bf16.mxu1 %v17469_v60  ;;  %12390 = vmatpush2.bf16.msra.mxu0 %v17543_v42 }
 0x5f8   :  { %15489 = vmatpush3.bf16.msra.mxu1 %v17473_v56 }
 0x5f9   :  { %12316 = vmatprep.subr.bf16.mxu1 %v17476_v6  ;;  %v17542_v6 = vld [vmem:[#allocation12 + $0x2a4] ss:$28 sps:$4 sm:$0xff]  }
 0x5fb   :  { %9745 = vmatmul.mubr.bf16.vlgmr.msra.gmra.mxu1 %v18756_v17  ;;  %v17504_v17 = vld [vmem:[#allocation12 + $0x70] ss:$28 sps:$4 sm:$0xff]  }
 0x5fc   :  { %12317 = vmatpush1.bf16.msra.mxu1 %v17474_v16  ;;  %12348 = vmatprep.mubr.bf16.mxu1 %v18838_v27 }
 0x5fd   :  { %12318 = vmatprep.subr.bf16.mxu1 %v17482_v13  ;;  %v9455_v13 = vpop.f32.mrf.mxu0 }
 0x600   :  { %12319 = vmatpush1.bf16.msra.mxu1 %v17480_v18 }
 0x601   :  { %12320 = vmatprep.subr.bf16.mxu1 %v17488_v54 }
 0x604   :  { %12321 = vmatpush1.bf16.msra.mxu1 %v17486_v36  ;;  %v17540_v36 = vld [vmem:[#allocation12 + $0x2a0] ss:$28 sps:$4 sm:$0xff]  }
 0x605   :  { %12322 = vmatprep.subr.bf16.mxu1 %v17494_v21 }
 0x608   :  { %12323 = vmatpush1.bf16.msra.mxu1 %v17492_v2  ;;  %v17548_v2 = vld [vmem:[#allocation12 + $0x26c] ss:$28 sps:$4 sm:$0xff]  }
 0x609   :  { %12324 = vmatprep.subr.bf16.mxu1 %v17500_v34 }
 0x60c   :  { %12325 = vmatpush1.bf16.msra.mxu1 %v17498_v28 }
 0x60d   :  { %12326 = vmatprep.subr.bf16.mxu1 %v17506_v58 }
 0x610   :  { %12327 = vmatpush1.bf16.msra.mxu1 %v17504_v17  ;;  %v17546_v17 = vld [vmem:[#allocation12 + $0x268] ss:$28 sps:$4 sm:$0xff]  }
 0x611   :  { %12328 = vmatprep.subr.bf16.mxu1 %v17512_v35  ;;  %v17633_v35 = vld [vmem:[#allocation12 + $0xc08] ss:$28 sps:$4 sm:$0xff]  }
 0x614   :  { %12329 = vmatpush1.bf16.msra.mxu1 %v17510_v26  ;;  %v17635_v26 = vld [vmem:[#allocation12 + $0xc0c] ss:$28 sps:$4 sm:$0xff]  }
 0x615   :  { %12330 = vmatprep.subr.bf16.mxu1 %v17518_v43  ;;  %12445 = vmatprep.subr.bf16.mxu0 %v17635_v26  ;;  %v17639_v43 = vld [vmem:[#allocation12 + $0xbd0] ss:$28 sps:$4 sm:$0xff]  }
 0x618   :  { %12331 = vmatpush1.bf16.msra.mxu1 %v17516_v7  ;;  %v17552_v7 = vld [vmem:[#allocation12 + $0x1f8] ss:$28 sps:$4 sm:$0xff]  }
 0x619   :  { %12332 = vmatprep.subr.bf16.mxu1 %v17524_v12  ;;  %v17555_v12 = vld [vmem:[#allocation12 + $0x1c0] ss:$28 sps:$4 sm:$0xff]  }
 0x61b   :  { %v9406_v49 = vpop.f32.mrf.mxu1 }
 0x61c   :  { %12333 = vmatpush2.bf16.msra.mxu1 %v17522_v11  ;;  %v9407_v60 = vadd.f32 %v9406_v49, %v9364_v4  ;;  %v17653_v11 = vld [vmem:[#allocation12 + $0xb64] ss:$28 sps:$4 sm:$0xff]   ;;  %v17561_v49 = vld [vmem:[#allocation12 + $0x850] ss:$28 sps:$4 sm:$0xff]  }
 0x61d   :  { %v9408_v46 = vpop.f32.mrf.mxu1  ;;  %12334 = vmatprep.subr.bf16.mxu1 %v17530_v31  ;;  %v17659_v31 = vld [vmem:[#allocation12 + $0xb2c] ss:$28 sps:$4 sm:$0xff]  }
 0x61e   :  { %v9409_v44 = vadd.f32 %v9408_v46, %v9366_v55  ;;  %v9450_v18 = vadd.f32 %v9449_v32, %v9407_v60  ;;  %v17560_v32 = vld [vmem:[#allocation12 + $0x88c] ss:$28 sps:$4 sm:$0xff]   ;;  %v17665_v55 = vld [vmem:[#allocation12 + $0xaf4] ss:$28 sps:$4 sm:$0xff]   ;;  %v17567_v60 = vld [vmem:[#allocation12 + $0x7e0] ss:$28 sps:$4 sm:$0xff]  }
 0x61f   :  { %v9410_v42 = vpop.f32.mrf.mxu1  ;;  %v17564_v46 = vld [vmem:[#allocation12 + $0x818] ss:$28 sps:$4 sm:$0xff]  }
 0x620   :  { %v9411_v63 = vadd.f32 %v9410_v42, %v9368_v33  ;;  %12335 = vmatpush2.bf16.msra.mxu1 %v17528_v59  ;;  %v9452_v45 = vadd.f32 %v9451_v25, %v9409_v44  ;;  %v9796_v15 = vmax.f32 %v9450_v18, 0.0  ;;  %v18856_v25 = vpop.f32.mrf.mxu0  ;;  %v17663_v59 = vld [vmem:[#allocation12 + $0xaf0] ss:$28 sps:$4 sm:$0xff]   ;;  %v17671_v44 = vld [vmem:[#allocation12 + $0xabc] ss:$28 sps:$4 sm:$0xff]  }
 0x621   :  { %v9412_v56 = vpop.f32.mrf.mxu1  ;;  %12336 = vmatprep.subr.bf16.mxu1 %v17536_v61  ;;  %v17569_v61 = vld [vmem:[#allocation12 + $0x7e4] ss:$28 sps:$4 sm:$0xff]   ;;  %v17669_v33 = vld [vmem:[#allocation12 + $0xab8] ss:$28 sps:$4 sm:$0xff]   ;;  %v17572_v42 = vld [vmem:[#allocation12 + $0x7ac] ss:$28 sps:$4 sm:$0xff]  }
 0x622   :  { %v9454_v9 = vadd.f32 %v9453_v38, %v9411_v63  ;;  %v9413_v16 = vadd.f32 %v9412_v56, %v9370_v23  ;;  %v9797_v34 = vmax.f32 %v9452_v45, 0.0  ;;  %v18858_v4 = vpop.f32.mrf.mxu0  ;;  %v17677_v63 = vld [vmem:[#allocation12 + $0xa84] ss:$28 sps:$4 sm:$0xff]  }
 0x623   :  { %v17675_v23 = vld [vmem:[#allocation12 + $0xa80] ss:$28 sps:$4 sm:$0xff]   ;;  %v17570_v56 = vld [vmem:[#allocation12 + $0x7a8] ss:$28 sps:$4 sm:$0xff]  }
 0x624   :  { %v9456_v54 = vadd.f32 %v9455_v13, %v9413_v16  ;;  %12337 = vmatpush2.bf16.msra.mxu1 %v17534_v3  ;;  %v9803_v21 = vmax.f32 %v9454_v9, 0.0  ;;  %v18860_v38 = vpop.f32.mrf.mxu0  ;;  %v17683_v9 = vld [vmem:[#allocation12 + $0x194] ss:$28 sps:$4 sm:$0xff]   ;;  %v17578_v13 = vld [vmem:[#allocation12 + $0x73c] ss:$28 sps:$4 sm:$0xff]  }
 0x625   :  { %12338 = vmatprep.subr.bf16.mxu1 %v17542_v6  ;;  %v17575_v6 = vld [vmem:[#allocation12 + $0x774] ss:$28 sps:$4 sm:$0xff]  }
 0x626   :  { %v9804_v28 = vmax.f32 %v9456_v54, 0.0  ;;  %v18850_v19 = vpack.c.bf16 %v9803_v21, %v9796_v15  ;;  %v18862_v3 = vpop.f32.mrf.mxu0  ;;  %v17573_v16 = vld [vmem:[#allocation12 + $0x770] ss:$28 sps:$4 sm:$0xff]   ;;  %v17576_v54 = vld [vmem:[#allocation12 + $0x738] ss:$28 sps:$4 sm:$0xff]  }
 0x628   :  { %v18848_v58 = vpack.c.bf16 %v9804_v28, %v9797_v34  ;;  %12339 = vmatpush2.bf16.msra.mxu1 %v17540_v36  ;;  %v17581_v36 = vld [vmem:[#allocation12 + $0x704] ss:$28 sps:$4 sm:$0xff]   ;;  %v17584_v34 = vld [vmem:[#allocation12 + $0xa4c] ss:$28 sps:$4 sm:$0xff]  }
 0x629   :  { %12340 = vmatprep.subr.bf16.mxu1 %v17548_v2  ;;  %v17579_v2 = vld [vmem:[#allocation12 + $0x700] ss:$28 sps:$4 sm:$0xff]  }
 0x62a   :  { %12391 = vmatprep.mubr.bf16.mxu0 %v18848_v58 }
 0x62b   :  { %12392 = vmatmul.mubr.bf16.vlgmr.msra.gmra.mxu0 %v18850_v19 }
 0x62c   :  { %12341 = vmatpush2.bf16.msra.mxu1 %v17546_v17  ;;  %12446 = vmatpush1.bf16.msra.mxu0 %v17633_v35  ;;  %v17582_v17 = vld [vmem:[#allocation12 + $0xa48] ss:$28 sps:$4 sm:$0xff]  }
 0x62d   :  { %12342 = vmatprep.subr.bf16.mxu1 %v17551_v47  ;;  %12477 = vmatprep.mubr.bf16.mxu0 %v18317_v14  ;;  %v17587_v47 = vld [vmem:[#allocation12 + $0xa14] ss:$28 sps:$4 sm:$0xff]  }
 0x62e   :  { %12447 = vmatprep.subr.bf16.mxu0 %v17641_v62 }
 0x630   :  { %12343 = vmatpush2.bf16.msra.mxu1 %v17549_v20  ;;  %12448 = vmatpush1.bf16.msra.mxu0 %v17639_v43  ;;  %v17590_v43 = vld [vmem:[#allocation12 + $0x9dc] ss:$28 sps:$4 sm:$0xff]  }
 0x631   :  { %12344 = vmatprep.subr.bf16.mxu1 %v17554_v24  ;;  %12449 = vmatprep.subr.bf16.mxu0 %v17647_v50  ;;  %v17585_v24 = vld [vmem:[#allocation12 + $0xa10] ss:$28 sps:$4 sm:$0xff]   ;;  %v17591_v50 = vld [vmem:[#allocation12 + $0x9a0] ss:$28 sps:$4 sm:$0xff]  }
 0x634   :  { %12345 = vmatpush2.bf16.msra.mxu1 %v17552_v7  ;;  %12450 = vmatpush1.bf16.msra.mxu0 %v17645_v10  ;;  %v17593_v10 = vld [vmem:[#allocation12 + $0x9a4] ss:$28 sps:$4 sm:$0xff]  }
 0x635   :  { %12346 = vmatprep.subr.bf16.mxu1 %v17557_v51  ;;  %12451 = vmatprep.subr.bf16.mxu0 %v17653_v11  ;;  %v17588_v51 = vld [vmem:[#allocation12 + $0x9d8] ss:$28 sps:$4 sm:$0xff]   ;;  %v17597_v11 = vld [vmem:[#allocation12 + $0x930] ss:$28 sps:$4 sm:$0xff]  }
 0x638   :  { %12347 = vmatpush2.bf16.msra.mxu1 %v17555_v12  ;;  %12452 = vmatpush1.bf16.msra.mxu0 %v17651_v52  ;;  %v18864_v45 = vpop.f32.mrf.mxu0  ;;  %v17596_v12 = vld [vmem:[#allocation12 + $0x96c] ss:$28 sps:$4 sm:$0xff]   ;;  %v17599_v52 = vld [vmem:[#allocation12 + $0x934] ss:$28 sps:$4 sm:$0xff]  }
 0x639   :  { %12402 = vmatprep.subr.bf16.mxu1 %v17560_v32  ;;  %12453 = vmatprep.subr.bf16.mxu0 %v17659_v31  ;;  %v17594_v32 = vld [vmem:[#allocation12 + $0x968] ss:$28 sps:$4 sm:$0xff]   ;;  %v17600_v31 = vld [vmem:[#allocation12 + $0x8f8] ss:$28 sps:$4 sm:$0xff]  }
 0x63a   :  { %v18866_v18 = vpop.f32.mrf.mxu0 }
 0x63b   :  { %12349 = vmatmul.mubr.bf16.vlgmr.msra.gmra.mxu1 %v18819_v53 }
 0x63c   :  { %12403 = vmatpush1.bf16.msra.mxu1 %v17558_v39  ;;  %12454 = vmatpush1.bf16.msra.mxu0 %v17657_v0  ;;  %v18868_v21 = vpop.f32.mrf.mxu0 }
 0x63d   :  { %12404 = vmatprep.subr.bf16.mxu1 %v17563_v40  ;;  %12455 = vmatprep.subr.bf16.mxu0 %v17665_v55  ;;  %v17602_v40 = vld [vmem:[#allocation12 + $0x8fc] ss:$28 sps:$4 sm:$0xff]  }
 0x63e   :  { %v18870_v28 = vpop.f32.mrf.mxu0  ;;  %v17603_v55 = vld [vmem:[#allocation12 + $0x8c0] ss:$28 sps:$4 sm:$0xff]  }
 0x640   :  { %12405 = vmatpush1.bf16.msra.mxu1 %v17561_v49  ;;  %12456 = vmatpush1.bf16.msra.mxu0 %v17663_v59  ;;  %v17605_v49 = vld [vmem:[#allocation12 + $0x8c4] ss:$28 sps:$4 sm:$0xff]   ;;  %v7082_v59 = vrot.slane %v18842_v29, %v18623_v37 }
 0x641   :  { %12406 = vmatprep.subr.bf16.mxu1 %v17566_v48  ;;  %12457 = vmatprep.subr.bf16.mxu0 %v17671_v44  ;;  %v7086_v48 = vrot.slane %v18842_v29, %v18620_v1 }
 0x643   :  { %v9495_v44 = vadd.f32 %v18858_v4, %v7086_v48 }
 0x644   :  { %12407 = vmatpush1.bf16.msra.mxu1 %v17564_v46  ;;  %12458 = vmatpush1.bf16.msra.mxu0 %v17669_v33  ;;  %v9497_v33 = vadd.f32 %v18860_v38, %v7082_v59 }
 0x645   :  { %12408 = vmatprep.subr.bf16.mxu1 %v17569_v61  ;;  %12459 = vmatprep.subr.bf16.mxu0 %v17677_v63  ;;  %v17608_v61 = vld [vmem:[#allocation12 + $0x514] ss:$28 sps:$4 sm:$0xff]  }
 0x648   :  { %12409 = vmatpush1.bf16.msra.mxu1 %v17567_v60  ;;  %12460 = vmatpush1.bf16.msra.mxu0 %v17675_v23  ;;  %v9499_v23 = vadd.f32 %v18862_v3, %v7086_v48  ;;  %v17624_v48 = vld [vmem:[#allocation12 + $0x3c0] ss:$28 sps:$4 sm:$0xff]  }
 0x649   :  { %12410 = vmatprep.subr.bf16.mxu1 %v17572_v42  ;;  %12488 = vmatprep.subr.bf16.mxu0 %v17683_v9  ;;  %v9493_v42 = vadd.f32 %v18856_v25, %v7082_v59  ;;  %v17627_v59 = vld [vmem:[#allocation12 + $0x388] ss:$28 sps:$4 sm:$0xff]  }
 0x64c   :  { %12411 = vmatpush1.bf16.msra.mxu1 %v17570_v56 }
 0x64d   :  { %12412 = vmatprep.subr.bf16.mxu1 %v17575_v6 }
 0x650   :  { %12413 = vmatpush1.bf16.msra.mxu1 %v17573_v16 }
 0x651   :  { %12414 = vmatprep.subr.bf16.mxu1 %v17578_v13 }
 0x654   :  { %12415 = vmatpush1.bf16.msra.mxu1 %v17576_v54 }
 0x655   :  { %12416 = vmatprep.subr.bf16.mxu1 %v17581_v36 }
 0x658   :  { %v15468_v15 = vpop.f32.mrf.mxu0  ;;  %12417 = vmatpush1.bf16.msra.mxu1 %v17579_v2 }
 0x659   :  { %12418 = vmatprep.subr.bf16.mxu1 %v17584_v34 }
 0x65a   :  { %v15469_v35 = vpop.f32.mrf.mxu0 }
 0x65b   :  { %v18872_v26 = vadd.f32 %v15469_v35, %v15468_v15  ;;  %v9535_v39 = vpop.f32.mrf.mxu1 }
 0x65c   :  { %v15471_v20 = vpop.f32.mrf.mxu0  ;;  %12419 = vmatpush2.bf16.msra.mxu1 %v17582_v17  ;;  %v9536_v16 = vadd.f32 %v9535_v39, %v9493_v42  ;;  %v17620_v39 = vld [vmem:[#allocation12 + $0x434] ss:$28 sps:$4 sm:$0xff]  }
 0x65d   :  { %12420 = vmatprep.subr.bf16.mxu1 %v17587_v47  ;;  %v9537_v0 = vpop.f32.mrf.mxu1 }
 0x65e   :  { %v15472_v62 = vpop.f32.mrf.mxu0  ;;  %v9538_v56 = vadd.f32 %v9537_v0, %v9495_v44  ;;  %v9579_v25 = vadd.f32 %v18864_v45, %v9536_v16  ;;  %v17609_v45 = vld [vmem:[#allocation12 + $0x4d8] ss:$28 sps:$4 sm:$0xff]  }
 0x65f   :  { %v18874_v7 = vadd.f32 %v15472_v62, %v15471_v20  ;;  %v9539_v46 = vpop.f32.mrf.mxu1  ;;  %v17621_v0 = vld [vmem:[#allocation12 + $0x3f8] ss:$28 sps:$4 sm:$0xff]  }
 0x660   :  { %12421 = vmatpush2.bf16.msra.mxu1 %v17585_v24  ;;  %v9540_v6 = vadd.f32 %v9539_v46, %v9497_v33  ;;  %v9581_v38 = vadd.f32 %v18866_v18, %v9538_v56  ;;  %v17606_v18 = vld [vmem:[#allocation12 + $0x510] ss:$28 sps:$4 sm:$0xff]   ;;  %v17638_v44 = vld [vmem:[#allocation12 + $0x69c] ss:$28 sps:$4 sm:$0xff]  }
 0x661   :  { %12422 = vmatprep.subr.bf16.mxu1 %v17590_v43  ;;  %v9541_v63 = vpop.f32.mrf.mxu1  ;;  %v17632_v46 = vld [vmem:[#allocation12 + $0x6d4] ss:$28 sps:$4 sm:$0xff]  }
 0x662   :  { %v9542_v54 = vadd.f32 %v9541_v63, %v9499_v23  ;;  %v9583_v34 = vadd.f32 %v18868_v21, %v9540_v6  ;;  %v17611_v21 = vld [vmem:[#allocation12 + $0x4dc] ss:$28 sps:$4 sm:$0xff]   ;;  %v17644_v63 = vld [vmem:[#allocation12 + $0x664] ss:$28 sps:$4 sm:$0xff]   ;;  %v17650_v6 = vld [vmem:[#allocation12 + $0x62c] ss:$28 sps:$4 sm:$0xff]  }
 0x663   :  { %v17636_v33 = vld [vmem:[#allocation12 + $0x698] ss:$28 sps:$4 sm:$0xff]   ;;  %v17642_v23 = vld [vmem:[#allocation12 + $0x660] ss:$28 sps:$4 sm:$0xff]  }
 0x664   :  { %12423 = vmatpush2.bf16.msra.mxu1 %v17588_v51  ;;  %v9585_v3 = vadd.f32 %v18870_v28, %v9542_v54  ;;  %v17614_v28 = vld [vmem:[#allocation12 + $0x4a4] ss:$28 sps:$4 sm:$0xff]   ;;  %v7090_v54 = vrot.slane %v18842_v29, %v18639_v57 }
 0x665   :  { %12424 = vmatprep.subr.bf16.mxu1 %v17593_v10  ;;  %v17666_v29 = vld [vmem:[#allocation12 + $0x580] ss:$28 sps:$4 sm:$0xff]  }
 0x668   :  { %12425 = vmatpush2.bf16.msra.mxu1 %v17591_v50 }
 0x669   :  { %12426 = vmatprep.subr.bf16.mxu1 %v17596_v12 }
 0x66c   :  { %12427 = vmatpush2.bf16.msra.mxu1 %v17594_v32  ;;  %v17612_v32 = vld [vmem:[#allocation12 + $0x4a0] ss:$28 sps:$4 sm:$0xff]  }
 0x66d   :  { %12428 = vmatprep.subr.bf16.mxu1 %v17599_v52  ;;  %v17617_v52 = vld [vmem:[#allocation12 + $0x46c] ss:$28 sps:$4 sm:$0xff]  }
 0x670   :  { %12429 = vmatpush2.bf16.msra.mxu1 %v17597_v11  ;;  %v17615_v11 = vld [vmem:[#allocation12 + $0x468] ss:$28 sps:$4 sm:$0xff]  }
 0x671   :  { %12430 = vmatprep.subr.bf16.mxu1 %v17602_v40  ;;  %v17618_v40 = vld [vmem:[#allocation12 + $0x430] ss:$28 sps:$4 sm:$0xff]  }
 0x674   :  { %12431 = vmatpush2.bf16.msra.mxu1 %v17600_v31  ;;  %v17623_v31 = vld [vmem:[#allocation12 + $0x3fc] ss:$28 sps:$4 sm:$0xff]  }
 0x675   :  { %12432 = vmatprep.subr.bf16.mxu1 %v17605_v49  ;;  %v17626_v49 = vld [vmem:[#allocation12 + $0x3c4] ss:$28 sps:$4 sm:$0xff]  }
 0x678   :  { %v18882_v60 = vpop.f32.mrf.mxu0  ;;  %12433 = vmatpush2.bf16.msra.mxu1 %v17603_v55  ;;  %v17629_v55 = vld [vmem:[#allocation12 + $0x38c] ss:$28 sps:$4 sm:$0xff]  }
 0x679   :  { %12531 = vmatprep.subr.bf16.mxu1 %v17608_v61  ;;  %v17630_v61 = vld [vmem:[#allocation12 + $0x6d0] ss:$28 sps:$4 sm:$0xff]  }
 0x67a   :  { %v15713_v9 = vpop.f32.mrf.mxu0 }
 0x67b   :  { %v9621_v13 = vpop.f32.mrf.mxu1  ;;  %v17648_v9 = vld [vmem:[#allocation12 + $0x628] ss:$28 sps:$4 sm:$0xff]  }
 0x67c   :  { %v18886_v36 = vpop.f32.mrf.mxu0  ;;  %v9622_v35 = vadd.f32 %v9621_v13, %v9579_v25  ;;  %v17656_v13 = vld [vmem:[#allocation12 + $0x5f4] ss:$28 sps:$4 sm:$0xff]  }
 0x67d   :  { %v9623_v4 = vpop.f32.mrf.mxu1 }
 0x67e   :  { %v15714_v2 = vpop.f32.mrf.mxu0  ;;  %v9624_v17 = vadd.f32 %v9623_v4, %v9581_v38  ;;  %v9798_v10 = vmax.f32 %v9622_v35, 0.0  ;;  %v17654_v38 = vld [vmem:[#allocation12 + $0x5f0] ss:$28 sps:$4 sm:$0xff]  }
 0x67f   :  { %v9625_v15 = vpop.f32.mrf.mxu1 }
 0x680   :  { %v9626_v47 = vadd.f32 %v9625_v15, %v9583_v34  ;;  %v9799_v62 = vmax.f32 %v9624_v17, 0.0  ;;  %v17662_v34 = vld [vmem:[#allocation12 + $0x5bc] ss:$28 sps:$4 sm:$0xff]  }
 0x681   :  { %v9627_v20 = vpop.f32.mrf.mxu1  ;;  %v17660_v17 = vld [vmem:[#allocation12 + $0x5b8] ss:$28 sps:$4 sm:$0xff]  }
 0x682   :  { %v9628_v24 = vadd.f32 %v9627_v20, %v9585_v3  ;;  %v9805_v43 = vmax.f32 %v9626_v47, 0.0  ;;  %v17668_v3 = vld [vmem:[#allocation12 + $0x584] ss:$28 sps:$4 sm:$0xff]  }
 0x684   :  { %v9806_v51 = vmax.f32 %v9628_v24, 0.0  ;;  %v18894_v12 = vpack.c.bf16 %v9805_v43, %v9798_v10 }
 0x686   :  { %v18892_v50 = vpack.c.bf16 %v9806_v51, %v9799_v62  ;;  %v17674_v51 = vld [vmem:[#allocation12 + $0x54c] ss:$28 sps:$4 sm:$0xff]  }
 0x688   :  { %12434 = vmatprep.mubr.bf16.mxu1 %v18892_v50 }
 0x689   :  { %12435 = vmatmul.mubr.bf16.vlgmr.msra.gmra.mxu1 %v18894_v12 }
 0x68a   :  { %12532 = vmatpush1.bf16.msra.mxu1 %v17606_v18  ;;  %12563 = vmatprep.mubr.bf16.mxu1 %v18848_v58 }
 0x68b   :  { %12533 = vmatprep.subr.bf16.mxu1 %v17611_v21 }
 0x68e   :  { %12534 = vmatpush1.bf16.msra.mxu1 %v17609_v45 }
 0x68f   :  { %12535 = vmatprep.subr.bf16.mxu1 %v17614_v28  ;;  %v17672_v28 = vld [vmem:[#allocation12 + $0x548] ss:$28 sps:$4 sm:$0xff]  }
 0x692   :  { %12536 = vmatpush1.bf16.msra.mxu1 %v17612_v32  ;;  %v17680_v32 = vld [vmem:[#allocation12 + $0xc14] ss:$28 sps:$4 sm:$0xff]  }
 0x693   :  { %12537 = vmatprep.subr.bf16.mxu1 %v17617_v52 }
 0x696   :  { %12538 = vmatpush1.bf16.msra.mxu1 %v17615_v11 }
 0x697   :  { %12539 = vmatprep.subr.bf16.mxu1 %v17620_v39  ;;  %v17678_v39 = vld [vmem:[#allocation12 + $0xc10] ss:$28 sps:$4 sm:$0xff]  }
 0x69a   :  { %12540 = vmatpush1.bf16.msra.mxu1 %v17618_v40  ;;  %v17686_v40 = vld [vmem:[#allocation12 + $0xbdc] ss:$28 sps:$4 sm:$0xff]  }
 0x69b   :  { %12541 = vmatprep.subr.bf16.mxu1 %v17623_v31  ;;  %v15446_v42 = vpop.f32.mrf.mxu1 }
 0x69d   :  { %v15447_v56 = vpop.f32.mrf.mxu1 }
 0x69e   :  { %12542 = vmatpush1.bf16.msra.mxu1 %v17621_v0  ;;  %v15448_v4 = vadd.f32 %v15447_v56, %v15446_v42  ;;  %v17701_v42 = vld [vmem:[#allocation12 + $0xec] ss:$28 sps:$4 sm:$0xff]  }
 0x69f   :  { %12543 = vmatprep.subr.bf16.mxu1 %v17626_v49  ;;  %v15449_v16 = vpop.f32.mrf.mxu1  ;;  %v17681_v49 = vld [vmem:[#allocation12 + $0x190] ss:$28 sps:$4 sm:$0xff]  }
 0x6a0   :  { %v9665_v25 = vadd.f32 %v15448_v4, %v7090_v54  ;;  %v17702_v56 = vld [vmem:[#allocation12 + $0xb30] ss:$28 sps:$4 sm:$0xff]   ;;  %v17716_v4 = vld [vmem:[#allocation12 + $0xac4] ss:$28 sps:$4 sm:$0xff]  }
 0x6a1   :  { %v15450_v2 = vpop.f32.mrf.mxu1 }
 0x6a2   :  { %12544 = vmatpush1.bf16.msra.mxu1 %v17624_v48  ;;  %v15451_v15 = vadd.f32 %v15450_v2, %v15449_v16  ;;  %v9706_v24 = vadd.f32 %v18872_v26, %v9665_v25  ;;  %v17684_v48 = vld [vmem:[#allocation12 + $0xbd8] ss:$28 sps:$4 sm:$0xff]   ;;  %v17705_v16 = vld [vmem:[#allocation12 + $0xb0] ss:$28 sps:$4 sm:$0xff]   ;;  %v17714_v2 = vld [vmem:[#allocation12 + $0xac0] ss:$28 sps:$4 sm:$0xff]  }
 0x6a3   :  { %12545 = vmatprep.subr.bf16.mxu1 %v17629_v55  ;;  %v17689_v55 = vld [vmem:[#allocation12 + $0x15c] ss:$28 sps:$4 sm:$0xff]   ;;  %v17722_v25 = vld [vmem:[#allocation12 + $0xa8c] ss:$28 sps:$4 sm:$0xff]  }
 0x6a4   :  { %v9668_v20 = vadd.f32 %v15451_v15, %v7090_v54  ;;  %v17713_v54 = vld [vmem:[#allocation12 + $0x7c] ss:$28 sps:$4 sm:$0xff]  }
 0x6a5   :  { %v17717_v15 = vld [vmem:[#allocation12 + $0x40] ss:$28 sps:$4 sm:$0xff]  }
 0x6a6   :  { %12546 = vmatpush1.bf16.msra.mxu1 %v17627_v59  ;;  %v9709_v21 = vadd.f32 %v18874_v7, %v9668_v20  ;;  %v17690_v59 = vld [vmem:[#allocation12 + $0xba0] ss:$28 sps:$4 sm:$0xff]   ;;  %v17726_v20 = vld [vmem:[#allocation12 + $0x198] ss:$28 sps:$4 sm:$0xff]  }
 0x6a7   :  { %12547 = vmatprep.subr.bf16.mxu1 %v17632_v46  ;;  %v17695_v46 = vld [vmem:[#allocation12 + $0x124] ss:$28 sps:$4 sm:$0xff]  }
 0x6aa   :  { %12548 = vmatpush2.bf16.msra.mxu1 %v17630_v61  ;;  %v17698_v61 = vld [vmem:[#allocation12 + $0xb6c] ss:$28 sps:$4 sm:$0xff]  }
 0x6ab   :  { %12549 = vmatprep.subr.bf16.mxu1 %v17638_v44  ;;  %v17693_v44 = vld [vmem:[#allocation12 + $0x120] ss:$28 sps:$4 sm:$0xff]  }
 0x6ae   :  { %12550 = vmatpush2.bf16.msra.mxu1 %v17636_v33  ;;  %v17696_v33 = vld [vmem:[#allocation12 + $0xb68] ss:$28 sps:$4 sm:$0xff]  }
 0x6af   :  { %12551 = vmatprep.subr.bf16.mxu1 %v17644_v63  ;;  %v17704_v63 = vld [vmem:[#allocation12 + $0xb34] ss:$28 sps:$4 sm:$0xff]  }
 0x6b2   :  { %12552 = vmatpush2.bf16.msra.mxu1 %v17642_v23  ;;  %v17699_v23 = vld [vmem:[#allocation12 + $0xe8] ss:$28 sps:$4 sm:$0xff]  }
 0x6b3   :  { %12553 = vmatprep.subr.bf16.mxu1 %v17650_v6  ;;  %v17707_v6 = vld [vmem:[#allocation12 + $0xb4] ss:$28 sps:$4 sm:$0xff]  }
 0x6b6   :  { %12554 = vmatpush2.bf16.msra.mxu1 %v17648_v9  ;;  %v17710_v9 = vld [vmem:[#allocation12 + $0xafc] ss:$28 sps:$4 sm:$0xff]  }
 0x6b7   :  { %12555 = vmatprep.subr.bf16.mxu1 %v17656_v13  ;;  %v17708_v13 = vld [vmem:[#allocation12 + $0xaf8] ss:$28 sps:$4 sm:$0xff]  }
 0x6ba   :  { %12556 = vmatpush2.bf16.msra.mxu1 %v17654_v38  ;;  %v17711_v38 = vld [vmem:[#allocation12 + $0x78] ss:$28 sps:$4 sm:$0xff]  }
 0x6bb   :  { %v15490_v47 = vpop.f32.mrf.mxu1  ;;  %12557 = vmatprep.subr.bf16.mxu1 %v17662_v34  ;;  %v17719_v34 = vld [vmem:[#allocation12 + $0x44] ss:$28 sps:$4 sm:$0xff]  }
 0x6bd   :  { %v15491_v35 = vpop.f32.mrf.mxu1 }
 0x6be   :  { %v15492_v43 = vadd.f32 %v15491_v35, %v15490_v47  ;;  %12558 = vmatpush2.bf16.msra.mxu1 %v17660_v17  ;;  %v17720_v17 = vld [vmem:[#allocation12 + $0xa88] ss:$28 sps:$4 sm:$0xff]  }
 0x6bf   :  { %v15493_v62 = vpop.f32.mrf.mxu1  ;;  %12559 = vmatprep.subr.bf16.mxu1 %v17668_v3  ;;  %v17725_v47 = vld [vmem:[#allocation12 + $0xc] ss:$28 sps:$4 sm:$0xff]   ;;  %v17728_v3 = vld [vmem:[#allocation12 + $0x19c] ss:$28 sps:$4 sm:$0xff]  }
 0x6c0   :  { %v9747_v10 = vadd.f32 %v15492_v43, %v9706_v24  ;;  %v17723_v35 = vld [vmem:[#allocation12 + $0x8] ss:$28 sps:$4 sm:$0xff]   ;;  %v17731_v24 = vld [vmem:[#allocation12 + $0x354] ss:$28 sps:$4 sm:$0xff]  }
 0x6c1   :  { %v15494_v18 = vpop.f32.mrf.mxu1  ;;  %v17734_v43 = vld [vmem:[#allocation12 + $0x164] ss:$28 sps:$4 sm:$0xff]  }
 0x6c2   :  { %v15495_v45 = vadd.f32 %v15494_v18, %v15493_v62  ;;  %12560 = vmatpush2.bf16.msra.mxu1 %v17666_v29  ;;  %v9788_v52 = vadd.f32 %v18882_v60, %v9747_v10  ;;  %v17692_v60 = vld [vmem:[#allocation12 + $0xba4] ss:$28 sps:$4 sm:$0xff]   ;;  %v17729_v29 = vld [vmem:[#allocation12 + $0x350] ss:$28 sps:$4 sm:$0xff]   ;;  %v17735_v18 = vld [vmem:[#allocation12 + $0x318] ss:$28 sps:$4 sm:$0xff]  }
 0x6c3   :  { %12561 = vmatprep.subr.bf16.mxu1 %v17674_v51  ;;  %v17732_v62 = vld [vmem:[#allocation12 + $0x160] ss:$28 sps:$4 sm:$0xff]   ;;  %v17740_v10 = vld [vmem:[#allocation12 + $0x12c] ss:$28 sps:$4 sm:$0xff]  }
 0x6c4   :  { %v9750_v11 = vadd.f32 %v15495_v45, %v9709_v21  ;;  %v9800_v31 = vmax.f32 %v9788_v52, 0.0  ;;  %v17737_v51 = vld [vmem:[#allocation12 + $0x31c] ss:$28 sps:$4 sm:$0xff]   ;;  %v17738_v21 = vld [vmem:[#allocation12 + $0x128] ss:$28 sps:$4 sm:$0xff]  }
 0x6c5   :  { %v17743_v45 = vld [vmem:[#allocation12 + $0x2e4] ss:$28 sps:$4 sm:$0xff]   ;;  %v17744_v52 = vld [vmem:[#allocation12 + $0xf0] ss:$28 sps:$4 sm:$0xff]  }
 0x6c6   :  { %v9791_v26 = vadd.f32 %v18886_v36, %v9750_v11  ;;  %12562 = vmatpush2.bf16.msra.mxu1 %v17672_v28  ;;  %v17687_v36 = vld [vmem:[#allocation12 + $0x158] ss:$28 sps:$4 sm:$0xff]   ;;  %v17749_v11 = vld [vmem:[#allocation12 + $0x2ac] ss:$28 sps:$4 sm:$0xff]  }
 0x6c7   :  { %12617 = vmatprep.subr.bf16.mxu1 %v17680_v32  ;;  %v17746_v28 = vld [vmem:[#allocation12 + $0xf4] ss:$28 sps:$4 sm:$0xff]   ;;  %v17741_v32 = vld [vmem:[#allocation12 + $0x2e0] ss:$28 sps:$4 sm:$0xff]  }
 0x6c8   :  { %v9807_v0 = vmax.f32 %v9791_v26, 0.0  ;;  %v17752_v26 = vld [vmem:[#allocation12 + $0xbc] ss:$28 sps:$4 sm:$0xff]  }
 0x6c9   :  { %12564 = vmatmul.mubr.bf16.vlgmr.msra.gmra.mxu1 %v18850_v19 }
 0x6ca   :  { %v18906_v7 = vpack.c.bf16 %v9807_v0, %v9800_v31  ;;  %12618 = vmatpush1.bf16.msra.mxu1 %v17678_v39  ;;  %12649 = vmatprep.mubr.bf16.mxu1 %v18317_v14  ;;  %v17747_v39 = vld [vmem:[#allocation12 + $0x2a8] ss:$28 sps:$4 sm:$0xff]   ;;  %v17755_v31 = vld [vmem:[#allocation12 + $0x274] ss:$28 sps:$4 sm:$0xff]  }
 0x6cb   :  { %12619 = vmatprep.subr.bf16.mxu1 %v17686_v40  ;;  %v17750_v40 = vld [vmem:[#allocation12 + $0xb8] ss:$28 sps:$4 sm:$0xff]   ;;  %v17758_v0 = vld [vmem:[#allocation12 + $0x84] ss:$28 sps:$4 sm:$0xff]  }
 0x6cc   :  { %12478 = vmatmul.mubr.bf16.vlgmr.msra.gmra.mxu0 %v18906_v7 }
 0x6cd   :  { %12489 = vmatpush1.bf16.msra.mxu0 %v17681_v49  ;;  %12520 = vmatprep.mubr.bf16.mxu0 %v18838_v27  ;;  %v17753_v49 = vld [vmem:[#allocation12 + $0x270] ss:$28 sps:$4 sm:$0xff]  }
 0x6ce   :  { %12620 = vmatpush1.bf16.msra.mxu1 %v17684_v48  ;;  %12490 = vmatprep.subr.bf16.mxu0 %v17689_v55  ;;  %v17756_v48 = vld [vmem:[#allocation12 + $0x80] ss:$28 sps:$4 sm:$0xff]  }
 0x6cf   :  { %12621 = vmatprep.subr.bf16.mxu1 %v17692_v60  ;;  %v17761_v55 = vld [vmem:[#allocation12 + $0x23c] ss:$28 sps:$4 sm:$0xff]   ;;  %v17764_v60 = vld [vmem:[#allocation12 + $0x4c] ss:$28 sps:$4 sm:$0xff]  }
 0x6d1   :  { %12491 = vmatpush1.bf16.msra.mxu0 %v17687_v36  ;;  %v17759_v36 = vld [vmem:[#allocation12 + $0x238] ss:$28 sps:$4 sm:$0xff]  }
 0x6d2   :  { %12622 = vmatpush1.bf16.msra.mxu1 %v17690_v59  ;;  %12492 = vmatprep.subr.bf16.mxu0 %v17695_v46  ;;  %v17762_v59 = vld [vmem:[#allocation12 + $0x48] ss:$28 sps:$4 sm:$0xff]  }
 0x6d3   :  { %12623 = vmatprep.subr.bf16.mxu1 %v17698_v61  ;;  %v17767_v46 = vld [vmem:[#allocation12 + $0x204] ss:$28 sps:$4 sm:$0xff]   ;;  %v17770_v61 = vld [vmem:[#allocation12 + $0x14] ss:$28 sps:$4 sm:$0xff]  }
 0x6d5   :  { %12493 = vmatpush1.bf16.msra.mxu0 %v17693_v44  ;;  %v17765_v44 = vld [vmem:[#allocation12 + $0x200] ss:$28 sps:$4 sm:$0xff]  }
 0x6d6   :  { %12624 = vmatpush1.bf16.msra.mxu1 %v17696_v33  ;;  %12494 = vmatprep.subr.bf16.mxu0 %v17701_v42  ;;  %v17768_v33 = vld [vmem:[#allocation12 + $0x10] ss:$28 sps:$4 sm:$0xff]  }
 0x6d7   :  { %12625 = vmatprep.subr.bf16.mxu1 %v17704_v63  ;;  %v17773_v42 = vld [vmem:[#allocation12 + $0x1cc] ss:$28 sps:$4 sm:$0xff]   ;;  %v17776_v63 = vld [vmem:[#allocation12 + $0x35c] ss:$28 sps:$4 sm:$0xff]  }
 0x6d9   :  { %12495 = vmatpush1.bf16.msra.mxu0 %v17699_v23  ;;  %v17771_v23 = vld [vmem:[#allocation12 + $0x1c8] ss:$28 sps:$4 sm:$0xff]  }
 0x6da   :  { %12626 = vmatpush1.bf16.msra.mxu1 %v17702_v56  ;;  %12496 = vmatprep.subr.bf16.mxu0 %v17707_v6  ;;  %v17774_v56 = vld [vmem:[#allocation12 + $0x358] ss:$28 sps:$4 sm:$0xff]  }
 0x6db   :  { %12627 = vmatprep.subr.bf16.mxu1 %v17710_v9  ;;  %v17779_v6 = vld [vmem:[#allocation12 + $0x894] ss:$28 sps:$4 sm:$0xff]   ;;  %v17782_v9 = vld [vmem:[#allocation12 + $0x324] ss:$28 sps:$4 sm:$0xff]  }
 0x6dd   :  { %12497 = vmatpush1.bf16.msra.mxu0 %v17705_v16  ;;  %v17777_v16 = vld [vmem:[#allocation12 + $0x890] ss:$28 sps:$4 sm:$0xff]  }
 0x6de   :  { %12628 = vmatpush1.bf16.msra.mxu1 %v17708_v13  ;;  %12498 = vmatprep.subr.bf16.mxu0 %v17713_v54  ;;  %v17780_v13 = vld [vmem:[#allocation12 + $0x320] ss:$28 sps:$4 sm:$0xff]  }
 0x6df   :  { %12629 = vmatprep.subr.bf16.mxu1 %v17716_v4  ;;  %v17785_v54 = vld [vmem:[#allocation12 + $0x85c] ss:$28 sps:$4 sm:$0xff]   ;;  %v17788_v4 = vld [vmem:[#allocation12 + $0x2ec] ss:$28 sps:$4 sm:$0xff]  }
 0x6e1   :  { %12499 = vmatpush1.bf16.msra.mxu0 %v17711_v38  ;;  %v17783_v38 = vld [vmem:[#allocation12 + $0x858] ss:$28 sps:$4 sm:$0xff]  }
 0x6e2   :  { %12630 = vmatpush1.bf16.msra.mxu1 %v17714_v2  ;;  %12500 = vmatprep.subr.bf16.mxu0 %v17719_v34  ;;  %v17786_v2 = vld [vmem:[#allocation12 + $0x2e8] ss:$28 sps:$4 sm:$0xff]  }
 0x6e3   :  { %12631 = vmatprep.subr.bf16.mxu1 %v17722_v25  ;;  %v17791_v34 = vld [vmem:[#allocation12 + $0x824] ss:$28 sps:$4 sm:$0xff]   ;;  %v17794_v25 = vld [vmem:[#allocation12 + $0x2b4] ss:$28 sps:$4 sm:$0xff]  }
 0x6e5   :  { %12501 = vmatpush1.bf16.msra.mxu0 %v17717_v15  ;;  %v17789_v15 = vld [vmem:[#allocation12 + $0x820] ss:$28 sps:$4 sm:$0xff]  }
 0x6e6   :  { %12632 = vmatpush1.bf16.msra.mxu1 %v17720_v17  ;;  %12502 = vmatprep.subr.bf16.mxu0 %v17725_v47  ;;  %v17792_v17 = vld [vmem:[#allocation12 + $0x2b0] ss:$28 sps:$4 sm:$0xff]  }
 0x6e7   :  { %12660 = vmatprep.subr.bf16.mxu1 %v17728_v3  ;;  %v17797_v47 = vld [vmem:[#allocation12 + $0x7ec] ss:$28 sps:$4 sm:$0xff]   ;;  %v17800_v3 = vld [vmem:[#allocation12 + $0x27c] ss:$28 sps:$4 sm:$0xff]  }
 0x6e9   :  { %12503 = vmatpush1.bf16.msra.mxu0 %v17723_v35  ;;  %12650 = vmatmul.mubr.bf16.vlgmr.msra.gmra.mxu1 %v18906_v7  ;;  %v17795_v35 = vld [vmem:[#allocation12 + $0x7e8] ss:$28 sps:$4 sm:$0xff]  }
 0x6ea   :  { %12661 = vmatpush1.bf16.msra.mxu1 %v17726_v20  ;;  %12692 = vmatprep.mubr.bf16.mxu1 %v18838_v27  ;;  %v17798_v20 = vld [vmem:[#allocation12 + $0x278] ss:$28 sps:$4 sm:$0xff]  }
 0x6eb   :  { %12504 = vmatprep.subr.bf16.mxu0 %v17731_v24  ;;  %12662 = vmatprep.subr.bf16.mxu1 %v17734_v43  ;;  %v17803_v24 = vld [vmem:[#allocation12 + $0x7b4] ss:$28 sps:$4 sm:$0xff]   ;;  %v17806_v43 = vld [vmem:[#allocation12 + $0x244] ss:$28 sps:$4 sm:$0xff]  }
 0x6ed   :  { %12505 = vmatpush2.bf16.msra.mxu0 %v17729_v29  ;;  %v17801_v29 = vld [vmem:[#allocation12 + $0x7b0] ss:$28 sps:$4 sm:$0xff]  }
 0x6ee   :  { %12663 = vmatpush1.bf16.msra.mxu1 %v17732_v62  ;;  %12506 = vmatprep.subr.bf16.mxu0 %v17737_v51  ;;  %v17804_v62 = vld [vmem:[#allocation12 + $0x240] ss:$28 sps:$4 sm:$0xff]  }
 0x6ef   :  { %12664 = vmatprep.subr.bf16.mxu1 %v17740_v10  ;;  %v17809_v51 = vld [vmem:[#allocation12 + $0x77c] ss:$28 sps:$4 sm:$0xff]   ;;  %v17812_v10 = vld [vmem:[#allocation12 + $0x20c] ss:$28 sps:$4 sm:$0xff]  }
 0x6f1   :  { %12507 = vmatpush2.bf16.msra.mxu0 %v17735_v18  ;;  %v17807_v18 = vld [vmem:[#allocation12 + $0x778] ss:$28 sps:$4 sm:$0xff]  }
 0x6f2   :  { %12665 = vmatpush1.bf16.msra.mxu1 %v17738_v21  ;;  %12508 = vmatprep.subr.bf16.mxu0 %v17743_v45  ;;  %v17810_v21 = vld [vmem:[#allocation12 + $0x208] ss:$28 sps:$4 sm:$0xff]  }
 0x6f3   :  { %12666 = vmatprep.subr.bf16.mxu1 %v17746_v28  ;;  %v17815_v45 = vld [vmem:[#allocation12 + $0x744] ss:$28 sps:$4 sm:$0xff]   ;;  %v17818_v28 = vld [vmem:[#allocation12 + $0x1d4] ss:$28 sps:$4 sm:$0xff]  }
 0x6f5   :  { %12509 = vmatpush2.bf16.msra.mxu0 %v17741_v32  ;;  %v17813_v32 = vld [vmem:[#allocation12 + $0x740] ss:$28 sps:$4 sm:$0xff]  }
 0x6f6   :  { %12667 = vmatpush1.bf16.msra.mxu1 %v17744_v52  ;;  %12510 = vmatprep.subr.bf16.mxu0 %v17749_v11  ;;  %v17816_v52 = vld [vmem:[#allocation12 + $0x1d0] ss:$28 sps:$4 sm:$0xff]  }
 0x6f7   :  { %12668 = vmatprep.subr.bf16.mxu1 %v17752_v26  ;;  %v17821_v11 = vld [vmem:[#allocation12 + $0x70c] ss:$28 sps:$4 sm:$0xff]   ;;  %v17824_v26 = vld [vmem:[#allocation12 + $0x89c] ss:$28 sps:$4 sm:$0xff]  }
 0x6f9   :  { %12511 = vmatpush2.bf16.msra.mxu0 %v17747_v39  ;;  %v17819_v39 = vld [vmem:[#allocation12 + $0x708] ss:$28 sps:$4 sm:$0xff]  }
 0x6fa   :  { %12669 = vmatpush1.bf16.msra.mxu1 %v17750_v40  ;;  %12512 = vmatprep.subr.bf16.mxu0 %v17755_v31  ;;  %v17822_v40 = vld [vmem:[#allocation12 + $0x898] ss:$28 sps:$4 sm:$0xff]  }
 0x6fb   :  { %12670 = vmatprep.subr.bf16.mxu1 %v17758_v0  ;;  %v17827_v31 = vld [vmem:[#allocation12 + $0xa54] ss:$28 sps:$4 sm:$0xff]   ;;  %v17830_v0 = vld [vmem:[#allocation12 + $0x864] ss:$28 sps:$4 sm:$0xff]  }
 0x6fd   :  { %12513 = vmatpush2.bf16.msra.mxu0 %v17753_v49  ;;  %v17825_v49 = vld [vmem:[#allocation12 + $0xa50] ss:$28 sps:$4 sm:$0xff]  }
 0x6fe   :  { %12671 = vmatpush1.bf16.msra.mxu1 %v17756_v48  ;;  %12514 = vmatprep.subr.bf16.mxu0 %v17761_v55  ;;  %v17828_v48 = vld [vmem:[#allocation12 + $0x860] ss:$28 sps:$4 sm:$0xff]  }
 0x6ff   :  { %12672 = vmatprep.subr.bf16.mxu1 %v17764_v60  ;;  %v17833_v55 = vld [vmem:[#allocation12 + $0xa1c] ss:$28 sps:$4 sm:$0xff]   ;;  %v17836_v60 = vld [vmem:[#allocation12 + $0x82c] ss:$28 sps:$4 sm:$0xff]  }
 0x701   :  { %12515 = vmatpush2.bf16.msra.mxu0 %v17759_v36  ;;  %v17831_v36 = vld [vmem:[#allocation12 + $0xa18] ss:$28 sps:$4 sm:$0xff]  }
 0x702   :  { %12673 = vmatpush1.bf16.msra.mxu1 %v17762_v59  ;;  %12516 = vmatprep.subr.bf16.mxu0 %v17767_v46  ;;  %v17834_v59 = vld [vmem:[#allocation12 + $0x828] ss:$28 sps:$4 sm:$0xff]  }
 0x703   :  { %12674 = vmatprep.subr.bf16.mxu1 %v17770_v61  ;;  %v17839_v46 = vld [vmem:[#allocation12 + $0x9e4] ss:$28 sps:$4 sm:$0xff]   ;;  %v17842_v61 = vld [vmem:[#allocation12 + $0x7f4] ss:$28 sps:$4 sm:$0xff]  }
 0x705   :  { %12517 = vmatpush2.bf16.msra.mxu0 %v17765_v44  ;;  %v17837_v44 = vld [vmem:[#allocation12 + $0x9e0] ss:$28 sps:$4 sm:$0xff]  }
 0x706   :  { %12675 = vmatpush1.bf16.msra.mxu1 %v17768_v33  ;;  %12518 = vmatprep.subr.bf16.mxu0 %v17773_v42  ;;  %v17840_v33 = vld [vmem:[#allocation12 + $0x7f0] ss:$28 sps:$4 sm:$0xff]  }
 0x707   :  { %12676 = vmatprep.subr.bf16.mxu1 %v17776_v63  ;;  %v17845_v42 = vld [vmem:[#allocation12 + $0x9ac] ss:$28 sps:$4 sm:$0xff]   ;;  %v17848_v63 = vld [vmem:[#allocation12 + $0x7bc] ss:$28 sps:$4 sm:$0xff]  }
 0x709   :  { %12519 = vmatpush2.bf16.msra.mxu0 %v17771_v23  ;;  %v17843_v23 = vld [vmem:[#allocation12 + $0x9a8] ss:$28 sps:$4 sm:$0xff]  }
 0x70a   :  { %12677 = vmatpush2.bf16.msra.mxu1 %v17774_v56  ;;  %12574 = vmatprep.subr.bf16.mxu0 %v17779_v6  ;;  %v17846_v56 = vld [vmem:[#allocation12 + $0x7b8] ss:$28 sps:$4 sm:$0xff]  }
 0x70b   :  { %12678 = vmatprep.subr.bf16.mxu1 %v17782_v9  ;;  %v17851_v6 = vld [vmem:[#allocation12 + $0x974] ss:$28 sps:$4 sm:$0xff]   ;;  %v17854_v9 = vld [vmem:[#allocation12 + $0x784] ss:$28 sps:$4 sm:$0xff]  }
 0x70c   :  { %12521 = vmatmul.mubr.bf16.vlgmr.msra.gmra.mxu0 %v18819_v53 }
 0x70d   :  { %12575 = vmatpush1.bf16.msra.mxu0 %v17777_v16  ;;  %12606 = vmatprep.mubr.bf16.mxu0 %v18892_v50  ;;  %v17849_v16 = vld [vmem:[#allocation12 + $0x970] ss:$28 sps:$4 sm:$0xff]  }
 0x70e   :  { %12679 = vmatpush2.bf16.msra.mxu1 %v17780_v13  ;;  %12576 = vmatprep.subr.bf16.mxu0 %v17785_v54  ;;  %v17852_v13 = vld [vmem:[#allocation12 + $0x780] ss:$28 sps:$4 sm:$0xff]  }
 0x70f   :  { %12680 = vmatprep.subr.bf16.mxu1 %v17788_v4  ;;  %v17857_v54 = vld [vmem:[#allocation12 + $0x93c] ss:$28 sps:$4 sm:$0xff]   ;;  %v17860_v4 = vld [vmem:[#allocation12 + $0x74c] ss:$28 sps:$4 sm:$0xff]  }
 0x711   :  { %12577 = vmatpush1.bf16.msra.mxu0 %v17783_v38  ;;  %v17855_v38 = vld [vmem:[#allocation12 + $0x938] ss:$28 sps:$4 sm:$0xff]  }
 0x712   :  { %12681 = vmatpush2.bf16.msra.mxu1 %v17786_v2  ;;  %12578 = vmatprep.subr.bf16.mxu0 %v17791_v34  ;;  %v17858_v2 = vld [vmem:[#allocation12 + $0x748] ss:$28 sps:$4 sm:$0xff]  }
 0x713   :  { %12682 = vmatprep.subr.bf16.mxu1 %v17794_v25  ;;  %v17863_v34 = vld [vmem:[#allocation12 + $0x904] ss:$28 sps:$4 sm:$0xff]   ;;  %v17866_v25 = vld [vmem:[#allocation12 + $0x714] ss:$28 sps:$4 sm:$0xff]  }
 0x715   :  { %12579 = vmatpush1.bf16.msra.mxu0 %v17789_v15  ;;  %v17861_v15 = vld [vmem:[#allocation12 + $0x900] ss:$28 sps:$4 sm:$0xff]  }
 0x716   :  { %12683 = vmatpush2.bf16.msra.mxu1 %v17792_v17  ;;  %12580 = vmatprep.subr.bf16.mxu0 %v17797_v47  ;;  %v17864_v17 = vld [vmem:[#allocation12 + $0x710] ss:$28 sps:$4 sm:$0xff]  }
 0x717   :  { %12684 = vmatprep.subr.bf16.mxu1 %v17800_v3  ;;  %v17869_v47 = vld [vmem:[#allocation12 + $0x8cc] ss:$28 sps:$4 sm:$0xff]   ;;  %v17872_v3 = vld [vmem:[#allocation12 + $0xa5c] ss:$28 sps:$4 sm:$0xff]  }
 0x719   :  { %12581 = vmatpush1.bf16.msra.mxu0 %v17795_v35  ;;  %v17867_v35 = vld [vmem:[#allocation12 + $0x8c8] ss:$28 sps:$4 sm:$0xff]  }
 0x71a   :  { %12685 = vmatpush2.bf16.msra.mxu1 %v17798_v20  ;;  %12582 = vmatprep.subr.bf16.mxu0 %v17803_v24  ;;  %v17870_v20 = vld [vmem:[#allocation12 + $0xa58] ss:$28 sps:$4 sm:$0xff]  }
 0x71b   :  { %12686 = vmatprep.subr.bf16.mxu1 %v17806_v43  ;;  %v17875_v24 = vld [vmem:[#allocation12 + $0x51c] ss:$28 sps:$4 sm:$0xff]   ;;  %v17878_v43 = vld [vmem:[#allocation12 + $0xa24] ss:$28 sps:$4 sm:$0xff]  }
 0x71d   :  { %12583 = vmatpush1.bf16.msra.mxu0 %v17801_v29  ;;  %v17873_v29 = vld [vmem:[#allocation12 + $0x518] ss:$28 sps:$4 sm:$0xff]  }
 0x71e   :  { %12687 = vmatpush2.bf16.msra.mxu1 %v17804_v62  ;;  %12584 = vmatprep.subr.bf16.mxu0 %v17809_v51  ;;  %v17876_v62 = vld [vmem:[#allocation12 + $0xa20] ss:$28 sps:$4 sm:$0xff]  }
 0x71f   :  { %12688 = vmatprep.subr.bf16.mxu1 %v17812_v10  ;;  %v17881_v51 = vld [vmem:[#allocation12 + $0x4e4] ss:$28 sps:$4 sm:$0xff]   ;;  %v17884_v10 = vld [vmem:[#allocation12 + $0x9ec] ss:$28 sps:$4 sm:$0xff]  }
 0x721   :  { %12585 = vmatpush1.bf16.msra.mxu0 %v17807_v18  ;;  %v17879_v18 = vld [vmem:[#allocation12 + $0x4e0] ss:$28 sps:$4 sm:$0xff]  }
 0x722   :  { %12689 = vmatpush2.bf16.msra.mxu1 %v17810_v21  ;;  %12586 = vmatprep.subr.bf16.mxu0 %v17815_v45  ;;  %v17882_v21 = vld [vmem:[#allocation12 + $0x9e8] ss:$28 sps:$4 sm:$0xff]  }
 0x723   :  { %12690 = vmatprep.subr.bf16.mxu1 %v17818_v28  ;;  %v17887_v45 = vld [vmem:[#allocation12 + $0x4ac] ss:$28 sps:$4 sm:$0xff]   ;;  %v17890_v28 = vld [vmem:[#allocation12 + $0x9b4] ss:$28 sps:$4 sm:$0xff]  }
 0x725   :  { %12587 = vmatpush1.bf16.msra.mxu0 %v17813_v32  ;;  %v17885_v32 = vld [vmem:[#allocation12 + $0x4a8] ss:$28 sps:$4 sm:$0xff]  }
 0x726   :  { %12691 = vmatpush2.bf16.msra.mxu1 %v17816_v52  ;;  %12588 = vmatprep.subr.bf16.mxu0 %v17821_v11  ;;  %v17888_v52 = vld [vmem:[#allocation12 + $0x9b0] ss:$28 sps:$4 sm:$0xff]  }
 0x727   :  { %12746 = vmatprep.subr.bf16.mxu1 %v17824_v26  ;;  %v17893_v11 = vld [vmem:[#allocation12 + $0x474] ss:$28 sps:$4 sm:$0xff]   ;;  %v17896_v26 = vld [vmem:[#allocation12 + $0x97c] ss:$28 sps:$4 sm:$0xff]  }
 0x729   :  { %12589 = vmatpush1.bf16.msra.mxu0 %v17819_v39  ;;  %12693 = vmatmul.mubr.bf16.vlgmr.msra.gmra.mxu1 %v18819_v53  ;;  %v17891_v39 = vld [vmem:[#allocation12 + $0x470] ss:$28 sps:$4 sm:$0xff]  }
 0x72a   :  { %12747 = vmatpush1.bf16.msra.mxu1 %v17822_v40  ;;  %12778 = vmatprep.mubr.bf16.mxu1 %v18892_v50  ;;  %v17894_v40 = vld [vmem:[#allocation12 + $0x978] ss:$28 sps:$4 sm:$0xff]  }
 0x72b   :  { %12590 = vmatprep.subr.bf16.mxu0 %v17827_v31  ;;  %12748 = vmatprep.subr.bf16.mxu1 %v17830_v0  ;;  %v17899_v31 = vld [vmem:[#allocation12 + $0x43c] ss:$28 sps:$4 sm:$0xff]   ;;  %v17902_v0 = vld [vmem:[#allocation12 + $0x944] ss:$28 sps:$4 sm:$0xff]  }
 0x72d   :  { %12591 = vmatpush2.bf16.msra.mxu0 %v17825_v49  ;;  %v17897_v49 = vld [vmem:[#allocation12 + $0x438] ss:$28 sps:$4 sm:$0xff]  }
 0x72e   :  { %12749 = vmatpush1.bf16.msra.mxu1 %v17828_v48  ;;  %12592 = vmatprep.subr.bf16.mxu0 %v17833_v55  ;;  %v17900_v48 = vld [vmem:[#allocation12 + $0x940] ss:$28 sps:$4 sm:$0xff]  }
 0x72f   :  { %12750 = vmatprep.subr.bf16.mxu1 %v17836_v60  ;;  %v17905_v55 = vld [vmem:[#allocation12 + $0x404] ss:$28 sps:$4 sm:$0xff]   ;;  %v17908_v60 = vld [vmem:[#allocation12 + $0x90c] ss:$28 sps:$4 sm:$0xff]  }
 0x731   :  { %12593 = vmatpush2.bf16.msra.mxu0 %v17831_v36  ;;  %v17903_v36 = vld [vmem:[#allocation12 + $0x400] ss:$28 sps:$4 sm:$0xff]  }
 0x732   :  { %12751 = vmatpush1.bf16.msra.mxu1 %v17834_v59  ;;  %12594 = vmatprep.subr.bf16.mxu0 %v17839_v46  ;;  %v17906_v59 = vld [vmem:[#allocation12 + $0x908] ss:$28 sps:$4 sm:$0xff]  }
 0x733   :  { %12752 = vmatprep.subr.bf16.mxu1 %v17842_v61  ;;  %v17911_v46 = vld [vmem:[#allocation12 + $0x3cc] ss:$28 sps:$4 sm:$0xff]   ;;  %v17914_v61 = vld [vmem:[#allocation12 + $0x8d4] ss:$28 sps:$4 sm:$0xff]  }
 0x735   :  { %12595 = vmatpush2.bf16.msra.mxu0 %v17837_v44  ;;  %v17909_v44 = vld [vmem:[#allocation12 + $0x3c8] ss:$28 sps:$4 sm:$0xff]  }
 0x736   :  { %12753 = vmatpush1.bf16.msra.mxu1 %v17840_v33  ;;  %12596 = vmatprep.subr.bf16.mxu0 %v17845_v42  ;;  %v17912_v33 = vld [vmem:[#allocation12 + $0x8d0] ss:$28 sps:$4 sm:$0xff]  }
 0x737   :  { %12754 = vmatprep.subr.bf16.mxu1 %v17848_v63  ;;  %v17917_v42 = vld [vmem:[#allocation12 + $0x394] ss:$28 sps:$4 sm:$0xff]   ;;  %v17918_v63 = vld [vmem:[#allocation12 + $0x6e0] ss:$28 sps:$4 sm:$0xff]  }
 0x739   :  { %12597 = vmatpush2.bf16.msra.mxu0 %v17843_v23  ;;  %v17915_v23 = vld [vmem:[#allocation12 + $0x390] ss:$28 sps:$4 sm:$0xff]  }
 0x73a   :  { %12755 = vmatpush1.bf16.msra.mxu1 %v17846_v56  ;;  %12598 = vmatprep.subr.bf16.mxu0 %v17851_v6  ;;  %v17919_v56 = vld [vmem:[#allocation12 + $0x520] ss:$28 sps:$4 sm:$0xff]  }
 0x73b   :  { %12756 = vmatprep.subr.bf16.mxu1 %v17854_v9  ;;  %v17922_v6 = vld [vmem:[#allocation12 + $0x6dc] ss:$28 sps:$4 sm:$0xff]   ;;  %v17923_v9 = vld [vmem:[#allocation12 + $0x6a8] ss:$28 sps:$4 sm:$0xff]  }
 0x73d   :  { %12599 = vmatpush2.bf16.msra.mxu0 %v17849_v16  ;;  %v17920_v16 = vld [vmem:[#allocation12 + $0x6d8] ss:$28 sps:$4 sm:$0xff]  }
 0x73e   :  { %12757 = vmatpush1.bf16.msra.mxu1 %v17852_v13  ;;  %12600 = vmatprep.subr.bf16.mxu0 %v17857_v54  ;;  %v17924_v13 = vld [vmem:[#allocation12 + $0x4e8] ss:$28 sps:$4 sm:$0xff]  }
 0x73f   :  { %12758 = vmatprep.subr.bf16.mxu1 %v17860_v4  ;;  %v17927_v54 = vld [vmem:[#allocation12 + $0x6a4] ss:$28 sps:$4 sm:$0xff]   ;;  %v17928_v4 = vld [vmem:[#allocation12 + $0x670] ss:$28 sps:$4 sm:$0xff]  }
 0x741   :  { %12601 = vmatpush2.bf16.msra.mxu0 %v17855_v38  ;;  %v17925_v38 = vld [vmem:[#allocation12 + $0x6a0] ss:$28 sps:$4 sm:$0xff]  }
 0x742   :  { %12759 = vmatpush1.bf16.msra.mxu1 %v17858_v2  ;;  %12602 = vmatprep.subr.bf16.mxu0 %v17863_v34  ;;  %v17929_v2 = vld [vmem:[#allocation12 + $0x4b0] ss:$28 sps:$4 sm:$0xff]  }
 0x743   :  { %12760 = vmatprep.subr.bf16.mxu1 %v17866_v25  ;;  %v17932_v34 = vld [vmem:[#allocation12 + $0x66c] ss:$28 sps:$4 sm:$0xff]   ;;  %v17933_v25 = vld [vmem:[#allocation12 + $0x638] ss:$28 sps:$4 sm:$0xff]  }
 0x745   :  { %12603 = vmatpush2.bf16.msra.mxu0 %v17861_v15  ;;  %v17930_v15 = vld [vmem:[#allocation12 + $0x668] ss:$28 sps:$4 sm:$0xff]  }
 0x746   :  { %12761 = vmatpush1.bf16.msra.mxu1 %v17864_v17  ;;  %12604 = vmatprep.subr.bf16.mxu0 %v17869_v47  ;;  %v17934_v17 = vld [vmem:[#allocation12 + $0x478] ss:$28 sps:$4 sm:$0xff]  }
 0x747   :  { %12762 = vmatprep.subr.bf16.mxu1 %v17872_v3  ;;  %v17937_v47 = vld [vmem:[#allocation12 + $0x634] ss:$28 sps:$4 sm:$0xff]  }
 0x748   :  { %v17935_v3 = vld [vmem:[#allocation12 + $0x630] ss:$28 sps:$4 sm:$0xff]  }
 0x749   :  { %12605 = vmatpush2.bf16.msra.mxu0 %v17867_v35  ;;  %v17939_v35 = vld [vmem:[#allocation12 + $0x440] ss:$28 sps:$4 sm:$0xff]  }
 0x74a   :  { %12763 = vmatpush2.bf16.msra.mxu1 %v17870_v20  ;;  %12703 = vmatprep.subr.bf16.mxu0 %v17875_v24  ;;  %v17942_v20 = vld [vmem:[#allocation12 + $0x5fc] ss:$28 sps:$4 sm:$0xff]   ;;  %v17943_v24 = vld [vmem:[#allocation12 + $0x5c8] ss:$28 sps:$4 sm:$0xff]  }
 0x74b   :  { %12764 = vmatprep.subr.bf16.mxu1 %v17878_v43  ;;  %v17940_v43 = vld [vmem:[#allocation12 + $0x5f8] ss:$28 sps:$4 sm:$0xff]  }
 0x74c   :  { %12607 = vmatmul.mubr.bf16.vlgmr.msra.gmra.mxu0 %v18894_v12 }
 0x74d   :  { %12704 = vmatpush1.bf16.msra.mxu0 %v17873_v29  ;;  %12735 = vmatprep.mubr.bf16.mxu0 %v18848_v58  ;;  %v17944_v29 = vld [vmem:[#allocation12 + $0x408] ss:$28 sps:$4 sm:$0xff]  }
 0x74e   :  { %12765 = vmatpush2.bf16.msra.mxu1 %v17876_v62  ;;  %12705 = vmatprep.subr.bf16.mxu0 %v17881_v51  ;;  %v17947_v62 = vld [vmem:[#allocation12 + $0x5c4] ss:$28 sps:$4 sm:$0xff]   ;;  %v17948_v51 = vld [vmem:[#allocation12 + $0x590] ss:$28 sps:$4 sm:$0xff]  }
 0x74f   :  { %12766 = vmatprep.subr.bf16.mxu1 %v17884_v10  ;;  %v17945_v10 = vld [vmem:[#allocation12 + $0x5c0] ss:$28 sps:$4 sm:$0xff]  }
 0x751   :  { %12706 = vmatpush1.bf16.msra.mxu0 %v17879_v18  ;;  %v17949_v18 = vld [vmem:[#allocation12 + $0x3d0] ss:$28 sps:$4 sm:$0xff]  }
 0x752   :  { %12767 = vmatpush2.bf16.msra.mxu1 %v17882_v21  ;;  %12707 = vmatprep.subr.bf16.mxu0 %v17887_v45  ;;  %v17952_v21 = vld [vmem:[#allocation12 + $0x58c] ss:$28 sps:$4 sm:$0xff]   ;;  %v17953_v45 = vld [vmem:[#allocation12 + $0x558] ss:$28 sps:$4 sm:$0xff]  }
 0x753   :  { %12768 = vmatprep.subr.bf16.mxu1 %v17890_v28  ;;  %v17950_v28 = vld [vmem:[#allocation12 + $0x588] ss:$28 sps:$4 sm:$0xff]  }
 0x755   :  { %12708 = vmatpush1.bf16.msra.mxu0 %v17885_v32  ;;  %v17954_v32 = vld [vmem:[#allocation12 + $0x398] ss:$28 sps:$4 sm:$0xff]  }
 0x756   :  { %12769 = vmatpush2.bf16.msra.mxu1 %v17888_v52  ;;  %12709 = vmatprep.subr.bf16.mxu0 %v17893_v11  ;;  %v17957_v52 = vld [vmem:[#allocation12 + $0x554] ss:$28 sps:$4 sm:$0xff]  }
 0x757   :  { %12770 = vmatprep.subr.bf16.mxu1 %v17896_v26  ;;  %v17955_v11 = vld [vmem:[#allocation12 + $0x550] ss:$28 sps:$4 sm:$0xff]   ;;  %v17958_v26 = vld [vmem:[#allocation12 + $0xc20] ss:$28 sps:$4 sm:$0xff]  }
 0x759   :  { %12710 = vmatpush1.bf16.msra.mxu0 %v17891_v39  ;;  %v17961_v39 = vld [vmem:[#allocation12 + $0xc1c] ss:$28 sps:$4 sm:$0xff]  }
 0x75a   :  { %12771 = vmatpush2.bf16.msra.mxu1 %v17894_v40  ;;  %12711 = vmatprep.subr.bf16.mxu0 %v17899_v31  ;;  %v17959_v40 = vld [vmem:[#allocation12 + $0xc18] ss:$28 sps:$4 sm:$0xff]   ;;  %v17962_v31 = vld [vmem:[#allocation12 + $0xbe8] ss:$28 sps:$4 sm:$0xff]  }
 0x75b   :  { %12772 = vmatprep.subr.bf16.mxu1 %v17902_v0  ;;  %v17965_v0 = vld [vmem:[#allocation12 + $0xbe4] ss:$28 sps:$4 sm:$0xff]  }
 0x75d   :  { %12712 = vmatpush1.bf16.msra.mxu0 %v17897_v49  ;;  %v17963_v49 = vld [vmem:[#allocation12 + $0xbe0] ss:$28 sps:$4 sm:$0xff]  }
 0x75e   :  { %12773 = vmatpush2.bf16.msra.mxu1 %v17900_v48  ;;  %12713 = vmatprep.subr.bf16.mxu0 %v17905_v55  ;;  %v17966_v48 = vld [vmem:[#allocation12 + $0xbb0] ss:$28 sps:$4 sm:$0xff]  }
 0x75f   :  { %12774 = vmatprep.subr.bf16.mxu1 %v17908_v60  ;;  %v17969_v55 = vld [vmem:[#allocation12 + $0xbac] ss:$28 sps:$4 sm:$0xff]  }
 0x760   :  { %v17967_v60 = vld [vmem:[#allocation12 + $0xba8] ss:$28 sps:$4 sm:$0xff]  }
 0x761   :  { %12714 = vmatpush1.bf16.msra.mxu0 %v17903_v36  ;;  %v17970_v36 = vld [vmem:[#allocation12 + $0xb78] ss:$28 sps:$4 sm:$0xff]  }
 0x762   :  { %12775 = vmatpush2.bf16.msra.mxu1 %v17906_v59  ;;  %12715 = vmatprep.subr.bf16.mxu0 %v17911_v46  ;;  %v17973_v59 = vld [vmem:[#allocation12 + $0xb74] ss:$28 sps:$4 sm:$0xff]   ;;  %v17974_v46 = vld [vmem:[#allocation12 + $0xb40] ss:$28 sps:$4 sm:$0xff]  }
 0x763   :  { %12776 = vmatprep.subr.bf16.mxu1 %v17914_v61  ;;  %v17975_v61 = vld [vmem:[#allocation12 + $0xb38] ss:$28 sps:$4 sm:$0xff]  }
 0x765   :  { %12716 = vmatpush1.bf16.msra.mxu0 %v17909_v44  ;;  %v17978_v44 = vld [vmem:[#allocation12 + $0xb08] ss:$28 sps:$4 sm:$0xff]  }
 0x766   :  { %12777 = vmatpush2.bf16.msra.mxu1 %v17912_v33  ;;  %12717 = vmatprep.subr.bf16.mxu0 %v17917_v42  ;;  %v17981_v33 = vld [vmem:[#allocation12 + $0xb04] ss:$28 sps:$4 sm:$0xff]  }
 0x767   :  { %15527 = vmatprep.subr.bf16.mxu1 %v17918_v63  ;;  %v17979_v42 = vld [vmem:[#allocation12 + $0xb00] ss:$28 sps:$4 sm:$0xff]   ;;  %v17982_v63 = vld [vmem:[#allocation12 + $0xad0] ss:$28 sps:$4 sm:$0xff]  }
 0x769   :  { %12718 = vmatpush1.bf16.msra.mxu0 %v17915_v23  ;;  %12779 = vmatmul.mubr.bf16.vlgmr.msra.gmra.mxu1 %v18894_v12  ;;  %v17985_v23 = vld [vmem:[#allocation12 + $0xacc] ss:$28 sps:$4 sm:$0xff]  }
 0x76a   :  { %15528 = vmatpush3.bf16.msra.mxu1 %v17919_v56  ;;  %12905 = vmatprep.mubr.bf16.mxu1 %v18848_v58  ;;  %v17938_v58 = vld [vmem:[#allocation12 + $0x600] ss:$28 sps:$4 sm:$0xff]   ;;  %v17983_v56 = vld [vmem:[#allocation12 + $0xac8] ss:$28 sps:$4 sm:$0xff]  }
 0x76b   :  { %12719 = vmatprep.subr.bf16.mxu0 %v17922_v6  ;;  %15529 = vmatprep.subr.bf16.mxu1 %v17923_v9  ;;  %v17986_v6 = vld [vmem:[#allocation12 + $0xa98] ss:$28 sps:$4 sm:$0xff]  }
 0x76c   :  { %v17989_v9 = vld [vmem:[#allocation12 + $0xa94] ss:$28 sps:$4 sm:$0xff]  }
 0x76d   :  { %12720 = vmatpush2.bf16.msra.mxu0 %v17920_v16  ;;  %v18031_v16 = vld [vmem:[#allocation15 + $0xf8] sm:$0xff]  }
 0x76e   :  { %15530 = vmatpush3.bf16.msra.mxu1 %v17924_v13  ;;  %12721 = vmatprep.subr.bf16.mxu0 %v17927_v54  ;;  %v17987_v13 = vld [vmem:[#allocation12 + $0xa90] ss:$28 sps:$4 sm:$0xff]   ;;  %v17990_v54 = vld [vmem:[#allocation12 + $0x360] ss:$28 sps:$4 sm:$0xff]  }
 0x76f   :  { %15531 = vmatprep.subr.bf16.mxu1 %v17928_v4  ;;  %v18033_v4 = vld [vmem:[#allocation15 + $0xb8] sm:$0xff]  }
 0x771   :  { %12722 = vmatpush2.bf16.msra.mxu0 %v17925_v38  ;;  %v18035_v38 = vld [vmem:[#allocation15 + $0xf0] sm:$0xff]  }
 0x772   :  { %15532 = vmatpush3.bf16.msra.mxu1 %v17929_v2  ;;  %12723 = vmatprep.subr.bf16.mxu0 %v17932_v34  ;;  %v17991_v2 = vld [vmem:[#allocation12 + $0x1a0] ss:$28 sps:$4 sm:$0xff]   ;;  %v17992_v34 = vld [vmem:[#allocation12 + $0x328] ss:$28 sps:$4 sm:$0xff]  }
 0x773   :  { %15533 = vmatprep.subr.bf16.mxu1 %v17933_v25  ;;  %v18037_v25 = vld [vmem:[#allocation15 + $0xb0] sm:$0xff]  }
 0x775   :  { %12724 = vmatpush2.bf16.msra.mxu0 %v17930_v15  ;;  %v18039_v15 = vld [vmem:[#allocation15 + $0xe8] sm:$0xff]  }
 0x776   :  { %15534 = vmatpush3.bf16.msra.mxu1 %v17934_v17  ;;  %12725 = vmatprep.subr.bf16.mxu0 %v17937_v47  ;;  %v17993_v17 = vld [vmem:[#allocation12 + $0x168] ss:$28 sps:$4 sm:$0xff]   ;;  %v17994_v47 = vld [vmem:[#allocation12 + $0x2f0] ss:$28 sps:$4 sm:$0xff]  }
 0x777   :  { %15535 = vmatprep.subr.bf16.mxu1 %v17938_v58  ;;  %v18041_v58 = vld [vmem:[#allocation15 + $0xa8] sm:$0xff]  }
 0x779   :  { %12726 = vmatpush2.bf16.msra.mxu0 %v17935_v3  ;;  %v18043_v3 = vld [vmem:[#allocation15 + $0xe0] sm:$0xff]  }
 0x77a   :  { %15536 = vmatpush3.bf16.msra.mxu1 %v17939_v35  ;;  %12727 = vmatprep.subr.bf16.mxu0 %v17942_v20  ;;  %v17995_v35 = vld [vmem:[#allocation12 + $0x130] ss:$28 sps:$4 sm:$0xff]   ;;  %v17996_v20 = vld [vmem:[#allocation12 + $0x2b8] ss:$28 sps:$4 sm:$0xff]  }
 0x77b   :  { %15537 = vmatprep.subr.bf16.mxu1 %v17943_v24  ;;  %v18045_v24 = vld [vmem:[#allocation15 + $0xa0] sm:$0xff]  }
 0x77d   :  { %12728 = vmatpush2.bf16.msra.mxu0 %v17940_v43  ;;  %v18046_v43 = vld [vmem:[#allocation15 + $0xd8] sm:$0xff]  }
 0x77e   :  { %15538 = vmatpush3.bf16.msra.mxu1 %v17944_v29  ;;  %12729 = vmatprep.subr.bf16.mxu0 %v17947_v62  ;;  %v17998_v29 = vld [vmem:[#allocation12 + $0x280] ss:$28 sps:$4 sm:$0xff]  }
 0x77f   :  { %15539 = vmatprep.subr.bf16.mxu1 %v17948_v51  ;;  %v18048_v62 = vld [vmem:[#allocation15 + $0xd0] sm:$0xff]  }
 0x780   :  { %v17999_v51 = vld [vmem:[#allocation12 + $0xc0] ss:$28 sps:$4 sm:$0xff]  }
 0x781   :  { %12730 = vmatpush2.bf16.msra.mxu0 %v17945_v10  ;;  %v18000_v10 = vld [vmem:[#allocation12 + $0x248] ss:$28 sps:$4 sm:$0xff]  }
 0x782   :  { %15540 = vmatpush3.bf16.msra.mxu1 %v17949_v18  ;;  %12731 = vmatprep.subr.bf16.mxu0 %v17952_v21  ;;  %v18049_v18 = vld [vmem:[#allocation15 + $0x90] sm:$0xff]   ;;  %v18050_v21 = vld [vmem:[#allocation15 + $0xc8] sm:$0xff]  }
 0x783   :  { %15541 = vmatprep.subr.bf16.mxu1 %v17953_v45  ;;  %v18001_v45 = vld [vmem:[#allocation12 + $0x88] ss:$28 sps:$4 sm:$0xff]  }
 0x785   :  { %12732 = vmatpush2.bf16.msra.mxu0 %v17950_v28  ;;  %v18002_v28 = vld [vmem:[#allocation12 + $0x210] ss:$28 sps:$4 sm:$0xff]  }
 0x786   :  { %15542 = vmatpush3.bf16.msra.mxu1 %v17954_v32  ;;  %12733 = vmatprep.subr.bf16.mxu0 %v17957_v52  ;;  %v18051_v32 = vld [vmem:[#allocation15 + $0x88] sm:$0xff]   ;;  %v18052_v52 = vld [vmem:[#allocation15 + $0xc0] sm:$0xff]  }
 0x787   :  { %15715 = vmatprep.subr.bf16.mxu1 %v18318_v30 }
 0x789   :  { %12734 = vmatpush2.bf16.msra.mxu0 %v17955_v11  ;;  %12906 = vmatmul.mubr.bf16.vlgmr.msra.gmra.mxu1 %v18850_v19  ;;  %v18003_v11 = vld [vmem:[#allocation12 + $0x50] ss:$28 sps:$4 sm:$0xff]  }
 0x78a   :  { %15716 = vmatpush3.bf16.msra.mxu1 %v17958_v26  ;;  %12789 = vmatprep.subr.bf16.mxu0 %v17961_v39  ;;  %v18004_v26 = vld [vmem:[#allocation12 + $0x1d8] ss:$28 sps:$4 sm:$0xff]   ;;  %v18053_v39 = vld [vmem:[#allocation15 + $0x80] sm:$0xff]  }
 0x78b   :  { %15717 = vmatprep.subr.bf16.mxu1 %v18318_v30  ;;  %15731 = vmatprep.mubr.msk.bf16.mxu1 %vm18319_vm0, %v18318_v30 }
 0x78c   :  { %12736 = vmatmul.mubr.bf16.vlgmr.msra.gmra.mxu0 %v18850_v19  ;;  %v17971_v19 = vld [vmem:[#allocation12 + $0xb70] ss:$28 sps:$4 sm:$0xff]  }
 0x78d   :  { %12790 = vmatpush1.bf16.msra.mxu0 %v17959_v40  ;;  %12821 = vmatprep.mubr.bf16.mxu0 %v18317_v14  ;;  %v17977_v14 = vld [vmem:[#allocation12 + $0xb3c] ss:$28 sps:$4 sm:$0xff]   ;;  %v18937_v40 = vpop.f32.mrf.mxu1 }
 0x78e   :  { %15718 = vmatpush3.bf16.msra.mxu1 %v17962_v31  ;;  %12791 = vmatprep.subr.bf16.mxu0 %v17965_v0  ;;  %v18005_v31 = vld [vmem:[#allocation12 + $0x18] ss:$28 sps:$4 sm:$0xff]   ;;  %v18939_v0 = vpop.f32.mrf.mxu0 }
 0x78f   :  { %15719 = vmatprep.subr.bf16.mxu1 %v18318_v30 }
 0x791   :  { %12792 = vmatpush1.bf16.msra.mxu0 %v17963_v49  ;;  %v18006_v49 = vld [vmem:[#allocation12 + $0xa60] ss:$28 sps:$4 sm:$0xff]  }
 0x792   :  { %15720 = vmatpush3.bf16.msra.mxu1 %v17966_v48  ;;  %12793 = vmatprep.subr.bf16.mxu0 %v17969_v55  ;;  %v12352_v48 = vpop.f32.mrf.mxu1  ;;  %v18007_v55 = vld [vmem:[#allocation12 + $0x8a0] ss:$28 sps:$4 sm:$0xff]  }
 0x793   :  { %15721 = vmatprep.subr.bf16.mxu1 %v18318_v30 }
 0x795   :  { %12794 = vmatpush1.bf16.msra.mxu0 %v17967_v60  ;;  %v12395_v60 = vpop.f32.mrf.mxu0 }
 0x796   :  { %15722 = vmatpush3.bf16.msra.mxu1 %v17970_v36  ;;  %12795 = vmatprep.subr.bf16.mxu0 %v17973_v59  ;;  %v18008_v36 = vld [vmem:[#allocation12 + $0xa28] ss:$28 sps:$4 sm:$0xff]   ;;  %v18942_v59 = vpop.f32.mrf.mxu1 }
 0x797   :  { %15723 = vmatprep.subr.bf16.mxu1 %v18318_v30 }
 0x799   :  { %12796 = vmatpush1.bf16.msra.mxu0 %v17971_v19  ;;  %v18009_v19 = vld [vmem:[#allocation12 + $0x868] ss:$28 sps:$4 sm:$0xff]  }
 0x79a   :  { %15724 = vmatpush3.bf16.msra.mxu1 %v17974_v46  ;;  %12797 = vmatprep.subr.bf16.mxu0 %v17977_v14  ;;  %v18946_v46 = vpop.f32.mrf.mxu0  ;;  %v18010_v14 = vld [vmem:[#allocation12 + $0x9f0] ss:$28 sps:$4 sm:$0xff]  }
 0x79b   :  { %15725 = vmatprep.subr.bf16.mxu1 %v18318_v30 }
 0x79d   :  { %12798 = vmatpush1.bf16.msra.mxu0 %v17975_v61  ;;  %v12356_v61 = vpop.f32.mrf.mxu1 }
 0x79e   :  { %15726 = vmatpush3.bf16.msra.mxu1 %v17978_v44  ;;  %12799 = vmatprep.subr.bf16.mxu0 %v17981_v33  ;;  %v18011_v44 = vld [vmem:[#allocation12 + $0x830] ss:$28 sps:$4 sm:$0xff]   ;;  %v12399_v33 = vpop.f32.mrf.mxu0 }
 0x79f   :  { %15727 = vmatprep.subr.bf16.mxu1 %v18318_v30 }
 0x7a1   :  { %12800 = vmatpush1.bf16.msra.mxu0 %v17979_v42  ;;  %v18948_v42 = vpop.f32.mrf.mxu1 }
 0x7a2   :  { %15728 = vmatpush3.bf16.msra.mxu1 %v17982_v63  ;;  %12801 = vmatprep.subr.bf16.mxu0 %v17985_v23  ;;  %v18012_v63 = vld [vmem:[#allocation12 + $0x9b8] ss:$28 sps:$4 sm:$0xff]   ;;  %v18950_v23 = vpop.f32.mrf.mxu0 }
 0x7a3   :  { %15729 = vmatprep.subr.bf16.mxu1 %v18318_v30 }
 0x7a5   :  { %12802 = vmatpush1.bf16.msra.mxu0 %v17983_v56  ;;  %v12438_v56 = vpop.f32.mrf.mxu1 }
 0x7a6   :  { %15730 = vmatpush3.bf16.msra.mxu1 %v17986_v6  ;;  %12803 = vmatprep.subr.bf16.mxu0 %v17989_v9  ;;  %v18952_v6 = vld [vmem:[#allocation13] sm:$0xff]  ;;  %v12481_v9 = vpop.f32.mrf.mxu0 }
 0x7a7   :  { %15602 = vmatprep.subr.bf16.mxu1 %v18031_v16  ;;  %v10272_v16 = vrot.slane %v18952_v6, %v18549_v8  ;;  %v18019_v8 = vld [vmem:[#allocation12 + $0x750] ss:$28 sps:$4 sm:$0xff]  }
 0x7a9   :  { %12804 = vmatpush1.bf16.msra.mxu0 %v17987_v13  ;;  %15732 = vmatmul.mubr.bf16.vlgmr.msra.gmra.mxu1 %v18906_v7  ;;  %v18015_v13 = vld [vmem:[#allocation12 + $0x7c0] ss:$28 sps:$4 sm:$0xff]  }
 0x7aa   :  { %15505 = vmatprep.subr.bf16.mxu0 %v17990_v54  ;;  %15603 = vmatpush3.bf16.msra.mxu1 %v18033_v4  ;;  %v18956_v54 = vpop.f32.mrf.mxu1  ;;  %v18016_v4 = vld [vmem:[#allocation12 + $0x948] ss:$28 sps:$4 sm:$0xff]  }
 0x7ab   :  { %15604 = vmatprep.subr.bf16.mxu1 %v18035_v38  ;;  %v12357_v38 = vadd.f32 %v12356_v61, %v10272_v16  ;;  %v18038_v61 = vld [vmem:[#allocation15 + $0x48] sm:$0xff]  }
 0x7ac   :  { %12822 = vmatmul.mubr.bf16.vlgmr.msra.gmra.mxu0 %v18906_v7  ;;  %v17997_v7 = vld [vmem:[#allocation12 + $0xf8] ss:$28 sps:$4 sm:$0xff]  }
 0x7ad   :  { %15506 = vmatpush3.bf16.msra.mxu0 %v17991_v2  ;;  %12864 = vmatprep.mubr.bf16.mxu0 %v18838_v27  ;;  %v18047_v27 = vld [vmem:[#allocation15 + $0x98] sm:$0xff]   ;;  %v18958_v2 = vpop.f32.mrf.mxu0 }
 0x7ae   :  { %15507 = vmatprep.subr.bf16.mxu0 %v17992_v34  ;;  %15605 = vmatpush3.bf16.msra.mxu1 %v18037_v25  ;;  %v12353_v34 = vadd.f32 %v12352_v48, %v10272_v16  ;;  %v18017_v25 = vld [vmem:[#allocation12 + $0x788] ss:$28 sps:$4 sm:$0xff]   ;;  %v18034_v48 = vld [vmem:[#allocation15 + $0x50] sm:$0xff]  }
 0x7af   :  { %15606 = vmatprep.subr.bf16.mxu1 %v18039_v15  ;;  %v12442_v15 = vpop.f32.mrf.mxu1 }
 0x7b1   :  { %15508 = vmatpush3.bf16.msra.mxu0 %v17993_v17  ;;  %v18018_v17 = vld [vmem:[#allocation12 + $0x910] ss:$28 sps:$4 sm:$0xff]  }
 0x7b2   :  { %15509 = vmatprep.subr.bf16.mxu0 %v17994_v47  ;;  %15607 = vmatpush3.bf16.msra.mxu1 %v18041_v58  ;;  %v12400_v47 = vadd.f32 %v12399_v33, %v12357_v38  ;;  %v12485_v58 = vpop.f32.mrf.mxu0  ;;  %v18040_v33 = vld [vmem:[#allocation15 + $0x8] sm:$0xff]  }
 0x7b3   :  { %15608 = vmatprep.subr.bf16.mxu1 %v18043_v3  ;;  %v12396_v3 = vadd.f32 %v12395_v60, %v12353_v34  ;;  %v18036_v60 = vld [vmem:[#allocation15 + $0x10] sm:$0xff]   ;;  %v18055_v34 = vld [vmem:[#allocation15 + $0x138] sm:$0xff]  }
 0x7b5   :  { %15510 = vmatpush3.bf16.msra.mxu0 %v17995_v35  ;;  %v12443_v35 = vadd.f32 %v12442_v15, %v12400_v47 }
 0x7b6   :  { %15511 = vmatprep.subr.bf16.mxu0 %v17996_v20  ;;  %15609 = vmatpush3.bf16.msra.mxu1 %v18045_v24  ;;  %v18020_v20 = vld [vmem:[#allocation12 + $0x8d8] ss:$28 sps:$4 sm:$0xff]   ;;  %v12439_v24 = vadd.f32 %v12438_v56, %v12396_v3  ;;  %v18042_v56 = vld [vmem:[#allocation15 + $0x40] sm:$0xff]  }
 0x7b7   :  { %15610 = vmatprep.subr.bf16.mxu1 %v18046_v43  ;;  %v12486_v43 = vadd.f32 %v12485_v58, %v12443_v35 }
 0x7b9   :  { %15512 = vmatpush3.bf16.msra.mxu0 %v17997_v7  ;;  %v12482_v7 = vadd.f32 %v12481_v9, %v12439_v24  ;;  %v18044_v9 = vld [vmem:[#allocation15] sm:$0xff]   ;;  %v18058_v24 = vld [vmem:[#allocation15 + $0x168] sm:$0xff]  }
 0x7ba   :  { %15513 = vmatprep.subr.bf16.mxu0 %v17998_v29  ;;  %15611 = vmatpush3.bf16.msra.mxu1 %v18047_v27  ;;  %v18021_v29 = vld [vmem:[#allocation12 + $0x718] ss:$28 sps:$4 sm:$0xff]   ;;  %v18022_v27 = vld [vmem:[#allocation15 + $0x78] sm:$0xff]  }
 0x7bb   :  { %15612 = vmatprep.subr.bf16.mxu1 %v18048_v62  ;;  %v13004_v62 = vmax.f32 %v12486_v43, 0.0 }
 0x7bd   :  { %15514 = vmatpush3.bf16.msra.mxu0 %v17999_v51  ;;  %v12997_v51 = vmax.f32 %v12482_v7, 0.0 }
 0x7be   :  { %15515 = vmatprep.subr.bf16.mxu0 %v18000_v10  ;;  %15613 = vmatpush3.bf16.msra.mxu1 %v18049_v18  ;;  %v18023_v10 = vld [vmem:[#allocation15 + $0x38] sm:$0xff]   ;;  %v18024_v18 = vld [vmem:[#allocation15 + $0x70] sm:$0xff]  }
 0x7bf   :  { %15614 = vmatprep.subr.bf16.mxu1 %v18050_v21  ;;  %v13011_v21 = vpack.c.bf16 %v13004_v62, %v12997_v51 }
 0x7c1   :  { %15516 = vmatpush3.bf16.msra.mxu0 %v18001_v45  ;;  %v18025_v45 = vld [vmem:[#allocation15 + $0x30] sm:$0xff]  }
 0x7c2   :  { %15517 = vmatprep.subr.bf16.mxu0 %v18002_v28  ;;  %15615 = vmatpush3.bf16.msra.mxu1 %v18051_v32  ;;  %v18026_v28 = vld [vmem:[#allocation15 + $0x68] sm:$0xff]  }
 0x7c3   :  { %15616 = vmatprep.subr.bf16.mxu1 %v18052_v52  ;;  %v18027_v32 = vld [vmem:[#allocation15 + $0x28] sm:$0xff]   ;;  %v18028_v52 = vld [vmem:[#allocation15 + $0x60] sm:$0xff]  }
 0x7c5   :  { %15518 = vmatpush3.bf16.msra.mxu0 %v18003_v11  ;;  %v18029_v11 = vld [vmem:[#allocation15 + $0x20] sm:$0xff]  }
 0x7c6   :  { %15519 = vmatprep.subr.bf16.mxu0 %v18004_v26  ;;  %15617 = vmatpush3.bf16.msra.mxu1 %v18053_v39  ;;  %v18030_v26 = vld [vmem:[#allocation15 + $0x58] sm:$0xff]   ;;  %v10268_v39 = vrot.slane %v18952_v6, %v18487_v22 }
 0x7c7   :  { %15735 = vmatprep.subr.bf16.mxu1 %v18318_v30 }
 0x7c9   :  { %15520 = vmatpush3.bf16.msra.mxu0 %v18005_v31  ;;  %v18032_v31 = vld [vmem:[#allocation15 + $0x18] sm:$0xff]  }
 0x7ca   :  { %15549 = vmatprep.subr.bf16.mxu0 %v18006_v49  ;;  %v12565_v49 = vpop.f32.mrf.mxu1 }
 0x7cc   :  { %12865 = vmatmul.mubr.bf16.vlgmr.msra.gmra.mxu0 %v18819_v53  ;;  %v18013_v53 = vld [vmem:[#allocation12 + $0x7f8] ss:$28 sps:$4 sm:$0xff]  }
 0x7cd   :  { %15550 = vmatpush3.bf16.msra.mxu0 %v18007_v55  ;;  %12946 = vmatprep.mubr.bf16.mxu0 %v18892_v50  ;;  %v18014_v50 = vld [vmem:[#allocation12 + $0x980] ss:$28 sps:$4 sm:$0xff]   ;;  %v12351_v55 = vadd.f32 %v18937_v40, %v10268_v39 }
 0x7ce   :  { %15551 = vmatprep.subr.bf16.mxu0 %v18008_v36 }
 0x7d1   :  { %15552 = vmatpush3.bf16.msra.mxu0 %v18009_v19  ;;  %v12567_v19 = vpop.f32.mrf.mxu1 }
 0x7d2   :  { %15553 = vmatprep.subr.bf16.mxu0 %v18010_v14  ;;  %v12522_v14 = vpop.f32.mrf.mxu0 }
 0x7d4   :  { %v12524_v40 = vpop.f32.mrf.mxu0 }
 0x7d5   :  { %15554 = vmatpush3.bf16.msra.mxu0 %v18011_v44  ;;  %v12394_v44 = vadd.f32 %v18939_v0, %v12351_v55 }
 0x7d6   :  { %15555 = vmatprep.subr.bf16.mxu0 %v18012_v63  ;;  %v12569_v63 = vpop.f32.mrf.mxu1 }
 0x7d8   :  { %v12571_v0 = vpop.f32.mrf.mxu1 }
 0x7d9   :  { %15556 = vmatpush3.bf16.msra.mxu0 %v18013_v53 }
 0x7da   :  { %15557 = vmatprep.subr.bf16.mxu0 %v18014_v50  ;;  %v10280_v50 = vrot.slane %v18952_v6, %v18578_v41  ;;  %v12651_v38 = vpop.f32.mrf.mxu1  ;;  %v18056_v41 = vld [vmem:[#allocation15 + $0x170] sm:$0xff]  }
 0x7dc   :  { %v12653_v47 = vpop.f32.mrf.mxu1 }
 0x7dd   :  { %15558 = vmatpush3.bf16.msra.mxu0 %v18015_v13  ;;  %v10276_v13 = vrot.slane %v18952_v6, %v18602_v5  ;;  %v18057_v5 = vld [vmem:[#allocation15 + $0x130] sm:$0xff]  }
 0x7de   :  { %15559 = vmatprep.subr.bf16.mxu0 %v18016_v4 }
 0x7e1   :  { %15560 = vmatpush3.bf16.msra.mxu0 %v18017_v25 }
 0x7e2   :  { %15561 = vmatprep.subr.bf16.mxu0 %v18018_v17 }
 0x7e5   :  { %15562 = vmatpush3.bf16.msra.mxu0 %v18019_v8 }
 0x7e6   :  { %15563 = vmatprep.subr.bf16.mxu0 %v18020_v20 }
 0x7e9   :  { %15564 = vmatpush3.bf16.msra.mxu0 %v18021_v29  ;;  %v12655_v29 = vpop.f32.mrf.mxu1 }
 0x7ea   :  { %15580 = vmatprep.subr.bf16.mxu0 %v18022_v27 }
 0x7ec   :  { %12947 = vmatmul.mubr.bf16.vlgmr.msra.gmra.mxu0 %v18894_v12  ;;  %v12355_v12 = vadd.f32 %v18942_v59, %v10268_v39  ;;  %v12437_v59 = vadd.f32 %v18948_v42, %v12394_v44  ;;  %v18054_v42 = vld [vmem:[#allocation15 + $0x178] sm:$0xff]   ;;  %v18064_v44 = vld [vmem:[#allocation15 + $0x150] sm:$0xff]  }
 0x7ed   :  { %15581 = vmatpush3.bf16.msra.mxu0 %v18023_v10  ;;  %13504 = vmatprep.mubr.bf16.mxu0 %v13011_v21 }
 0x7ee   :  { %15582 = vmatprep.subr.bf16.mxu0 %v18024_v18  ;;  %v12398_v36 = vadd.f32 %v18946_v46, %v12355_v12  ;;  %v12480_v46 = vadd.f32 %v18950_v23, %v12437_v59  ;;  %v12523_v23 = vadd.f32 %v12522_v14, %v10276_v13  ;;  %v18059_v18 = vld [vmem:[#allocation15 + $0x128] sm:$0xff]   ;;  %v18070_v14 = vld [vmem:[#allocation15 + $0x1b8] sm:$0xff]  }
 0x7ef   :  { %v18066_v59 = vld [vmem:[#allocation15 + $0x148] sm:$0xff]  }
 0x7f0   :  { %v12441_v22 = vadd.f32 %v18956_v54, %v12398_v36  ;;  %v12526_v54 = vpop.f32.mrf.mxu0  ;;  %v12996_v4 = vmax.f32 %v12480_v46, 0.0  ;;  %v12566_v8 = vadd.f32 %v12565_v49, %v12523_v23  ;;  %v18062_v49 = vld [vmem:[#allocation15 + $0x158] sm:$0xff]   ;;  %v18073_v46 = vld [vmem:[#allocation15 + $0x1a0] sm:$0xff]  }
 0x7f1   :  { %15583 = vmatpush3.bf16.msra.mxu0 %v18025_v45  ;;  %v12527_v17 = vadd.f32 %v12526_v54, %v10276_v13  ;;  %v18060_v45 = vld [vmem:[#allocation15 + $0x160] sm:$0xff]   ;;  %v18076_v13 = vld [vmem:[#allocation15 + $0x188] sm:$0xff]  }
 0x7f2   :  { %15584 = vmatprep.subr.bf16.mxu0 %v18026_v28  ;;  %v12484_v53 = vadd.f32 %v18958_v2, %v12441_v22  ;;  %v12525_v2 = vadd.f32 %v12524_v40, %v10280_v50  ;;  %v12528_v15 = vpop.f32.mrf.mxu0  ;;  %v18065_v22 = vld [vmem:[#allocation15 + $0x110] sm:$0xff]   ;;  %v18068_v40 = vld [vmem:[#allocation15 + $0x140] sm:$0xff]  }
 0x7f3   :  { %v12529_v3 = vadd.f32 %v12528_v15, %v10280_v50  ;;  %v12570_v7 = vadd.f32 %v12569_v63, %v12527_v17  ;;  %v18067_v63 = vld [vmem:[#allocation15 + $0x108] sm:$0xff]   ;;  %v18074_v50 = vld [vmem:[#allocation15 + $0x198] sm:$0xff]  }
 0x7f4   :  { %v13003_v16 = vmax.f32 %v12484_v53, 0.0  ;;  %v12568_v35 = vadd.f32 %v12567_v19, %v12525_v2  ;;  %v18063_v19 = vld [vmem:[#allocation15 + $0x118] sm:$0xff]   ;;  %v18072_v53 = vld [vmem:[#allocation15 + $0x1a8] sm:$0xff]  }
 0x7f5   :  { %15585 = vmatpush3.bf16.msra.mxu0 %v18027_v32  ;;  %v12572_v10 = vadd.f32 %v12571_v0, %v12529_v3  ;;  %v18075_v0 = vld [vmem:[#allocation15 + $0x190] sm:$0xff]  }
 0x7f6   :  { %15586 = vmatprep.subr.bf16.mxu0 %v18028_v52  ;;  %v13010_v25 = vpack.c.bf16 %v13003_v16, %v12996_v4 }
 0x7f9   :  { %15587 = vmatpush3.bf16.msra.mxu0 %v18029_v11  ;;  %v12657_v11 = vpop.f32.mrf.mxu1 }
 0x7fa   :  { %15588 = vmatprep.subr.bf16.mxu0 %v18030_v26 }
 0x7fd   :  { %15589 = vmatpush3.bf16.msra.mxu0 %v18032_v31  ;;  %v18061_v31 = vld [vmem:[#allocation15 + $0x120] sm:$0xff]  }
 0x7fe   :  { %15590 = vmatprep.subr.bf16.mxu0 %v18034_v48 }
 0x801   :  { %15591 = vmatpush3.bf16.msra.mxu0 %v18036_v60 }
 0x802   :  { %15592 = vmatprep.subr.bf16.mxu0 %v18038_v61 }
 0x805   :  { %15593 = vmatpush3.bf16.msra.mxu0 %v18040_v33  ;;  %v18071_v33 = vld [vmem:[#allocation15 + $0x1b0] sm:$0xff]  }
 0x806   :  { %15594 = vmatprep.subr.bf16.mxu0 %v18042_v56  ;;  %v18069_v56 = vld [vmem:[#allocation15 + $0x100] sm:$0xff]  }
 0x809   :  { %15595 = vmatpush3.bf16.msra.mxu0 %v18044_v9  ;;  %v12694_v9 = vpop.f32.mrf.mxu1 }
 0x80a   :  { %15624 = vmatprep.subr.bf16.mxu0 %v18054_v42  ;;  %v18077_v42 = vld [vmem:[#allocation15 + $0x180] sm:$0xff]  }
 0x80b   :  { %v12696_v16 = vpop.f32.mrf.mxu1 }
 0x80c   :  { %v12608_v58 = vpop.f32.mrf.mxu0  ;;  %13505 = vmatmul.mubr.bf16.vlgmr.msra.gmra.mxu0 %v13010_v25 }
 0x80d   :  { %15625 = vmatpush3.bf16.msra.mxu0 %v18055_v34  ;;  %v12609_v27 = vadd.f32 %v12608_v58, %v12566_v8  ;;  %v12698_v54 = vpop.f32.mrf.mxu1 }
 0x80e   :  { %v12610_v20 = vpop.f32.mrf.mxu0  ;;  %15626 = vmatprep.subr.bf16.mxu0 %v18056_v41 }
 0x80f   :  { %v12611_v43 = vadd.f32 %v12610_v20, %v12568_v35  ;;  %v12652_v26 = vadd.f32 %v12651_v38, %v12609_v27  ;;  %v12700_v4 = vpop.f32.mrf.mxu1 }
 0x810   :  { %v12612_v62 = vpop.f32.mrf.mxu0 }
 0x811   :  { %v12613_v51 = vadd.f32 %v12612_v62, %v12570_v7  ;;  %15627 = vmatpush3.bf16.msra.mxu0 %v18057_v5  ;;  %v12654_v28 = vadd.f32 %v12653_v47, %v12611_v43  ;;  %v12998_v60 = vmax.f32 %v12652_v26, 0.0  ;;  %v10288_v5 = vrot.slane %v18952_v6, %v18620_v1 }
 0x812   :  { %v12614_v21 = vpop.f32.mrf.mxu0  ;;  %15628 = vmatprep.subr.bf16.mxu0 %v18058_v24 }
 0x813   :  { %v12656_v32 = vadd.f32 %v12655_v29, %v12613_v51  ;;  %v12615_v52 = vadd.f32 %v12614_v21, %v12572_v10  ;;  %v12999_v48 = vmax.f32 %v12654_v28, 0.0  ;;  %v12697_v20 = vadd.f32 %v12696_v16, %v10288_v5 }
 0x814   :  { %v12701_v27 = vadd.f32 %v12700_v4, %v10288_v5 }
 0x815   :  { %v12658_v39 = vadd.f32 %v12657_v11, %v12615_v52  ;;  %15629 = vmatpush3.bf16.msra.mxu0 %v18059_v18  ;;  %v13005_v12 = vmax.f32 %v12656_v32, 0.0 }
 0x816   :  { %15630 = vmatprep.subr.bf16.mxu0 %v18060_v45 }
 0x817   :  { %v13006_v55 = vmax.f32 %v12658_v39, 0.0  ;;  %v13012_v61 = vpack.c.bf16 %v13005_v12, %v12998_v60 }
 0x819   :  { %v13013_v36 = vpack.c.bf16 %v13006_v55, %v12999_v48  ;;  %15631 = vmatpush3.bf16.msra.mxu0 %v18061_v31 }
 0x81a   :  { %15632 = vmatprep.subr.bf16.mxu0 %v18062_v49 }
 0x81b   :  { %13545 = vmatprep.mubr.bf16.mxu1 %v13013_v36 }
 0x81c   :  { %13546 = vmatmul.mubr.bf16.vlgmr.msra.gmra.mxu1 %v13012_v61 }
 0x81d   :  { %15633 = vmatpush3.bf16.msra.mxu0 %v18063_v19  ;;  %15736 = vmatpush3.bf16.msra.mxu1 %v18070_v14 }
 0x81e   :  { %15634 = vmatprep.subr.bf16.mxu0 %v18064_v44  ;;  %15737 = vmatprep.subr.bf16.mxu1 %v18318_v30 }
 0x81f   :  { %15751 = vmatprep.mubr.msk.bf16.mxu1 %vm18319_vm0, %v18318_v30 }
 0x821   :  { %15635 = vmatpush3.bf16.msra.mxu0 %v18065_v22  ;;  %15738 = vmatpush3.bf16.msra.mxu1 %v18071_v33 }
 0x822   :  { %15636 = vmatprep.subr.bf16.mxu0 %v18066_v59  ;;  %15739 = vmatprep.subr.bf16.mxu1 %v18318_v30 }
 0x825   :  { %15637 = vmatpush3.bf16.msra.mxu0 %v18067_v63  ;;  %15740 = vmatpush3.bf16.msra.mxu1 %v18072_v53  ;;  %v10292_v63 = vrot.slane %v18952_v6, %v18639_v57 }
 0x826   :  { %15638 = vmatprep.subr.bf16.mxu0 %v18068_v40  ;;  %15741 = vmatprep.subr.bf16.mxu1 %v18318_v30 }
 0x829   :  { %15639 = vmatpush3.bf16.msra.mxu0 %v18069_v56  ;;  %15742 = vmatpush3.bf16.msra.mxu1 %v18073_v46  ;;  %v12780_v38 = vpop.f32.mrf.mxu1 }
 0x82a   :  { %15743 = vmatprep.subr.bf16.mxu1 %v18318_v30 }
 0x82b   :  { %v12782_v2 = vpop.f32.mrf.mxu1 }
 0x82d   :  { %15744 = vmatpush3.bf16.msra.mxu1 %v18074_v50  ;;  %v12784_v34 = vpop.f32.mrf.mxu1 }
 0x82e   :  { %15745 = vmatprep.subr.bf16.mxu1 %v18318_v30 }
 0x82f   :  { %v12786_v25 = vpop.f32.mrf.mxu1 }
 0x831   :  { %15746 = vmatpush3.bf16.msra.mxu1 %v18075_v0 }
 0x832   :  { %15747 = vmatprep.subr.bf16.mxu1 %v18318_v30 }
 0x835   :  { %15748 = vmatpush3.bf16.msra.mxu1 %v18076_v13 }
 0x836   :  { %15749 = vmatprep.subr.bf16.mxu1 %v18318_v30  ;;  %v10284_v30 = vrot.slane %v18952_v6, %v18623_v37 }
 0x838   :  { %v12699_v24 = vadd.f32 %v12698_v54, %v10284_v30  ;;  %v12695_v7 = vadd.f32 %v12694_v9, %v10284_v30 }
 0x839   :  { %15750 = vmatpush3.bf16.msra.mxu1 %v18077_v42 }
 0x849   :  { %v15543_v23 = vpop.f32.mrf.mxu1 }
 0x84b   :  { %v15544_v15 = vpop.f32.mrf.mxu1 }
 0x84c   :  { %v15545_v41 = vadd.f32 %v15544_v15, %v15543_v23  ;;  %v12737_v3 = vpop.f32.mrf.mxu0 }
 0x84d   :  { %v15546_v17 = vpop.f32.mrf.mxu1  ;;  %v12738_v18 = vadd.f32 %v12737_v3, %v12695_v7  ;;  %v15223_v7 = vld [vmem:[#allocation16] ss:$0 sm:$0xff] }
 0x84e   :  { %v12739_v35 = vpop.f32.mrf.mxu0 }
 0x84f   :  { %v15547_v47 = vpop.f32.mrf.mxu1  ;;  %v12740_v62 = vadd.f32 %v12739_v35, %v12697_v20  ;;  %v12781_v26 = vadd.f32 %v12780_v38, %v12738_v18 }
 0x850   :  { %v15548_v58 = vadd.f32 %v15547_v47, %v15546_v17  ;;  %v12741_v8 = vpop.f32.mrf.mxu0 }
 0x851   :  { %v12742_v51 = vadd.f32 %v12741_v8, %v12699_v24  ;;  %v12783_v52 = vadd.f32 %v12782_v2, %v12740_v62 }
 0x852   :  { %v12743_v29 = vpop.f32.mrf.mxu0 }
 0x853   :  { %v12744_v45 = vadd.f32 %v12743_v29, %v12701_v27  ;;  %v12785_v11 = vadd.f32 %v12784_v34, %v12742_v51 }
 0x855   :  { %v12787_v12 = vadd.f32 %v12786_v25, %v12744_v45 }
 0x869   :  { %v12989_v43 = vpop.f32.mrf.mxu1 }
 0x86b   :  { %v15733_v10 = vpop.f32.mrf.mxu1 }
 0x86c   :  { %v12823_v21 = vpop.f32.mrf.mxu0 }
 0x86d   :  { %v12992_v28 = vpop.f32.mrf.mxu1  ;;  %v12824_v49 = vadd.f32 %v12823_v21, %v12781_v26 }
 0x86e   :  { %v12825_v32 = vpop.f32.mrf.mxu0 }
 0x86f   :  { %v15734_v1 = vpop.f32.mrf.mxu1  ;;  %v12826_v39 = vadd.f32 %v12825_v32, %v12783_v52  ;;  %v13000_v14 = vmax.f32 %v12824_v49, 0.0 }
 0x870   :  { %v12827_v37 = vpop.f32.mrf.mxu0 }
 0x871   :  { %v12828_v31 = vadd.f32 %v12827_v37, %v12785_v11  ;;  %v13001_v36 = vmax.f32 %v12826_v39, 0.0 }
 0x872   :  { %v12829_v48 = vpop.f32.mrf.mxu0 }
 0x873   :  { %v12830_v55 = vadd.f32 %v12829_v48, %v12787_v12  ;;  %v13007_v60 = vmax.f32 %v12828_v31, 0.0 }
 0x875   :  { %v13008_v19 = vmax.f32 %v12830_v55, 0.0  ;;  %v13014_v44 = vpack.c.bf16 %v13007_v60, %v13000_v14 }
 0x877   :  { %v13015_v61 = vpack.c.bf16 %v13008_v19, %v13001_v36 }
 0x879   :  { %13586 = vmatprep.mubr.bf16.mxu0 %v13015_v61 }
 0x87a   :  { %13587 = vmatmul.mubr.bf16.vlgmr.msra.gmra.mxu0 %v13014_v44 }
 0x88c   :  { %v15521_v22 = vpop.f32.mrf.mxu0 }
 0x88e   :  { %v15522_v33 = vpop.f32.mrf.mxu0 }
 0x88f   :  { %v15523_v53 = vadd.f32 %v15522_v33, %v15521_v22 }
 0x890   :  { %v15524_v59 = vpop.f32.mrf.mxu0 }
 0x891   :  { %v12867_v56 = vadd.f32 %v15523_v53, %v10292_v63 }
 0x892   :  { %v15525_v40 = vpop.f32.mrf.mxu0 }
 0x893   :  { %v15526_v46 = vadd.f32 %v15525_v40, %v15524_v59  ;;  %v12908_v16 = vadd.f32 %v15545_v41, %v12867_v56 }
 0x895   :  { %v12870_v0 = vadd.f32 %v15526_v46, %v10292_v63 }
 0x897   :  { %v12911_v38 = vadd.f32 %v15548_v58, %v12870_v0 }
 0x8ac   :  { %v15565_v50 = vpop.f32.mrf.mxu0 }
 0x8ae   :  { %v15566_v9 = vpop.f32.mrf.mxu0 }
 0x8af   :  { %v15567_v13 = vadd.f32 %v15566_v9, %v15565_v50 }
 0x8b0   :  { %v15568_v54 = vpop.f32.mrf.mxu0 }
 0x8b1   :  { %v12949_v42 = vadd.f32 %v15567_v13, %v12908_v16 }
 0x8b2   :  { %v15569_v4 = vpop.f32.mrf.mxu0 }
 0x8b3   :  { %v15570_v2 = vadd.f32 %v15569_v4, %v15568_v54  ;;  %v12990_v34 = vadd.f32 %v12989_v43, %v12949_v42 }
 0x8b5   :  { %v12952_v25 = vadd.f32 %v15570_v2, %v12911_v38  ;;  %v13002_v15 = vmax.f32 %v12990_v34, 0.0 }
 0x8b7   :  { %v12993_v23 = vadd.f32 %v12992_v28, %v12952_v25 }
 0x8b9   :  { %v13009_v17 = vmax.f32 %v12993_v23, 0.0 }
 0x8bb   :  { %v13016_v57 = vpack.c.bf16 %v13009_v17, %v13002_v15 }
 0x8bd   :  { %15752 = vmatmul.mubr.bf16.vlgmr.msra.gmra.mxu1 %v13016_v57 }
 0x8cc   :  { %v15596_v6 = vpop.f32.mrf.mxu0 }
 0x8ce   :  { %v15597_v47 = vpop.f32.mrf.mxu0 }
 0x8cf   :  { %v15598_v24 = vadd.f32 %v15597_v47, %v15596_v6 }
 0x8d0   :  { %v15599_v3 = vpop.f32.mrf.mxu0 }
 0x8d1   :  { %v13507_v27 = vadd.f32 %v15598_v24, %v15223_v7 }
 0x8d2   :  { %v15600_v35 = vpop.f32.mrf.mxu0 }
 0x8d3   :  { %v15601_v62 = vadd.f32 %v15600_v35, %v15599_v3 }
 0x8d5   :  { %v13510_v45 = vadd.f32 %v15601_v62, %v15223_v7 }
 0x8dc   :  { %v15618_v5 = vpop.f32.mrf.mxu1 }
 0x8de   :  { %v15619_v41 = vpop.f32.mrf.mxu1 }
 0x8df   :  { %v15620_v29 = vadd.f32 %v15619_v41, %v15618_v5 }
 0x8e0   :  { %v15621_v20 = vpop.f32.mrf.mxu1 }
 0x8e1   :  { %v13548_v18 = vadd.f32 %v15620_v29, %v13507_v27 }
 0x8e2   :  { %v15622_v43 = vpop.f32.mrf.mxu1 }
 0x8e3   :  { %v15623_v21 = vadd.f32 %v15622_v43, %v15621_v20 }
 0x8e5   :  { %v13551_v1 = vadd.f32 %v15623_v21, %v13510_v45 }
 0x93a   :  { %v15640_v30 = vpop.f32.mrf.mxu0 }
 0x93c   :  { %v15641_v8 = vpop.f32.mrf.mxu0 }
 0x93d   :  { %v15642_v51 = vadd.f32 %v15641_v8, %v15640_v30 }
 0x93e   :  { %v15643_v58 = vpop.f32.mrf.mxu0 }
 0x93f   :  { %v13589_v32 = vadd.f32 %v15642_v51, %v13548_v18 }
 0x940   :  { %v15644_v10 = vpop.f32.mrf.mxu0 }
 0x941   :  { %v15645_v28 = vadd.f32 %v15644_v10, %v15643_v58 }
 0x943   :  { %v13592_v37 = vadd.f32 %v15645_v28, %v13551_v1 }
 0x97d   :  { %v13629_v52 = vpop.f32.mrf.mxu1 }
 0x97e   :  { %v13630_v11 = vadd.f32 %v13629_v52, %v13589_v32 }
 0x97f   :  { %v15753_v26 = vpop.f32.mrf.mxu1 }
 0x980   :  { %13636 = vst [vmem:[%s19007_s11] sm:$0xff] %v13630_v11 }
 0x981   :  { %v13632_v39 = vpop.f32.mrf.mxu1 }
 0x982   :  { %v13633_v31 = vadd.f32 %v13632_v39, %v13592_v37 }
 0x983   :  { %v15754_v12 = vpop.f32.mrf.mxu1 }
 0x984   :  { %13637 = vst [vmem:[%s19007_s11 + $0x8] sm:$0xff] %v13633_v31 }
 0x985   :  { %13642 = vsyncpa [#allocation3], 1 }
 0x986   :  { %13643 = vsyncpa [#allocation5], 1 }
 0x987   :  { %13644 = vsyncpa [#allocation8], 1 }
 0x988   :  { %13645 = vsyncpa [#allocation11], 1 }
 0x989   :  { %13646 = vsyncpa [#allocation14], 1 }
 0x98a   :  { %13647 = vsyncpa [#allocation17], 1 }

</bundles_post_ra>
